<compile_context>
chip_gen: v6e
topology: v6e:2x2x1
jax: 0.10.0
libtpu: 0.0.40
codegen_flags: <defaults>
</compile_context>

<pallas_src>
import functools

import jax
import jax.numpy as jnp
from jax.experimental import pallas as pl
from jax.experimental.pallas import tpu as pltpu


# ----------------------------------------------------------------------------------
# Kernel 1: fused conv stacks (traffic + od), a block of samples per grid step
# ----------------------------------------------------------------------------------
def _fused_conv_kernel(
    x_ref, od_ref,
    w1_ref, b1_ref, w2_ref, b2_ref, w3_ref, b3_ref,
    wo1_ref, bo1_ref, wo2_ref, bo2_ref,
    feat_ref,
    pad1, pad2, pad3, pod1, pod2,
    *, BN, S, T, F, R, Ti,
):
    T2 = T // 2

    def leaky(v):                                   # LeakyReLU(0.2)
        return jnp.maximum(v, 0.2 * v)

    def conv2d_3x3(pad_ref, interior, w_ref, b, d0, d1, cin):
        # interior: (BN, d0, d1, cin) f32; pad_ref: (BN, d0+2, d1+2, cin) VMEM scratch.
        # Write only the thin halo (not the full scratch): cheaper, and correct even
        # when the "parallel" grid axis is split across TensorCores.
        zr = jnp.zeros((BN, 1, d1 + 2, cin), jnp.float32)
        pad_ref[:, 0:1, :, :] = zr
        pad_ref[:, d0 + 1:d0 + 2, :, :] = zr
        zc = jnp.zeros((BN, d0 + 2, 1, cin), jnp.float32)
        pad_ref[:, :, 0:1, :] = zc
        pad_ref[:, :, d1 + 1:d1 + 2, :] = zc
        pad_ref[:, 1:d0 + 1, 1:d1 + 1, :] = interior
        # im2col: build the (BN*d0*d1, 9*cin) slab once, cast once, one deep-K MXU dot.
        taps = []
        for k0 in range(3):            # tap along d0 (space)
            for k1 in range(3):        # tap along d1 (time)
                taps.append(pad_ref[:, k0:k0 + d0, k1:k1 + d1, :])
        slab = jnp.concatenate(taps, axis=-1)                       # (BN, d0, d1, 9*cin)
        slab = slab.reshape(BN * d0 * d1, 9 * cin).astype(jnp.bfloat16)
        out = jnp.dot(slab, w_ref[...], preferred_element_type=jnp.float32)
        return leaky(out + b)                                        # (BN*d0*d1, cout) f32

    def conv1d_3(pad_ref, interior, w_ref, b, cin):
        # interior: (BN, Ti, cin) f32; pad_ref: (BN, Ti+2, cin) VMEM scratch.
        zt = jnp.zeros((BN, 1, cin), jnp.float32)
        pad_ref[:, 0:1, :] = zt
        pad_ref[:, Ti + 1:Ti + 2, :] = zt
        pad_ref[:, 1:Ti + 1, :] = interior
        taps = [pad_ref[:, k:k + Ti, :] for k in range(3)]
        slab = jnp.concatenate(taps, axis=-1)                        # (BN, Ti, 3*cin)
        slab = slab.reshape(BN * Ti, 3 * cin).astype(jnp.bfloat16)
        out = jnp.dot(slab, w_ref[...], preferred_element_type=jnp.float32)
        return leaky(out + b)                                        # (BN*Ti, cout)

    # ---------------- traffic branch: native (space, time) grid ----------------
    x = x_ref[...]                                                   # (BN, S, T, F) f32
    h1 = conv2d_3x3(pad1, x, w1_ref, b1_ref[...], S, T, F)           # (BN*S*T, 32)
    h2 = conv2d_3x3(pad2, h1.reshape(BN, S, T, 32), w2_ref, b2_ref[...], S, T, 32)

    # MaxPool3d((1,2,1)): pool the time axis by 2 (floor), like PyTorch.
    h2v = h2.reshape(BN, S, T, 64)[:, :, :2 * T2, :]
    h2p = jnp.max(h2v.reshape(BN, S, T2, 2, 64), axis=3)             # (BN, S, T2, 64)

    h3 = conv2d_3x3(pad3, h2p, w3_ref, b3_ref[...], S, T2, 64)       # (BN*S*T2, 128)

    # ---------------- od branch (spectral norm folded into weights at prep) -----
    g = od_ref[...]                                                  # (BN, Ti, R) f32
    g1 = conv1d_3(pod1, g, wo1_ref, bo1_ref[...], R)                 # (BN*Ti, 32)
    g2 = conv1d_3(pod2, g1.reshape(BN, Ti, 32), wo2_ref, bo2_ref[...], 32)  # (BN*Ti, 64)

    # Lane-dense combined output: traffic rows then od rows zero-padded 64 -> 128 ch.
    g2p = jnp.concatenate([g2, jnp.zeros((BN * Ti, 64), jnp.float32)], axis=-1)
    feat = jnp.concatenate([h3.reshape(BN, S * T2, 128),
                            g2p.reshape(BN, Ti, 128)], axis=1)       # (BN, S*T2+Ti, 128)
    feat_ref[...] = feat.astype(feat_ref.dtype)


def _pick_block_n(n):
    # Largest block <= 8 that divides n while leaving >= 2 grid steps
    # (keeps both v7x TensorCores busy); fall back to a single full-batch step.
    best = 0
    for cand in range(1, min(8, n) + 1):
        if n % cand == 0 and n // cand >= 2:
            best = cand
    return best if best > 0 else n


def fused_conv_stack(traffic, od_t, p):
    N, S, T, F = traffic.shape
    _, Ti, R = od_t.shape
    T2 = T // 2
    BN = _pick_block_n(N)
    steps = N // BN
    rows = S * T2 + Ti
    kernel = functools.partial(_fused_conv_kernel, BN=BN, S=S, T=T, F=F, R=R, Ti=Ti)
    return pl.pallas_call(
        kernel,
        out_shape=jax.ShapeDtypeStruct((N, rows, 128), jnp.bfloat16),
        grid=(steps,),
        in_specs=[
            pl.BlockSpec((BN, S, T, F), lambda n: (n, 0, 0, 0)),
            pl.BlockSpec((BN, Ti, R), lambda n: (n, 0, 0)),
            pl.BlockSpec((9 * F, 32), lambda n: (0, 0)),
            pl.BlockSpec((1, 32), lambda n: (0, 0)),
            pl.BlockSpec((9 * 32, 64), lambda n: (0, 0)),
            pl.BlockSpec((1, 64), lambda n: (0, 0)),
            pl.BlockSpec((9 * 64, 128), lambda n: (0, 0)),
            pl.BlockSpec((1, 128), lambda n: (0, 0)),
            pl.BlockSpec((3 * R, 32), lambda n: (0, 0)),
            pl.BlockSpec((1, 32), lambda n: (0, 0)),
            pl.BlockSpec((3 * 32, 64), lambda n: (0, 0)),
            pl.BlockSpec((1, 64), lambda n: (0, 0)),
        ],
        out_specs=pl.BlockSpec((BN, rows, 128), lambda n: (n, 0, 0)),
        scratch_shapes=[
            pltpu.VMEM((BN, S + 2, T + 2, F), jnp.float32),
            pltpu.VMEM((BN, S + 2, T + 2, 32), jnp.float32),
            pltpu.VMEM((BN, S + 2, T2 + 2, 64), jnp.float32),
            pltpu.VMEM((BN, Ti + 2, R), jnp.float32),
            pltpu.VMEM((BN, Ti + 2, 32), jnp.float32),
        ],
        compiler_params=pltpu.CompilerParams(
            dimension_semantics=("parallel",),
            # Explicit headroom for larger batch blocks; still well within the
            # v7x 64 MiB physical budget (v5e/v6e have 128 MiB).
            vmem_limit_bytes=32 * 1024 * 1024),
    )(traffic, od_t,
      p["tc1_w"], p["tc1_b"], p["tc2_w"], p["tc2_b"], p["tc3_w"], p["tc3_b"],
      p["od1_w"], p["od1_b"], p["od2_w"], p["od2_b"])


# ----------------------------------------------------------------------------------
# Kernel 2: fused fc head (fc1 + LeakyReLU [+ Dropout eval] + fc2)
# ----------------------------------------------------------------------------------
def _fc_head_single_kernel(tf_ref, w1_ref, b1_ref, w2_ref, b2_ref, out_ref):
    z = jnp.dot(tf_ref[...], w1_ref[...], preferred_element_type=jnp.float32)
    z = z + b1_ref[...]
    z = jnp.maximum(z, 0.2 * z)                    # LeakyReLU(0.2)
    # TODO(synk): nn.Dropout(0.5) implemented with eval-mode semantics (identity).
    # fc2 as VPU multiply + lane reduction (avoids a degenerate (64,1) MXU pass).
    out_ref[...] = jnp.sum(z * w2_ref[...], axis=-1, keepdims=True) + b2_ref[...]


def _fc_head_tiled_kernel(tf_ref, w1_ref, b1_ref, w2_ref, b2_ref, out_ref, acc_ref):
    k = pl.program_id(0)

    @pl.when(k == 0)
    def _():
        acc_ref[...] = jnp.zeros_like(acc_ref)

    acc_ref[...] = acc_ref[...] + jnp.dot(tf_ref[...], w1_ref[...],
                                          preferred_element_type=jnp.float32)

    @pl.when(k == pl.num_programs(0) - 1)
    def _():
        z = acc_ref[...] + b1_ref[...]
        z = jnp.maximum(z, 0.2 * z)
        out_ref[...] = jnp.sum(z * w2_ref[...], axis=-1, keepdims=True) + b2_ref[...]


def _pick_tile_k(K, h, budget_bytes=4 << 20):
    budget = max(128, budget_bytes // (2 * h))
    best = K
    for cand in range(128, K, 128):
        if K % cand == 0 and cand <= budget:
            best = cand
    return best


def fc_head(tf, w1, b1, w2row, b2):
    n, K = tf.shape
    h = w1.shape[1]
    w1_bytes = K * h * 2                              # bf16 weight
    if w1_bytes <= (8 << 20):
        # fc1 weight comfortably fits VMEM (~1 MiB here): single step, no K grid,
        # no accumulator scratch, no epilogue branching.
        return pl.pallas_call(
            _fc_head_single_kernel,
            out_shape=jax.ShapeDtypeStruct((n, 1), jnp.float32),
            grid=(1,),
            in_specs=[
                pl.BlockSpec((n, K), lambda k: (0, 0)),
                pl.BlockSpec((K, h), lambda k: (0, 0)),
                pl.BlockSpec((1, h), lambda k: (0, 0)),
                pl.BlockSpec((1, h), lambda k: (0, 0)),
                pl.BlockSpec((1, 1), lambda k: (0, 0)),
            ],
            out_specs=pl.BlockSpec((n, 1), lambda k: (0, 0)),
            compiler_params=pltpu.CompilerParams(
                dimension_semantics=("arbitrary",)),
        )(tf, w1, b1, w2row, b2)

    # Fallback: very large fc1 — stream the weight through a K-tiled "arbitrary" axis.
    tile_k = _pick_tile_k(K, h)
    steps = K // tile_k
    return pl.pallas_call(
        _fc_head_tiled_kernel,
        out_shape=jax.ShapeDtypeStruct((n, 1), jnp.float32),
        grid=(steps,),
        in_specs=[
            pl.BlockSpec((n, tile_k), lambda k: (0, k)),
            pl.BlockSpec((tile_k, h), lambda k: (k, 0)),
            pl.BlockSpec((1, h), lambda k: (0, 0)),
            pl.BlockSpec((1, h), lambda k: (0, 0)),
            pl.BlockSpec((1, 1), lambda k: (0, 0)),
        ],
        out_specs=pl.BlockSpec((n, 1), lambda k: (0, 0)),
        scratch_shapes=[pltpu.VMEM((n, h), jnp.float32)],
        compiler_params=pltpu.CompilerParams(
            dimension_semantics=("arbitrary",)),
    )(tf, w1, b1, w2row, b2)


# ----------------------------------------------------------------------------------
# Parameter preprocessing (hoisted out of the forward; run once per parameter update)
# ----------------------------------------------------------------------------------
def spectral_normalize(w, n_iter=10):
    # TODO(synk): PyTorch spectral_norm does 1 power iteration with persistent u/v
    # buffers; here sigma is re-derived deterministically at parameter-prep time.
    cout = w.shape[0]
    wm = w.reshape(cout, -1)
    v = jnp.ones((wm.shape[1],), jnp.float32) / jnp.sqrt(float(wm.shape[1]))
    u = jnp.ones((cout,), jnp.float32) / jnp.sqrt(float(cout))
    for _ in range(n_iter):
        u = wm @ v
        u = u / (jnp.linalg.norm(u) + 1e-12)
        v = wm.T @ u
        v = v / (jnp.linalg.norm(v) + 1e-12)
    sigma = u @ (wm @ v)
    return w / sigma


def prepare_params(raw, *, space, time, time_intervals):
    t2 = time // 2

    def c3d(w):
        # (Cout, Cin, kD=space, kH=time, kW): with W=1 and padding=1, only the kW=1
        # centre slice ever touches data -> a 3x3 conv over (space, time).
        # Reorder to im2col layout (kD, kH, Cin, Cout) and flatten to (9*Cin, Cout).
        w = w[:, :, :, :, 1].transpose(2, 3, 1, 0)
        return w.reshape(-1, w.shape[-1]).astype(jnp.bfloat16)

    def c1d(w):
        # (Cout, Cin, 3) -> (k, Cin, Cout) -> (3*Cin, Cout)
        w = w.transpose(2, 1, 0)
        return w.reshape(-1, w.shape[-1]).astype(jnp.bfloat16)

    def bias(b):
        return b.reshape(1, -1).astype(jnp.float32)

    # fc1 rows are permuted to the kernel's feature layout:
    #   traffic rows (s, t, c) for the (space, time2, 128) conv3 output, then
    #   od rows (t, c_pad) with channels zero-padded 64 -> 128 (lane-dense output).
    # NOTE(synk): raw fc1_w is stored (in_features, out_features); transpose first
    # when importing a PyTorch nn.Linear checkpoint (which stores (out, in)).
    kt = 128 * space * t2
    w_fc1 = raw["fc1_w"].astype(jnp.float32)
    wt = w_fc1[:kt].reshape(128, space, t2, 64).transpose(1, 2, 0, 3)
    wt = wt.reshape(space * t2 * 128, 64)
    wo = w_fc1[kt:].reshape(64, time_intervals, 64).transpose(1, 0, 2)      # (t, c, out)
    wo = jnp.pad(wo, ((0, 0), (0, 64), (0, 0)))                             # pad c -> 128
    wo = wo.reshape(time_intervals * 128, 64)
    w1 = jnp.concatenate([wt, wo], axis=0).astype(jnp.bfloat16)

    od1 = spectral_normalize(raw["od1_w"])
    od2 = spectral_normalize(raw["od2_w"])

    return {
        "tc1_w": c3d(raw["tc1_w"]), "tc1_b": bias(raw["tc1_b"]),
        "tc2_w": c3d(raw["tc2_w"]), "tc2_b": bias(raw["tc2_b"]),
        "tc3_w": c3d(raw["tc3_w"]), "tc3_b": bias(raw["tc3_b"]),
        "od1_w": c1d(od1), "od1_b": bias(raw["od1_b"]),
        "od2_w": c1d(od2), "od2_b": bias(raw["od2_b"]),
        "fc1_w": w1, "fc1_b": bias(raw["fc1_b"]),
        "fc2_w": raw["fc2_w"].reshape(1, -1).astype(jnp.float32),           # (1, 64)
        "fc2_b": raw["fc2_b"].reshape(1, 1).astype(jnp.float32),
    }


def init_params(key, features, space, time, routes, time_intervals):
    ks = jax.random.split(key, 14)

    def norm(k, shape, scale=0.05):
        return scale * jax.random.normal(k, shape, dtype=jnp.float32)

    traffic_out = 128 * space * (time // 2) * 1      # Conv3d stack + MaxPool3d((1,2,1))
    od_out = 64 * time_intervals
    return {
        "tc1_w": norm(ks[0], (32, features, 3, 3, 3)), "tc1_b": norm(ks[1], (32,)),
        "tc2_w": norm(ks[2], (64, 32, 3, 3, 3)),       "tc2_b": norm(ks[3], (64,)),
        "tc3_w": norm(ks[4], (128, 64, 3, 3, 3)),      "tc3_b": norm(ks[5], (128,)),
        "od1_w": norm(ks[6], (32, routes, 3)),         "od1_b": norm(ks[7], (32,)),
        "od2_w": norm(ks[8], (64, 32, 3)),             "od2_b": norm(ks[9], (64,)),
        "fc1_w": norm(ks[10], (traffic_out + od_out, 64), scale=0.02),
        "fc1_b": norm(ks[11], (64,)),
        "fc2_w": norm(ks[12], (64, 1)),                "fc2_b": norm(ks[13], (1,)),
    }


# ----------------------------------------------------------------------------------
# Forward pass
# ----------------------------------------------------------------------------------
@jax.jit
def discriminator_forward(prep, traffic, od):
    N, S, T, F = traffic.shape
    _, R, Ti = od.shape
    T2 = T // 2

    # Traffic is consumed directly in its native (N, space, time, features) layout
    # (no HBM transpose pass); the kernel swaps the roles of space/time internally.
    # The od transpose is N*R*Ti elements — negligible HBM traffic.
    od_t = jnp.transpose(od, (0, 2, 1)).astype(jnp.float32)                 # (N, Ti, R)

    feat = fused_conv_stack(traffic.astype(jnp.float32), od_t, prep)        # (N, S*T2+Ti, 128) bf16
    tf = feat.reshape(N, (S * T2 + Ti) * 128)        # contiguous merge, matches fc1 rows
    return fc_head(tf, prep["fc1_w"], prep["fc1_b"], prep["fc2_w"], prep["fc2_b"])


# ----------------------------------------------------------------------------------
if __name__ == "__main__":
    key = jax.random.PRNGKey(0)
    k_traffic, k_od, k_param = jax.random.split(key, 3)

    # traffic_shape = (num_samples, space, time, features); od_shape = (num_samples, routes, time_intervals)
    N, S, T, F = 2, 16, 8, 4
    R, Ti = 4, 8

    traffic = jax.random.normal(k_traffic, (N, S, T, F), dtype=jnp.float32)
    od = jax.random.normal(k_od, (N, R, Ti), dtype=jnp.float32)

    raw_params = init_params(k_param, F, S, T, R, Ti)
    prep = prepare_params(raw_params, space=S, time=T, time_intervals=Ti)   # once per update

    out = discriminator_forward(prep, traffic, od)
    out = jax.block_until_ready(out)
    assert out.shape == (N, 1), out.shape
    assert bool(jnp.all(jnp.isfinite(out)))
    print("KERNEL_OK")
</pallas_src>

<mosaic_0001>
module attributes {stable_mosaic.version = 11 : i64} {
  func.func @_fc_head_single_kernel(%arg0: i32, %arg1: memref<2x9216xbf16, #tpu.memory_space<vmem>>, %arg2: memref<9216x64xbf16, #tpu.memory_space<vmem>>, %arg3: memref<1x64xf32, #tpu.memory_space<vmem>>, %arg4: memref<1x64xf32, #tpu.memory_space<vmem>>, %arg5: memref<1x1xf32, #tpu.memory_space<vmem>>, %arg6: memref<2x1xf32, #tpu.memory_space<vmem>>) attributes {dimension_semantics = [#tpu.dimension_semantics<arbitrary>], iteration_bounds = array<i64: 1>, scalar_prefetch = 0 : i64, scratch_operands = 0 : i64, tpu.core_type = #tpu.core_type<tc>, window_params = [{pipeline_mode = #tpu.pipeline_mode<synchronous>, transform_indices = @transform_0, window_bounds = array<i64: 2, 9216>}, {pipeline_mode = #tpu.pipeline_mode<synchronous>, transform_indices = @transform_1, window_bounds = array<i64: 9216, 64>}, {pipeline_mode = #tpu.pipeline_mode<synchronous>, transform_indices = @transform_2, window_bounds = array<i64: 1, 64>}, {pipeline_mode = #tpu.pipeline_mode<synchronous>, transform_indices = @transform_3, window_bounds = array<i64: 1, 64>}, {pipeline_mode = #tpu.pipeline_mode<synchronous>, transform_indices = @transform_4, window_bounds = array<i64: 1, 1>}, {pipeline_mode = #tpu.pipeline_mode<synchronous>, transform_indices = @transform_5, window_bounds = array<i64: 2, 1>}]} {
    %c0 = arith.constant 0 : index
    %c0_0 = arith.constant 0 : index
    %0 = vector.load %arg1[%c0, %c0_0] : memref<2x9216xbf16, #tpu.memory_space<vmem>>, vector<2x9216xbf16>
    %c0_1 = arith.constant 0 : index
    %c0_2 = arith.constant 0 : index
    %1 = vector.load %arg2[%c0_1, %c0_2] : memref<9216x64xbf16, #tpu.memory_space<vmem>>, vector<9216x64xbf16>
    %cst = arith.constant dense<0.000000e+00> : vector<2x64xf32>
    %2 = tpu.matmul %0, %1, %cst {dimension_numbers = #tpu.dot_dimension_numbers<[1], [0], [0], [1], [0, 0, 1, 1], [], []>} : vector<2x9216xbf16>, vector<9216x64xbf16>, vector<2x64xf32> -> vector<2x64xf32>
    %c0_3 = arith.constant 0 : index
    %c0_4 = arith.constant 0 : index
    %3 = vector.load %arg3[%c0_3, %c0_4] : memref<1x64xf32, #tpu.memory_space<vmem>>, vector<1x64xf32>
    %4 = vector.broadcast %3 : vector<1x64xf32> to vector<2x64xf32>
    %5 = arith.addf %2, %4 : vector<2x64xf32>
    %cst_5 = arith.constant 2.000000e-01 : f32
    %6 = vector.broadcast %cst_5 : f32 to vector<2x64xf32>
    %7 = arith.mulf %6, %5 : vector<2x64xf32>
    %8 = arith.maximumf %5, %7 : vector<2x64xf32>
    %c0_6 = arith.constant 0 : index
    %c0_7 = arith.constant 0 : index
    %9 = vector.load %arg4[%c0_6, %c0_7] : memref<1x64xf32, #tpu.memory_space<vmem>>, vector<1x64xf32>
    %10 = vector.broadcast %9 : vector<1x64xf32> to vector<2x64xf32>
    %11 = arith.mulf %8, %10 : vector<2x64xf32>
    %cst_8 = arith.constant dense<0.000000e+00> : vector<2xf32>
    %12 = vector.multi_reduction <add>, %11, %cst_8 [1] : vector<2x64xf32> to vector<2xf32>
    %13 = vector.shape_cast %12 : vector<2xf32> to vector<2x1xf32>
    %c0_9 = arith.constant 0 : index
    %c0_10 = arith.constant 0 : index
    %14 = vector.load %arg5[%c0_9, %c0_10] : memref<1x1xf32, #tpu.memory_space<vmem>>, vector<1x1xf32>
    %15 = vector.broadcast %14 : vector<1x1xf32> to vector<2x1xf32>
    %16 = arith.addf %13, %15 : vector<2x1xf32>
    %c0_11 = arith.constant 0 : index
    %c0_12 = arith.constant 0 : index
    %17 = vector.load %arg6[%c0_11, %c0_12] : memref<2x1xf32, #tpu.memory_space<vmem>>, vector<2x1xf32>
    tpu.vector_store %arg6[%c0_11, %c0_12], %16 {strides = array<i32>} : memref<2x1xf32, #tpu.memory_space<vmem>>, vector<2x1xf32>,
    return
  }
  func.func @transform_0(%arg0: i32) -> (i32, i32) {
    %c0_i32 = arith.constant 0 : i32
    %c0_i32_0 = arith.constant 0 : i32
    %c0_i32_1 = arith.constant 0 : i32
    return %c0_i32, %c0_i32_0 : i32, i32
  }
  func.func @transform_1(%arg0: i32) -> (i32, i32) {
    %c0_i32 = arith.constant 0 : i32
    %c0_i32_0 = arith.constant 0 : i32
    %c0_i32_1 = arith.constant 0 : i32
    return %c0_i32, %c0_i32_0 : i32, i32
  }
  func.func @transform_2(%arg0: i32) -> (i32, i32) {
    %c0_i32 = arith.constant 0 : i32
    %c0_i32_0 = arith.constant 0 : i32
    %c0_i32_1 = arith.constant 0 : i32
    return %c0_i32, %c0_i32_0 : i32, i32
  }
  func.func @transform_3(%arg0: i32) -> (i32, i32) {
    %c0_i32 = arith.constant 0 : i32
    %c0_i32_0 = arith.constant 0 : i32
    %c0_i32_1 = arith.constant 0 : i32
    return %c0_i32, %c0_i32_0 : i32, i32
  }
  func.func @transform_4(%arg0: i32) -> (i32, i32) {
    %c0_i32 = arith.constant 0 : i32
    %c0_i32_0 = arith.constant 0 : i32
    %c0_i32_1 = arith.constant 0 : i32
    return %c0_i32, %c0_i32_0 : i32, i32
  }
  func.func @transform_5(%arg0: i32) -> (i32, i32) {
    %c0_i32 = arith.constant 0 : i32
    %c0_i32_0 = arith.constant 0 : i32
    %c0_i32_1 = arith.constant 0 : i32
    return %c0_i32, %c0_i32_0 : i32, i32
  }
}

module attributes {stable_mosaic.version = 11 : i64} {
  func.func @_fused_conv_kernel(%arg0: i32, %arg1: memref<1x16x8x4xf32, #tpu.memory_space<vmem>>, %arg2: memref<1x8x4xf32, #tpu.memory_space<vmem>>, %arg3: memref<36x32xbf16, #tpu.memory_space<vmem>>, %arg4: memref<1x32xf32, #tpu.memory_space<vmem>>, %arg5: memref<288x64xbf16, #tpu.memory_space<vmem>>, %arg6: memref<1x64xf32, #tpu.memory_space<vmem>>, %arg7: memref<576x128xbf16, #tpu.memory_space<vmem>>, %arg8: memref<1x128xf32, #tpu.memory_space<vmem>>, %arg9: memref<12x32xbf16, #tpu.memory_space<vmem>>, %arg10: memref<1x32xf32, #tpu.memory_space<vmem>>, %arg11: memref<96x64xbf16, #tpu.memory_space<vmem>>, %arg12: memref<1x64xf32, #tpu.memory_space<vmem>>, %arg13: memref<1x72x128xbf16, #tpu.memory_space<vmem>>, %arg14: memref<1x18x10x4xf32, #tpu.memory_space<vmem>>, %arg15: memref<1x18x10x32xf32, #tpu.memory_space<vmem>>, %arg16: memref<1x18x6x64xf32, #tpu.memory_space<vmem>>, %arg17: memref<1x10x4xf32, #tpu.memory_space<vmem>>, %arg18: memref<1x10x32xf32, #tpu.memory_space<vmem>>) attributes {dimension_semantics = [#tpu.dimension_semantics<parallel>], iteration_bounds = array<i64: 2>, scalar_prefetch = 0 : i64, scratch_operands = 5 : i64, tpu.core_type = #tpu.core_type<tc>, window_params = [{transform_indices = @transform_0, window_bounds = array<i64: 1, 16, 8, 4>}, {transform_indices = @transform_1, window_bounds = array<i64: 1, 8, 4>}, {pipeline_mode = #tpu.pipeline_mode<synchronous>, transform_indices = @transform_2, window_bounds = array<i64: 36, 32>}, {pipeline_mode = #tpu.pipeline_mode<synchronous>, transform_indices = @transform_3, window_bounds = array<i64: 1, 32>}, {pipeline_mode = #tpu.pipeline_mode<synchronous>, transform_indices = @transform_4, window_bounds = array<i64: 288, 64>}, {pipeline_mode = #tpu.pipeline_mode<synchronous>, transform_indices = @transform_5, window_bounds = array<i64: 1, 64>}, {pipeline_mode = #tpu.pipeline_mode<synchronous>, transform_indices = @transform_6, window_bounds = array<i64: 576, 128>}, {pipeline_mode = #tpu.pipeline_mode<synchronous>, transform_indices = @transform_7, window_bounds = array<i64: 1, 128>}, {pipeline_mode = #tpu.pipeline_mode<synchronous>, transform_indices = @transform_8, window_bounds = array<i64: 12, 32>}, {pipeline_mode = #tpu.pipeline_mode<synchronous>, transform_indices = @transform_9, window_bounds = array<i64: 1, 32>}, {pipeline_mode = #tpu.pipeline_mode<synchronous>, transform_indices = @transform_10, window_bounds = array<i64: 96, 64>}, {pipeline_mode = #tpu.pipeline_mode<synchronous>, transform_indices = @transform_11, window_bounds = array<i64: 1, 64>}, {transform_indices = @transform_12, window_bounds = array<i64: 1, 72, 128>}]} {
    %c0 = arith.constant 0 : index
    %c0_0 = arith.constant 0 : index
    %c0_1 = arith.constant 0 : index
    %c0_2 = arith.constant 0 : index
    %0 = vector.load %arg1[%c0, %c0_0, %c0_1, %c0_2] : memref<1x16x8x4xf32, #tpu.memory_space<vmem>>, vector<1x16x8x4xf32>
    %c0_3 = arith.constant 0 : index
    %c0_4 = arith.constant 0 : index
    %1 = vector.load %arg4[%c0_3, %c0_4] : memref<1x32xf32, #tpu.memory_space<vmem>>, vector<1x32xf32>
    %cst = arith.constant 0.000000e+00 : f32
    %2 = vector.broadcast %cst : f32 to vector<1x1x10x4xf32>
    %c0_5 = arith.constant 0 : index
    %c0_6 = arith.constant 0 : index
    %c0_7 = arith.constant 0 : index
    %c0_8 = arith.constant 0 : index
    %3 = vector.load %arg14[%c0_5, %c0_6, %c0_7, %c0_8] : memref<1x18x10x4xf32, #tpu.memory_space<vmem>>, vector<1x1x10x4xf32>
    tpu.vector_store %arg14[%c0_5, %c0_6, %c0_7, %c0_8], %2 {strides = array<i32>} : memref<1x18x10x4xf32, #tpu.memory_space<vmem>>, vector<1x1x10x4xf32>,
    %c0_9 = arith.constant 0 : index
    %c17 = arith.constant 17 : index
    %c0_10 = arith.constant 0 : index
    %c0_11 = arith.constant 0 : index
    %4 = vector.load %arg14[%c0_9, %c17, %c0_10, %c0_11] : memref<1x18x10x4xf32, #tpu.memory_space<vmem>>, vector<1x1x10x4xf32>
    tpu.vector_store %arg14[%c0_9, %c17, %c0_10, %c0_11], %2 {strides = array<i32>} : memref<1x18x10x4xf32, #tpu.memory_space<vmem>>, vector<1x1x10x4xf32>,
    %cst_12 = arith.constant 0.000000e+00 : f32
    %5 = vector.broadcast %cst_12 : f32 to vector<1x18x1x4xf32>
    %c0_13 = arith.constant 0 : index
    %c0_14 = arith.constant 0 : index
    %c0_15 = arith.constant 0 : index
    %c0_16 = arith.constant 0 : index
    %6 = vector.load %arg14[%c0_13, %c0_14, %c0_15, %c0_16] : memref<1x18x10x4xf32, #tpu.memory_space<vmem>>, vector<1x18x1x4xf32>
    tpu.vector_store %arg14[%c0_13, %c0_14, %c0_15, %c0_16], %5 {strides = array<i32>} : memref<1x18x10x4xf32, #tpu.memory_space<vmem>>, vector<1x18x1x4xf32>,
    %c0_17 = arith.constant 0 : index
    %c0_18 = arith.constant 0 : index
    %c9 = arith.constant 9 : index
    %c0_19 = arith.constant 0 : index
    %7 = vector.load %arg14[%c0_17, %c0_18, %c9, %c0_19] : memref<1x18x10x4xf32, #tpu.memory_space<vmem>>, vector<1x18x1x4xf32>
    tpu.vector_store %arg14[%c0_17, %c0_18, %c9, %c0_19], %5 {strides = array<i32>} : memref<1x18x10x4xf32, #tpu.memory_space<vmem>>, vector<1x18x1x4xf32>,
    %c0_20 = arith.constant 0 : index
    %c1 = arith.constant 1 : index
    %c1_21 = arith.constant 1 : index
    %c0_22 = arith.constant 0 : index
    %8 = vector.load %arg14[%c0_20, %c1, %c1_21, %c0_22] : memref<1x18x10x4xf32, #tpu.memory_space<vmem>>, vector<1x16x8x4xf32>
    tpu.vector_store %arg14[%c0_20, %c1, %c1_21, %c0_22], %0 {strides = array<i32>} : memref<1x18x10x4xf32, #tpu.memory_space<vmem>>, vector<1x16x8x4xf32>,
    %c0_23 = arith.constant 0 : index
    %c0_24 = arith.constant 0 : index
    %c0_25 = arith.constant 0 : index
    %c0_26 = arith.constant 0 : index
    %9 = vector.load %arg14[%c0_23, %c0_24, %c0_25, %c0_26] : memref<1x18x10x4xf32, #tpu.memory_space<vmem>>, vector<1x16x8x4xf32>
    %c0_27 = arith.constant 0 : index
    %c0_28 = arith.constant 0 : index
    %c1_29 = arith.constant 1 : index
    %c0_30 = arith.constant 0 : index
    %10 = vector.load %arg14[%c0_27, %c0_28, %c1_29, %c0_30] : memref<1x18x10x4xf32, #tpu.memory_space<vmem>>, vector<1x16x8x4xf32>
    %c0_31 = arith.constant 0 : index
    %c0_32 = arith.constant 0 : index
    %c2 = arith.constant 2 : index
    %c0_33 = arith.constant 0 : index
    %11 = vector.load %arg14[%c0_31, %c0_32, %c2, %c0_33] : memref<1x18x10x4xf32, #tpu.memory_space<vmem>>, vector<1x16x8x4xf32>
    %c0_34 = arith.constant 0 : index
    %c1_35 = arith.constant 1 : index
    %c0_36 = arith.constant 0 : index
    %c0_37 = arith.constant 0 : index
    %12 = vector.load %arg14[%c0_34, %c1_35, %c0_36, %c0_37] : memref<1x18x10x4xf32, #tpu.memory_space<vmem>>, vector<1x16x8x4xf32>
    %c0_38 = arith.constant 0 : index
    %c1_39 = arith.constant 1 : index
    %c1_40 = arith.constant 1 : index
    %c0_41 = arith.constant 0 : index
    %13 = vector.load %arg14[%c0_38, %c1_39, %c1_40, %c0_41] : memref<1x18x10x4xf32, #tpu.memory_space<vmem>>, vector<1x16x8x4xf32>
    %c0_42 = arith.constant 0 : index
    %c1_43 = arith.constant 1 : index
    %c2_44 = arith.constant 2 : index
    %c0_45 = arith.constant 0 : index
    %14 = vector.load %arg14[%c0_42, %c1_43, %c2_44, %c0_45] : memref<1x18x10x4xf32, #tpu.memory_space<vmem>>, vector<1x16x8x4xf32>
    %c0_46 = arith.constant 0 : index
    %c2_47 = arith.constant 2 : index
    %c0_48 = arith.constant 0 : index
    %c0_49 = arith.constant 0 : index
    %15 = vector.load %arg14[%c0_46, %c2_47, %c0_48, %c0_49] : memref<1x18x10x4xf32, #tpu.memory_space<vmem>>, vector<1x16x8x4xf32>
    %c0_50 = arith.constant 0 : index
    %c2_51 = arith.constant 2 : index
    %c1_52 = arith.constant 1 : index
    %c0_53 = arith.constant 0 : index
    %16 = vector.load %arg14[%c0_50, %c2_51, %c1_52, %c0_53] : memref<1x18x10x4xf32, #tpu.memory_space<vmem>>, vector<1x16x8x4xf32>
    %c0_54 = arith.constant 0 : index
    %c2_55 = arith.constant 2 : index
    %c2_56 = arith.constant 2 : index
    %c0_57 = arith.constant 0 : index
    %17 = vector.load %arg14[%c0_54, %c2_55, %c2_56, %c0_57] : memref<1x18x10x4xf32, #tpu.memory_space<vmem>>, vector<1x16x8x4xf32>
    %18 = tpu.concatenate %9, %10, %11, %12, %13, %14, %15, %16, %17 in 3 : vector<1x16x8x4xf32>, vector<1x16x8x4xf32>, vector<1x16x8x4xf32>, vector<1x16x8x4xf32>, vector<1x16x8x4xf32>, vector<1x16x8x4xf32>, vector<1x16x8x4xf32>, vector<1x16x8x4xf32>, vector<1x16x8x4xf32> -> vector<1x16x8x36xf32>
    %19 = vector.shape_cast %18 : vector<1x16x8x36xf32> to vector<128x36xf32>
    %20 = arith.truncf %19 : vector<128x36xf32> to vector<128x36xbf16>
    %c0_58 = arith.constant 0 : index
    %c0_59 = arith.constant 0 : index
    %21 = vector.load %arg3[%c0_58, %c0_59] : memref<36x32xbf16, #tpu.memory_space<vmem>>, vector<36x32xbf16>
    %cst_60 = arith.constant dense<0.000000e+00> : vector<128x32xf32>
    %22 = tpu.matmul %20, %21, %cst_60 {dimension_numbers = #tpu.dot_dimension_numbers<[1], [0], [0], [1], [0, 0, 1, 1], [], []>} : vector<128x36xbf16>, vector<36x32xbf16>, vector<128x32xf32> -> vector<128x32xf32>
    %23 = vector.broadcast %1 : vector<1x32xf32> to vector<128x32xf32>
    %24 = arith.addf %22, %23 : vector<128x32xf32>
    %cst_61 = arith.constant 2.000000e-01 : f32
    %25 = vector.broadcast %cst_61 : f32 to vector<128x32xf32>
    %26 = arith.mulf %25, %24 : vector<128x32xf32>
    %27 = arith.maximumf %24, %26 : vector<128x32xf32>
    %28 = vector.shape_cast %27 : vector<128x32xf32> to vector<1x16x8x32xf32>
    %c0_62 = arith.constant 0 : index
    %c0_63 = arith.constant 0 : index
    %29 = vector.load %arg6[%c0_62, %c0_63] : memref<1x64xf32, #tpu.memory_space<vmem>>, vector<1x64xf32>
    %cst_64 = arith.constant 0.000000e+00 : f32
    %30 = vector.broadcast %cst_64 : f32 to vector<1x1x10x32xf32>
    %c0_65 = arith.constant 0 : index
    %c0_66 = arith.constant 0 : index
    %c0_67 = arith.constant 0 : index
    %c0_68 = arith.constant 0 : index
    %31 = vector.load %arg15[%c0_65, %c0_66, %c0_67, %c0_68] : memref<1x18x10x32xf32, #tpu.memory_space<vmem>>, vector<1x1x10x32xf32>
    tpu.vector_store %arg15[%c0_65, %c0_66, %c0_67, %c0_68], %30 {strides = array<i32>} : memref<1x18x10x32xf32, #tpu.memory_space<vmem>>, vector<1x1x10x32xf32>,
    %c0_69 = arith.constant 0 : index
    %c17_70 = arith.constant 17 : index
    %c0_71 = arith.constant 0 : index
    %c0_72 = arith.constant 0 : index
    %32 = vector.load %arg15[%c0_69, %c17_70, %c0_71, %c0_72] : memref<1x18x10x32xf32, #tpu.memory_space<vmem>>, vector<1x1x10x32xf32>
    tpu.vector_store %arg15[%c0_69, %c17_70, %c0_71, %c0_72], %30 {strides = array<i32>} : memref<1x18x10x32xf32, #tpu.memory_space<vmem>>, vector<1x1x10x32xf32>,
    %cst_73 = arith.constant 0.000000e+00 : f32
    %33 = vector.broadcast %cst_73 : f32 to vector<1x18x1x32xf32>
    %c0_74 = arith.constant 0 : index
    %c0_75 = arith.constant 0 : index
    %c0_76 = arith.constant 0 : index
    %c0_77 = arith.constant 0 : index
    %34 = vector.load %arg15[%c0_74, %c0_75, %c0_76, %c0_77] : memref<1x18x10x32xf32, #tpu.memory_space<vmem>>, vector<1x18x1x32xf32>
    tpu.vector_store %arg15[%c0_74, %c0_75, %c0_76, %c0_77], %33 {strides = array<i32>} : memref<1x18x10x32xf32, #tpu.memory_space<vmem>>, vector<1x18x1x32xf32>,
    %c0_78 = arith.constant 0 : index
    %c0_79 = arith.constant 0 : index
    %c9_80 = arith.constant 9 : index
    %c0_81 = arith.constant 0 : index
    %35 = vector.load %arg15[%c0_78, %c0_79, %c9_80, %c0_81] : memref<1x18x10x32xf32, #tpu.memory_space<vmem>>, vector<1x18x1x32xf32>
    tpu.vector_store %arg15[%c0_78, %c0_79, %c9_80, %c0_81], %33 {strides = array<i32>} : memref<1x18x10x32xf32, #tpu.memory_space<vmem>>, vector<1x18x1x32xf32>,
    %c0_82 = arith.constant 0 : index
    %c1_83 = arith.constant 1 : index
    %c1_84 = arith.constant 1 : index
    %c0_85 = arith.constant 0 : index
    %36 = vector.load %arg15[%c0_82, %c1_83, %c1_84, %c0_85] : memref<1x18x10x32xf32, #tpu.memory_space<vmem>>, vector<1x16x8x32xf32>
    tpu.vector_store %arg15[%c0_82, %c1_83, %c1_84, %c0_85], %28 {strides = array<i32>} : memref<1x18x10x32xf32, #tpu.memory_space<vmem>>, vector<1x16x8x32xf32>,
    %c0_86 = arith.constant 0 : index
    %c0_87 = arith.constant 0 : index
    %c0_88 = arith.constant 0 : index
    %c0_89 = arith.constant 0 : index
    %37 = vector.load %arg15[%c0_86, %c0_87, %c0_88, %c0_89] : memref<1x18x10x32xf32, #tpu.memory_space<vmem>>, vector<1x16x8x32xf32>
    %c0_90 = arith.constant 0 : index
    %c0_91 = arith.constant 0 : index
    %c1_92 = arith.constant 1 : index
    %c0_93 = arith.constant 0 : index
    %38 = vector.load %arg15[%c0_90, %c0_91, %c1_92, %c0_93] : memref<1x18x10x32xf32, #tpu.memory_space<vmem>>, vector<1x16x8x32xf32>
    %c0_94 = arith.constant 0 : index
    %c0_95 = arith.constant 0 : index
    %c2_96 = arith.constant 2 : index
    %c0_97 = arith.constant 0 : index
    %39 = vector.load %arg15[%c0_94, %c0_95, %c2_96, %c0_97] : memref<1x18x10x32xf32, #tpu.memory_space<vmem>>, vector<1x16x8x32xf32>
    %c0_98 = arith.constant 0 : index
    %c1_99 = arith.constant 1 : index
    %c0_100 = arith.constant 0 : index
    %c0_101 = arith.constant 0 : index
    %40 = vector.load %arg15[%c0_98, %c1_99, %c0_100, %c0_101] : memref<1x18x10x32xf32, #tpu.memory_space<vmem>>, vector<1x16x8x32xf32>
    %c0_102 = arith.constant 0 : index
    %c1_103 = arith.constant 1 : index
    %c1_104 = arith.constant 1 : index
    %c0_105 = arith.constant 0 : index
    %41 = vector.load %arg15[%c0_102, %c1_103, %c1_104, %c0_105] : memref<1x18x10x32xf32, #tpu.memory_space<vmem>>, vector<1x16x8x32xf32>
    %c0_106 = arith.constant 0 : index
    %c1_107 = arith.constant 1 : index
    %c2_108 = arith.constant 2 : index
    %c0_109 = arith.constant 0 : index
    %42 = vector.load %arg15[%c0_106, %c1_107, %c2_108, %c0_109] : memref<1x18x10x32xf32, #tpu.memory_space<vmem>>, vector<1x16x8x32xf32>
    %c0_110 = arith.constant 0 : index
    %c2_111 = arith.constant 2 : index
    %c0_112 = arith.constant 0 : index
    %c0_113 = arith.constant 0 : index
    %43 = vector.load %arg15[%c0_110, %c2_111, %c0_112, %c0_113] : memref<1x18x10x32xf32, #tpu.memory_space<vmem>>, vector<1x16x8x32xf32>
    %c0_114 = arith.constant 0 : index
    %c2_115 = arith.constant 2 : index
    %c1_116 = arith.constant 1 : index
    %c0_117 = arith.constant 0 : index
    %44 = vector.load %arg15[%c0_114, %c2_115, %c1_116, %c0_117] : memref<1x18x10x32xf32, #tpu.memory_space<vmem>>, vector<1x16x8x32xf32>
    %c0_118 = arith.constant 0 : index
    %c2_119 = arith.constant 2 : index
    %c2_120 = arith.constant 2 : index
    %c0_121 = arith.constant 0 : index
    %45 = vector.load %arg15[%c0_118, %c2_119, %c2_120, %c0_121] : memref<1x18x10x32xf32, #tpu.memory_space<vmem>>, vector<1x16x8x32xf32>
    %46 = tpu.concatenate %37, %38, %39, %40, %41, %42, %43, %44, %45 in 3 : vector<1x16x8x32xf32>, vector<1x16x8x32xf32>, vector<1x16x8x32xf32>, vector<1x16x8x32xf32>, vector<1x16x8x32xf32>, vector<1x16x8x32xf32>, vector<1x16x8x32xf32>, vector<1x16x8x32xf32>, vector<1x16x8x32xf32> -> vector<1x16x8x288xf32>
    %47 = vector.shape_cast %46 : vector<1x16x8x288xf32> to vector<128x288xf32>
    %48 = arith.truncf %47 : vector<128x288xf32> to vector<128x288xbf16>
    %c0_122 = arith.constant 0 : index
    %c0_123 = arith.constant 0 : index
    %49 = vector.load %arg5[%c0_122, %c0_123] : memref<288x64xbf16, #tpu.memory_space<vmem>>, vector<288x64xbf16>
    %cst_124 = arith.constant dense<0.000000e+00> : vector<128x64xf32>
    %50 = tpu.matmul %48, %49, %cst_124 {dimension_numbers = #tpu.dot_dimension_numbers<[1], [0], [0], [1], [0, 0, 1, 1], [], []>} : vector<128x288xbf16>, vector<288x64xbf16>, vector<128x64xf32> -> vector<128x64xf32>
    %51 = vector.broadcast %29 : vector<1x64xf32> to vector<128x64xf32>
    %52 = arith.addf %50, %51 : vector<128x64xf32>
    %cst_125 = arith.constant 2.000000e-01 : f32
    %53 = vector.broadcast %cst_125 : f32 to vector<128x64xf32>
    %54 = arith.mulf %53, %52 : vector<128x64xf32>
    %55 = arith.maximumf %52, %54 : vector<128x64xf32>
    %56 = vector.shape_cast %55 : vector<128x64xf32> to vector<1x16x8x64xf32>
    %57 = vector.shape_cast %56 : vector<1x16x8x64xf32> to vector<1x16x4x2x64xf32>
    %cst_126 = arith.constant dense<0xFF800000> : vector<1x16x4x64xf32>
    %58 = vector.multi_reduction <maximumf>, %57, %cst_126 [3] : vector<1x16x4x2x64xf32> to vector<1x16x4x64xf32>
    %c0_127 = arith.constant 0 : index
    %c0_128 = arith.constant 0 : index
    %59 = vector.load %arg8[%c0_127, %c0_128] : memref<1x128xf32, #tpu.memory_space<vmem>>, vector<1x128xf32>
    %cst_129 = arith.constant 0.000000e+00 : f32
    %60 = vector.broadcast %cst_129 : f32 to vector<1x1x6x64xf32>
    %c0_130 = arith.constant 0 : index
    %c0_131 = arith.constant 0 : index
    %c0_132 = arith.constant 0 : index
    %c0_133 = arith.constant 0 : index
    %61 = vector.load %arg16[%c0_130, %c0_131, %c0_132, %c0_133] : memref<1x18x6x64xf32, #tpu.memory_space<vmem>>, vector<1x1x6x64xf32>
    tpu.vector_store %arg16[%c0_130, %c0_131, %c0_132, %c0_133], %60 {strides = array<i32>} : memref<1x18x6x64xf32, #tpu.memory_space<vmem>>, vector<1x1x6x64xf32>,
    %c0_134 = arith.constant 0 : index
    %c17_135 = arith.constant 17 : index
    %c0_136 = arith.constant 0 : index
    %c0_137 = arith.constant 0 : index
    %62 = vector.load %arg16[%c0_134, %c17_135, %c0_136, %c0_137] : memref<1x18x6x64xf32, #tpu.memory_space<vmem>>, vector<1x1x6x64xf32>
    tpu.vector_store %arg16[%c0_134, %c17_135, %c0_136, %c0_137], %60 {strides = array<i32>} : memref<1x18x6x64xf32, #tpu.memory_space<vmem>>, vector<1x1x6x64xf32>,
    %cst_138 = arith.constant 0.000000e+00 : f32
    %63 = vector.broadcast %cst_138 : f32 to vector<1x18x1x64xf32>
    %c0_139 = arith.constant 0 : index
    %c0_140 = arith.constant 0 : index
    %c0_141 = arith.constant 0 : index
    %c0_142 = arith.constant 0 : index
    %64 = vector.load %arg16[%c0_139, %c0_140, %c0_141, %c0_142] : memref<1x18x6x64xf32, #tpu.memory_space<vmem>>, vector<1x18x1x64xf32>
    tpu.vector_store %arg16[%c0_139, %c0_140, %c0_141, %c0_142], %63 {strides = array<i32>} : memref<1x18x6x64xf32, #tpu.memory_space<vmem>>, vector<1x18x1x64xf32>,
    %c0_143 = arith.constant 0 : index
    %c0_144 = arith.constant 0 : index
    %c5 = arith.constant 5 : index
    %c0_145 = arith.constant 0 : index
    %65 = vector.load %arg16[%c0_143, %c0_144, %c5, %c0_145] : memref<1x18x6x64xf32, #tpu.memory_space<vmem>>, vector<1x18x1x64xf32>
    tpu.vector_store %arg16[%c0_143, %c0_144, %c5, %c0_145], %63 {strides = array<i32>} : memref<1x18x6x64xf32, #tpu.memory_space<vmem>>, vector<1x18x1x64xf32>,
    %c0_146 = arith.constant 0 : index
    %c1_147 = arith.constant 1 : index
    %c1_148 = arith.constant 1 : index
    %c0_149 = arith.constant 0 : index
    %66 = vector.load %arg16[%c0_146, %c1_147, %c1_148, %c0_149] : memref<1x18x6x64xf32, #tpu.memory_space<vmem>>, vector<1x16x4x64xf32>
    tpu.vector_store %arg16[%c0_146, %c1_147, %c1_148, %c0_149], %58 {strides = array<i32>} : memref<1x18x6x64xf32, #tpu.memory_space<vmem>>, vector<1x16x4x64xf32>,
    %c0_150 = arith.constant 0 : index
    %c0_151 = arith.constant 0 : index
    %c0_152 = arith.constant 0 : index
    %c0_153 = arith.constant 0 : index
    %67 = vector.load %arg16[%c0_150, %c0_151, %c0_152, %c0_153] : memref<1x18x6x64xf32, #tpu.memory_space<vmem>>, vector<1x16x4x64xf32>
    %c0_154 = arith.constant 0 : index
    %c0_155 = arith.constant 0 : index
    %c1_156 = arith.constant 1 : index
    %c0_157 = arith.constant 0 : index
    %68 = vector.load %arg16[%c0_154, %c0_155, %c1_156, %c0_157] : memref<1x18x6x64xf32, #tpu.memory_space<vmem>>, vector<1x16x4x64xf32>
    %c0_158 = arith.constant 0 : index
    %c0_159 = arith.constant 0 : index
    %c2_160 = arith.constant 2 : index
    %c0_161 = arith.constant 0 : index
    %69 = vector.load %arg16[%c0_158, %c0_159, %c2_160, %c0_161] : memref<1x18x6x64xf32, #tpu.memory_space<vmem>>, vector<1x16x4x64xf32>
    %c0_162 = arith.constant 0 : index
    %c1_163 = arith.constant 1 : index
    %c0_164 = arith.constant 0 : index
    %c0_165 = arith.constant 0 : index
    %70 = vector.load %arg16[%c0_162, %c1_163, %c0_164, %c0_165] : memref<1x18x6x64xf32, #tpu.memory_space<vmem>>, vector<1x16x4x64xf32>
    %c0_166 = arith.constant 0 : index
    %c1_167 = arith.constant 1 : index
    %c1_168 = arith.constant 1 : index
    %c0_169 = arith.constant 0 : index
    %71 = vector.load %arg16[%c0_166, %c1_167, %c1_168, %c0_169] : memref<1x18x6x64xf32, #tpu.memory_space<vmem>>, vector<1x16x4x64xf32>
    %c0_170 = arith.constant 0 : index
    %c1_171 = arith.constant 1 : index
    %c2_172 = arith.constant 2 : index
    %c0_173 = arith.constant 0 : index
    %72 = vector.load %arg16[%c0_170, %c1_171, %c2_172, %c0_173] : memref<1x18x6x64xf32, #tpu.memory_space<vmem>>, vector<1x16x4x64xf32>
    %c0_174 = arith.constant 0 : index
    %c2_175 = arith.constant 2 : index
    %c0_176 = arith.constant 0 : index
    %c0_177 = arith.constant 0 : index
    %73 = vector.load %arg16[%c0_174, %c2_175, %c0_176, %c0_177] : memref<1x18x6x64xf32, #tpu.memory_space<vmem>>, vector<1x16x4x64xf32>
    %c0_178 = arith.constant 0 : index
    %c2_179 = arith.constant 2 : index
    %c1_180 = arith.constant 1 : index
    %c0_181 = arith.constant 0 : index
    %74 = vector.load %arg16[%c0_178, %c2_179, %c1_180, %c0_181] : memref<1x18x6x64xf32, #tpu.memory_space<vmem>>, vector<1x16x4x64xf32>
    %c0_182 = arith.constant 0 : index
    %c2_183 = arith.constant 2 : index
    %c2_184 = arith.constant 2 : index
    %c0_185 = arith.constant 0 : index
    %75 = vector.load %arg16[%c0_182, %c2_183, %c2_184, %c0_185] : memref<1x18x6x64xf32, #tpu.memory_space<vmem>>, vector<1x16x4x64xf32>
    %76 = tpu.concatenate %67, %68, %69, %70, %71, %72, %73, %74, %75 in 3 : vector<1x16x4x64xf32>, vector<1x16x4x64xf32>, vector<1x16x4x64xf32>, vector<1x16x4x64xf32>, vector<1x16x4x64xf32>, vector<1x16x4x64xf32>, vector<1x16x4x64xf32>, vector<1x16x4x64xf32>, vector<1x16x4x64xf32> -> vector<1x16x4x576xf32>
    %77 = vector.shape_cast %76 : vector<1x16x4x576xf32> to vector<64x576xf32>
    %78 = arith.truncf %77 : vector<64x576xf32> to vector<64x576xbf16>
    %c0_186 = arith.constant 0 : index
    %c0_187 = arith.constant 0 : index
    %79 = vector.load %arg7[%c0_186, %c0_187] : memref<576x128xbf16, #tpu.memory_space<vmem>>, vector<576x128xbf16>
    %cst_188 = arith.constant dense<0.000000e+00> : vector<64x128xf32>
    %80 = tpu.matmul %78, %79, %cst_188 {dimension_numbers = #tpu.dot_dimension_numbers<[1], [0], [0], [1], [0, 0, 1, 1], [], []>} : vector<64x576xbf16>, vector<576x128xbf16>, vector<64x128xf32> -> vector<64x128xf32>
    %81 = vector.broadcast %59 : vector<1x128xf32> to vector<64x128xf32>
    %82 = arith.addf %80, %81 : vector<64x128xf32>
    %cst_189 = arith.constant 2.000000e-01 : f32
    %83 = vector.broadcast %cst_189 : f32 to vector<64x128xf32>
    %84 = arith.mulf %83, %82 : vector<64x128xf32>
    %85 = arith.maximumf %82, %84 : vector<64x128xf32>
    %c0_190 = arith.constant 0 : index
    %c0_191 = arith.constant 0 : index
    %c0_192 = arith.constant 0 : index
    %86 = vector.load %arg2[%c0_190, %c0_191, %c0_192] : memref<1x8x4xf32, #tpu.memory_space<vmem>>, vector<1x8x4xf32>
    %c0_193 = arith.constant 0 : index
    %c0_194 = arith.constant 0 : index
    %87 = vector.load %arg10[%c0_193, %c0_194] : memref<1x32xf32, #tpu.memory_space<vmem>>, vector<1x32xf32>
    %cst_195 = arith.constant 0.000000e+00 : f32
    %88 = vector.broadcast %cst_195 : f32 to vector<1x1x4xf32>
    %c0_196 = arith.constant 0 : index
    %c0_197 = arith.constant 0 : index
    %c0_198 = arith.constant 0 : index
    %89 = vector.load %arg17[%c0_196, %c0_197, %c0_198] : memref<1x10x4xf32, #tpu.memory_space<vmem>>, vector<1x1x4xf32>
    tpu.vector_store %arg17[%c0_196, %c0_197, %c0_198], %88 {strides = array<i32>} : memref<1x10x4xf32, #tpu.memory_space<vmem>>, vector<1x1x4xf32>,
    %c0_199 = arith.constant 0 : index
    %c9_200 = arith.constant 9 : index
    %c0_201 = arith.constant 0 : index
    %90 = vector.load %arg17[%c0_199, %c9_200, %c0_201] : memref<1x10x4xf32, #tpu.memory_space<vmem>>, vector<1x1x4xf32>
    tpu.vector_store %arg17[%c0_199, %c9_200, %c0_201], %88 {strides = array<i32>} : memref<1x10x4xf32, #tpu.memory_space<vmem>>, vector<1x1x4xf32>,
    %c0_202 = arith.constant 0 : index
    %c1_203 = arith.constant 1 : index
    %c0_204 = arith.constant 0 : index
    %91 = vector.load %arg17[%c0_202, %c1_203, %c0_204] : memref<1x10x4xf32, #tpu.memory_space<vmem>>, vector<1x8x4xf32>
    tpu.vector_store %arg17[%c0_202, %c1_203, %c0_204], %86 {strides = array<i32>} : memref<1x10x4xf32, #tpu.memory_space<vmem>>, vector<1x8x4xf32>,
    %c0_205 = arith.constant 0 : index
    %c0_206 = arith.constant 0 : index
    %c0_207 = arith.constant 0 : index
    %92 = vector.load %arg17[%c0_205, %c0_206, %c0_207] : memref<1x10x4xf32, #tpu.memory_space<vmem>>, vector<1x8x4xf32>
    %c0_208 = arith.constant 0 : index
    %c1_209 = arith.constant 1 : index
    %c0_210 = arith.constant 0 : index
    %93 = vector.load %arg17[%c0_208, %c1_209, %c0_210] : memref<1x10x4xf32, #tpu.memory_space<vmem>>, vector<1x8x4xf32>
    %c0_211 = arith.constant 0 : index
    %c2_212 = arith.constant 2 : index
    %c0_213 = arith.constant 0 : index
    %94 = vector.load %arg17[%c0_211, %c2_212, %c0_213] : memref<1x10x4xf32, #tpu.memory_space<vmem>>, vector<1x8x4xf32>
    %95 = tpu.concatenate %92, %93, %94 in 2 : vector<1x8x4xf32>, vector<1x8x4xf32>, vector<1x8x4xf32> -> vector<1x8x12xf32>
    %96 = vector.shape_cast %95 : vector<1x8x12xf32> to vector<8x12xf32>
    %97 = arith.truncf %96 : vector<8x12xf32> to vector<8x12xbf16>
    %c0_214 = arith.constant 0 : index
    %c0_215 = arith.constant 0 : index
    %98 = vector.load %arg9[%c0_214, %c0_215] : memref<12x32xbf16, #tpu.memory_space<vmem>>, vector<12x32xbf16>
    %cst_216 = arith.constant dense<0.000000e+00> : vector<8x32xf32>
    %99 = tpu.matmul %97, %98, %cst_216 {dimension_numbers = #tpu.dot_dimension_numbers<[1], [0], [0], [1], [0, 0, 1, 1], [], []>} : vector<8x12xbf16>, vector<12x32xbf16>, vector<8x32xf32> -> vector<8x32xf32>
    %100 = vector.broadcast %87 : vector<1x32xf32> to vector<8x32xf32>
    %101 = arith.addf %99, %100 : vector<8x32xf32>
    %cst_217 = arith.constant 2.000000e-01 : f32
    %102 = vector.broadcast %cst_217 : f32 to vector<8x32xf32>
    %103 = arith.mulf %102, %101 : vector<8x32xf32>
    %104 = arith.maximumf %101, %103 : vector<8x32xf32>
    %105 = vector.shape_cast %104 : vector<8x32xf32> to vector<1x8x32xf32>
    %c0_218 = arith.constant 0 : index
    %c0_219 = arith.constant 0 : index
    %106 = vector.load %arg12[%c0_218, %c0_219] : memref<1x64xf32, #tpu.memory_space<vmem>>, vector<1x64xf32>
    %cst_220 = arith.constant 0.000000e+00 : f32
    %107 = vector.broadcast %cst_220 : f32 to vector<1x1x32xf32>
    %c0_221 = arith.constant 0 : index
    %c0_222 = arith.constant 0 : index
    %c0_223 = arith.constant 0 : index
    %108 = vector.load %arg18[%c0_221, %c0_222, %c0_223] : memref<1x10x32xf32, #tpu.memory_space<vmem>>, vector<1x1x32xf32>
    tpu.vector_store %arg18[%c0_221, %c0_222, %c0_223], %107 {strides = array<i32>} : memref<1x10x32xf32, #tpu.memory_space<vmem>>, vector<1x1x32xf32>,
    %c0_224 = arith.constant 0 : index
    %c9_225 = arith.constant 9 : index
    %c0_226 = arith.constant 0 : index
    %109 = vector.load %arg18[%c0_224, %c9_225, %c0_226] : memref<1x10x32xf32, #tpu.memory_space<vmem>>, vector<1x1x32xf32>
    tpu.vector_store %arg18[%c0_224, %c9_225, %c0_226], %107 {strides = array<i32>} : memref<1x10x32xf32, #tpu.memory_space<vmem>>, vector<1x1x32xf32>,
    %c0_227 = arith.constant 0 : index
    %c1_228 = arith.constant 1 : index
    %c0_229 = arith.constant 0 : index
    %110 = vector.load %arg18[%c0_227, %c1_228, %c0_229] : memref<1x10x32xf32, #tpu.memory_space<vmem>>, vector<1x8x32xf32>
    tpu.vector_store %arg18[%c0_227, %c1_228, %c0_229], %105 {strides = array<i32>} : memref<1x10x32xf32, #tpu.memory_space<vmem>>, vector<1x8x32xf32>,
    %c0_230 = arith.constant 0 : index
    %c0_231 = arith.constant 0 : index
    %c0_232 = arith.constant 0 : index
    %111 = vector.load %arg18[%c0_230, %c0_231, %c0_232] : memref<1x10x32xf32, #tpu.memory_space<vmem>>, vector<1x8x32xf32>
    %c0_233 = arith.constant 0 : index
    %c1_234 = arith.constant 1 : index
    %c0_235 = arith.constant 0 : index
    %112 = vector.load %arg18[%c0_233, %c1_234, %c0_235] : memref<1x10x32xf32, #tpu.memory_space<vmem>>, vector<1x8x32xf32>
    %c0_236 = arith.constant 0 : index
    %c2_237 = arith.constant 2 : index
    %c0_238 = arith.constant 0 : index
    %113 = vector.load %arg18[%c0_236, %c2_237, %c0_238] : memref<1x10x32xf32, #tpu.memory_space<vmem>>, vector<1x8x32xf32>
    %114 = tpu.concatenate %111, %112, %113 in 2 : vector<1x8x32xf32>, vector<1x8x32xf32>, vector<1x8x32xf32> -> vector<1x8x96xf32>
    %115 = vector.shape_cast %114 : vector<1x8x96xf32> to vector<8x96xf32>
    %116 = arith.truncf %115 : vector<8x96xf32> to vector<8x96xbf16>
    %c0_239 = arith.constant 0 : index
    %c0_240 = arith.constant 0 : index
    %117 = vector.load %arg11[%c0_239, %c0_240] : memref<96x64xbf16, #tpu.memory_space<vmem>>, vector<96x64xbf16>
    %cst_241 = arith.constant dense<0.000000e+00> : vector<8x64xf32>
    %118 = tpu.matmul %116, %117, %cst_241 {dimension_numbers = #tpu.dot_dimension_numbers<[1], [0], [0], [1], [0, 0, 1, 1], [], []>} : vector<8x96xbf16>, vector<96x64xbf16>, vector<8x64xf32> -> vector<8x64xf32>
    %119 = vector.broadcast %106 : vector<1x64xf32> to vector<8x64xf32>
    %120 = arith.addf %118, %119 : vector<8x64xf32>
    %cst_242 = arith.constant 2.000000e-01 : f32
    %121 = vector.broadcast %cst_242 : f32 to vector<8x64xf32>
    %122 = arith.mulf %121, %120 : vector<8x64xf32>
    %123 = arith.maximumf %120, %122 : vector<8x64xf32>
    %cst_243 = arith.constant 0.000000e+00 : f32
    %124 = vector.broadcast %cst_243 : f32 to vector<8x64xf32>
    %125 = tpu.concatenate %123, %124 in 1 : vector<8x64xf32>, vector<8x64xf32> -> vector<8x128xf32>
    %126 = vector.shape_cast %85 : vector<64x128xf32> to vector<1x64x128xf32>
    %127 = vector.shape_cast %125 : vector<8x128xf32> to vector<1x8x128xf32>
    %128 = tpu.concatenate %126, %127 in 1 : vector<1x64x128xf32>, vector<1x8x128xf32> -> vector<1x72x128xf32>
    %129 = arith.truncf %128 : vector<1x72x128xf32> to vector<1x72x128xbf16>
    %c0_244 = arith.constant 0 : index
    %c0_245 = arith.constant 0 : index
    %c0_246 = arith.constant 0 : index
    %130 = vector.load %arg13[%c0_244, %c0_245, %c0_246] : memref<1x72x128xbf16, #tpu.memory_space<vmem>>, vector<1x72x128xbf16>
    tpu.vector_store %arg13[%c0_244, %c0_245, %c0_246], %129 {strides = array<i32>} : memref<1x72x128xbf16, #tpu.memory_space<vmem>>, vector<1x72x128xbf16>,
    return
  }
  func.func @transform_0(%arg0: i32) -> (i32, i32, i32, i32) {
    %c0_i32 = arith.constant 0 : i32
    %c0_i32_0 = arith.constant 0 : i32
    %c0_i32_1 = arith.constant 0 : i32
    %c0_i32_2 = arith.constant 0 : i32
    return %arg0, %c0_i32, %c0_i32_0, %c0_i32_1 : i32, i32, i32, i32
  }
  func.func @transform_1(%arg0: i32) -> (i32, i32, i32) {
    %c0_i32 = arith.constant 0 : i32
    %c0_i32_0 = arith.constant 0 : i32
    %c0_i32_1 = arith.constant 0 : i32
    return %arg0, %c0_i32, %c0_i32_0 : i32, i32, i32
  }
  func.func @transform_2(%arg0: i32) -> (i32, i32) {
    %c0_i32 = arith.constant 0 : i32
    %c0_i32_0 = arith.constant 0 : i32
    %c0_i32_1 = arith.constant 0 : i32
    return %c0_i32, %c0_i32_0 : i32, i32
  }
  func.func @transform_3(%arg0: i32) -> (i32, i32) {
    %c0_i32 = arith.constant 0 : i32
    %c0_i32_0 = arith.constant 0 : i32
    %c0_i32_1 = arith.constant 0 : i32
    return %c0_i32, %c0_i32_0 : i32, i32
  }
  func.func @transform_4(%arg0: i32) -> (i32, i32) {
    %c0_i32 = arith.constant 0 : i32
    %c0_i32_0 = arith.constant 0 : i32
    %c0_i32_1 = arith.constant 0 : i32
    return %c0_i32, %c0_i32_0 : i32, i32
  }
  func.func @transform_5(%arg0: i32) -> (i32, i32) {
    %c0_i32 = arith.constant 0 : i32
    %c0_i32_0 = arith.constant 0 : i32
    %c0_i32_1 = arith.constant 0 : i32
    return %c0_i32, %c0_i32_0 : i32, i32
  }
  func.func @transform_6(%arg0: i32) -> (i32, i32) {
    %c0_i32 = arith.constant 0 : i32
    %c0_i32_0 = arith.constant 0 : i32
    %c0_i32_1 = arith.constant 0 : i32
    return %c0_i32, %c0_i32_0 : i32, i32
  }
  func.func @transform_7(%arg0: i32) -> (i32, i32) {
    %c0_i32 = arith.constant 0 : i32
    %c0_i32_0 = arith.constant 0 : i32
    %c0_i32_1 = arith.constant 0 : i32
    return %c0_i32, %c0_i32_0 : i32, i32
  }
  func.func @transform_8(%arg0: i32) -> (i32, i32) {
    %c0_i32 = arith.constant 0 : i32
    %c0_i32_0 = arith.constant 0 : i32
    %c0_i32_1 = arith.constant 0 : i32
    return %c0_i32, %c0_i32_0 : i32, i32
  }
  func.func @transform_9(%arg0: i32) -> (i32, i32) {
    %c0_i32 = arith.constant 0 : i32
    %c0_i32_0 = arith.constant 0 : i32
    %c0_i32_1 = arith.constant 0 : i32
    return %c0_i32, %c0_i32_0 : i32, i32
  }
  func.func @transform_10(%arg0: i32) -> (i32, i32) {
    %c0_i32 = arith.constant 0 : i32
    %c0_i32_0 = arith.constant 0 : i32
    %c0_i32_1 = arith.constant 0 : i32
    return %c0_i32, %c0_i32_0 : i32, i32
  }
  func.func @transform_11(%arg0: i32) -> (i32, i32) {
    %c0_i32 = arith.constant 0 : i32
    %c0_i32_0 = arith.constant 0 : i32
    %c0_i32_1 = arith.constant 0 : i32
    return %c0_i32, %c0_i32_0 : i32, i32
  }
  func.func @transform_12(%arg0: i32) -> (i32, i32, i32) {
    %c0_i32 = arith.constant 0 : i32
    %c0_i32_0 = arith.constant 0 : i32
    %c0_i32_1 = arith.constant 0 : i32
    return %arg0, %c0_i32, %c0_i32_0 : i32, i32, i32
  }
}

</mosaic_0001>

<bundles_post_ra>
// kernel: discriminator_forward.2
= control target key start
LH: loop header
LB: loop body
LE: loop exit
PB: predicated region body
PF: predicated region fallthrough
CT: control target
= control target key end

     0   :  { %17 = vsyncpa [#allocation8], 0  ;;  %s8291_s0 = inlined_call_operand.vmem [shape: f32[2,16,8,4], index: 0, kind: input, shape index: {}]   ;;  %s8292_s1 = inlined_call_operand.vmem [shape: f32[2,8,4], index: 1, kind: input, shape index: {}]   ;;  %s8293_s2 = inlined_call_operand.vmem [shape: bf16[36,32], index: 2, kind: input, shape index: {}]   ;;  %s8294_s3 = inlined_call_operand.hbm [shape: f32[1,32], index: 3, kind: input, shape index: {}]   ;;  %s8295_s4 = inlined_call_operand.vmem [shape: bf16[288,64], index: 4, kind: input, shape index: {}]   ;;  %s8296_s5 = inlined_call_operand.hbm [shape: f32[1,64], index: 5, kind: input, shape index: {}]   ;;  %s8297_s6 = inlined_call_operand.hbm [shape: bf16[576,128], index: 6, kind: input, shape index: {}]   ;;  %s8298_s7 = inlined_call_operand.hbm [shape: f32[1,128], index: 7, kind: input, shape index: {}]   ;;  %s8299_s8 = inlined_call_operand.hbm [shape: bf16[12,32], index: 8, kind: input, shape index: {}]   ;;  %s8300_s9 = inlined_call_operand.hbm [shape: f32[1,32], index: 9, kind: input, shape index: {}]   ;;  %s8301_s10 = inlined_call_operand.vmem [shape: bf16[96,64], index: 10, kind: input, shape index: {}]   ;;  %s8302_s11 = inlined_call_operand.hbm [shape: f32[1,64], index: 11, kind: input, shape index: {}]   ;;  %s8303_s12 = inlined_call_operand.vmem [shape: bf16[2,72,128], index: 12, kind: output, shape index: {}]  }
   0x1   :  { %18 = vsyncpa [#allocation10], 0 }
   0x2   :  { %19 = vsyncpa [#allocation13], 0 }
   0x3   :  { %20 = vsyncpa [#allocation16], 0  ;;  %s6739_s21 = smov 0  }
   0x4 LB: > { %s6652_s22 = smov [#allocation9]   ;;  %s6745_s24 = sadd.s32 4294967295, %s6650_s21   ;;  %s6650_s21 = sphi %s6739_s21, %s26_s21  }
   0x5   : > { %s349_s23 = sshll.u32 %s6652_s22, 4  ;;  %p5267_p0 = scmp.ge.s32.totalorder %s6650_s21, 1  ;;  %s350_s23 = int_to_ptr.vmem [resolvable:$true] %s349_s23 }
   0x6   : > { %p319_p1 = scmp.lt.s32.totalorder %s6650_s21, 3  ;;  %p8304_p2 = scmp.eq.s32.totalorder %s6745_s24, 0 }
   0x7   : > { %s6653_s26 = smov [#allocation12]   ;;  %s6654_s28 = smov [#allocation15]  }
   0x8   : > { %p6750_p3 = pnand %p5267_p0, %p319_p1  ;;  %s373_s27 = sshll.u32 %s6653_s26, 4  ;;  %s6756_s27 = int_to_ptr.vmem [resolvable:$true] %s373_s27 }
   0x9   : > { %s397_s29 = sshll.u32 %s6654_s28, 4  ;;  %s6655_s13 = smov [#allocation7]   ;;  %s6764_s29 = int_to_ptr.vmem [resolvable:$true] %s397_s29 }
   0xa   : > { %s8306_s25 = scalar_select %p6750_p3, 1, 0 }
   0xb   : > { %p5747_p4 = pneg %p6750_p3  ;;  %s335_s14 = sshll.u32 %s6655_s13, 4  ;;  %s6766_s14 = int_to_ptr.vmem [resolvable:$true] %s335_s14 }
   0xc   : > { %s6457_s16 = scalar_lea.vmem %s350_s23, 16  ;;  %s6464_s17 = scalar_lea.vmem %s350_s23, 32 }
   0xd   : > { %p6760_p5 = pnand %p8304_p2, %p5747_p4  ;;  %p6458_p7 = scmp.ne.s32.totalorder %s350_s23, %s6457_s16 }
   0xe   : > { %p6465_p10 = scmp.lt.s32.totalorder %s350_s23, %s350_s23  ;;  %p6466_p11 = scmp.lt.s32.totalorder %s6464_s17, %s6457_s16 }
   0xf   : > { %p6770_p6 = pneg %p6760_p5 }
  0x10   : > { %p6467_p12 = por %p6466_p11, %p6465_p10 }
  0x11   : > { %p6460_p8 = pnand %p6458_p7, %p6770_p6 }
  0x13   : > { %p6461_p9 = pneg %p6460_p8 }
  0x15   : > { %p6468_p13 = pnand %p6467_p12, %p6461_p9 }
  0x17   : > { %6471 = shalt.err (!%p6468_p13)
}
  0x18   : > { %5753 = dma.hbm_to_vmem [thread:$0]  (!%p6760_p5), %s8296_s5, 16, %s350_s23, [#allocation10]  }
  0x19   : > { %s6483_s20 = scalar_lea.vmem %s6756_s27, 16  ;;  %s6490_s22 = scalar_lea.vmem %s6756_s27, 32 }
  0x1a   : > { %p6484_p0 = scmp.ne.s32.totalorder %s6756_s27, %s6483_s20  ;;  %p6491_p7 = scmp.lt.s32.totalorder %s6756_s27, %s6756_s27 }
  0x1b   : > { %p6492_p8 = scmp.lt.s32.totalorder %s6490_s22, %s6483_s20 }
  0x1c   : > { %p6486_p1 = pnand %p6484_p0, %p6770_p6 }
  0x1d   : > { %p6493_p9 = por %p6492_p8, %p6491_p7 }
  0x1e   : > { %p6487_p4 = pneg %p6486_p1 }
  0x20   : > { %p6494_p10 = pnand %p6493_p9, %p6487_p4 }
  0x22   : > { %6497 = shalt.err (!%p6494_p10)
}
  0x23   : > { %5759 = dma.hbm_to_vmem [thread:$0]  (!%p6760_p5), %s8298_s7, 16, %s6756_s27, [#allocation13]  }
  0x24   : > { %s6509_s23 = scalar_lea.vmem %s6764_s29, 16  ;;  %s6516_s13 = scalar_lea.vmem %s6764_s29, 32 }
  0x25   : > { %p6510_p11 = scmp.ne.s32.totalorder %s6764_s29, %s6509_s23  ;;  %p6517_p0 = scmp.lt.s32.totalorder %s6764_s29, %s6764_s29 }
  0x26   : > { %p6518_p1 = scmp.lt.s32.totalorder %s6516_s13, %s6509_s23 }
  0x27   : > { %p6512_p12 = pnand %p6510_p11, %p6770_p6 }
  0x28   : > { %p6519_p4 = por %p6518_p1, %p6517_p0 }
  0x29   : > { %p6513_p13 = pneg %p6512_p12 }
  0x2b   : > { %p6520_p7 = pnand %p6519_p4, %p6513_p13 }
  0x2d   : > { %6523 = shalt.err (!%p6520_p7)
}
  0x2e   : > { %5765 = dma.hbm_to_vmem [thread:$0]  (!%p6760_p5), %s8300_s9, 16, %s6764_s29, [#allocation16]  }
  0x2f   : > { %s6535_s27 = scalar_lea.vmem %s6766_s14, 16  ;;  %s6542_s18 = scalar_lea.vmem %s6766_s14, 32 }
  0x30   : > { %p6536_p8 = scmp.ne.s32.totalorder %s6766_s14, %s6535_s27  ;;  %p6543_p11 = scmp.lt.s32.totalorder %s6766_s14, %s6766_s14 }
  0x31   : > { %p6544_p12 = scmp.lt.s32.totalorder %s6542_s18, %s6535_s27 }
  0x32   : > { %p6538_p9 = pnand %p6536_p8, %p6770_p6 }
  0x33   : > { %p6545_p13 = por %p6544_p12, %p6543_p11 }
  0x34   : > { %p6539_p10 = pneg %p6538_p9 }
  0x36   : > { %p6546_p0 = pnand %p6545_p13, %p6539_p10 }
  0x38   : > { %6549 = shalt.err (!%p6546_p0)
}
  0x39   : > { %5750 = dma.hbm_to_vmem [thread:$0]  (!%p6760_p5), %s8294_s3, 16, %s6766_s14, [#allocation8]  }
  0x3a   : > { %s6656_s29 = smov [#allocation11]  }
  0x3b   : > { %s359_s22 = sshll.u32 %s6656_s29, 4  ;;  %s360_s22 = int_to_ptr.vmem [resolvable:$true] %s359_s22 }
  0x3c   : > { %s6561_s26 = scalar_lea.vmem %s360_s22, 4608  ;;  %p6569_p8 = scmp.lt.s32.totalorder %s360_s22, %s360_s22 }
  0x3d   : > { %p6562_p1 = scmp.ne.s32.totalorder %s360_s22, %s6561_s26  ;;  %p6570_p9 = scmp.lt.s32.totalorder %s6561_s26, %s6561_s26 }
  0x3f   : > { %p6564_p4 = pnand %p6562_p1, %p6770_p6  ;;  %p6571_p10 = por %p6570_p9, %p6569_p8 }
  0x41   : > { %p6565_p7 = pneg %p6564_p4 }
  0x43   : > { %p6572_p11 = pnand %p6571_p10, %p6565_p7 }
  0x45   : > { %6575 = shalt.err (!%p6572_p11)
}
  0x46   : > { %s6657_s28 = smov 64   ;;  %s6658_s23 = smov 4  }
  0x47   : > { %5756 = dma.hbm_to_vmem [thread:$0]  (!%p6760_p5), %s8297_s6, 4608, %s360_s22, [#allocation10], %s6657_s28, %s6657_s28, %s6658_s23  }
  0x48   : > { %s6659_s16 = smov [#allocation14]   ;;  %s6660_s27 = smov [#allocation17]  }
  0x49   : > { %s383_s17 = sshll.u32 %s6659_s16, 4  ;;  %s411_s18 = sshll.u32 %s6660_s27, 4  ;;  %s384_s17 = int_to_ptr.vmem [resolvable:$true] %s383_s17  ;;  %s412_s18 = int_to_ptr.vmem [resolvable:$true] %s411_s18 }
  0x4a   : > { %s6587_s19 = scalar_lea.vmem %s384_s17, 128  ;;  %p6595_p1 = scmp.lt.s32.totalorder %s384_s17, %s384_s17 }
  0x4b   : > { %p6588_p12 = scmp.ne.s32.totalorder %s384_s17, %s6587_s19  ;;  %p6596_p4 = scmp.lt.s32.totalorder %s6587_s19, %s6587_s19 }
  0x4d   : > { %p6590_p13 = pnand %p6588_p12, %p6770_p6  ;;  %p6597_p7 = por %p6596_p4, %p6595_p1 }
  0x4f   : > { %p6591_p0 = pneg %p6590_p13 }
  0x51   : > { %p6598_p8 = pnand %p6597_p7, %p6591_p0 }
  0x53   : > { %6601 = shalt.err (!%p6598_p8)
}
  0x54   : > { %5762 = dma.hbm_to_vmem [thread:$0]  (!%p6760_p5), %s8299_s8, 128, %s384_s17, [#allocation13], %s6657_s28, %s6657_s28, %s6658_s23  }
  0x55   : > { %s6613_s22 = scalar_lea.vmem %s412_s18, 16  ;;  %s6620_s26 = scalar_lea.vmem %s412_s18, 32 }
  0x56   : > { %p6614_p9 = scmp.ne.s32.totalorder %s412_s18, %s6613_s22  ;;  %p6621_p12 = scmp.lt.s32.totalorder %s412_s18, %s412_s18 }
  0x57   : > { %p6622_p13 = scmp.lt.s32.totalorder %s6620_s26, %s6613_s22 }
  0x58   : > { %p6616_p10 = pnand %p6614_p9, %p6770_p6 }
  0x59   : > { %p6623_p2 = por %p6622_p13, %p6621_p12 }
  0x5a   : > { %p6617_p11 = pneg %p6616_p10 }
  0x5c   : > { %p6624_p3 = pnand %p6623_p2, %p6617_p11 }
  0x5e   : > { %6627 = shalt.err (!%p6624_p3)
}
  0x5f   : > { %5768 = dma.hbm_to_vmem [thread:$0]  (!%p6760_p5), %s8302_s11, 16, %s412_s18, [#allocation16]  }
  0x60   : > { %p8309_p0 = scmp.ne.s32.totalorder %s8306_s25, 0 }
  0x61   : > { %p8310_p1 = scmp.eq.s32.totalorder (!%p8309_p0), %s6745_s24, 0 }
  0x62   : > { %439 = sbr.rel (%p8309_p0) target bundleno = 1712 (0x6b0), region = 68 }
  0x67   : > { %6633 = dma.done.wait (%p8310_p1), [#allocation8], 16   ;;  %p8311_p6 = pmov %p8310_p1 }
  0x68   : > { %p8312_p4 = pmov %p8310_p1 }
  0x69   : > { %6635 = vsyncadd (%p8311_p6), [#allocation8], 4294967280 }
  0x6a   : > { %6637 = dma.done.wait (%p8312_p4), [#allocation10], 4624   ;;  %p8313_p2 = pmov %p8310_p1 }
  0x6b   : > { %p8314_p3 = pmov %p8310_p1 }
  0x6c   : > { %6639 = vsyncadd (%p8313_p2), [#allocation10], 4294962672 }
  0x6d   : > { %6641 = dma.done.wait (%p8314_p3), [#allocation13], 144   ;;  %p8315_p5 = pmov %p8310_p1 }
  0x6e   : > { %p8316_p7 = pmov %p8310_p1 }
  0x6f   : > { %6643 = vsyncadd (%p8315_p5), [#allocation13], 4294967152 }
  0x70   : > { %6645 = dma.done.wait (%p8316_p7), [#allocation16], 32   ;;  %p8317_p8 = pmov %p8310_p1 }
  0x71   : > { %p509_p9 = scmp.lt.s32.totalorder %s6745_s24, 1  ;;  %vm541_vm0 = vcmask 31744   ;;  %vm543_vm1 = vcmask 25600   ;;  %v6661_v0 = vmov 0.0   ;;  %vm548_vm2 = vcmask 24576   ;;  %s6662_s23 = smov 8  }
  0x72   : > { %6647 = vsyncadd (%p8317_p8), [#allocation16], 4294967264  ;;  %542 = vst.msk [vmem:[#allocation2] sm:$0xff] %vm541_vm0, %v6661_v0  ;;  %s6663_s16 = smov 4   ;;  %s6664_s17 = smov 12   ;;  %vm1453_vm3 = vcmask 1041408  }
  0x73   : > { %544 = vst.msk [vmem:[#allocation2 + $0x8] sm:$0x3] %vm543_vm1, %v6661_v0  ;;  %547 = vst.msk [vmem:[#allocation2 + $0x118] sm:$0x3] %vm543_vm1, %v6661_v0  ;;  %s8319_s24 = smov (!%p509_p9, %s6745_s24), 1  ;;  %s6665_s27 = smov 16  }
  0x74   : > { %546 = vst.msk [vmem:[#allocation2 + $0x110] sm:$0xff] %vm541_vm0, %v6661_v0  ;;  %s5422_s25 = sshll.u32 %s8319_s24, 7  ;;  %v6373_v42 = vld [vmem:[%s8293_s2 + $0x10] ss:$0 sps:$4 sm:$0x33]   ;;  %v6374_v43 = vld [vmem:[%s8293_s2 + $0x8] sm:$0xff]  }
  0x75   : > { %549 = vst.msk [vmem:[#allocation2] sm:$0x1] %vm548_vm2, %v6661_v0  ;;  %567 = vst.msk [vmem:[#allocation2 + $0x9] sm:$0x1] %vm548_vm2, %v6661_v0  ;;  %s513_s28 = scalar_lea.vmem %s8291_s0, %s5422_s25  ;;  %vm1377_vm4 = vcmask 261120   ;;  %5717 = vmatprep.subr.msk.bf16.mxu0 %vm1453_vm3, %v6373_v42  ;;  %v1455_v45 = vsel %vm1453_vm3, %v6373_v42, 0 }
  0x76   : > { %568 = vst.msk [vmem:[#allocation2 + $0x19] sm:$0x1] %vm548_vm2, %v6661_v0  ;;  %550 = vst.msk [vmem:[#allocation2 + $0x10] sm:$0x1] %vm548_vm2, %v6661_v0  ;;  %v524_v1 = vld [vmem:[%s513_s28] sm:$0xff]  ;;  %v525_v2 = vld [vmem:[%s513_s28 + $0x8] sm:$0xff]  ;;  %5638 = vmatpush3.bf16.msra.mxu0 %v1455_v45 }
  0x77   : > { %551 = vst.msk [vmem:[#allocation2 + $0x20] sm:$0x1] %vm548_vm2, %v6661_v0  ;;  %552 = vst.msk [vmem:[#allocation2 + $0x30] sm:$0x1] %vm548_vm2, %v6661_v0  ;;  %v526_v3 = vld [vmem:[%s513_s28 + $0x10] sm:$0xff]  ;;  %v527_v4 = vld [vmem:[%s513_s28 + $0x18] sm:$0xff]  ;;  %5639 = vmatprep.subr.bf16.mxu0 %v6374_v43 }
  0x78   : > { %553 = vst.msk [vmem:[#allocation2 + $0x40] sm:$0x1] %vm548_vm2, %v6661_v0  ;;  %554 = vst.msk [vmem:[#allocation2 + $0x50] sm:$0x1] %vm548_vm2, %v6661_v0  ;;  %v528_v5 = vld [vmem:[%s513_s28 + $0x20] sm:$0xff]  ;;  %v529_v6 = vld [vmem:[%s513_s28 + $0x28] sm:$0xff] }
  0x79   : > { %555 = vst.msk [vmem:[#allocation2 + $0x60] sm:$0x1] %vm548_vm2, %v6661_v0  ;;  %556 = vst.msk [vmem:[#allocation2 + $0x70] sm:$0x1] %vm548_vm2, %v6661_v0  ;;  %v530_v7 = vld [vmem:[%s513_s28 + $0x30] sm:$0xff]  ;;  %v531_v8 = vld [vmem:[%s513_s28 + $0x38] sm:$0xff] }
  0x7a   : > { %557 = vst.msk [vmem:[#allocation2 + $0x80] sm:$0x1] %vm548_vm2, %v6661_v0  ;;  %558 = vst.msk [vmem:[#allocation2 + $0x90] sm:$0x1] %vm548_vm2, %v6661_v0  ;;  %v532_v9 = vld [vmem:[%s513_s28 + $0x40] sm:$0xff]  ;;  %v533_v10 = vld [vmem:[%s513_s28 + $0x48] sm:$0xff]  ;;  %5640 = vmatpush3.bf16.msra.mxu0 %v6374_v43 }
  0x7b   : > { %559 = vst.msk [vmem:[#allocation2 + $0xa0] sm:$0x1] %vm548_vm2, %v6661_v0  ;;  %560 = vst.msk [vmem:[#allocation2 + $0xb0] sm:$0x1] %vm548_vm2, %v6661_v0  ;;  %v534_v11 = vld [vmem:[%s513_s28 + $0x50] sm:$0xff]  ;;  %v535_v12 = vld [vmem:[%s513_s28 + $0x58] sm:$0xff] }
  0x7c   : > { %561 = vst.msk [vmem:[#allocation2 + $0xc0] sm:$0x1] %vm548_vm2, %v6661_v0  ;;  %562 = vst.msk [vmem:[#allocation2 + $0xd0] sm:$0x1] %vm548_vm2, %v6661_v0  ;;  %v536_v13 = vld [vmem:[%s513_s28 + $0x60] sm:$0xff]  ;;  %v537_v14 = vld [vmem:[%s513_s28 + $0x68] sm:$0xff] }
  0x7d   : > { %563 = vst.msk [vmem:[#allocation2 + $0xe0] sm:$0x1] %vm548_vm2, %v6661_v0  ;;  %564 = vst.msk [vmem:[#allocation2 + $0xf0] sm:$0x1] %vm548_vm2, %v6661_v0  ;;  %v538_v15 = vld [vmem:[%s513_s28 + $0x70] sm:$0xff]  ;;  %v539_v16 = vld [vmem:[%s513_s28 + $0x78] sm:$0xff] }
  0x7e   : > { %565 = vst.msk [vmem:[#allocation2 + $0x100] sm:$0x1] %vm548_vm2, %v6661_v0  ;;  %569 = vst.msk [vmem:[#allocation2 + $0x29] sm:$0x1] %vm548_vm2, %v6661_v0  ;;  %v634_v17 = vld [vmem:[#allocation2 + $0x2] sm:$0xff]  ;;  %s6666_s22 = smov 20  }
  0x7f   : > { %570 = vst.msk [vmem:[#allocation2 + $0x39] sm:$0x1] %vm548_vm2, %v6661_v0  ;;  %571 = vst.msk [vmem:[#allocation2 + $0x49] sm:$0x1] %vm548_vm2, %v6661_v0  ;;  %v618_v18 = vld [vmem:[#allocation2 + $0x1] sm:$0xff]  ;;  %s6667_s14 = smov 24  }
  0x80   : > { %572 = vst.msk [vmem:[#allocation2 + $0x59] sm:$0x1] %vm548_vm2, %v6661_v0  ;;  %573 = vst.msk [vmem:[#allocation2 + $0x69] sm:$0x1] %vm548_vm2, %v6661_v0  ;;  %v6375_v48 = vld [vmem:[%s8293_s2] sm:$0xff]   ;;  %s6668_s25 = smov 28  }
  0x81   : > { %574 = vst.msk [vmem:[#allocation2 + $0x79] sm:$0x1] %vm548_vm2, %v6661_v0  ;;  %575 = vst.msk [vmem:[#allocation2 + $0x89] sm:$0x1] %vm548_vm2, %v6661_v0  ;;  %5641 = vmatprep.subr.bf16.mxu0 %v6375_v48  ;;  %s6669_s30 = smov 32   ;;  %vm1275_vm5 = vcmask 64512  }
  0x82   : > { %576 = vst.msk [vmem:[#allocation2 + $0x99] sm:$0x1] %vm548_vm2, %v6661_v0  ;;  %577 = vst.msk [vmem:[#allocation2 + $0xa9] sm:$0x1] %vm548_vm2, %v6661_v0  ;;  %5642 = vmatpush3.bf16.msra.mxu0 %v6375_v48  ;;  %vm1292_vm6 = vcmask 97280   ;;  %vm1309_vm7 = vcmask 130048  }
  0x83   : > { %578 = vst.msk [vmem:[#allocation2 + $0xb9] sm:$0x1] %vm548_vm2, %v6661_v0  ;;  %579 = vst.msk [vmem:[#allocation2 + $0xc9] sm:$0x1] %vm548_vm2, %v6661_v0  ;;  %vm1326_vm8 = vcmask 162816   ;;  %vm1343_vm9 = vcmask 195584  }
  0x84   : > { %580 = vst.msk [vmem:[#allocation2 + $0xd9] sm:$0x1] %vm548_vm2, %v6661_v0  ;;  %581 = vst.msk [vmem:[#allocation2 + $0xe9] sm:$0x1] %vm548_vm2, %v6661_v0  ;;  %vm1360_vm10 = vcmask 228352   ;;  %vm1428_vm11 = vcmask 293888  }
  0x85   : > { %582 = vst.msk [vmem:[#allocation2 + $0xf9] sm:$0x1] %vm548_vm2, %v6661_v0  ;;  %583 = vst.msk [vmem:[#allocation2 + $0x109] sm:$0x1] %vm548_vm2, %v6661_v0  ;;  %vm1588_vm12 = vcmask 254976   ;;  %vm1593_vm13 = vcmask 253952  }
  0x86   : > { %4886 = vst.msk [vmem:[#allocation5] sm:$0x1] %vm548_vm2, %v6661_v0  ;;  %4887 = vst.msk [vmem:[#allocation5 + $0x9] sm:$0x1] %vm548_vm2, %v6661_v0  ;;  %s6670_s13 = smov 64   ;;  %vm2192_vm14 = vcmask 523264  }
  0x87   : > { %566 = vst.msk [vmem:[#allocation2 + $0x110] sm:$0x1] %vm548_vm2, %v6661_v0  ;;  %584 = vst.msk [vmem:[#allocation2 + $0x119] sm:$0x1] %vm548_vm2, %v6661_v0  ;;  %vm2209_vm15 = vcmask 785408   ;;  %vm3500_vm1 = vcmask 521216  }
  0x88   : > { %586 = vst.msk [vmem:[#allocation2 + $0x11] sm:$0xff] %vm541_vm0, %v524_v1  ;;  %587 = vst.msk [vmem:[#allocation2 + $0x21] sm:$0xff] %vm541_vm0, %v525_v2  ;;  %vm3504_vm2 = vcmask 516096   ;;  %vm3050_vm3 = vcmask 517120   ;;  %s5718_s28 = smul.u32 36, %s8319_s24 }
  0x89   : > { %588 = vst.msk [vmem:[#allocation2 + $0x31] sm:$0xff] %vm541_vm0, %v526_v3  ;;  %589 = vst.msk [vmem:[#allocation2 + $0x41] sm:$0xff] %vm541_vm0, %v527_v4 }
  0x8a   : > { %590 = vst.msk [vmem:[#allocation2 + $0x51] sm:$0xff] %vm541_vm0, %v528_v5  ;;  %591 = vst.msk [vmem:[#allocation2 + $0x61] sm:$0xff] %vm541_vm0, %v529_v6 }
  0x8b   : > { %592 = vst.msk [vmem:[#allocation2 + $0x71] sm:$0xff] %vm541_vm0, %v530_v7  ;;  %593 = vst.msk [vmem:[#allocation2 + $0x81] sm:$0xff] %vm541_vm0, %v531_v8 }
  0x8c   : > { %594 = vst.msk [vmem:[#allocation2 + $0x91] sm:$0xff] %vm541_vm0, %v532_v9  ;;  %595 = vst.msk [vmem:[#allocation2 + $0xa1] sm:$0xff] %vm541_vm0, %v533_v10 }
  0x8d   : > { %596 = vst.msk [vmem:[#allocation2 + $0xb1] sm:$0xff] %vm541_vm0, %v534_v11  ;;  %597 = vst.msk [vmem:[#allocation2 + $0xc1] sm:$0xff] %vm541_vm0, %v535_v12 }
  0x8e   : > { %598 = vst.msk [vmem:[#allocation2 + $0xd1] sm:$0xff] %vm541_vm0, %v536_v13  ;;  %599 = vst.msk [vmem:[#allocation2 + $0xe1] sm:$0xff] %vm541_vm0, %v537_v14 }
  0x8f   : > { %600 = vst.msk [vmem:[#allocation2 + $0xf1] sm:$0xff] %vm541_vm0, %v538_v15  ;;  %601 = vst.msk [vmem:[#allocation2 + $0x101] sm:$0xff] %vm541_vm0, %v539_v16  ;;  %v635_v19 = vld [vmem:[#allocation2 + $0x12] sm:$0xff]  ;;  %v636_v21 = vld [vmem:[#allocation2 + $0x22] sm:$0xff] }
  0x90   : > { %v619_v20 = vld [vmem:[#allocation2 + $0x11] sm:$0xff]  ;;  %v5823_v22 = vpack.i.bf16 %v635_v19, %v634_v17  ;;  %v620_v25 = vld [vmem:[#allocation2 + $0x21] sm:$0xff]  ;;  %v5853_v40 = vpack.i.bf16 %v636_v21, %v635_v19  ;;  %1587 = vst.msk [vmem:[#allocation3] sm:$0xff] %vm1377_vm4, %v6661_v0  ;;  %1591 = vst.msk [vmem:[#allocation3 + $0x110] sm:$0xff] %vm1377_vm4, %v6661_v0 }
  0x91   : > { %v5813_v23 = vpack.i.bf16 %v619_v20, %v618_v18  ;;  %v637_v24 = vld [vmem:[#allocation2 + $0x32] sm:$0xff]  ;;  %v6969_v30 = vld [vmem:[#allocation2 + $0x40] sm:$0xff]  ;;  %v5843_v37 = vpack.i.bf16 %v620_v25, %v619_v20  ;;  %1589 = vst.msk [vmem:[#allocation3 + $0x8] sm:$0x3] %vm1588_vm12, %v6661_v0  ;;  %1592 = vst.msk [vmem:[#allocation3 + $0x118] sm:$0x3] %vm1588_vm12, %v6661_v0 }
  0x92   : > { %v621_v26 = vld [vmem:[#allocation2 + $0x31] sm:$0xff]  ;;  %5824 = vrot.lane.b32.xlu1 %v5823_v22, %s6662_s23  ;;  %v5828_v27 = vpack.i.bf16 %v637_v24, %v636_v21  ;;  %v6973_v32 = vld [vmem:[#allocation2 + $0x20] sm:$0xff]  ;;  %1594 = vst.msk [vmem:[#allocation3] sm:$0x1] %vm1593_vm13, %v6661_v0  ;;  %1595 = vst.msk [vmem:[#allocation3 + $0x10] sm:$0x1] %vm1593_vm13, %v6661_v0 }
  0x93   : > { %5814 = vrot.lane.b32.xlu0 %v5813_v23, %s6663_s16  ;;  %v5818_v28 = vpack.i.bf16 %v621_v26, %v620_v25  ;;  %v6967_v29 = vld [vmem:[#allocation2 + $0x30] sm:$0xff]  ;;  %v669_v35 = vld [vmem:[#allocation2 + $0x41] sm:$0xff]  ;;  %1596 = vst.msk [vmem:[#allocation3 + $0x20] sm:$0x1] %vm1593_vm13, %v6661_v0  ;;  %1597 = vst.msk [vmem:[#allocation3 + $0x30] sm:$0x1] %vm1593_vm13, %v6661_v0 }
  0x94   : > { %v6971_v31 = vld [vmem:[#allocation2 + $0x10] sm:$0xff]  ;;  %v5838_v33 = vpack.i.bf16 %v6969_v30, %v6967_v29  ;;  %v5848_v36 = vpack.i.bf16 %v669_v35, %v621_v26  ;;  %v685_v38 = vld [vmem:[#allocation2 + $0x42] sm:$0xff]  ;;  %v5863_v47 = vpack.i.bf16 %v6967_v29, %v6973_v32  ;;  %1598 = vst.msk [vmem:[#allocation3 + $0x40] sm:$0x1] %vm1593_vm13, %v6661_v0  ;;  %1599 = vst.msk [vmem:[#allocation3 + $0x50] sm:$0x1] %vm1593_vm13, %v6661_v0 }
  0x95   : > { %v5833_v34 = vpack.i.bf16 %v6973_v32, %v6971_v31  ;;  %v5858_v39 = vpack.i.bf16 %v685_v38, %v637_v24  ;;  %v6985_v41 = vld [vmem:[#allocation2 + $0x50] sm:$0xff]  ;;  %v624_v51 = vld [vmem:[#allocation2 + $0x61] sm:$0xff]  ;;  %1600 = vst.msk [vmem:[#allocation3 + $0x60] sm:$0x1] %vm1593_vm13, %v6661_v0  ;;  %1601 = vst.msk [vmem:[#allocation3 + $0x70] sm:$0x1] %vm1593_vm13, %v6661_v0 }
  0x96   : > { %5829 = vrot.lane.b32.xlu1 %v5828_v27, %s6662_s23  ;;  %v718_v44 = vld [vmem:[#allocation2 + $0x51] sm:$0xff]  ;;  %v5868_v46 = vpack.i.bf16 %v6985_v41, %v6969_v30  ;;  %v640_v54 = vld [vmem:[#allocation2 + $0x62] sm:$0xff]  ;;  %1602 = vst.msk [vmem:[#allocation3 + $0x80] sm:$0x1] %vm1593_vm13, %v6661_v0  ;;  %1603 = vst.msk [vmem:[#allocation3 + $0x90] sm:$0x1] %vm1593_vm13, %v6661_v0 }
  0x97   : > { %5819 = vrot.lane.b32.xlu0 %v5818_v28, %s6663_s16  ;;  %v734_v49 = vld [vmem:[#allocation2 + $0x52] sm:$0xff]  ;;  %v5878_v50 = vpack.i.bf16 %v718_v44, %v669_v35  ;;  %v7014_v58 = vld [vmem:[#allocation2 + $0x80] sm:$0xff]  ;;  %v5923_v3 = vpack.i.bf16 %v624_v51, %v718_v44  ;;  %1604 = vst.msk [vmem:[#allocation3 + $0xa0] sm:$0x1] %vm1593_vm13, %v6661_v0  ;;  %1605 = vst.msk [vmem:[#allocation3 + $0xb0] sm:$0x1] %vm1593_vm13, %v6661_v0 }
  0x98   : > { %v625_v52 = vld [vmem:[#allocation2 + $0x71] sm:$0xff]  ;;  %v5888_v53 = vpack.i.bf16 %v734_v49, %v685_v38  ;;  %v7016_v59 = vld [vmem:[#allocation2 + $0x60] sm:$0xff]  ;;  %v5933_v6 = vpack.i.bf16 %v640_v54, %v734_v49  ;;  %1606 = vst.msk [vmem:[#allocation3 + $0xc0] sm:$0x1] %vm1593_vm13, %v6661_v0  ;;  %1607 = vst.msk [vmem:[#allocation3 + $0xd0] sm:$0x1] %vm1593_vm13, %v6661_v0 }
  0x99   : > { %v641_v55 = vld [vmem:[#allocation2 + $0x72] sm:$0xff]  ;;  %v5898_v56 = vpack.i.bf16 %v625_v52, %v624_v51  ;;  %v673_v61 = vld [vmem:[#allocation2 + $0x81] sm:$0xff]  ;;  %v5913_v63 = vpack.i.bf16 %v7016_v59, %v6985_v41  ;;  %1608 = vst.msk [vmem:[#allocation3 + $0xe0] sm:$0x1] %vm1593_vm13, %v6661_v0  ;;  %1609 = vst.msk [vmem:[#allocation3 + $0xf0] sm:$0x1] %vm1593_vm13, %v6661_v0 }
  0x9a   : > { %5839 = vrot.lane.b32.xlu1 %v5838_v33, %s6664_s17  ;;  %v7012_v57 = vld [vmem:[#allocation2 + $0x70] sm:$0xff]  ;;  %v5908_v60 = vpack.i.bf16 %v641_v55, %v640_v54  ;;  %v689_v1 = vld [vmem:[#allocation2 + $0x82] sm:$0xff]  ;;  %v5928_v2 = vpack.i.bf16 %v673_v61, %v625_v52  ;;  %1610 = vst.msk [vmem:[#allocation3 + $0x100] sm:$0x1] %vm1593_vm13, %v6661_v0  ;;  %1611 = vst.msk [vmem:[#allocation3 + $0x110] sm:$0x1] %vm1593_vm13, %v6661_v0 }
  0x9b   : > { %5834 = vrot.lane.b32.xlu0 %v5833_v34, %s6664_s17  ;;  %v5918_v62 = vpack.i.bf16 %v7014_v58, %v7012_v57  ;;  %v7028_v4 = vld [vmem:[#allocation2 + $0x90] sm:$0xff]  ;;  %v5938_v5 = vpack.i.bf16 %v689_v1, %v641_v55  ;;  %v5943_v9 = vpack.i.bf16 %v7012_v57, %v7016_v59  ;;  %v628_v13 = vld [vmem:[#allocation2 + $0xa1] sm:$0xff]  ;;  %1613 = vst.msk [vmem:[#allocation3 + $0x19] sm:$0x1] %vm1593_vm13, %v6661_v0  ;;  %1614 = vst.msk [vmem:[#allocation3 + $0x29] sm:$0x1] %vm1593_vm13, %v6661_v0 }
  0x9c   : > { %v722_v7 = vld [vmem:[#allocation2 + $0x91] sm:$0xff]  ;;  %v5948_v8 = vpack.i.bf16 %v7028_v4, %v7014_v58  ;;  %v644_v16 = vld [vmem:[#allocation2 + $0xa2] sm:$0xff]  ;;  %1615 = vst.msk [vmem:[#allocation3 + $0x39] sm:$0x1] %vm1593_vm13, %v6661_v0  ;;  %1616 = vst.msk [vmem:[#allocation3 + $0x49] sm:$0x1] %vm1593_vm13, %v6661_v0 }
  0x9d   : > { %v738_v10 = vld [vmem:[#allocation2 + $0x92] sm:$0xff]  ;;  %v5958_v11 = vpack.i.bf16 %v722_v7, %v673_v61  ;;  %v7048_v20 = vld [vmem:[#allocation2 + $0xc0] sm:$0xff]  ;;  %v6003_v26 = vpack.i.bf16 %v628_v13, %v722_v7  ;;  %1617 = vst.msk [vmem:[#allocation3 + $0x59] sm:$0x1] %vm1593_vm13, %v6661_v0  ;;  %1618 = vst.msk [vmem:[#allocation3 + $0x69] sm:$0x1] %vm1593_vm13, %v6661_v0 }
  0x9e   : > { %5849 = vrot.lane.b32.xlu1 %v5848_v36, %s6665_s27  ;;  %v5968_v12 = vpack.i.bf16 %v738_v10, %v689_v1  ;;  %v629_v14 = vld [vmem:[#allocation2 + $0xb1] sm:$0xff]  ;;  %v7050_v21 = vld [vmem:[#allocation2 + $0xa0] sm:$0xff]  ;;  %v6013_v33 = vpack.i.bf16 %v644_v16, %v738_v10  ;;  %1619 = vst.msk [vmem:[#allocation3 + $0x79] sm:$0x1] %vm1593_vm13, %v6661_v0  ;;  %1620 = vst.msk [vmem:[#allocation3 + $0x89] sm:$0x1] %vm1593_vm13, %v6661_v0 }
  0x9f   : > { %5844 = vrot.lane.b32.xlu0 %v5843_v37, %s6665_s27  ;;  %v5978_v15 = vpack.i.bf16 %v629_v14, %v628_v13  ;;  %v645_v17 = vld [vmem:[#allocation2 + $0xb2] sm:$0xff]  ;;  %v5993_v23 = vpack.i.bf16 %v7050_v21, %v7028_v4  ;;  %v677_v24 = vld [vmem:[#allocation2 + $0xc1] sm:$0xff]  ;;  %1621 = vst.msk [vmem:[#allocation3 + $0x99] sm:$0x1] %vm1593_vm13, %v6661_v0  ;;  %1622 = vst.msk [vmem:[#allocation3 + $0xa9] sm:$0x1] %vm1593_vm13, %v6661_v0 }
  0xa0   : > { %v5988_v18 = vpack.i.bf16 %v645_v17, %v644_v16  ;;  %v7046_v19 = vld [vmem:[#allocation2 + $0xb0] sm:$0xff]  ;;  %v6008_v25 = vpack.i.bf16 %v677_v24, %v629_v14  ;;  %v632_v42 = vld [vmem:[#allocation2 + $0xe1] sm:$0xff]  ;;  %1623 = vst.msk [vmem:[#allocation3 + $0xb9] sm:$0x1] %vm1593_vm13, %v6661_v0  ;;  %1624 = vst.msk [vmem:[#allocation3 + $0xc9] sm:$0x1] %vm1593_vm13, %v6661_v0 }
  0xa1   : > { %v5998_v22 = vpack.i.bf16 %v7048_v20, %v7046_v19  ;;  %v7062_v34 = vld [vmem:[#allocation2 + $0xd0] sm:$0xff]  ;;  %v6023_v36 = vpack.i.bf16 %v7046_v19, %v7050_v21  ;;  %v648_v45 = vld [vmem:[#allocation2 + $0xe2] sm:$0xff]  ;;  %1625 = vst.msk [vmem:[#allocation3 + $0xd9] sm:$0x1] %vm1593_vm13, %v6661_v0  ;;  %1626 = vst.msk [vmem:[#allocation3 + $0xe9] sm:$0x1] %vm1593_vm13, %v6661_v0 }
  0xa2   : > { %5859 = vrot.lane.b32.xlu1 %v5858_v39, %s6666_s22  ;;  %v6028_v35 = vpack.i.bf16 %v7062_v34, %v7048_v20  ;;  %v726_v37 = vld [vmem:[#allocation2 + $0xd1] sm:$0xff]  ;;  %v665_v49 = vld [vmem:[#allocation2 + $0x100] sm:$0xff]  ;;  %1627 = vst.msk [vmem:[#allocation3 + $0xf9] sm:$0x1] %vm1593_vm13, %v6661_v0  ;;  %1628 = vst.msk [vmem:[#allocation3 + $0x109] sm:$0x1] %vm1593_vm13, %v6661_v0 }
  0xa3   : > { %5854 = vrot.lane.b32.xlu0 %v5853_v40, %s6666_s22  ;;  %v6038_v38 = vpack.i.bf16 %v726_v37, %v677_v24  ;;  %v742_v39 = vld [vmem:[#allocation2 + $0xd2] sm:$0xff]  ;;  %v6083_v55 = vpack.i.bf16 %v632_v42, %v726_v37  ;;  %4966 = vst.msk [vmem:[#allocation6] sm:$0x1] %vm1593_vm13, %v6661_v0  ;;  %4967 = vst.msk [vmem:[#allocation6 + $0x9] sm:$0x1] %vm1593_vm13, %v6661_v0  ;;  %vm6673_vm12 = vmmov 0  }
  0xa4   : > { %v633_v43 = vld [vmem:[#allocation2 + $0xf1] sm:$0xff]  ;;  %v6093_v61 = vpack.i.bf16 %v648_v45, %v742_v39  ;;  %1612 = vst.msk [vmem:[#allocation3 + $0x9] sm:$0x1] %vm1593_vm13, %v6661_v0  ;;  %1629 = vst.msk [vmem:[#allocation3 + $0x119] sm:$0x1] %vm1593_vm13, %v6661_v0 }
  0xa5   : > { %v6058_v44 = vpack.i.bf16 %v633_v43, %v632_v42  ;;  %v7078_v48 = vld [vmem:[#allocation2 + $0xf0] sm:$0xff]  ;;  %3501 = vst.msk [vmem:[#allocation4] sm:$0x3f] %vm3500_vm1, %v6661_v0  ;;  %3503 = vst.msk [vmem:[#allocation4 + $0x88] sm:$0x3f] %vm3500_vm1, %v6661_v0 }
  0xa6   : > { %5869 = vrot.lane.b32.xlu1 %v5868_v46, %s6667_s14  ;;  %v649_v46 = vld [vmem:[#allocation2 + $0xf2] sm:$0xff]  ;;  %v6078_v51 = vpack.i.bf16 %v665_v49, %v7078_v48  ;;  %3506 = vst.msk [vmem:[#allocation4 + $0x8] sm:$0x1] %vm3504_vm2, %v6661_v0  ;;  %3505 = vst.msk [vmem:[#allocation4] sm:$0x1] %vm3504_vm2, %v6661_v0 }
  0xa7   : > { %5864 = vrot.lane.b32.xlu0 %v5863_v47, %s6667_s14  ;;  %v6068_v47 = vpack.i.bf16 %v649_v46, %v648_v45  ;;  %v746_v7 = vld [vmem:[#allocation2 + $0x112] sm:$0xff]  ;;  %3507 = vst.msk [vmem:[#allocation4 + $0x10] sm:$0x1] %vm3504_vm2, %v6661_v0  ;;  %3508 = vst.msk [vmem:[#allocation4 + $0x18] sm:$0x1] %vm3504_vm2, %v6661_v0 }
  0xa8   : > { %3509 = vst.msk [vmem:[#allocation4 + $0x20] sm:$0x1] %vm3504_vm2, %v6661_v0  ;;  %3510 = vst.msk [vmem:[#allocation4 + $0x28] sm:$0x1] %vm3504_vm2, %v6661_v0 }
  0xa9   : > { %3511 = vst.msk [vmem:[#allocation4 + $0x30] sm:$0x1] %vm3504_vm2, %v6661_v0  ;;  %3512 = vst.msk [vmem:[#allocation4 + $0x38] sm:$0x1] %vm3504_vm2, %v6661_v0 }
  0xaa   : > { %5879 = vrot.lane.b32.xlu1 %v5878_v50, %s6668_s25  ;;  %3513 = vst.msk [vmem:[#allocation4 + $0x40] sm:$0x1] %vm3504_vm2, %v6661_v0  ;;  %3514 = vst.msk [vmem:[#allocation4 + $0x48] sm:$0x1] %vm3504_vm2, %v6661_v0 }
  0xab   : > { %5874 = vrot.lane.b32.xlu0 %v5818_v28, %s6668_s25  ;;  %3515 = vst.msk [vmem:[#allocation4 + $0x50] sm:$0x1] %vm3504_vm2, %v6661_v0  ;;  %3516 = vst.msk [vmem:[#allocation4 + $0x58] sm:$0x1] %vm3504_vm2, %v6661_v0 }
  0xac   : > { %3517 = vst.msk [vmem:[#allocation4 + $0x60] sm:$0x1] %vm3504_vm2, %v6661_v0  ;;  %3518 = vst.msk [vmem:[#allocation4 + $0x68] sm:$0x1] %vm3504_vm2, %v6661_v0 }
  0xad   : > { %3519 = vst.msk [vmem:[#allocation4 + $0x70] sm:$0x1] %vm3504_vm2, %v6661_v0  ;;  %3520 = vst.msk [vmem:[#allocation4 + $0x78] sm:$0x1] %vm3504_vm2, %v6661_v0 }
  0xae   : > { %5889 = vrot.lane.b32.xlu1 %v5888_v53, %s6669_s30  ;;  %3521 = vst.msk [vmem:[#allocation4 + $0x80] sm:$0x1] %vm3504_vm2, %v6661_v0  ;;  %3522 = vst.msk [vmem:[#allocation4 + $0x88] sm:$0x1] %vm3504_vm2, %v6661_v0 }
  0xaf   : > { %5884 = vrot.lane.b32.xlu0 %v5828_v27, %s6669_s30  ;;  %v693_v27 = vld [vmem:[#allocation2 + $0xc2] sm:$0xff]  ;;  %3523 = vst.msk [vmem:[#allocation4 + $0x5] sm:$0x1] %vm3504_vm2, %v6661_v0  ;;  %3524 = vst.msk [vmem:[#allocation4 + $0xd] sm:$0x1] %vm3504_vm2, %v6661_v0 }
  0xb0   : > { %v6018_v28 = vpack.i.bf16 %v693_v27, %v645_v17  ;;  %v6048_v40 = vpack.i.bf16 %v742_v39, %v693_v27  ;;  %3525 = vst.msk [vmem:[#allocation4 + $0x15] sm:$0x1] %vm3504_vm2, %v6661_v0  ;;  %3526 = vst.msk [vmem:[#allocation4 + $0x1d] sm:$0x1] %vm3504_vm2, %v6661_v0 }
  0xb1   : > { %3527 = vst.msk [vmem:[#allocation4 + $0x25] sm:$0x1] %vm3504_vm2, %v6661_v0  ;;  %3528 = vst.msk [vmem:[#allocation4 + $0x2d] sm:$0x1] %vm3504_vm2, %v6661_v0 }
  0xb2   : > { %5899 = vrot.lane.b32.xlu1 %v5898_v56, %s6663_s16  ;;  %3529 = vst.msk [vmem:[#allocation4 + $0x35] sm:$0x1] %vm3504_vm2, %v6661_v0  ;;  %3530 = vst.msk [vmem:[#allocation4 + $0x3d] sm:$0x1] %vm3504_vm2, %v6661_v0 }
  0xb3   : > { %5894 = vrot.lane.b32.xlu0 %v5878_v50, %s6663_s16  ;;  %v7080_v50 = vld [vmem:[#allocation2 + $0xe0] sm:$0xff]  ;;  %3531 = vst.msk [vmem:[#allocation4 + $0x45] sm:$0x1] %vm3504_vm2, %v6661_v0  ;;  %3532 = vst.msk [vmem:[#allocation4 + $0x4d] sm:$0x1] %vm3504_vm2, %v6661_v0 }
  0xb4   : > { %v6073_v52 = vpack.i.bf16 %v7080_v50, %v7062_v34  ;;  %v6103_v1 = vpack.i.bf16 %v7078_v48, %v7080_v50  ;;  %3533 = vst.msk [vmem:[#allocation4 + $0x55] sm:$0x1] %vm3504_vm2, %v6661_v0  ;;  %3534 = vst.msk [vmem:[#allocation4 + $0x5d] sm:$0x1] %vm3504_vm2, %v6661_v0 }
  0xb5   : > { %3535 = vst.msk [vmem:[#allocation4 + $0x65] sm:$0x1] %vm3504_vm2, %v6661_v0  ;;  %3536 = vst.msk [vmem:[#allocation4 + $0x6d] sm:$0x1] %vm3504_vm2, %v6661_v0 }
  0xb6   : > { %5909 = vrot.lane.b32.xlu1 %v5908_v60, %s6662_s23  ;;  %3537 = vst.msk [vmem:[#allocation4 + $0x75] sm:$0x1] %vm3504_vm2, %v6661_v0  ;;  %3538 = vst.msk [vmem:[#allocation4 + $0x7d] sm:$0x1] %vm3504_vm2, %v6661_v0 }
  0xb7   : > { %5904 = vrot.lane.b32.xlu0 %v5888_v53, %s6662_s23  ;;  %v681_v53 = vld [vmem:[#allocation2 + $0x101] sm:$0xff]  ;;  %3539 = vst.msk [vmem:[#allocation4 + $0x85] sm:$0x1] %vm3504_vm2, %v6661_v0  ;;  %3540 = vst.msk [vmem:[#allocation4 + $0x8d] sm:$0x1] %vm3504_vm2, %v6661_v0 }
  0xb8   : > { %v6088_v54 = vpack.i.bf16 %v681_v53, %v633_v43 }
  0xba   : > { %5919 = vrot.lane.b32.xlu1 %v5918_v62, %s6664_s17  ;;  %v714_v62 = vld [vmem:[#allocation2 + $0x110] sm:$0xff] }
  0xbb   : > { %5914 = vrot.lane.b32.xlu0 %v5913_v63, %s6664_s17  ;;  %v6108_v63 = vpack.i.bf16 %v714_v62, %v665_v49 }
  0xbe   : > { %5929 = vrot.lane.b32.xlu1 %v5928_v2, %s6665_s27  ;;  %v730_v2 = vld [vmem:[#allocation2 + $0x111] sm:$0xff] }
  0xbf   : > { %5924 = vrot.lane.b32.xlu0 %v5923_v3, %s6665_s27 }
  0xc2   : > { %5939 = vrot.lane.b32.xlu1 %v5938_v5, %s6666_s22 }
  0xc3   : > { %5934 = vrot.lane.b32.xlu0 %v5933_v6, %s6666_s22  ;;  %v6118_v6 = vpack.i.bf16 %v730_v2, %v681_v53 }
  0xc6   : > { %5949 = vrot.lane.b32.xlu1 %v5948_v8, %s6667_s14 }
  0xc7   : > { %5944 = vrot.lane.b32.xlu0 %v5943_v9, %s6667_s14 }
  0xca   : > { %5959 = vrot.lane.b32.xlu1 %v5958_v11, %s6668_s25 }
  0xcb   : > { %5954 = vrot.lane.b32.xlu0 %v5898_v56, %s6668_s25  ;;  %v697_v56 = vld [vmem:[#allocation2 + $0x102] sm:$0xff] }
  0xcc   : > { %v6128_v10 = vpack.i.bf16 %v746_v7, %v697_v56 }
  0xce   : > { %5969 = vrot.lane.b32.xlu1 %v5968_v12, %s6669_s30 }
  0xcf   : > { %5964 = vrot.lane.b32.xlu0 %v5908_v60, %s6669_s30  ;;  %v6098_v60 = vpack.i.bf16 %v697_v56, %v649_v46 }
  0xd2   : > { %5979 = vrot.lane.b32.xlu1 %v5978_v15, %s6663_s16 }
  0xd3   : > { %5974 = vrot.lane.b32.xlu0 %v5958_v11, %s6663_s16 }
  0xd6   : > { %5989 = vrot.lane.b32.xlu1 %v5988_v18, %s6662_s23 }
  0xd7   : > { %5984 = vrot.lane.b32.xlu0 %v5968_v12, %s6662_s23 }
  0xda   : > { %5999 = vrot.lane.b32.xlu1 %v5998_v22, %s6664_s17  ;;  %v602_v22 = vld [vmem:[#allocation2] sm:$0xff] }
  0xdb   : > { %5994 = vrot.lane.b32.xlu0 %v5993_v23, %s6664_s17 }
  0xde   : > { %6009 = vrot.lane.b32.xlu1 %v6008_v25, %s6665_s27 }
  0xdf   : > { %6004 = vrot.lane.b32.xlu0 %v6003_v26, %s6665_s27 }
  0xe2   : > { %6019 = vrot.lane.b32.xlu1 %v6018_v28, %s6666_s22 }
  0xe3   : > { %6014 = vrot.lane.b32.xlu0 %v6013_v33, %s6666_s22 }
  0xe6   : > { %6029 = vrot.lane.b32.xlu1 %v6028_v35, %s6667_s14 }
  0xe7   : > { %6024 = vrot.lane.b32.xlu0 %v6023_v36, %s6667_s14 }
  0xea   : > { %6039 = vrot.lane.b32.xlu1 %v6038_v38, %s6668_s25 }
  0xeb   : > { %6034 = vrot.lane.b32.xlu0 %v5978_v15, %s6668_s25 }
  0xee   : > { %6049 = vrot.lane.b32.xlu1 %v6048_v40, %s6669_s30 }
  0xef   : > { %6044 = vrot.lane.b32.xlu0 %v5988_v18, %s6669_s30 }
  0xf2   : > { %6059 = vrot.lane.b32.xlu1 %v6058_v44, %s6663_s16 }
  0xf3   : > { %6054 = vrot.lane.b32.xlu0 %v6038_v38, %s6663_s16 }
  0xf6   : > { %6069 = vrot.lane.b32.xlu1 %v6068_v47, %s6662_s23 }
  0xf7   : > { %6064 = vrot.lane.b32.xlu0 %v6048_v40, %s6662_s23 }
  0xfa   : > { %6079 = vrot.lane.b32.xlu1 %v6078_v51, %s6664_s17 }
  0xfb   : > { %6074 = vrot.lane.b32.xlu0 %v6073_v52, %s6664_s17 }
  0xfe   : > { %6089 = vrot.lane.b32.xlu1 %v6088_v54, %s6665_s27 }
  0xff   : > { %6084 = vrot.lane.b32.xlu0 %v6083_v55, %s6665_s27 }
 0x102   : > { %6099 = vrot.lane.b32.xlu1 %v6098_v60, %s6666_s22 }
 0x103   : > { %6094 = vrot.lane.b32.xlu0 %v6093_v61, %s6666_s22 }
 0x104   : > { %v5825_v3 = vpop.permute.xlu1 %5824 }
 0x105   : > { %v5815_v5 = vpop.permute.xlu0 %5814  ;;  %v5827_v23 = vunpack.i.h.bf16 %v5825_v3  ;;  %v5826_v24 = vunpack.i.l.bf16 %v5825_v3 }
 0x106   : > { %6109 = vrot.lane.b32.xlu1 %v6108_v63, %s6667_s14  ;;  %v5817_v15 = vunpack.i.h.bf16 %v5815_v5  ;;  %v5816_v16 = vunpack.i.l.bf16 %v5815_v5 }
 0x107   : > { %6104 = vrot.lane.b32.xlu0 %v6103_v1, %s6667_s14  ;;  %s6671_s14 = smov 96  }
 0x108   : > { %v5830_v8 = vpop.permute.xlu1 %5829  ;;  %v1259_v33 = vsel %vm541_vm0, %v602_v22, %v5816_v16  ;;  %v1260_v35 = vsel %vm541_vm0, %v6971_v31, %v5817_v15 }
 0x109   : > { %v5820_v9 = vpop.permute.xlu0 %5819  ;;  %v5832_v25 = vunpack.i.h.bf16 %v5830_v8  ;;  %v5831_v26 = vunpack.i.l.bf16 %v5830_v8  ;;  %v1276_v31 = vsel %vm1275_vm5, %v1259_v33, %v5826_v24  ;;  %v1277_v45 = vsel %vm1275_vm5, %v1260_v35, %v5827_v23 }
 0x10a   : > { %6119 = vrot.lane.b32.xlu1 %v6118_v6, %s6668_s25  ;;  %v5822_v17 = vunpack.i.h.bf16 %v5820_v9  ;;  %v5821_v18 = vunpack.i.l.bf16 %v5820_v9 }
 0x10b   : > { %6114 = vrot.lane.b32.xlu0 %v6058_v44, %s6668_s25  ;;  %s5286_s25 = sshll.u32 %s8319_s24, 3 }
 0x10c   : > { %v5840_v11 = vpop.permute.xlu1 %5839  ;;  %v1262_v36 = vsel %vm541_vm0, %v6967_v29, %v5822_v17  ;;  %v1261_v37 = vsel %vm541_vm0, %v6973_v32, %v5821_v18  ;;  %s517_s17 = scalar_lea.vmem %s8292_s1, %s5286_s25 }
 0x10d   : > { %v5835_v12 = vpop.permute.xlu0 %5834  ;;  %v5842_v38 = vunpack.i.h.bf16 %v5840_v11  ;;  %v5841_v39 = vunpack.i.l.bf16 %v5840_v11  ;;  %v1278_v43 = vsel %vm1275_vm5, %v1261_v37, %v5831_v26  ;;  %v1279_v44 = vsel %vm1275_vm5, %v1262_v36, %v5832_v25 }
 0x10e   : > { %6129 = vrot.lane.b32.xlu1 %v6128_v10, %s6669_s30  ;;  %v5837_v40 = vunpack.i.h.bf16 %v5835_v12  ;;  %v5836_v42 = vunpack.i.l.bf16 %v5835_v12 }
 0x10f   : > { %6124 = vrot.lane.b32.xlu0 %v6068_v47, %s6669_s30  ;;  %v1295_v52 = vsel %vm1292_vm6, %v1278_v43, %v5841_v39  ;;  %v1296_v53 = vsel %vm1292_vm6, %v1279_v44, %v5842_v38 }
 0x110   : > { %v5850_v13 = vpop.permute.xlu1 %5849  ;;  %v1293_v54 = vsel %vm1292_vm6, %v1276_v31, %v5836_v42  ;;  %v1294_v55 = vsel %vm1292_vm6, %v1277_v45, %v5837_v40 }
 0x111   : > { %v5845_v14 = vpop.permute.xlu0 %5844  ;;  %v5852_v47 = vunpack.i.h.bf16 %v5850_v13  ;;  %v5851_v32 = vunpack.i.l.bf16 %v5850_v13 }
 0x112   : > { %v5847_v49 = vunpack.i.h.bf16 %v5845_v14  ;;  %v5846_v51 = vunpack.i.l.bf16 %v5845_v14 }
 0x113   : > { %v1312_v7 = vsel %vm1309_vm7, %v1295_v52, %v5851_v32  ;;  %v1313_v8 = vsel %vm1309_vm7, %v1296_v53, %v5852_v47 }
 0x114   : > { %v5860_v27 = vpop.permute.xlu1 %5859  ;;  %v1310_v9 = vsel %vm1309_vm7, %v1293_v54, %v5846_v51  ;;  %v1311_v10 = vsel %vm1309_vm7, %v1294_v55, %v5847_v49 }
 0x115   : > { %v5855_v28 = vpop.permute.xlu0 %5854  ;;  %v5862_v56 = vunpack.i.h.bf16 %v5860_v27  ;;  %v5861_v60 = vunpack.i.l.bf16 %v5860_v27 }
 0x116   : > { %v5857_v61 = vunpack.i.h.bf16 %v5855_v28  ;;  %v5856_v62 = vunpack.i.l.bf16 %v5855_v28 }
 0x117   : > { %v1329_v15 = vsel %vm1326_vm8, %v1312_v7, %v5861_v60  ;;  %v1330_v16 = vsel %vm1326_vm8, %v1313_v8, %v5862_v56 }
 0x118   : > { %v5870_v29 = vpop.permute.xlu1 %5869  ;;  %v1327_v17 = vsel %vm1326_vm8, %v1310_v9, %v5856_v62  ;;  %v1328_v18 = vsel %vm1326_vm8, %v1311_v10, %v5857_v61 }
 0x119   : > { %v5865_v46 = vpop.permute.xlu0 %5864  ;;  %v5872_v63 = vunpack.i.h.bf16 %v5870_v29  ;;  %v5871_v1 = vunpack.i.l.bf16 %v5870_v29 }
 0x11a   : > { %v5867_v2 = vunpack.i.h.bf16 %v5865_v46  ;;  %v5866_v3 = vunpack.i.l.bf16 %v5865_v46 }
 0x11b   : > { %v1346_v22 = vsel %vm1343_vm9, %v1329_v15, %v5871_v1  ;;  %v1347_v23 = vsel %vm1343_vm9, %v1330_v16, %v5872_v63 }
 0x11c   : > { %v5880_v5 = vpop.permute.xlu1 %5879  ;;  %v1344_v26 = vsel %vm1343_vm9, %v1327_v17, %v5866_v3  ;;  %v1345_v27 = vsel %vm1343_vm9, %v1328_v18, %v5867_v2 }
 0x11d   : > { %v5875_v6 = vpop.permute.xlu0 %5874  ;;  %v5882_v11 = vunpack.i.h.bf16 %v5880_v5  ;;  %v5881_v12 = vunpack.i.l.bf16 %v5880_v5 }
 0x11e   : > { %v5877_v13 = vunpack.i.h.bf16 %v5875_v6  ;;  %v5876_v14 = vunpack.i.l.bf16 %v5875_v6 }
 0x11f   : > { %v1363_v37 = vsel %vm1360_vm10, %v1346_v22, %v5881_v12  ;;  %v1364_v38 = vsel %vm1360_vm10, %v1347_v23, %v5882_v11 }
 0x120   : > { %v5890_v24 = vpop.permute.xlu1 %5889  ;;  %v1361_v39 = vsel %vm1360_vm10, %v1344_v26, %v5876_v14  ;;  %v1362_v40 = vsel %vm1360_vm10, %v1345_v27, %v5877_v13 }
 0x121   : > { %v5885_v25 = vpop.permute.xlu0 %5884  ;;  %v5892_v28 = vunpack.i.h.bf16 %v5890_v24  ;;  %v5891_v33 = vunpack.i.l.bf16 %v5890_v24 }
 0x122   : > { %v5887_v35 = vunpack.i.h.bf16 %v5885_v25  ;;  %v5886_v36 = vunpack.i.l.bf16 %v5885_v25 }
 0x123   : > { %v1380_v42 = vsel %vm1377_vm4, %v1363_v37, %v5891_v33  ;;  %v1381_v43 = vsel %vm1377_vm4, %v1364_v38, %v5892_v28 }
 0x124   : > { %v1378_v44 = vsel %vm1377_vm4, %v1361_v39, %v5886_v36  ;;  %v1379_v31 = vsel %vm1377_vm4, %v1362_v40, %v5887_v35  ;;  %v5900_v45 = vpop.permute.xlu1 %5899  ;;  %v1395_v47 = vpack.c.bf16 %v1381_v43, %v1380_v42 }
 0x125   : > { %v5895_v29 = vpop.permute.xlu0 %5894  ;;  %v1394_v46 = vpack.c.bf16 %v1379_v31, %v1378_v44  ;;  %v5902_v55 = vunpack.i.h.bf16 %v5900_v45  ;;  %v5901_v56 = vunpack.i.l.bf16 %v5900_v45 }
 0x126   : > { %v5897_v60 = vunpack.i.h.bf16 %v5895_v29  ;;  %v5896_v61 = vunpack.i.l.bf16 %v5895_v29 }
 0x127   : > { %5643 = vmatprep.mubr.msk.bf16.mxu0 %vm1428_vm11, %v1394_v46  ;;  %v1266_v10 = vsel %vm541_vm0, %v7012_v57, %v5902_v55  ;;  %v1265_v11 = vsel %vm541_vm0, %v7016_v59, %v5901_v56 }
 0x128   : > { %5644 = vmatmul.mubr.msk.bf16.vlgmr.msra.gmra.mxu0 %vm1428_vm11, %v1395_v47  ;;  %v5910_v32 = vpop.permute.xlu1 %5909  ;;  %v1264_v12 = vsel %vm541_vm0, %v6985_v41, %v5897_v60  ;;  %v1263_v13 = vsel %vm541_vm0, %v6969_v30, %v5896_v61 }
 0x129   : > { %v5905_v49 = vpop.permute.xlu0 %5904  ;;  %v5912_v62 = vunpack.i.h.bf16 %v5910_v32  ;;  %v5911_v63 = vunpack.i.l.bf16 %v5910_v32 }
 0x12a   : > { %v5907_v1 = vunpack.i.h.bf16 %v5905_v49  ;;  %v5906_v2 = vunpack.i.l.bf16 %v5905_v49 }
 0x12b   : > { %v1282_v14 = vsel %vm1275_vm5, %v1265_v11, %v5911_v63  ;;  %v1283_v15 = vsel %vm1275_vm5, %v1266_v10, %v5912_v62 }
 0x12c   : > { %v5920_v51 = vpop.permute.xlu1 %5919  ;;  %v1280_v16 = vsel %vm1275_vm5, %v1263_v13, %v5906_v2  ;;  %v1281_v17 = vsel %vm1275_vm5, %v1264_v12, %v5907_v1 }
 0x12d   : > { %v5915_v52 = vpop.permute.xlu0 %5914  ;;  %v5922_v6 = vunpack.i.h.bf16 %v5920_v51  ;;  %v5921_v7 = vunpack.i.l.bf16 %v5920_v51 }
 0x12e   : > { %v5917_v8 = vunpack.i.h.bf16 %v5915_v52  ;;  %v5916_v9 = vunpack.i.l.bf16 %v5915_v52 }
 0x12f   : > { %v1299_v25 = vsel %vm1292_vm6, %v1282_v14, %v5921_v7  ;;  %v1300_v41 = vsel %vm1292_vm6, %v1283_v15, %v5922_v6 }
 0x130   : > { %v5930_v53 = vpop.permute.xlu1 %5929  ;;  %v1297_v30 = vsel %vm1292_vm6, %v1280_v16, %v5916_v9  ;;  %v1298_v26 = vsel %vm1292_vm6, %v1281_v17, %v5917_v8 }
 0x131   : > { %v5925_v54 = vpop.permute.xlu0 %5924  ;;  %v5932_v57 = vunpack.i.h.bf16 %v5930_v53  ;;  %v5931_v23 = vunpack.i.l.bf16 %v5930_v53 }
 0x132   : > { %v5927_v24 = vunpack.i.h.bf16 %v5925_v54  ;;  %v5926_v59 = vunpack.i.l.bf16 %v5925_v54 }
 0x133   : > { %v1316_v43 = vsel %vm1309_vm7, %v1299_v25, %v5931_v23  ;;  %v1317_v44 = vsel %vm1309_vm7, %v1300_v41, %v5932_v57 }
 0x134   : > { %v5940_v3 = vpop.permute.xlu1 %5939  ;;  %v1314_v31 = vsel %vm1309_vm7, %v1297_v30, %v5926_v59  ;;  %v1315_v45 = vsel %vm1309_vm7, %v1298_v26, %v5927_v24 }
 0x135   : > { %v5935_v5 = vpop.permute.xlu0 %5934  ;;  %v5942_v27 = vunpack.i.h.bf16 %v5940_v3  ;;  %v5941_v28 = vunpack.i.l.bf16 %v5940_v3 }
 0x136   : > { %v5937_v33 = vunpack.i.h.bf16 %v5935_v5  ;;  %v5936_v35 = vunpack.i.l.bf16 %v5935_v5 }
 0x137   : > { %v1333_v49 = vsel %vm1326_vm8, %v1316_v43, %v5941_v28  ;;  %v1334_v51 = vsel %vm1326_vm8, %v1317_v44, %v5942_v27 }
 0x138   : > { %v5950_v18 = vpop.permute.xlu1 %5949  ;;  %v1331_v52 = vsel %vm1326_vm8, %v1314_v31, %v5936_v35  ;;  %v1332_v53 = vsel %vm1326_vm8, %v1315_v45, %v5937_v33 }
 0x139   : > { %v5945_v22 = vpop.permute.xlu0 %5944  ;;  %v5952_v36 = vunpack.i.h.bf16 %v5950_v18  ;;  %v5951_v37 = vunpack.i.l.bf16 %v5950_v18 }
 0x13a   : > { %v5947_v38 = vunpack.i.h.bf16 %v5945_v22  ;;  %v5946_v39 = vunpack.i.l.bf16 %v5945_v22 }
 0x13b   : > { %v1350_v54 = vsel %vm1343_vm9, %v1333_v49, %v5951_v37  ;;  %v1351_v55 = vsel %vm1343_vm9, %v1334_v51, %v5952_v36 }
 0x13c   : > { %v5960_v40 = vpop.permute.xlu1 %5959  ;;  %v1348_v56 = vsel %vm1343_vm9, %v1331_v52, %v5946_v39  ;;  %v1349_v60 = vsel %vm1343_vm9, %v1332_v53, %v5947_v38 }
 0x13d   : > { %v5955_v42 = vpop.permute.xlu0 %5954  ;;  %v5962_v29 = vunpack.i.h.bf16 %v5960_v40  ;;  %v5961_v46 = vunpack.i.l.bf16 %v5960_v40 }
 0x13e   : > { %v5957_v47 = vunpack.i.h.bf16 %v5955_v42  ;;  %v5956_v32 = vunpack.i.l.bf16 %v5955_v42 }
 0x13f   : > { %v1367_v5 = vsel %vm1360_vm10, %v1350_v54, %v5961_v46  ;;  %v1368_v6 = vsel %vm1360_vm10, %v1351_v55, %v5962_v29 }
 0x140   : > { %v5970_v61 = vpop.permute.xlu1 %5969  ;;  %v1365_v7 = vsel %vm1360_vm10, %v1348_v56, %v5956_v32  ;;  %v1366_v8 = vsel %vm1360_vm10, %v1349_v60, %v5957_v47 }
 0x141   : > { %v5965_v62 = vpop.permute.xlu0 %5964  ;;  %v5972_v63 = vunpack.i.h.bf16 %v5970_v61  ;;  %v5971_v1 = vunpack.i.l.bf16 %v5970_v61 }
 0x142   : > { %v5967_v2 = vunpack.i.h.bf16 %v5965_v62  ;;  %v5966_v3 = vunpack.i.l.bf16 %v5965_v62 }
 0x143   : > { %v1384_v9 = vsel %vm1377_vm4, %v1367_v5, %v5971_v1  ;;  %v1385_v10 = vsel %vm1377_vm4, %v1368_v6, %v5972_v63 }
 0x144   : > { %v1382_v11 = vsel %vm1377_vm4, %v1365_v7, %v5966_v3  ;;  %v1383_v12 = vsel %vm1377_vm4, %v1366_v8, %v5967_v2  ;;  %v5980_v13 = vpop.permute.xlu1 %5979  ;;  %v1397_v16 = vpack.c.bf16 %v1385_v10, %v1384_v9 }
 0x145   : > { %v5975_v14 = vpop.permute.xlu0 %5974  ;;  %v1396_v15 = vpack.c.bf16 %v1383_v12, %v1382_v11  ;;  %v5982_v59 = vunpack.i.h.bf16 %v5980_v13  ;;  %v5981_v25 = vunpack.i.l.bf16 %v5980_v13 }
 0x146   : > { %v5977_v41 = vunpack.i.h.bf16 %v5975_v14  ;;  %v5976_v30 = vunpack.i.l.bf16 %v5975_v14 }
 0x147   : > { %5647 = vmatprep.mubr.msk.bf16.mxu0 %vm1428_vm11, %v1396_v15  ;;  %v1270_v42 = vsel %vm541_vm0, %v7046_v19, %v5982_v59  ;;  %v1269_v43 = vsel %vm541_vm0, %v7050_v21, %v5981_v25 }
 0x148   : > { %5648 = vmatmul.mubr.msk.bf16.gmra.mxu0 %vm1428_vm11, %v1397_v16  ;;  %v5990_v17 = vpop.permute.xlu1 %5989  ;;  %v1268_v44 = vsel %vm541_vm0, %v7028_v4, %v5977_v41  ;;  %v1267_v31 = vsel %vm541_vm0, %v7014_v58, %v5976_v30 }
 0x149   : > { %v5985_v18 = vpop.permute.xlu0 %5984  ;;  %v5992_v26 = vunpack.i.h.bf16 %v5990_v17  ;;  %v5991_v27 = vunpack.i.l.bf16 %v5990_v17 }
 0x14a   : > { %v5987_v28 = vunpack.i.h.bf16 %v5985_v18  ;;  %v5986_v33 = vunpack.i.l.bf16 %v5985_v18 }
 0x14b   : > { %v1286_v45 = vsel %vm1275_vm5, %v1269_v43, %v5991_v27  ;;  %v1287_v29 = vsel %vm1275_vm5, %v1270_v42, %v5992_v26 }
 0x14c   : > { %v6000_v22 = vpop.permute.xlu1 %5999  ;;  %v1284_v46 = vsel %vm1275_vm5, %v1267_v31, %v5986_v33  ;;  %v1285_v47 = vsel %vm1275_vm5, %v1268_v44, %v5987_v28 }
 0x14d   : > { %v5995_v57 = vpop.permute.xlu0 %5994  ;;  %v6002_v37 = vunpack.i.h.bf16 %v6000_v22  ;;  %v6001_v38 = vunpack.i.l.bf16 %v6000_v22 }
 0x14e   : > { %v5997_v39 = vunpack.i.h.bf16 %v5995_v57  ;;  %v5996_v40 = vunpack.i.l.bf16 %v5995_v57 }
 0x14f   : > { %v1303_v53 = vsel %vm1292_vm6, %v1286_v45, %v6001_v38  ;;  %v1304_v4 = vsel %vm1292_vm6, %v1287_v29, %v6002_v37 }
 0x150   : > { %v6010_v23 = vpop.permute.xlu1 %6009  ;;  %v1301_v58 = vsel %vm1292_vm6, %v1284_v46, %v5996_v40  ;;  %v1302_v54 = vsel %vm1292_vm6, %v1285_v47, %v5997_v39 }
 0x151   : > { %v6005_v24 = vpop.permute.xlu0 %6004  ;;  %v6012_v19 = vunpack.i.h.bf16 %v6010_v23  ;;  %v6011_v51 = vunpack.i.l.bf16 %v6010_v23 }
 0x152   : > { %v6007_v52 = vunpack.i.h.bf16 %v6005_v24  ;;  %v6006_v21 = vunpack.i.l.bf16 %v6005_v24 }
 0x153   : > { %v1320_v6 = vsel %vm1309_vm7, %v1303_v53, %v6011_v51  ;;  %v1321_v7 = vsel %vm1309_vm7, %v1304_v4, %v6012_v19 }
 0x154   : > { %v6020_v35 = vpop.permute.xlu1 %6019  ;;  %v1318_v8 = vsel %vm1309_vm7, %v1301_v58, %v6006_v21  ;;  %v1319_v9 = vsel %vm1309_vm7, %v1302_v54, %v6007_v52 }
 0x155   : > { %v6015_v36 = vpop.permute.xlu0 %6014  ;;  %v6022_v55 = vunpack.i.h.bf16 %v6020_v35  ;;  %v6021_v56 = vunpack.i.l.bf16 %v6020_v35 }
 0x156   : > { %v6017_v60 = vunpack.i.h.bf16 %v6015_v36  ;;  %v6016_v61 = vunpack.i.l.bf16 %v6015_v36 }
 0x157   : > { %v1337_v14 = vsel %vm1326_vm8, %v1320_v6, %v6021_v56  ;;  %v1338_v15 = vsel %vm1326_vm8, %v1321_v7, %v6022_v55 }
 0x158   : > { %v6030_v32 = vpop.permute.xlu1 %6029  ;;  %v1335_v16 = vsel %vm1326_vm8, %v1318_v8, %v6016_v61  ;;  %v1336_v17 = vsel %vm1326_vm8, %v1319_v9, %v6017_v60 }
 0x159   : > { %v6025_v49 = vpop.permute.xlu0 %6024  ;;  %v6032_v62 = vunpack.i.h.bf16 %v6030_v32  ;;  %v6031_v63 = vunpack.i.l.bf16 %v6030_v32 }
 0x15a   : > { %v6027_v1 = vunpack.i.h.bf16 %v6025_v49  ;;  %v6026_v2 = vunpack.i.l.bf16 %v6025_v49 }
 0x15b   : > { %v1354_v18 = vsel %vm1343_vm9, %v1337_v14, %v6031_v63  ;;  %v1355_v22 = vsel %vm1343_vm9, %v1338_v15, %v6032_v62 }
 0x15c   : > { %v6040_v3 = vpop.permute.xlu1 %6039  ;;  %v1352_v57 = vsel %vm1343_vm9, %v1335_v16, %v6026_v2  ;;  %v1353_v23 = vsel %vm1343_vm9, %v1336_v17, %v6027_v1 }
 0x15d   : > { %v6035_v5 = vpop.permute.xlu0 %6034  ;;  %v6042_v10 = vunpack.i.h.bf16 %v6040_v3  ;;  %v6041_v11 = vunpack.i.l.bf16 %v6040_v3 }
 0x15e   : > { %v6037_v12 = vunpack.i.h.bf16 %v6035_v5  ;;  %v6036_v13 = vunpack.i.l.bf16 %v6035_v5 }
 0x15f   : > { %v1371_v27 = vsel %vm1360_vm10, %v1354_v18, %v6041_v11  ;;  %v1372_v28 = vsel %vm1360_vm10, %v1355_v22, %v6042_v10 }
 0x160   : > { %v6050_v24 = vpop.permute.xlu1 %6049  ;;  %v1369_v33 = vsel %vm1360_vm10, %v1352_v57, %v6036_v13  ;;  %v1370_v35 = vsel %vm1360_vm10, %v1353_v23, %v6037_v12 }
 0x161   : > { %v6045_v59 = vpop.permute.xlu0 %6044  ;;  %v6052_v25 = vunpack.i.h.bf16 %v6050_v24  ;;  %v6051_v41 = vunpack.i.l.bf16 %v6050_v24 }
 0x162   : > { %v6047_v30 = vunpack.i.h.bf16 %v6045_v59  ;;  %v6046_v26 = vunpack.i.l.bf16 %v6045_v59 }
 0x163   : > { %v1388_v36 = vsel %vm1377_vm4, %v1371_v27, %v6051_v41  ;;  %v1389_v37 = vsel %vm1377_vm4, %v1372_v28, %v6052_v25 }
 0x164   : > { %v1386_v38 = vsel %vm1377_vm4, %v1369_v33, %v6046_v26  ;;  %v1387_v39 = vsel %vm1377_vm4, %v1370_v35, %v6047_v30  ;;  %v7212_v40 = vpop.permute.xlu1 %6059  ;;  %v1399_v44 = vpack.c.bf16 %v1389_v37, %v1388_v36 }
 0x165   : > { %v7214_v42 = vpop.permute.xlu0 %6054  ;;  %v1398_v43 = vpack.c.bf16 %v1387_v39, %v1386_v38  ;;  %v6062_v49 = vunpack.i.h.bf16 %v7212_v40  ;;  %v6061_v19 = vunpack.i.l.bf16 %v7212_v40 }
 0x166   : > { %v6057_v51 = vunpack.i.h.bf16 %v7214_v42  ;;  %v6056_v52 = vunpack.i.l.bf16 %v7214_v42 }
 0x167   : > { %5651 = vmatprep.mubr.msk.bf16.mxu0 %vm1428_vm11, %v1398_v43  ;;  %v1274_v63 = vsel %vm541_vm0, %v7078_v48, %v6062_v49  ;;  %v1273_v1 = vsel %vm541_vm0, %v7080_v50, %v6061_v19 }
 0x168   : > { %5652 = vmatmul.mubr.msk.bf16.gmra.mxu0 %vm1428_vm11, %v1399_v44  ;;  %v7218_v31 = vpop.permute.xlu1 %6069  ;;  %v1272_v2 = vsel %vm541_vm0, %v7062_v34, %v6057_v51  ;;  %v1271_v3 = vsel %vm541_vm0, %v7048_v20, %v6056_v52 }
 0x169   : > { %v7220_v45 = vpop.permute.xlu0 %6064  ;;  %v6072_v21 = vunpack.i.h.bf16 %v7218_v31  ;;  %v6071_v53 = vunpack.i.l.bf16 %v7218_v31 }
 0x16a   : > { %v6067_v4 = vunpack.i.h.bf16 %v7220_v45  ;;  %v6066_v58 = vunpack.i.l.bf16 %v7220_v45 }
 0x16b   : > { %v1290_v5 = vsel %vm1275_vm5, %v1273_v1, %v6071_v53  ;;  %v1291_v6 = vsel %vm1275_vm5, %v1274_v63, %v6072_v21  ;;  %v6379_v63 = vld [vmem:[%s8295_s4 + $0x38] sm:$0xff]   ;;  %v6380_v1 = vld [vmem:[%s8295_s4 + $0x70] sm:$0xff]  }
 0x16c   : > { %v7222_v29 = vpop.permute.xlu1 %6079  ;;  %v1288_v7 = vsel %vm1275_vm5, %v1271_v3, %v6066_v58  ;;  %v1289_v8 = vsel %vm1275_vm5, %v1272_v2, %v6067_v4  ;;  %v6381_v2 = vld [vmem:[%s8295_s4 + $0x30] sm:$0xff]  }
 0x16d   : > { %v7224_v46 = vpop.permute.xlu0 %6074  ;;  %v6082_v56 = vunpack.i.h.bf16 %v7222_v29  ;;  %v6081_v60 = vunpack.i.l.bf16 %v7222_v29  ;;  %v7372_v3 = vld [vmem:[#allocation7] ss:$0 sm:$0xff] }
 0x16e   : > { %v6077_v61 = vunpack.i.h.bf16 %v7224_v46  ;;  %v6076_v62 = vunpack.i.l.bf16 %v7224_v46 }
 0x16f   : > { %v1307_v13 = vsel %vm1292_vm6, %v1290_v5, %v6081_v60  ;;  %v1308_v34 = vsel %vm1292_vm6, %v1291_v6, %v6082_v56  ;;  %v6376_v60 = vld [vmem:[%s8295_s4 + $0x88] sm:$0xff]  }
 0x170   : > { %v6090_v47 = vpop.permute.xlu1 %6089  ;;  %v1305_v20 = vsel %vm1292_vm6, %v1288_v7, %v6076_v62  ;;  %v1306_v14 = vsel %vm1292_vm6, %v1289_v8, %v6077_v61  ;;  %5659 = vmatprep.subr.bf16.mxu0 %v6376_v60  ;;  %v6377_v61 = vld [vmem:[%s8295_s4 + $0x80] sm:$0xff]   ;;  %v6378_v62 = vld [vmem:[%s8295_s4 + $0x78] sm:$0xff]   ;;  %v6382_v6 = vld [vmem:[%s8295_s4 + $0x68] sm:$0xff]  }
 0x171   : > { %v6085_v32 = vpop.permute.xlu0 %6084  ;;  %v6092_v48 = vunpack.i.h.bf16 %v6090_v47  ;;  %v6091_v11 = vunpack.i.l.bf16 %v6090_v47  ;;  %5660 = vmatpush3.bf16.msra.mxu0 %v6376_v60  ;;  %5466 = vmatprep.subr.bf16.mxu1 %v6378_v62  ;;  %v6383_v7 = vld [vmem:[%s8295_s4 + $0x28] sm:$0xff]  }
 0x172   : > { %v6087_v12 = vunpack.i.h.bf16 %v6085_v32  ;;  %v6086_v50 = vunpack.i.l.bf16 %v6085_v32  ;;  %5661 = vmatprep.subr.bf16.mxu0 %v6377_v61  ;;  %5467 = vmatpush3.bf16.msra.mxu1 %v6379_v63 }
 0x173   : > { %v1324_v41 = vsel %vm1309_vm7, %v1307_v13, %v6091_v11  ;;  %v1325_v30 = vsel %vm1309_vm7, %v1308_v34, %v6092_v48  ;;  %5468 = vmatprep.subr.bf16.mxu1 %v6380_v1  ;;  %v6384_v34 = vld [vmem:[%s8295_s4 + $0x60] sm:$0xff]  }
 0x174   : > { %v6100_v54 = vpop.permute.xlu1 %6099  ;;  %v1322_v26 = vsel %vm1309_vm7, %v1305_v20, %v6086_v50  ;;  %v1323_v27 = vsel %vm1309_vm7, %v1306_v14, %v6087_v12  ;;  %v6385_v14 = vld [vmem:[%s8295_s4 + $0x20] sm:$0xff]   ;;  %vm3605_vm7 = vcmask 1041409  }
 0x175   : > { %v6095_v55 = vpop.permute.xlu0 %6094  ;;  %v6102_v15 = vunpack.i.h.bf16 %v6100_v54  ;;  %v6101_v16 = vunpack.i.l.bf16 %v6100_v54  ;;  %5662 = vmatpush3.bf16.msra.mxu0 %v6377_v61 }
 0x176   : > { %v6097_v17 = vunpack.i.h.bf16 %v6095_v55  ;;  %v6096_v18 = vunpack.i.l.bf16 %v6095_v55  ;;  %5469 = vmatpush3.bf16.msra.mxu1 %v6381_v2 }
 0x177   : > { %v1341_v37 = vsel %vm1326_vm8, %v1324_v41, %v6101_v16  ;;  %v1342_v38 = vsel %vm1326_vm8, %v1325_v30, %v6102_v15  ;;  %5470 = vmatprep.subr.bf16.mxu1 %v6382_v6  ;;  %v6389_v41 = vld [vmem:[%s8295_s4 + $0x10] sm:$0xff]  }
 0x178   : > { %v6110_v9 = vpop.permute.xlu1 %6109  ;;  %v1339_v39 = vsel %vm1326_vm8, %v1322_v26, %v6096_v18  ;;  %v1340_v40 = vsel %vm1326_vm8, %v1323_v27, %v6097_v17  ;;  %v1679_v27 = vld [vmem:[#allocation3 + $0x2] sm:$0xff]  ;;  %vm3607_vm8 = vcmask 1042434  }
 0x179   : > { %v6105_v10 = vpop.permute.xlu0 %6104  ;;  %v6112_v22 = vunpack.i.h.bf16 %v6110_v9  ;;  %v6111_v57 = vunpack.i.l.bf16 %v6110_v9 }
 0x17a   : > { %v6107_v23 = vunpack.i.h.bf16 %v6105_v10  ;;  %v6106_v24 = vunpack.i.l.bf16 %v6105_v10  ;;  %5471 = vmatpush3.bf16.msra.mxu1 %v6383_v7 }
 0x17b   : > { %v1358_v42 = vsel %vm1343_vm9, %v1341_v37, %v6111_v57  ;;  %v1359_v43 = vsel %vm1343_vm9, %v1342_v38, %v6112_v22  ;;  %5472 = vmatprep.subr.bf16.mxu1 %v6384_v34  ;;  %v6386_v57 = vld [vmem:[%s8295_s4 + $0x58] sm:$0xff]   ;;  %v6391_v38 = vld [vmem:[%s8295_s4 + $0x8] sm:$0xff]  }
 0x17c   : > { %v6120_v59 = vpop.permute.xlu1 %6119  ;;  %v1356_v44 = vsel %vm1343_vm9, %v1339_v39, %v6106_v24  ;;  %v1357_v31 = vsel %vm1343_vm9, %v1340_v40, %v6107_v23  ;;  %v6387_v23 = vld [vmem:[%s8295_s4 + $0x18] sm:$0xff]   ;;  %vm3609_vm9 = vcmask 1043459  }
 0x17d   : > { %v6115_v25 = vpop.permute.xlu0 %6114  ;;  %v6122_v28 = vunpack.i.h.bf16 %v6120_v59  ;;  %v6121_v33 = vunpack.i.l.bf16 %v6120_v59  ;;  %v6388_v59 = vld [vmem:[%s8295_s4 + $0x50] sm:$0xff]  }
 0x17e   : > { %v6117_v35 = vunpack.i.h.bf16 %v6115_v25  ;;  %v6116_v36 = vunpack.i.l.bf16 %v6115_v25  ;;  %5473 = vmatpush3.bf16.msra.mxu1 %v6385_v14  ;;  %v1663_v25 = vld [vmem:[#allocation3 + $0x1] sm:$0xff] }
 0x17f   : > { %v1375_v19 = vsel %vm1360_vm10, %v1358_v42, %v6121_v33  ;;  %v1376_v51 = vsel %vm1360_vm10, %v1359_v43, %v6122_v28  ;;  %5474 = vmatprep.subr.bf16.mxu1 %v6386_v57  ;;  %v6390_v28 = vld [vmem:[%s8295_s4 + $0x48] sm:$0xff]   ;;  %v6392_v43 = vld [vmem:[%s8295_s4 + $0x40] sm:$0xff]  }
 0x180   : > { %v6130_v45 = vpop.permute.xlu1 %6129  ;;  %v1373_v52 = vsel %vm1360_vm10, %v1356_v44, %v6116_v36  ;;  %v1374_v21 = vsel %vm1360_vm10, %v1357_v31, %v6117_v35  ;;  %v6393_v31 = vld [vmem:[%s8295_s4] sm:$0xff]   ;;  %vm3673_vm10 = vcmask 519168  }
 0x181   : > { %v6125_v29 = vpop.permute.xlu0 %6124  ;;  %v6132_v46 = vunpack.i.h.bf16 %v6130_v45  ;;  %v6131_v47 = vunpack.i.l.bf16 %v6130_v45 }
 0x182   : > { %v6127_v32 = vunpack.i.h.bf16 %v6125_v29  ;;  %v6126_v49 = vunpack.i.l.bf16 %v6125_v29  ;;  %5475 = vmatpush3.bf16.msra.mxu1 %v6387_v23 }
 0x183   : > { %v1392_v53 = vsel %vm1377_vm4, %v1375_v19, %v6131_v47  ;;  %v1393_v4 = vsel %vm1377_vm4, %v1376_v51, %v6132_v46  ;;  %5476 = vmatprep.subr.bf16.mxu1 %v6388_v59 }
 0x184   : > { %v1390_v58 = vsel %vm1377_vm4, %v1373_v52, %v6126_v49  ;;  %v1391_v54 = vsel %vm1377_vm4, %v1374_v21, %v6127_v32  ;;  %v1401_v56 = vpack.c.bf16 %v1393_v4, %v1392_v53 }
 0x185   : > { %v1400_v55 = vpack.c.bf16 %v1391_v54, %v1390_v58 }
 0x186   : > { %5477 = vmatpush3.bf16.msra.mxu1 %v6389_v41 }
 0x187   : > { %5655 = vmatprep.mubr.msk.bf16.mxu0 %vm1428_vm11, %v1400_v55  ;;  %5478 = vmatprep.subr.bf16.mxu1 %v6390_v28 }
 0x188   : > { %5656 = vmatmul.mubr.msk.bf16.gmra.mxu0 %vm1428_vm11, %v1401_v56  ;;  %vm4919_vm11 = vcmask 1045504  }
 0x18a   : > { %5479 = vmatpush3.bf16.msra.mxu1 %v6391_v38 }
 0x18b   : > { %5480 = vmatprep.subr.bf16.mxu1 %v6392_v43 }
 0x18e   : > { %5481 = vmatpush3.bf16.msra.mxu1 %v6393_v31 }
 0x1e8   : > { %v5645_v5 = vpop.f32.mrf.mxu0 }
 0x1e9   : > { %v1500_v8 = vadd.f32 %v5645_v5, %v7372_v3 }
 0x1ea   : > { %v1491_v9 = vpop.f32.mrf.mxu0 }
 0x1eb   : > { %v1556_v10 = vmul.f32 0.2, %v1500_v8  ;;  %v1492_v48 = vadd.f32 %v7372_v3, %v1491_v9 }
 0x1ec   : > { %v5646_v11 = vpop.f32.mrf.mxu0 }
 0x1ed   : > { %v1572_v12 = vmax.f32 %v1500_v8, %v1556_v10  ;;  %v1554_v50 = vmul.f32 0.2, %v1492_v48  ;;  %v1503_v13 = vadd.f32 %v5646_v11, %v7372_v3 }
 0x1ee   : > { %v1494_v20 = vpop.f32.mrf.mxu0 }
 0x1ef   : > { %1633 = vst.msk [vmem:[#allocation3 + $0x31] sm:$0xff] %vm1377_vm4, %v1572_v12  ;;  %v1570_v15 = vmax.f32 %v1492_v48, %v1554_v50  ;;  %v1557_v16 = vmul.f32 0.2, %v1503_v13  ;;  %v1495_v17 = vadd.f32 %v7372_v3, %v1494_v20 }
 0x1f1   : > { %1631 = vst.msk [vmem:[#allocation3 + $0x11] sm:$0xff] %vm1377_vm4, %v1570_v15  ;;  %v1573_v18 = vmax.f32 %v1503_v13, %v1557_v16  ;;  %v1555_v22 = vmul.f32 0.2, %v1495_v17 }
 0x1f3   : > { %1634 = vst.msk [vmem:[#allocation3 + $0x41] sm:$0xff] %vm1377_vm4, %v1573_v18  ;;  %v1571_v24 = vmax.f32 %v1495_v17, %v1555_v22 }
 0x1f5   : > { %1632 = vst.msk [vmem:[#allocation3 + $0x21] sm:$0xff] %vm1377_vm4, %v1571_v24 }
 0x1f6   : > { %v1729_v33 = vld [vmem:[#allocation3 + $0x32] sm:$0xff] }
 0x1f7   : > { %v7430_v29 = vld [vmem:[#allocation3 + $0x30] sm:$0xff] }
 0x1f8   : > { %v7406_v30 = vld [vmem:[#allocation3 + $0x11] sm:$0xff] }
 0x1f9   : > { %v6133_v26 = vpack.i.bf16 %v7406_v30, %v1663_v25  ;;  %v1680_v36 = vld [vmem:[#allocation3 + $0x12] sm:$0xff] }
 0x1fa   : > { %v7412_v35 = vld [vmem:[#allocation3 + $0x42] sm:$0xff]  ;;  %v6138_v42 = vpack.i.bf16 %v1680_v36, %v1679_v27  ;;  %v7440_v49 = vld [vmem:[#allocation3 + $0x10] sm:$0xff] }
 0x1fb   : > { %6134 = vrot.lane.b32.xlu1 %v6133_v26, %s6669_s30  ;;  %v6143_v37 = vpack.i.bf16 %v7412_v35, %v1729_v33  ;;  %v7423_v44 = vld [vmem:[#allocation3 + $0x40] sm:$0xff]  ;;  %v7447_v52 = vld [vmem:[#allocation3 + $0x31] sm:$0xff] }
 0x1fc   : > { %v1776_v39 = vld [vmem:[#allocation3 + $0x22] sm:$0xff]  ;;  %v6148_v47 = vpack.i.bf16 %v7423_v44, %v7430_v29 }
 0x1fd   : > { %6144 = vrot.lane.b32.xlu0 %v6143_v37, %s6669_s30  ;;  %v2276_v40 = vpack.c.bf16 %v1729_v33, %v1776_v39  ;;  %v6153_v45 = vpack.i.bf16 %v1776_v39, %v1680_v36  ;;  %v7432_v46 = vld [vmem:[#allocation3 + $0x20] sm:$0xff]  ;;  %v6178_v63 = vpack.i.bf16 %v1729_v33, %v1776_v39 }
 0x1fe   : > { %v6158_v32 = vpack.i.bf16 %v7430_v29, %v7432_v46  ;;  %v7442_v19 = vld [vmem:[#allocation3 + $0x21] sm:$0xff]  ;;  %v6168_v51 = vpack.i.bf16 %v7432_v46, %v7440_v49 }
 0x1ff   : > { %5663 = vmatprep.mubr.msk.bf16.mxu0 %vm1377_vm4, %v2276_v40  ;;  %6139 = vrot.lane.b32.xlu1 %v6138_v42, %s6670_s13  ;;  %v6163_v21 = vpack.i.bf16 %v7447_v52, %v7442_v19  ;;  %v7463_v10 = vld [vmem:[#allocation3 + $0x41] sm:$0xff] }
 0x201   : > { %6154 = vrot.lane.b32.xlu0 %v6153_v45, %s6669_s30 }
 0x203   : > { %6149 = vrot.lane.b32.xlu1 %v6148_v47, %s6671_s14 }
 0x205   : > { %6159 = vrot.lane.b32.xlu0 %v6158_v32, %s6670_s13 }
 0x207   : > { %6169 = vrot.lane.b32.xlu1 %v6168_v51, %s6671_s14 }
 0x208   : > { %v5649_v53 = vpop.f32.mrf.mxu0 }
 0x209   : > { %v1516_v4 = vadd.f32 %v5649_v53, %v7372_v3  ;;  %6164 = vrot.lane.b32.xlu0 %v6163_v21, %s6671_s14 }
 0x20a   : > { %v1507_v58 = vpop.f32.mrf.mxu0 }
 0x20b   : > { %v1560_v54 = vmul.f32 0.2, %v1516_v4  ;;  %v1508_v55 = vadd.f32 %v7372_v3, %v1507_v58  ;;  %6174 = vrot.lane.b32.xlu1 %v6163_v21, %s6669_s30 }
 0x20c   : > { %v5650_v56 = vpop.f32.mrf.mxu0 }
 0x20d   : > { %v1576_v60 = vmax.f32 %v1516_v4, %v1560_v54  ;;  %v1558_v61 = vmul.f32 0.2, %v1508_v55  ;;  %v1519_v62 = vadd.f32 %v5650_v56, %v7372_v3 }
 0x20e   : > { %v1510_v1 = vpop.f32.mrf.mxu0 }
 0x20f   : > { %1637 = vst.msk [vmem:[#allocation3 + $0x71] sm:$0xff] %vm1377_vm4, %v1576_v60  ;;  %v1574_v2 = vmax.f32 %v1508_v55, %v1558_v61  ;;  %v1561_v5 = vmul.f32 0.2, %v1519_v62  ;;  %v1511_v6 = vadd.f32 %v7372_v3, %v1510_v1  ;;  %6179 = vrot.lane.b32.xlu1 %v6178_v63, %s6670_s13 }
 0x211   : > { %1635 = vst.msk [vmem:[#allocation3 + $0x51] sm:$0xff] %vm1377_vm4, %v1574_v2  ;;  %v1577_v7 = vmax.f32 %v1519_v62, %v1561_v5  ;;  %v1559_v8 = vmul.f32 0.2, %v1511_v6 }
 0x213   : > { %1638 = vst.msk [vmem:[#allocation3 + $0x81] sm:$0xff] %vm1377_vm4, %v1577_v7  ;;  %v1575_v9 = vmax.f32 %v1511_v6, %v1559_v8 }
 0x215   : > { %1636 = vst.msk [vmem:[#allocation3 + $0x61] sm:$0xff] %vm1377_vm4, %v1575_v9 }
 0x216   : > { %v1781_v14 = vld [vmem:[#allocation3 + $0x72] sm:$0xff] }
 0x217   : > { %v7483_v57 = vld [vmem:[#allocation3 + $0x70] sm:$0xff] }
 0x218   : > { %v1779_v48 = vld [vmem:[#allocation3 + $0x52] sm:$0xff] }
 0x219   : > { %v7465_v11 = vld [vmem:[#allocation3 + $0x50] sm:$0xff]  ;;  %v2279_v50 = vpack.c.bf16 %v1779_v48, %v7412_v35  ;;  %v6198_v16 = vpack.i.bf16 %v1779_v48, %v7412_v35 }
 0x21a   : > { %v7467_v12 = vld [vmem:[#allocation3 + $0x51] sm:$0xff]  ;;  %v6183_v13 = vpack.i.bf16 %v7465_v11, %v7423_v44  ;;  %v1734_v17 = vld [vmem:[#allocation3 + $0x82] sm:$0xff] }
 0x21b   : > { %v6193_v34 = vpack.i.bf16 %v7467_v12, %v7463_v10  ;;  %5664 = vmatmul.mubr.msk.bf16.vlgmr.msra.gmra.mxu0 %vm1377_vm4, %v2279_v50  ;;  %v7480_v18 = vld [vmem:[#allocation3 + $0x80] sm:$0xff]  ;;  %v6203_v22 = vpack.i.bf16 %v1734_v17, %v1781_v14  ;;  %v7500_v33 = vld [vmem:[#allocation3 + $0x71] sm:$0xff] }
 0x21c   : > { %6184 = vrot.lane.b32.xlu0 %v6183_v13, %s6670_s13  ;;  %v1780_v20 = vld [vmem:[#allocation3 + $0x62] sm:$0xff]  ;;  %v6208_v23 = vpack.i.bf16 %v7480_v18, %v7483_v57 }
 0x21d   : > { %6194 = vrot.lane.b32.xlu1 %v6193_v34, %s6669_s30  ;;  %v2282_v15 = vpack.c.bf16 %v1781_v14, %v1780_v20  ;;  %v7488_v24 = vld [vmem:[#allocation3 + $0x60] sm:$0xff]  ;;  %v6213_v59 = vpack.i.bf16 %v1780_v20, %v1779_v48  ;;  %v6238_v45 = vpack.i.bf16 %v1781_v14, %v1780_v20 }
 0x21e   : > { %v6228_v25 = vpack.i.bf16 %v7488_v24, %v7465_v11  ;;  %v7494_v41 = vld [vmem:[#allocation3 + $0x61] sm:$0xff]  ;;  %v6218_v28 = vpack.i.bf16 %v7483_v57, %v7488_v24 }
 0x21f   : > { %5667 = vmatprep.mubr.msk.bf16.mxu0 %vm1377_vm4, %v2282_v15  ;;  %v6233_v36 = vpack.i.bf16 %v7500_v33, %v7494_v41  ;;  %v7515_v58 = vld [vmem:[#allocation3 + $0x81] sm:$0xff] }
 0x220   : > { %6189 = vrot.lane.b32.xlu0 %v6193_v34, %s6671_s14 }
 0x221   : > { %6199 = vrot.lane.b32.xlu1 %v6198_v16, %s6670_s13 }
 0x224   : > { %6204 = vrot.lane.b32.xlu0 %v6203_v22, %s6669_s30 }
 0x225   : > { %6209 = vrot.lane.b32.xlu1 %v6208_v23, %s6671_s14 }
 0x228   : > { %6214 = vrot.lane.b32.xlu0 %v6213_v59, %s6669_s30  ;;  %v5653_v26 = vpop.f32.mrf.mxu0 }
 0x229   : > { %6229 = vrot.lane.b32.xlu1 %v6228_v25, %s6671_s14  ;;  %v1532_v27 = vadd.f32 %v5653_v26, %v7372_v3 }
 0x22a   : > { %v1523_v35 = vpop.f32.mrf.mxu0 }
 0x22b   : > { %v1564_v37 = vmul.f32 0.2, %v1532_v27  ;;  %v1524_v38 = vadd.f32 %v7372_v3, %v1523_v35 }
 0x22c   : > { %6219 = vrot.lane.b32.xlu0 %v6218_v28, %s6670_s13  ;;  %v5654_v39 = vpop.f32.mrf.mxu0 }
 0x22d   : > { %6234 = vrot.lane.b32.xlu1 %v6233_v36, %s6669_s30  ;;  %v1580_v40 = vmax.f32 %v1532_v27, %v1564_v37  ;;  %v1562_v42 = vmul.f32 0.2, %v1524_v38  ;;  %v1535_v43 = vadd.f32 %v5654_v39, %v7372_v3 }
 0x22e   : > { %v1526_v31 = vpop.f32.mrf.mxu0 }
 0x22f   : > { %1641 = vst.msk [vmem:[#allocation3 + $0xb1] sm:$0xff] %vm1377_vm4, %v1580_v40  ;;  %v1578_v47 = vmax.f32 %v1524_v38, %v1562_v42  ;;  %v1565_v32 = vmul.f32 0.2, %v1535_v43  ;;  %v1527_v51 = vadd.f32 %v7372_v3, %v1526_v31 }
 0x230   : > { %6224 = vrot.lane.b32.xlu0 %v6233_v36, %s6671_s14 }
 0x231   : > { %6239 = vrot.lane.b32.xlu1 %v6238_v45, %s6670_s13  ;;  %1639 = vst.msk [vmem:[#allocation3 + $0x91] sm:$0xff] %vm1377_vm4, %v1578_v47  ;;  %v1581_v21 = vmax.f32 %v1535_v43, %v1565_v32  ;;  %v1563_v53 = vmul.f32 0.2, %v1527_v51 }
 0x233   : > { %1642 = vst.msk [vmem:[#allocation3 + $0xc1] sm:$0xff] %vm1377_vm4, %v1581_v21  ;;  %v1579_v4 = vmax.f32 %v1527_v51, %v1563_v53 }
 0x235   : > { %1640 = vst.msk [vmem:[#allocation3 + $0xa1] sm:$0xff] %vm1377_vm4, %v1579_v4 }
 0x236   : > { %v1785_v1 = vld [vmem:[#allocation3 + $0xb2] sm:$0xff] }
 0x237   : > { %v7536_v9 = vld [vmem:[#allocation3 + $0xb0] sm:$0xff] }
 0x238   : > { %v1783_v54 = vld [vmem:[#allocation3 + $0x92] sm:$0xff] }
 0x239   : > { %v7517_v55 = vld [vmem:[#allocation3 + $0x90] sm:$0xff]  ;;  %v2285_v60 = vpack.c.bf16 %v1783_v54, %v1734_v17  ;;  %v6258_v5 = vpack.i.bf16 %v1783_v54, %v1734_v17 }
 0x23a   : > { %v7519_v56 = vld [vmem:[#allocation3 + $0x91] sm:$0xff]  ;;  %v6243_v61 = vpack.i.bf16 %v7517_v55, %v7480_v18  ;;  %v7528_v6 = vld [vmem:[#allocation3 + $0xc2] sm:$0xff] }
 0x23b   : > { %v6253_v62 = vpack.i.bf16 %v7519_v56, %v7515_v58  ;;  %5668 = vmatmul.mubr.msk.bf16.gmra.mxu0 %vm1377_vm4, %v2285_v60  ;;  %v7532_v7 = vld [vmem:[#allocation3 + $0xc0] sm:$0xff]  ;;  %v6263_v8 = vpack.i.bf16 %v7528_v6, %v1785_v1  ;;  %v7553_v17 = vld [vmem:[#allocation3 + $0xb1] sm:$0xff] }
 0x23c   : > { %6244 = vrot.lane.b32.xlu0 %v6243_v61, %s6670_s13  ;;  %v1784_v63 = vld [vmem:[#allocation3 + $0xa2] sm:$0xff]  ;;  %v6268_v48 = vpack.i.bf16 %v7532_v7, %v7536_v9 }
 0x23d   : > { %6254 = vrot.lane.b32.xlu1 %v6253_v62, %s6669_s30  ;;  %v2288_v2 = vpack.c.bf16 %v1785_v1, %v1784_v63  ;;  %v7541_v50 = vld [vmem:[#allocation3 + $0xa0] sm:$0xff]  ;;  %v6273_v13 = vpack.i.bf16 %v1784_v63, %v1783_v54  ;;  %v6298_v37 = vpack.i.bf16 %v1785_v1, %v1784_v63  ;;  %v1791_v63 = vld [vmem:[#allocation3 + $0x112] sm:$0xff] }
 0x23e   : > { %v6288_v34 = vpack.i.bf16 %v7541_v50, %v7517_v55  ;;  %v7547_v20 = vld [vmem:[#allocation3 + $0xa1] sm:$0xff]  ;;  %v6278_v16 = vpack.i.bf16 %v7536_v9, %v7541_v50 }
 0x23f   : > { %5671 = vmatprep.mubr.msk.bf16.mxu0 %vm1377_vm4, %v2288_v2  ;;  %v6293_v23 = vpack.i.bf16 %v7553_v17, %v7547_v20  ;;  %v7568_v45 = vld [vmem:[#allocation3 + $0xc1] sm:$0xff] }
 0x240   : > { %6249 = vrot.lane.b32.xlu0 %v6253_v62, %s6671_s14 }
 0x241   : > { %6259 = vrot.lane.b32.xlu1 %v6258_v5, %s6670_s13 }
 0x244   : > { %6264 = vrot.lane.b32.xlu0 %v6263_v8, %s6669_s30 }
 0x245   : > { %6269 = vrot.lane.b32.xlu1 %v6268_v48, %s6671_s14 }
 0x248   : > { %6274 = vrot.lane.b32.xlu0 %v6273_v13, %s6669_s30  ;;  %v5657_v14 = vpop.f32.mrf.mxu0 }
 0x249   : > { %6289 = vrot.lane.b32.xlu1 %v6288_v34, %s6671_s14  ;;  %v1548_v15 = vadd.f32 %v5657_v14, %v7372_v3 }
 0x24a   : > { %v1539_v22 = vpop.f32.mrf.mxu0 }
 0x24b   : > { %v1568_v59 = vmul.f32 0.2, %v1548_v15  ;;  %v1540_v25 = vadd.f32 %v7372_v3, %v1539_v22 }
 0x24c   : > { %6279 = vrot.lane.b32.xlu0 %v6278_v16, %s6670_s13  ;;  %v5658_v26 = vpop.f32.mrf.mxu0 }
 0x24d   : > { %6294 = vrot.lane.b32.xlu1 %v6293_v23, %s6669_s30  ;;  %v1584_v27 = vmax.f32 %v1548_v15, %v1568_v59  ;;  %v1566_v28 = vmul.f32 0.2, %v1540_v25  ;;  %v1551_v35 = vadd.f32 %v5658_v26, %v7372_v3 }
 0x24e   : > { %v1542_v36 = vpop.f32.mrf.mxu0 }
 0x24f   : > { %1645 = vst.msk [vmem:[#allocation3 + $0xf1] sm:$0xff] %vm1377_vm4, %v1584_v27  ;;  %v1582_v38 = vmax.f32 %v1540_v25, %v1566_v28  ;;  %v1569_v39 = vmul.f32 0.2, %v1551_v35  ;;  %v1543_v40 = vadd.f32 %v7372_v3, %v1542_v36  ;;  %v1759_v25 = vld [vmem:[#allocation3 + $0x110] sm:$0xff] }
 0x250   : > { %6284 = vrot.lane.b32.xlu0 %v6293_v23, %s6671_s14  ;;  %v1775_v36 = vld [vmem:[#allocation3 + $0x111] sm:$0xff] }
 0x251   : > { %6299 = vrot.lane.b32.xlu1 %v6298_v37, %s6670_s13  ;;  %1643 = vst.msk [vmem:[#allocation3 + $0xd1] sm:$0xff] %vm1377_vm4, %v1582_v38  ;;  %v1585_v42 = vmax.f32 %v1551_v35, %v1569_v39  ;;  %v1567_v43 = vmul.f32 0.2, %v1543_v40 }
 0x253   : > { %1646 = vst.msk [vmem:[#allocation3 + $0x101] sm:$0xff] %vm1377_vm4, %v1585_v42  ;;  %v1583_v31 = vmax.f32 %v1543_v40, %v1567_v43  ;;  %v1647_v43 = vld [vmem:[#allocation3] sm:$0xff] }
 0x255   : > { %1644 = vst.msk [vmem:[#allocation3 + $0xe1] sm:$0xff] %vm1377_vm4, %v1583_v31 }
 0x256   : > { %v1789_v54 = vld [vmem:[#allocation3 + $0xf2] sm:$0xff] }
 0x257   : > { %v7595_v13 = vld [vmem:[#allocation3 + $0xf1] sm:$0xff] }
 0x258   : > { %v1787_v47 = vld [vmem:[#allocation3 + $0xd2] sm:$0xff] }
 0x259   : > { %v7570_v32 = vld [vmem:[#allocation3 + $0xd0] sm:$0xff]  ;;  %v2291_v3 = vpack.c.bf16 %v1787_v47, %v7528_v6  ;;  %v6318_v61 = vpack.i.bf16 %v1787_v47, %v7528_v6 }
 0x25a   : > { %v7572_v51 = vld [vmem:[#allocation3 + $0xd1] sm:$0xff]  ;;  %v6303_v21 = vpack.i.bf16 %v7570_v32, %v7532_v7  ;;  %v1790_v62 = vld [vmem:[#allocation3 + $0x102] sm:$0xff] }
 0x25b   : > { %v6313_v53 = vpack.i.bf16 %v7572_v51, %v7568_v45  ;;  %5672 = vmatmul.mubr.msk.bf16.gmra.mxu0 %vm1377_vm4, %v2291_v3  ;;  %v2297_v2 = vpack.c.bf16 %v1791_v63, %v1790_v62  ;;  %v6323_v5 = vpack.i.bf16 %v1790_v62, %v1789_v54  ;;  %v7601_v14 = vld [vmem:[#allocation3 + $0xf0] sm:$0xff]  ;;  %v1710_v22 = vld [vmem:[#allocation3 + $0x100] sm:$0xff] }
 0x25c   : > { %6304 = vrot.lane.b32.xlu0 %v6303_v21, %s6670_s13  ;;  %v1788_v4 = vld [vmem:[#allocation3 + $0xe2] sm:$0xff]  ;;  %v6368_v59 = vpack.i.bf16 %v1710_v22, %v7601_v14  ;;  %v6343_v28 = vpack.i.bf16 %v1759_v25, %v1710_v22 }
 0x25d   : > { %6314 = vrot.lane.b32.xlu1 %v6313_v53, %s6669_s30  ;;  %v2294_v60 = vpack.c.bf16 %v1789_v54, %v1788_v4  ;;  %v7585_v1 = vld [vmem:[#allocation3 + $0xe0] sm:$0xff]  ;;  %v6328_v48 = vpack.i.bf16 %v1788_v4, %v1787_v47  ;;  %v6363_v16 = vpack.i.bf16 %v1789_v54, %v1788_v4 }
 0x25e   : > { %v6353_v8 = vpack.i.bf16 %v7585_v1, %v7570_v32  ;;  %v7592_v6 = vld [vmem:[#allocation3 + $0xe1] sm:$0xff]  ;;  %v6333_v15 = vpack.i.bf16 %v7601_v14, %v7585_v1 }
 0x25f   : > { %5675 = vmatprep.mubr.msk.bf16.mxu0 %vm1377_vm4, %v2294_v60  ;;  %v6358_v34 = vpack.i.bf16 %v7595_v13, %v7592_v6  ;;  %v7612_v35 = vld [vmem:[#allocation3 + $0x101] sm:$0xff] }
 0x260   : > { %6309 = vrot.lane.b32.xlu0 %v6313_v53, %s6671_s14  ;;  %v6348_v39 = vpack.i.bf16 %v1775_v36, %v7612_v35 }
 0x261   : > { %6319 = vrot.lane.b32.xlu1 %v6318_v61, %s6670_s13 }
 0x263   : > { %5676 = vmatmul.mubr.msk.bf16.gmra.mxu0 %vm1377_vm4, %v2297_v2 }
 0x264   : > { %6324 = vrot.lane.b32.xlu0 %v6323_v5, %s6669_s30 }
 0x265   : > { %6354 = vrot.lane.b32.xlu1 %v6353_v8, %s6671_s14 }
 0x268   : > { %6329 = vrot.lane.b32.xlu0 %v6328_v48, %s6669_s30 }
 0x269   : > { %6359 = vrot.lane.b32.xlu1 %v6358_v34, %s6669_s30 }
 0x26c   : > { %6334 = vrot.lane.b32.xlu0 %v6333_v15, %s6670_s13 }
 0x26d   : > { %6364 = vrot.lane.b32.xlu1 %v6363_v16, %s6670_s13  ;;  %v6135_v23 = vpop.permute.xlu1 %6134 }
 0x26e   : > { %v6137_v40 = vunpack.i.h.bf16 %v6135_v23  ;;  %v6136_v42 = vunpack.i.l.bf16 %v6135_v23 }
 0x26f   : > { %v7608_v26 = vpop.permute.xlu0 %6144 }
 0x270   : > { %6339 = vrot.lane.b32.xlu0 %v6358_v34, %s6671_s14  ;;  %v2176_v61 = vsel %vm1377_vm4, %v1647_v43, %v6136_v42  ;;  %v2177_v62 = vsel %vm1377_vm4, %v7440_v49, %v6137_v40 }
 0x271   : > { %6369 = vrot.lane.b32.xlu1 %v6368_v59, %s6671_s14  ;;  %v6140_v27 = vpop.permute.xlu1 %6139 }
 0x272   : > { %v6142_v31 = vunpack.i.h.bf16 %v6140_v27  ;;  %v6141_v47 = vunpack.i.l.bf16 %v6140_v27 }
 0x273   : > { %v6155_v37 = vpop.permute.xlu0 %6154 }
 0x274   : > { %6344 = vrot.lane.b32.xlu0 %v6343_v28, %s6670_s13  ;;  %v6157_v21 = vunpack.i.h.bf16 %v6155_v37  ;;  %v6156_v53 = vunpack.i.l.bf16 %v6155_v37  ;;  %v2193_v8 = vsel %vm2192_vm14, %v2176_v61, %v6141_v47  ;;  %v2194_v48 = vsel %vm2192_vm14, %v2177_v62, %v6142_v31 }
 0x275   : > { %v7615_v38 = vpop.permute.xlu1 %6149  ;;  %v6147_v47 = vunpack.i.h.bf16 %v7608_v26 }
 0x276   : > { %v2226_v16 = vsel %vm1377_vm4, %v7406_v30, %v6156_v53  ;;  %v2227_v22 = vsel %vm1377_vm4, %v7442_v19, %v6157_v21 }
 0x277   : > { %v6160_v3 = vpop.permute.xlu0 %6159 }
 0x278   : > { %6349 = vrot.lane.b32.xlu0 %v6348_v39, %s6671_s14  ;;  %v6162_v4 = vunpack.i.h.bf16 %v6160_v3  ;;  %v6161_v54 = vunpack.i.l.bf16 %v6160_v3  ;;  %v6146_v3 = vunpack.i.l.bf16 %v7608_v26 }
 0x279   : > { %v6170_v60 = vpop.permute.xlu1 %6169 }
 0x27a   : > { %v6172_v63 = vunpack.i.h.bf16 %v6170_v60  ;;  %v6171_v2 = vunpack.i.l.bf16 %v6170_v60  ;;  %v2242_v23 = vsel %vm2192_vm14, %v2226_v16, %v6161_v54  ;;  %v2243_v59 = vsel %vm2192_vm14, %v2227_v22, %v6162_v4 }
 0x27b   : > { %v6165_v5 = vpop.permute.xlu0 %6164  ;;  %v2228_v26 = vsel %vm1377_vm4, %v7447_v52, %v6146_v3 }
 0x27c   : > { %v6167_v34 = vunpack.i.h.bf16 %v6165_v5  ;;  %v6166_v15 = vunpack.i.l.bf16 %v6165_v5  ;;  %v2210_v49 = vsel %vm2209_vm15, %v2193_v8, %v6171_v2  ;;  %v2211_v25 = vsel %vm2209_vm15, %v2194_v48, %v6172_v63 }
 0x27d   : > { %v2274_v37 = vpack.c.bf16 %v2211_v25, %v2210_v49  ;;  %v6175_v30 = vpop.permute.xlu1 %6174  ;;  %v6152_v63 = vunpack.i.h.bf16 %v7615_v38  ;;  %v6151_v2 = vunpack.i.l.bf16 %v7615_v38 }
 0x27e   : > { %v2258_v27 = vsel %vm2209_vm15, %v2242_v23, %v6166_v15  ;;  %v2259_v28 = vsel %vm2209_vm15, %v2243_v59, %v6167_v34  ;;  %v6177_v40 = vunpack.i.h.bf16 %v6175_v30  ;;  %v6176_v19 = vunpack.i.l.bf16 %v6175_v30 }
 0x27f   : > { %v2275_v36 = vpack.c.bf16 %v2259_v28, %v2258_v27 }
 0x280   : > { %v2179_v53 = vsel %vm1377_vm4, %v7430_v29, %v6177_v40  ;;  %v2178_v4 = vsel %vm1377_vm4, %v7432_v46, %v6176_v19  ;;  %v2229_v29 = vsel %vm1377_vm4, %v7463_v10, %v6147_v47 }
 0x281   : > { %2504 = vmatprep.mubr.bf16.mxu1 %v2275_v36  ;;  %v6180_v39 = vpop.permute.xlu1 %6179 }
 0x282   : > { %2505 = vmatmul.mubr.bf16.vlgmr.msra.gmra.mxu1 %v2274_v37  ;;  %v6182_v42 = vunpack.i.h.bf16 %v6180_v39  ;;  %v6181_v43 = vunpack.i.l.bf16 %v6180_v39 }
 0x284   : > { %v2195_v61 = vsel %vm2192_vm14, %v2178_v4, %v6181_v43  ;;  %v2196_v62 = vsel %vm2192_vm14, %v2179_v53, %v6182_v42 }
 0x285   : > { %v2212_v16 = vsel %vm2209_vm15, %v2195_v61, %v6151_v2  ;;  %v2213_v22 = vsel %vm2209_vm15, %v2196_v62, %v6152_v63 }
 0x286   : > { %v2277_v10 = vpack.c.bf16 %v2213_v22, %v2212_v16 }
 0x28e   : > { %v6185_v31 = vpop.permute.xlu0 %6184 }
 0x28f   : > { %v6195_v21 = vpop.permute.xlu1 %6194  ;;  %v6187_v54 = vunpack.i.h.bf16 %v6185_v31  ;;  %v6186_v60 = vunpack.i.l.bf16 %v6185_v31 }
 0x290   : > { %v6197_v27 = vunpack.i.h.bf16 %v6195_v21  ;;  %v6196_v28 = vunpack.i.l.bf16 %v6195_v21 }
 0x291   : > { %v2244_v34 = vsel %vm2192_vm14, %v2228_v26, %v6186_v60  ;;  %v2245_v15 = vsel %vm2192_vm14, %v2229_v29, %v6187_v54 }
 0x292   : > { %v6190_v5 = vpop.permute.xlu0 %6189  ;;  %v2181_v3 = vsel %vm1377_vm4, %v7465_v11, %v6197_v27  ;;  %v2180_v53 = vsel %vm1377_vm4, %v7423_v44, %v6196_v28 }
 0x293   : > { %v6192_v8 = vunpack.i.h.bf16 %v6190_v5  ;;  %v6191_v48 = vunpack.i.l.bf16 %v6190_v5  ;;  %v6200_v46 = vpop.permute.xlu1 %6199 }
 0x294   : > { %v6202_v37 = vunpack.i.h.bf16 %v6200_v46  ;;  %v6201_v30 = vunpack.i.l.bf16 %v6200_v46 }
 0x295   : > { %v2260_v38 = vsel %vm2209_vm15, %v2244_v34, %v6191_v48  ;;  %v2261_v23 = vsel %vm2209_vm15, %v2245_v15, %v6192_v8 }
 0x296   : > { %v6205_v59 = vpop.permute.xlu0 %6204  ;;  %v2278_v52 = vpack.c.bf16 %v2261_v23, %v2260_v38  ;;  %v2197_v54 = vsel %vm2192_vm14, %v2180_v53, %v6201_v30  ;;  %v2198_v21 = vsel %vm2192_vm14, %v2181_v3, %v6202_v37 }
 0x297   : > { %v7654_v49 = vpop.permute.xlu1 %6209  ;;  %v6207_v38 = vunpack.i.h.bf16 %v6205_v59  ;;  %v6206_v23 = vunpack.i.l.bf16 %v6205_v59 }
 0x298   : > { %2512 = vmatprep.mubr.bf16.mxu1 %v2278_v52  ;;  %v6212_v30 = vunpack.i.h.bf16 %v7654_v49 }
 0x299   : > { %2513 = vmatmul.mubr.bf16.gmra.mxu1 %v2277_v10  ;;  %v2233_v59 = vsel %vm1377_vm4, %v7515_v58, %v6207_v38 }
 0x29a   : > { %v6215_v25 = vpop.permute.xlu0 %6214 }
 0x29b   : > { %v6230_v36 = vpop.permute.xlu1 %6229  ;;  %v6217_v40 = vunpack.i.h.bf16 %v6215_v25  ;;  %v6216_v19 = vunpack.i.l.bf16 %v6215_v25 }
 0x29c   : > { %v6232_v42 = vunpack.i.h.bf16 %v6230_v36  ;;  %v6231_v43 = vunpack.i.l.bf16 %v6230_v36 }
 0x29d   : > { %v2231_v60 = vsel %vm1377_vm4, %v7494_v41, %v6217_v40  ;;  %v2230_v61 = vsel %vm1377_vm4, %v7467_v12, %v6216_v19 }
 0x29e   : > { %v6220_v39 = vpop.permute.xlu0 %6219  ;;  %v2214_v44 = vsel %vm2209_vm15, %v2197_v54, %v6231_v43  ;;  %v2215_v26 = vsel %vm2209_vm15, %v2198_v21, %v6232_v42 }
 0x29f   : > { %v6222_v31 = vunpack.i.h.bf16 %v6220_v39  ;;  %v6221_v47 = vunpack.i.l.bf16 %v6220_v39  ;;  %v6235_v2 = vpop.permute.xlu1 %6234  ;;  %v2280_v41 = vpack.c.bf16 %v2215_v26, %v2214_v44  ;;  %v6211_v39 = vunpack.i.l.bf16 %v7654_v49 }
 0x2a0   : > { %v6237_v46 = vunpack.i.h.bf16 %v6235_v2  ;;  %v6236_v34 = vunpack.i.l.bf16 %v6235_v2 }
 0x2a1   : > { %v2246_v5 = vsel %vm2192_vm14, %v2230_v61, %v6221_v47  ;;  %v2247_v11 = vsel %vm2192_vm14, %v2231_v60, %v6222_v31 }
 0x2a2   : > { %v6225_v4 = vpop.permute.xlu0 %6224  ;;  %v2183_v10 = vsel %vm1377_vm4, %v7483_v57, %v6237_v46  ;;  %v2182_v25 = vsel %vm1377_vm4, %v7488_v24, %v6236_v34  ;;  %v2232_v57 = vsel %vm1377_vm4, %v7500_v33, %v6206_v23 }
 0x2a3   : > { %v6227_v62 = vunpack.i.h.bf16 %v6225_v4  ;;  %v6226_v63 = vunpack.i.l.bf16 %v6225_v4  ;;  %v6240_v12 = vpop.permute.xlu1 %6239 }
 0x2a4   : > { %v6242_v15 = vunpack.i.h.bf16 %v6240_v12  ;;  %v6241_v16 = vunpack.i.l.bf16 %v6240_v12 }
 0x2a5   : > { %v2262_v29 = vsel %vm2209_vm15, %v2246_v5, %v6226_v63  ;;  %v2263_v8 = vsel %vm2209_vm15, %v2247_v11, %v6227_v62 }
 0x2a6   : > { %v2281_v48 = vpack.c.bf16 %v2263_v8, %v2262_v29  ;;  %v2199_v36 = vsel %vm2192_vm14, %v2182_v25, %v6241_v16  ;;  %v2200_v37 = vsel %vm2192_vm14, %v2183_v10, %v6242_v15 }
 0x2a7   : > { %v2216_v47 = vsel %vm2209_vm15, %v2199_v36, %v6211_v39  ;;  %v2217_v3 = vsel %vm2209_vm15, %v2200_v37, %v6212_v30 }
 0x2a8   : > { %2520 = vmatprep.mubr.bf16.mxu1 %v2281_v48  ;;  %v2283_v33 = vpack.c.bf16 %v2217_v3, %v2216_v47 }
 0x2a9   : > { %2521 = vmatmul.mubr.bf16.gmra.mxu1 %v2280_v41 }
 0x2ae   : > { %v6245_v22 = vpop.permute.xlu0 %6244 }
 0x2af   : > { %v6255_v52 = vpop.permute.xlu1 %6254  ;;  %v6247_v27 = vunpack.i.h.bf16 %v6245_v22  ;;  %v6246_v28 = vunpack.i.l.bf16 %v6245_v22 }
 0x2b0   : > { %v6257_v60 = vunpack.i.h.bf16 %v6255_v52  ;;  %v6256_v61 = vunpack.i.l.bf16 %v6255_v52 }
 0x2b1   : > { %v2248_v43 = vsel %vm2192_vm14, %v2232_v57, %v6246_v28  ;;  %v2249_v31 = vsel %vm2192_vm14, %v2233_v59, %v6247_v27 }
 0x2b2   : > { %v6250_v40 = vpop.permute.xlu0 %6249  ;;  %v2185_v41 = vsel %vm1377_vm4, %v7517_v55, %v6257_v60  ;;  %v2184_v12 = vsel %vm1377_vm4, %v7480_v18, %v6256_v61 }
 0x2b3   : > { %v6252_v19 = vunpack.i.h.bf16 %v6250_v40  ;;  %v6251_v42 = vunpack.i.l.bf16 %v6250_v40  ;;  %v6260_v24 = vpop.permute.xlu1 %6259 }
 0x2b4   : > { %v6262_v63 = vunpack.i.h.bf16 %v6260_v24  ;;  %v6261_v2 = vunpack.i.l.bf16 %v6260_v24 }
 0x2b5   : > { %v2264_v49 = vsel %vm2209_vm15, %v2248_v43, %v6251_v42  ;;  %v2265_v53 = vsel %vm2209_vm15, %v2249_v31, %v6252_v19 }
 0x2b6   : > { %v6265_v4 = vpop.permute.xlu0 %6264  ;;  %v2284_v58 = vpack.c.bf16 %v2265_v53, %v2264_v49  ;;  %v2201_v46 = vsel %vm2192_vm14, %v2184_v12, %v6261_v2  ;;  %v2202_v34 = vsel %vm2192_vm14, %v2185_v41, %v6262_v63 }
 0x2b7   : > { %v7690_v54 = vpop.permute.xlu1 %6269  ;;  %v6267_v57 = vunpack.i.h.bf16 %v6265_v4  ;;  %v6266_v19 = vunpack.i.l.bf16 %v6265_v4 }
 0x2b8   : > { %2528 = vmatprep.mubr.bf16.mxu1 %v2284_v58  ;;  %v6272_v53 = vunpack.i.h.bf16 %v7690_v54  ;;  %v6271_v58 = vunpack.i.l.bf16 %v7690_v54 }
 0x2b9   : > { %2529 = vmatmul.mubr.bf16.gmra.mxu1 %v2283_v33  ;;  %v2237_v4 = vsel %vm1377_vm4, %v7568_v45, %v6267_v57 }
 0x2ba   : > { %v6275_v21 = vpop.permute.xlu0 %6274 }
 0x2bb   : > { %v6290_v62 = vpop.permute.xlu1 %6289  ;;  %v6277_v11 = vunpack.i.h.bf16 %v6275_v21  ;;  %v6276_v44 = vunpack.i.l.bf16 %v6275_v21 }
 0x2bc   : > { %v6292_v26 = vunpack.i.h.bf16 %v6290_v62  ;;  %v6291_v29 = vunpack.i.l.bf16 %v6290_v62 }
 0x2bd   : > { %v2235_v16 = vsel %vm1377_vm4, %v7547_v20, %v6277_v11  ;;  %v2234_v22 = vsel %vm1377_vm4, %v7519_v56, %v6276_v44 }
 0x2be   : > { %v6280_v5 = vpop.permute.xlu0 %6279  ;;  %v2218_v18 = vsel %vm2209_vm15, %v2201_v46, %v6291_v29  ;;  %v2219_v25 = vsel %vm2209_vm15, %v2202_v34, %v6292_v26 }
 0x2bf   : > { %v6282_v8 = vunpack.i.h.bf16 %v6280_v5  ;;  %v6281_v48 = vunpack.i.l.bf16 %v6280_v5  ;;  %v6295_v10 = vpop.permute.xlu1 %6294  ;;  %v2286_v20 = vpack.c.bf16 %v2219_v25, %v2218_v18 }
 0x2c0   : > { %v6297_v37 = vunpack.i.h.bf16 %v6295_v10  ;;  %v6296_v30 = vunpack.i.l.bf16 %v6295_v10 }
 0x2c1   : > { %v2250_v52 = vsel %vm2192_vm14, %v2234_v22, %v6281_v48  ;;  %v2251_v55 = vsel %vm2192_vm14, %v2235_v16, %v6282_v8 }
 0x2c2   : > { %v6285_v15 = vpop.permute.xlu0 %6284  ;;  %v2187_v24 = vsel %vm1377_vm4, %v7536_v9, %v6297_v37  ;;  %v2186_v43 = vsel %vm1377_vm4, %v7541_v50, %v6296_v30  ;;  %v2236_v9 = vsel %vm1377_vm4, %v7553_v17, %v6266_v19 }
 0x2c3   : > { %v6287_v38 = vunpack.i.h.bf16 %v6285_v15  ;;  %v6286_v23 = vunpack.i.l.bf16 %v6285_v15  ;;  %v6300_v56 = vpop.permute.xlu1 %6299 }
 0x2c4   : > { %v6302_v39 = vunpack.i.h.bf16 %v6300_v56  ;;  %v6301_v40 = vunpack.i.l.bf16 %v6300_v56 }
 0x2c5   : > { %v2266_v27 = vsel %vm2209_vm15, %v2250_v52, %v6286_v23  ;;  %v2267_v28 = vsel %vm2209_vm15, %v2251_v55, %v6287_v38 }
 0x2c6   : > { %v2287_v36 = vpack.c.bf16 %v2267_v28, %v2266_v27  ;;  %v2203_v3 = vsel %vm2192_vm14, %v2186_v43, %v6301_v40  ;;  %v2204_v49 = vsel %vm2192_vm14, %v2187_v24, %v6302_v39 }
 0x2c7   : > { %v2220_v63 = vsel %vm2209_vm15, %v2203_v3, %v6271_v58  ;;  %v2221_v2 = vsel %vm2209_vm15, %v2204_v49, %v6272_v53 }
 0x2c8   : > { %2536 = vmatprep.mubr.bf16.mxu1 %v2287_v36  ;;  %v2289_v26 = vpack.c.bf16 %v2221_v2, %v2220_v63  ;;  %v3706_v2 = vld [vmem:[#allocation4 + $0x1] sm:$0xf] }
 0x2c9   : > { %2537 = vmatmul.mubr.bf16.gmra.mxu1 %v2286_v20  ;;  %3851 = vrot.lane.b32.xlu0 %v3706_v2, %s6670_s13 }
 0x2ce   : > { %v6305_v59 = vpop.permute.xlu0 %6304 }
 0x2cf   : > { %v6315_v42 = vpop.permute.xlu1 %6314  ;;  %v6307_v31 = vunpack.i.h.bf16 %v6305_v59  ;;  %v6306_v47 = vunpack.i.l.bf16 %v6305_v59 }
 0x2d0   : > { %v6317_v8 = vunpack.i.h.bf16 %v6315_v42  ;;  %v6316_v48 = vunpack.i.l.bf16 %v6315_v42 }
 0x2d1   : > { %v2252_v61 = vsel %vm2192_vm14, %v2236_v9, %v6306_v47  ;;  %v2253_v62 = vsel %vm2192_vm14, %v2237_v4, %v6307_v31 }
 0x2d2   : > { %v6310_v33 = vpop.permute.xlu0 %6309  ;;  %v2189_v55 = vsel %vm1377_vm4, %v7570_v32, %v6317_v8  ;;  %v2188_v10 = vsel %vm1377_vm4, %v7532_v7, %v6316_v48  ;;  %v2718_v8 = vlaneseq }
 0x2d3   : > { %v6312_v21 = vunpack.i.h.bf16 %v6310_v33  ;;  %v6311_v60 = vunpack.i.l.bf16 %v6310_v33  ;;  %v6320_v50 = vpop.permute.xlu1 %6319 }
 0x2d4   : > { %v6322_v41 = vunpack.i.h.bf16 %v6320_v50  ;;  %v6321_v12 = vunpack.i.l.bf16 %v6320_v50 }
 0x2d5   : > { %v2268_v54 = vsel %vm2209_vm15, %v2252_v61, %v6311_v60  ;;  %v2269_v5 = vsel %vm2209_vm15, %v2253_v62, %v6312_v21 }
 0x2d6   : > { %v6325_v11 = vpop.permute.xlu0 %6324  ;;  %v2290_v45 = vpack.c.bf16 %v2269_v5, %v2268_v54  ;;  %v2205_v18 = vsel %vm2192_vm14, %v2188_v10, %v6321_v12  ;;  %v2206_v25 = vsel %vm2192_vm14, %v2189_v55, %v6322_v41  ;;  %v7835_v41 = vld [vmem:[#allocation9] ss:$0 sm:$0xff] }
 0x2d7   : > { %v6355_v44 = vpop.permute.xlu1 %6354  ;;  %v6326_v59 = vunpack.i.l.bf16 %v6325_v11 }
 0x2d8   : > { %2544 = vmatprep.mubr.bf16.mxu1 %v2290_v45  ;;  %v6357_v22 = vunpack.i.h.bf16 %v6355_v44  ;;  %v6356_v38 = vunpack.i.l.bf16 %v6355_v44 }
 0x2d9   : > { %2545 = vmatmul.mubr.bf16.gmra.mxu1 %v2289_v26  ;;  %v2240_v4 = vsel %vm1377_vm4, %v7595_v13, %v6326_v59 }
 0x2da   : > { %v6330_v17 = vpop.permute.xlu0 %6329  ;;  %v2222_v7 = vsel %vm2209_vm15, %v2205_v18, %v6356_v38  ;;  %v2223_v30 = vsel %vm2209_vm15, %v2206_v25, %v6357_v22  ;;  %v2719_v22 = vshrl.u32 %v2718_v8, 7 }
 0x2db   : > { %v6360_v29 = vpop.permute.xlu1 %6359  ;;  %v6332_v46 = vunpack.i.h.bf16 %v6330_v17  ;;  %v6331_v15 = vunpack.i.l.bf16 %v6330_v17  ;;  %v2292_v47 = vpack.c.bf16 %v2223_v30, %v2222_v7  ;;  %v7833_v44 = vpop.f32.mrf.mxu0  ;;  %v6672_v17 = vmov 1983009808  }
 0x2dc   : > { %v6362_v57 = vunpack.i.h.bf16 %v6360_v29  ;;  %v6361_v19 = vunpack.i.l.bf16 %v6360_v29  ;;  %v2716_v29 = vunpack.c.l.s4 %v6672_v17 }
 0x2dd   : > { %v2239_v27 = vsel %vm1377_vm4, %v7592_v6, %v6332_v46  ;;  %v2238_v36 = vsel %vm1377_vm4, %v7572_v51, %v6331_v15  ;;  %v6327_v6 = vunpack.i.h.bf16 %v6325_v11  ;;  %v2603_v48 = vpop.f32.mrf.mxu0 }
 0x2de   : > { %v6335_v34 = vpop.permute.xlu0 %6334  ;;  %v2191_v9 = vsel %vm1377_vm4, %v7601_v14, %v6362_v57  ;;  %v2190_v21 = vsel %vm1377_vm4, %v7585_v1, %v6361_v19 }
 0x2df   : > { %v6365_v16 = vpop.permute.xlu1 %6364  ;;  %v6337_v23 = vunpack.i.h.bf16 %v6335_v34  ;;  %v6336_v52 = vunpack.i.l.bf16 %v6335_v34  ;;  %v2241_v33 = vsel %vm1377_vm4, %v7612_v35, %v6327_v6  ;;  %v7838_v38 = vpop.f32.mrf.mxu0 }
 0x2e0   : > { %v6367_v43 = vunpack.i.h.bf16 %v6365_v16  ;;  %v6366_v31 = vunpack.i.l.bf16 %v6365_v16  ;;  %v2717_v16 = vunpack.c.0.s8 %v2716_v29 }
 0x2e1   : > { %v2254_v37 = vsel %vm2192_vm14, %v2238_v36, %v6336_v52  ;;  %v2255_v32 = vsel %vm2192_vm14, %v2239_v27, %v6337_v23  ;;  %v2606_v27 = vpop.f32.mrf.mxu0 }
 0x2e2   : > { %v6340_v28 = vpop.permute.xlu0 %6339  ;;  %v2207_v50 = vsel %vm2192_vm14, %v2190_v21, %v6366_v31  ;;  %v2208_v61 = vsel %vm2192_vm14, %v2191_v9, %v6367_v43  ;;  %v7840_v18 = vsub.s32 %v2717_v16, %v2719_v22 }
 0x2e3   : > { %v6342_v20 = vunpack.i.h.bf16 %v6340_v28  ;;  %v6341_v56 = vunpack.i.l.bf16 %v6340_v28  ;;  %v6370_v39 = vpop.permute.xlu1 %6369 }
 0x2e4   : > { %v6372_v3 = vunpack.i.h.bf16 %v6370_v39  ;;  %v6371_v49 = vunpack.i.l.bf16 %v6370_v39 }
 0x2e5   : > { %v2270_v40 = vsel %vm2209_vm15, %v2254_v37, %v6341_v56  ;;  %v2271_v51 = vsel %vm2209_vm15, %v2255_v32, %v6342_v20 }
 0x2e6   : > { %v6345_v42 = vpop.permute.xlu0 %6344  ;;  %v2293_v24 = vpack.c.bf16 %v2271_v51, %v2270_v40  ;;  %v2224_v13 = vsel %vm2209_vm15, %v2207_v50, %v6371_v49  ;;  %v2225_v5 = vsel %vm2209_vm15, %v2208_v61, %v6372_v3 }
 0x2e7   : > { %v6347_v53 = vunpack.i.h.bf16 %v6345_v42  ;;  %v6346_v58 = vunpack.i.l.bf16 %v6345_v42  ;;  %v2295_v45 = vpack.c.bf16 %v2225_v5, %v2224_v13 }
 0x2e8   : > { %2552 = vmatprep.mubr.bf16.mxu1 %v2293_v24 }
 0x2e9   : > { %2553 = vmatmul.mubr.bf16.gmra.mxu1 %v2292_v47  ;;  %v2256_v54 = vsel %vm2192_vm14, %v2240_v4, %v6346_v58  ;;  %v2257_v35 = vsel %vm2192_vm14, %v2241_v33, %v6347_v53 }
 0x2ea   : > { %v6350_v60 = vpop.permute.xlu0 %6349 }
 0x2eb   : > { %v6352_v62 = vunpack.i.h.bf16 %v6350_v60  ;;  %v6351_v63 = vunpack.i.l.bf16 %v6350_v60 }
 0x2ed   : > { %v2272_v1 = vsel %vm2209_vm15, %v2256_v54, %v6351_v63  ;;  %v2273_v14 = vsel %vm2209_vm15, %v2257_v35, %v6352_v62 }
 0x2ee   : > { %v2296_v11 = vpack.c.bf16 %v2273_v14, %v2272_v1 }
 0x2f0   : > { %2560 = vmatprep.mubr.bf16.mxu1 %v2296_v11 }
 0x2f1   : > { %2561 = vmatmul.mubr.bf16.gmra.mxu1 %v2295_v45 }
 0x342   : > { %v5482_v26 = vpop.f32.mrf.mxu1 }
 0x344   : > { %v5483_v12 = vpop.f32.mrf.mxu1 }
 0x345   : > { %v5484_v46 = vadd.f32 %v5483_v12, %v5482_v26 }
 0x346   : > { %v5485_v34 = vpop.f32.mrf.mxu1 }
 0x347   : > { %v2507_v15 = vadd.f32 %v5484_v46, %v7835_v41 }
 0x348   : > { %v5486_v23 = vpop.f32.mrf.mxu1 }
 0x349   : > { %v2604_v52 = vadd.f32 %v2603_v48, %v2507_v15  ;;  %v5487_v55 = vadd.f32 %v5486_v23, %v5485_v34 }
 0x34b   : > { %v2666_v10 = vmul.f32 0.2, %v2604_v52  ;;  %v2510_v25 = vadd.f32 %v5487_v55, %v7835_v41 }
 0x34d   : > { %v2682_v28 = vmax.f32 %v2604_v52, %v2666_v10  ;;  %v2607_v36 = vadd.f32 %v2606_v27, %v2510_v25 }
 0x34f   : > { %v2714_v20 = vcombine.high %v2682_v28, %v2682_v28  ;;  %v2721_v56 = vrot.slane %v2682_v28, %v7840_v18  ;;  %v2667_v37 = vmul.f32 0.2, %v2607_v36 }
 0x351   : > { %v2728_v32 = vrot.slane %v2714_v20, %v7840_v18  ;;  %v2729_v7 = vcombine.high %v2721_v56, %v2721_v56  ;;  %v3051_v30 = vsel %vm3050_vm3, %v2721_v56, -inf  ;;  %v2683_v6 = vmax.f32 %v2607_v36, %v2667_v37 }
 0x352   : > { %v3052_v39 = vrot.slane %v3051_v30, 4 }
 0x353   : > { %v2730_v40 = vcombine.high %v2728_v32, %v2728_v32  ;;  %v3058_v51 = vsel %vm3050_vm3, %v2729_v7, -inf  ;;  %v3065_v59 = vsel %vm3050_vm3, %v2728_v32, -inf  ;;  %v2731_v57 = vcombine.high %v2683_v6, %v2683_v6 }
 0x354   : > { %v3053_v19 = vmax.f32 %v3051_v30, %v3052_v39  ;;  %v3059_v42 = vrot.slane %v3058_v51, 4  ;;  %v3066_v24 = vrot.slane %v3065_v59, 4  ;;  %v2738_v43 = vrot.slane %v2683_v6, %v7840_v18 }
 0x355   : > { %v3072_v31 = vsel %vm3050_vm3, %v2730_v40, -inf  ;;  %v2745_v47 = vrot.slane %v2731_v57, %v7840_v18 }
 0x356   : > { %v3054_v3 = vrot.slane %v3053_v19, 2  ;;  %v3060_v49 = vmax.f32 %v3058_v51, %v3059_v42  ;;  %v3067_v53 = vmax.f32 %v3065_v59, %v3066_v24  ;;  %v3073_v58 = vrot.slane %v3072_v31, 4 }
 0x357   : > { %v2746_v33 = vcombine.high %v2738_v43, %v2738_v43  ;;  %v2747_v4 = vcombine.high %v2745_v47, %v2745_v47  ;;  %v3079_v9 = vsel %vm3050_vm3, %v2738_v43, -inf  ;;  %v3093_v21 = vsel %vm3050_vm3, %v2745_v47, -inf }
 0x358   : > { %v3055_v60 = vmax.f32 %v3053_v19, %v3054_v3  ;;  %v3061_v50 = vrot.slane %v3060_v49, 2  ;;  %v3068_v61 = vrot.slane %v3067_v53, 2  ;;  %v3074_v62 = vmax.f32 %v3072_v31, %v3073_v58 }
 0x359   : > { %v5488_v63 = vpop.f32.mrf.mxu1  ;;  %v3080_v2 = vrot.slane %v3079_v9, 4  ;;  %v3086_v54 = vsel %vm3050_vm3, %v2746_v33, -inf  ;;  %v3094_v35 = vrot.slane %v3093_v21, 4  ;;  %v3100_v13 = vsel %vm3050_vm3, %v2747_v4, -inf }
 0x35a   : > { %v3056_v5 = vrot.slane %v3055_v60, 1  ;;  %v3062_v1 = vmax.f32 %v3060_v49, %v3061_v50  ;;  %v3069_v14 = vmax.f32 %v3067_v53, %v3068_v61  ;;  %v3075_v11 = vrot.slane %v3074_v62, 2 }
 0x35b   : > { %v5489_v45 = vpop.f32.mrf.mxu1  ;;  %v3081_v26 = vmax.f32 %v3079_v9, %v3080_v2  ;;  %v3087_v17 = vrot.slane %v3086_v54, 4  ;;  %v3095_v29 = vmax.f32 %v3093_v21, %v3094_v35  ;;  %v3101_v8 = vrot.slane %v3100_v13, 4 }
 0x35c   : > { %v3057_v48 = vmax.f32 %v3055_v60, %v3056_v5  ;;  %v3063_v12 = vrot.slane %v3062_v1, 1  ;;  %v3070_v46 = vrot.slane %v3069_v14, 1  ;;  %v3076_v34 = vmax.f32 %v3074_v62, %v3075_v11 }
 0x35d   : > { %v5491_v15 = vpop.f32.mrf.mxu1  ;;  %v3082_v16 = vrot.slane %v3081_v26, 2  ;;  %v3088_v22 = vmax.f32 %v3086_v54, %v3087_v17  ;;  %v3096_v23 = vrot.slane %v3095_v29, 2  ;;  %v3102_v52 = vmax.f32 %v3100_v13, %v3101_v8 }
 0x35e   : > { %v3064_v55 = vmax.f32 %v3062_v1, %v3063_v12  ;;  %v3071_v10 = vmax.f32 %v3069_v14, %v3070_v46  ;;  %v3077_v25 = vrot.slane %v3076_v34, 1  ;;  %v5490_v27 = vadd.f32 %v5489_v45, %v5488_v63 }
 0x35f   : > { %v5492_v28 = vpop.f32.mrf.mxu1  ;;  %v3083_v36 = vmax.f32 %v3081_v26, %v3082_v16  ;;  %v3089_v20 = vrot.slane %v3088_v22, 2  ;;  %v3097_v56 = vmax.f32 %v3095_v29, %v3096_v23  ;;  %v3103_v37 = vrot.slane %v3102_v52, 2 }
 0x360   : > { %v3078_v32 = vmax.f32 %v3076_v34, %v3077_v25  ;;  %v3606_v7 = vsel %vm3605_vm7, %v3064_v55, %v3057_v48  ;;  %v2515_v30 = vadd.f32 %v5490_v27, %v7835_v41  ;;  %v5493_v6 = vadd.f32 %v5492_v28, %v5491_v15  ;;  %v7879_v27 = vpop.f32.mrf.mxu0 }
 0x361   : > { %v3608_v39 = vsel %vm3607_vm8, %v3071_v10, %v3606_v7  ;;  %v3084_v40 = vrot.slane %v3083_v36, 1  ;;  %v3090_v51 = vmax.f32 %v3088_v22, %v3089_v20  ;;  %v3098_v59 = vrot.slane %v3097_v56, 1 }
 0x362   : > { %v3610_v57 = vsel %vm3609_vm9, %v3078_v32, %v3608_v39  ;;  %v3104_v19 = vmax.f32 %v3102_v52, %v3103_v37  ;;  %v2612_v42 = vadd.f32 %v7833_v44, %v2515_v30  ;;  %v2518_v24 = vadd.f32 %v5493_v6, %v7835_v41 }
 0x363   : > { %3674 = vst.msk [vmem:[#allocation4 + $0x9] sm:$0xf] %vm3673_vm10, %v3610_v57  ;;  %v3091_v43 = vrot.slane %v3090_v51, 1  ;;  %v3099_v31 = vmax.f32 %v3097_v56, %v3098_v59  ;;  %v3085_v53 = vmax.f32 %v3083_v36, %v3084_v40 }
 0x364   : > { %v3105_v47 = vrot.slane %v3104_v19, 1  ;;  %v2668_v3 = vmul.f32 0.2, %v2612_v42  ;;  %v2615_v49 = vadd.f32 %v7838_v38, %v2518_v24 }
 0x365   : > { %v3092_v58 = vmax.f32 %v3090_v51, %v3091_v43 }
 0x366   : > { %v3106_v33 = vmax.f32 %v3104_v19, %v3105_v47  ;;  %v2684_v4 = vmax.f32 %v2612_v42, %v2668_v3  ;;  %v2669_v9 = vmul.f32 0.2, %v2615_v49  ;;  %v2619_v47 = vpop.f32.mrf.mxu0 }
 0x367   : > { %v3611_v21 = vsel %vm3605_vm7, %v3092_v58, %v3085_v53 }
 0x368   : > { %v3612_v60 = vsel %vm3607_vm8, %v3099_v31, %v3611_v21  ;;  %v2748_v44 = vcombine.high %v2684_v4, %v2684_v4  ;;  %v2755_v50 = vrot.slane %v2684_v4, %v7840_v18  ;;  %v2685_v61 = vmax.f32 %v2615_v49, %v2669_v9 }
 0x369   : > { %v5494_v62 = vpop.f32.mrf.mxu1  ;;  %v3613_v63 = vsel %vm3609_vm9, %v3106_v33, %v3612_v60 }
 0x36a   : > { %3675 = vst.msk [vmem:[#allocation4 + $0x11] sm:$0xf] %vm3673_vm10, %v3613_v63  ;;  %v2762_v38 = vrot.slane %v2748_v44, %v7840_v18  ;;  %v2763_v2 = vcombine.high %v2755_v50, %v2755_v50  ;;  %v3107_v54 = vsel %vm3050_vm3, %v2755_v50, -inf  ;;  %v2765_v35 = vcombine.high %v2685_v61, %v2685_v61  ;;  %v3738_v5 = vld [vmem:[#allocation4 + $0x8] sm:$0xf] }
 0x36b   : > { %v5495_v13 = vpop.f32.mrf.mxu1  ;;  %v3707_v1 = vld [vmem:[#allocation4 + $0x9] sm:$0xf]  ;;  %v3108_v14 = vrot.slane %v3107_v54, 4  ;;  %v2772_v11 = vrot.slane %v2685_v61, %v7840_v18  ;;  %3915 = vrot.lane.b32.xlu0 %v3738_v5, %s6670_s13 }
 0x36c   : > { %v5496_v45 = vadd.f32 %v5495_v13, %v5494_v62  ;;  %3853 = vrot.lane.b32.xlu1 %v3707_v1, %s6670_s13  ;;  %v2764_v26 = vcombine.high %v2762_v38, %v2762_v38  ;;  %v3114_v17 = vsel %vm3050_vm3, %v2763_v2, -inf  ;;  %v3121_v29 = vsel %vm3050_vm3, %v2762_v38, -inf }
 0x36d   : > { %v2779_v8 = vrot.slane %v2765_v35, %v7840_v18  ;;  %v3109_v48 = vmax.f32 %v3107_v54, %v3108_v14  ;;  %v3115_v12 = vrot.slane %v3114_v17, 4  ;;  %v3122_v46 = vrot.slane %v3121_v29, 4  ;;  %v5497_v19 = vpop.f32.mrf.mxu1  ;;  %v5670_v35 = vpop.f32.mrf.mxu0 }
 0x36e   : > { %v2780_v34 = vcombine.high %v2772_v11, %v2772_v11  ;;  %v3128_v15 = vsel %vm3050_vm3, %v2764_v26, -inf  ;;  %v3135_v22 = vsel %vm3050_vm3, %v2772_v11, -inf  ;;  %v2523_v54 = vadd.f32 %v5496_v45, %v7835_v41 }
 0x36f   : > { %v2781_v16 = vcombine.high %v2779_v8, %v2779_v8  ;;  %v3149_v23 = vsel %vm3050_vm3, %v2779_v8, -inf  ;;  %v3110_v52 = vrot.slane %v3109_v48, 2  ;;  %v3116_v55 = vmax.f32 %v3114_v17, %v3115_v12  ;;  %v5498_v62 = vpop.f32.mrf.mxu1 }
 0x370   : > { %v3123_v10 = vmax.f32 %v3121_v29, %v3122_v46  ;;  %v3129_v25 = vrot.slane %v3128_v15, 4  ;;  %v3136_v28 = vrot.slane %v3135_v22, 4  ;;  %v3142_v36 = vsel %vm3050_vm3, %v2780_v34, -inf }
 0x371   : > { %v3150_v20 = vrot.slane %v3149_v23, 4  ;;  %v3156_v56 = vsel %vm3050_vm3, %v2781_v16, -inf  ;;  %v3111_v37 = vmax.f32 %v3109_v48, %v3110_v52  ;;  %v3117_v32 = vrot.slane %v3116_v55, 2  ;;  %v3708_v6 = vld [vmem:[#allocation4 + $0x11] sm:$0xf] }
 0x372   : > { %v3124_v7 = vrot.slane %v3123_v10, 2  ;;  %v3130_v30 = vmax.f32 %v3128_v15, %v3129_v25  ;;  %v3739_v39 = vld [vmem:[#allocation4 + $0x10] sm:$0xf]  ;;  %v3137_v40 = vmax.f32 %v3135_v22, %v3136_v28  ;;  %v3143_v51 = vrot.slane %v3142_v36, 4  ;;  %3855 = vrot.lane.b32.xlu0 %v3708_v6, %s6670_s13 }
 0x373   : > { %v3151_v59 = vmax.f32 %v3149_v23, %v3150_v20  ;;  %v3157_v57 = vrot.slane %v3156_v56, 4  ;;  %3917 = vrot.lane.b32.xlu1 %v3739_v39, %s6670_s13  ;;  %v3112_v42 = vrot.slane %v3111_v37, 1  ;;  %v3118_v24 = vmax.f32 %v3116_v55, %v3117_v32  ;;  %v2622_v23 = vpop.f32.mrf.mxu0 }
 0x374   : > { %v3125_v43 = vmax.f32 %v3123_v10, %v3124_v7  ;;  %v3131_v31 = vrot.slane %v3130_v30, 2  ;;  %v3138_v3 = vrot.slane %v3137_v40, 2  ;;  %v3144_v49 = vmax.f32 %v3142_v36, %v3143_v51 }
 0x375   : > { %v3152_v53 = vrot.slane %v3151_v59, 2  ;;  %v3158_v58 = vmax.f32 %v3156_v56, %v3157_v57  ;;  %v3113_v33 = vmax.f32 %v3111_v37, %v3112_v42  ;;  %v3119_v4 = vrot.slane %v3118_v24, 1 }
 0x376   : > { %v3126_v9 = vrot.slane %v3125_v43, 1  ;;  %v3132_v21 = vmax.f32 %v3130_v30, %v3131_v31  ;;  %v3139_v60 = vmax.f32 %v3137_v40, %v3138_v3  ;;  %v3145_v44 = vrot.slane %v3144_v49, 2 }
 0x377   : > { %v3153_v50 = vmax.f32 %v3151_v59, %v3152_v53  ;;  %v3159_v61 = vrot.slane %v3158_v58, 2  ;;  %v3120_v63 = vmax.f32 %v3118_v24, %v3119_v4  ;;  %v2620_v29 = vadd.f32 %v2619_v47, %v2523_v54 }
 0x378   : > { %v3127_v38 = vmax.f32 %v3125_v43, %v3126_v9  ;;  %v3133_v2 = vrot.slane %v3132_v21, 1  ;;  %v3140_v13 = vrot.slane %v3139_v60, 1  ;;  %v3146_v5 = vmax.f32 %v3144_v49, %v3145_v44 }
 0x379   : > { %v3154_v1 = vrot.slane %v3153_v50, 1  ;;  %v3160_v14 = vmax.f32 %v3158_v58, %v3159_v61  ;;  %v5500_v11 = vpop.f32.mrf.mxu1  ;;  %v3614_v17 = vsel %vm3605_vm7, %v3120_v63, %v3113_v33  ;;  %v5499_v8 = vadd.f32 %v5498_v62, %v5497_v19 }
 0x37a   : > { %v3134_v26 = vmax.f32 %v3132_v21, %v3133_v2  ;;  %v3615_v48 = vsel %vm3607_vm8, %v3127_v38, %v3614_v17  ;;  %v3147_v12 = vrot.slane %v3146_v5, 1  ;;  %v2670_v45 = vmul.f32 0.2, %v2620_v29 }
 0x37b   : > { %v3155_v46 = vmax.f32 %v3153_v50, %v3154_v1  ;;  %v5501_v34 = vpop.f32.mrf.mxu1  ;;  %v3161_v16 = vrot.slane %v3160_v14, 1  ;;  %v2526_v22 = vadd.f32 %v5499_v8, %v7835_v41  ;;  %v3141_v52 = vmax.f32 %v3139_v60, %v3140_v13  ;;  %v4884_v13 = vld [vmem:[%s517_s17] sm:$0xff] }
 0x37c   : > { %v3616_v15 = vsel %vm3609_vm9, %v3134_v26, %v3615_v48  ;;  %v3148_v55 = vmax.f32 %v3146_v5, %v3147_v12  ;;  %v5502_v10 = vadd.f32 %v5501_v34, %v5500_v11  ;;  %v2686_v36 = vmax.f32 %v2620_v29, %v2670_v45  ;;  %4888 = vst.msk [vmem:[#allocation5 + $0x1] sm:$0xff] %vm541_vm0, %v4884_v13 }
 0x37d   : > { %3676 = vst.msk [vmem:[#allocation4 + $0x19] sm:$0xf] %vm3673_vm10, %v3616_v15  ;;  %v5503_v25 = vpop.f32.mrf.mxu1  ;;  %v3162_v28 = vmax.f32 %v3160_v14, %v3161_v16  ;;  %v2623_v20 = vadd.f32 %v2622_v23, %v2526_v22  ;;  %v6394_v16 = vld [vmem:[#allocation11 + $0x78] sm:$0xff]  }
 0x37e   : > { %v3617_v56 = vsel %vm3605_vm7, %v3148_v55, %v3141_v52  ;;  %v2531_v37 = vadd.f32 %v5502_v10, %v7835_v41  ;;  %v2782_v30 = vcombine.high %v2686_v36, %v2686_v36  ;;  %v2789_v6 = vrot.slane %v2686_v36, %v7840_v18  ;;  %v6395_v55 = vld [vmem:[#allocation11 + $0x38] sm:$0xff]   ;;  %5540 = vmatprep.subr.bf16.mxu0 %v6394_v16 }
 0x37f   : > { %v5504_v32 = vpop.f32.mrf.mxu1  ;;  %v3618_v7 = vsel %vm3607_vm8, %v3155_v46, %v3617_v56  ;;  %v2671_v39 = vmul.f32 0.2, %v2623_v20  ;;  %5541 = vmatpush3.bf16.msra.mxu0 %v6395_v55 }
 0x380   : > { %v3619_v40 = vsel %vm3609_vm9, %v3162_v28, %v3618_v7  ;;  %v2628_v51 = vadd.f32 %v7879_v27, %v2531_v37  ;;  %v5505_v59 = vadd.f32 %v5504_v32, %v5503_v25  ;;  %v2796_v57 = vrot.slane %v2782_v30, %v7840_v18 }
 0x381   : > { %3677 = vst.msk [vmem:[#allocation4 + $0x21] sm:$0xf] %vm3673_vm10, %v3619_v40  ;;  %v2797_v19 = vcombine.high %v2789_v6, %v2789_v6  ;;  %v3163_v42 = vsel %vm3050_vm3, %v2789_v6, -inf  ;;  %v2687_v24 = vmax.f32 %v2623_v20, %v2671_v39 }
 0x382   : > { %v3164_v43 = vrot.slane %v3163_v42, 4  ;;  %v2672_v31 = vmul.f32 0.2, %v2628_v51  ;;  %v2534_v47 = vadd.f32 %v5505_v59, %v7835_v41  ;;  %v2798_v3 = vcombine.high %v2796_v57, %v2796_v57 }
 0x383   : > { %v3170_v49 = vsel %vm3050_vm3, %v2797_v19, -inf  ;;  %v3177_v53 = vsel %vm3050_vm3, %v2796_v57, -inf  ;;  %v2799_v27 = vcombine.high %v2687_v24, %v2687_v24  ;;  %v2806_v60 = vrot.slane %v2687_v24, %v7840_v18  ;;  %v6397_v24 = vld [vmem:[#allocation11 + $0x30] sm:$0xff]  }
 0x384   : > { %v3740_v58 = vld [vmem:[#allocation4 + $0x18] sm:$0xf]  ;;  %v3165_v4 = vmax.f32 %v3163_v42, %v3164_v43  ;;  %v3171_v9 = vrot.slane %v3170_v49, 4  ;;  %v3178_v21 = vrot.slane %v3177_v53, 4  ;;  %v3184_v44 = vsel %vm3050_vm3, %v2798_v3, -inf }
 0x385   : > { %v3709_v33 = vld [vmem:[#allocation4 + $0x19] sm:$0xf]  ;;  %3919 = vrot.lane.b32.xlu0 %v3740_v58, %s6670_s13  ;;  %v2813_v50 = vrot.slane %v2799_v27, %v7840_v18  ;;  %v2688_v61 = vmax.f32 %v2628_v51, %v2672_v31  ;;  %v7909_v62 = vadd.f32 %v5670_v35, %v2534_v47  ;;  %v3185_v54 = vrot.slane %v3184_v44, 4  ;;  %v6396_v51 = vld [vmem:[#allocation11 + $0x70] sm:$0xff]  }
 0x386   : > { %3857 = vrot.lane.b32.xlu1 %v3709_v33, %s6670_s13  ;;  %v3166_v63 = vrot.slane %v3165_v4, 2  ;;  %v3172_v38 = vmax.f32 %v3170_v49, %v3171_v9  ;;  %v3179_v2 = vmax.f32 %v3177_v53, %v3178_v21  ;;  %v2814_v5 = vcombine.high %v2806_v60, %v2806_v60  ;;  %5542 = vmatprep.subr.bf16.mxu0 %v6396_v51 }
 0x387   : > { %v2815_v1 = vcombine.high %v2813_v50, %v2813_v50  ;;  %v3191_v14 = vsel %vm3050_vm3, %v2806_v60, -inf  ;;  %v3205_v11 = vsel %vm3050_vm3, %v2813_v50, -inf  ;;  %v3186_v29 = vmax.f32 %v3184_v44, %v3185_v54  ;;  %5543 = vmatpush3.bf16.msra.mxu0 %v6397_v24  ;;  %v6398_v44 = vld [vmem:[#allocation11 + $0x68] sm:$0xff]  }
 0x388   : > { %v3167_v26 = vmax.f32 %v3165_v4, %v3166_v63  ;;  %v3173_v35 = vrot.slane %v3172_v38, 2  ;;  %v3180_v17 = vrot.slane %v3179_v2, 2  ;;  %v3710_v8 = vld [vmem:[#allocation4 + $0x21] sm:$0xf]  ;;  %v3192_v12 = vrot.slane %v3191_v14, 4  ;;  %5544 = vmatprep.subr.bf16.mxu0 %v6398_v44 }
 0x389   : > { %v3741_v48 = vld [vmem:[#allocation4 + $0x20] sm:$0xf]  ;;  %v3198_v46 = vsel %vm3050_vm3, %v2814_v5, -inf  ;;  %v3206_v34 = vrot.slane %v3205_v11, 4  ;;  %v3212_v15 = vsel %vm3050_vm3, %v2815_v1, -inf  ;;  %3859 = vrot.lane.b32.xlu0 %v3710_v8, %s6670_s13  ;;  %v3187_v52 = vrot.slane %v3186_v29, 2  ;;  %v5506_v7 = vpop.f32.mrf.mxu1 }
 0x38a   : > { %3921 = vrot.lane.b32.xlu1 %v3741_v48, %s6670_s13  ;;  %v3168_v45 = vrot.slane %v3167_v26, 1  ;;  %v3174_v22 = vmax.f32 %v3172_v38, %v3173_v35  ;;  %v3181_v23 = vmax.f32 %v3179_v2, %v3180_v17  ;;  %v3193_v10 = vmax.f32 %v3191_v14, %v3192_v12  ;;  %v6399_v54 = vld [vmem:[#allocation11 + $0x28] sm:$0xff]  }
 0x38b   : > { %v3199_v25 = vrot.slane %v3198_v46, 4  ;;  %v3207_v28 = vmax.f32 %v3205_v11, %v3206_v34  ;;  %v3213_v36 = vrot.slane %v3212_v15, 4  ;;  %v3188_v32 = vmax.f32 %v3186_v29, %v3187_v52  ;;  %v5507_v33 = vpop.f32.mrf.mxu1  ;;  %5545 = vmatpush3.bf16.msra.mxu0 %v6399_v54  ;;  %v7931_v34 = vpop.f32.mrf.mxu0 }
 0x38c   : > { %v3169_v20 = vmax.f32 %v3167_v26, %v3168_v45  ;;  %v3175_v56 = vrot.slane %v3174_v22, 1  ;;  %v3182_v37 = vrot.slane %v3181_v23, 1  ;;  %v3194_v30 = vrot.slane %v3193_v10, 2 }
 0x38d   : > { %v3200_v6 = vmax.f32 %v3198_v46, %v3199_v25  ;;  %v3208_v39 = vrot.slane %v3207_v28, 2  ;;  %v3214_v40 = vmax.f32 %v3212_v15, %v3213_v36  ;;  %v3189_v19 = vrot.slane %v3188_v32, 1  ;;  %v5509_v17 = vpop.f32.mrf.mxu1  ;;  %v6400_v46 = vld [vmem:[#allocation11 + $0x60] sm:$0xff]   ;;  %v2635_v51 = vpop.f32.mrf.mxu0 }
 0x38e   : > { %v3176_v59 = vmax.f32 %v3174_v22, %v3175_v56  ;;  %v3183_v57 = vmax.f32 %v3181_v23, %v3182_v37  ;;  %v2816_v42 = vcombine.high %v2688_v61, %v2688_v61  ;;  %v3195_v43 = vmax.f32 %v3193_v10, %v3194_v30  ;;  %v6401_v23 = vld [vmem:[#allocation11 + $0x20] sm:$0xff]   ;;  %5546 = vmatprep.subr.bf16.mxu0 %v6400_v46 }
 0x38f   : > { %v3201_v31 = vrot.slane %v3200_v6, 2  ;;  %v3209_v47 = vmax.f32 %v3207_v28, %v3208_v39  ;;  %v3215_v3 = vrot.slane %v3214_v40, 2  ;;  %v3190_v49 = vmax.f32 %v3188_v32, %v3189_v19  ;;  %v5510_v37 = vpop.f32.mrf.mxu1  ;;  %5547 = vmatpush3.bf16.msra.mxu0 %v6401_v23  ;;  %v7945_v54 = vpop.f32.mrf.mxu0 }
 0x390   : > { %v3620_v53 = vsel %vm3605_vm7, %v3176_v59, %v3169_v20  ;;  %v2823_v27 = vrot.slane %v2688_v61, %v7840_v18  ;;  %v2830_v58 = vrot.slane %v2816_v42, %v7840_v18  ;;  %v3196_v9 = vrot.slane %v3195_v43, 1 }
 0x391   : > { %v3621_v4 = vsel %vm3607_vm8, %v3183_v57, %v3620_v53  ;;  %v3202_v21 = vmax.f32 %v3200_v6, %v3201_v31  ;;  %v3210_v60 = vrot.slane %v3209_v47, 1  ;;  %v3216_v63 = vmax.f32 %v3214_v40, %v3215_v3  ;;  %v6402_v40 = vld [vmem:[#allocation11 + $0x58] sm:$0xff]  }
 0x392   : > { %v3622_v50 = vsel %vm3609_vm9, %v3190_v49, %v3621_v4  ;;  %v2831_v38 = vcombine.high %v2823_v27, %v2823_v27  ;;  %v2832_v2 = vcombine.high %v2830_v58, %v2830_v58  ;;  %v3197_v13 = vmax.f32 %v3195_v43, %v3196_v9  ;;  %5548 = vmatprep.subr.bf16.mxu0 %v6402_v40 }
 0x393   : > { %3678 = vst.msk [vmem:[#allocation4 + $0x29] sm:$0xf] %vm3673_vm10, %v3622_v50  ;;  %v3203_v61 = vrot.slane %v3202_v21, 1  ;;  %v3211_v5 = vmax.f32 %v3209_v47, %v3210_v60  ;;  %v3219_v1 = vsel %vm3050_vm3, %v2823_v27, -inf  ;;  %v3217_v14 = vrot.slane %v3216_v63, 1  ;;  %v6404_v60 = vld [vmem:[#allocation11 + $0x50] sm:$0xff]  }
 0x394   : > { %v3220_v11 = vrot.slane %v3219_v1, 4  ;;  %v3226_v26 = vsel %vm3050_vm3, %v2831_v38, -inf  ;;  %v3233_v35 = vsel %vm3050_vm3, %v2830_v58, -inf  ;;  %v3240_v12 = vsel %vm3050_vm3, %v2832_v2, -inf  ;;  %v6405_v2 = vld [vmem:[#allocation11 + $0x10] sm:$0xff]  }
 0x395   : > { %v3204_v29 = vmax.f32 %v3202_v21, %v3203_v61  ;;  %v3227_v8 = vrot.slane %v3226_v26, 4  ;;  %v3234_v48 = vrot.slane %v3233_v35, 4  ;;  %v3218_v15 = vmax.f32 %v3216_v63, %v3217_v14 }
 0x396   : > { %v3221_v16 = vmax.f32 %v3219_v1, %v3220_v11  ;;  %v3241_v45 = vrot.slane %v3240_v12, 4  ;;  %v2673_v22 = vmul.f32 0.2, %v7909_v62  ;;  %v5508_v25 = vadd.f32 %v5507_v33, %v5506_v7 }
 0x397   : > { %v3623_v52 = vsel %vm3605_vm7, %v3204_v29, %v3197_v13  ;;  %v3228_v55 = vmax.f32 %v3226_v26, %v3227_v8  ;;  %v3235_v10 = vmax.f32 %v3233_v35, %v3234_v48  ;;  %v5511_v3 = vadd.f32 %v5510_v37, %v5509_v17 }
 0x398   : > { %v3624_v28 = vsel %vm3607_vm8, %v3211_v5, %v3623_v52  ;;  %v3222_v36 = vrot.slane %v3221_v16, 2  ;;  %v3242_v20 = vmax.f32 %v3240_v12, %v3241_v45  ;;  %v2689_v56 = vmax.f32 %v7909_v62, %v2673_v22  ;;  %v6403_v62 = vld [vmem:[#allocation11 + $0x18] sm:$0xff]  }
 0x399   : > { %v3625_v32 = vsel %vm3609_vm9, %v3218_v15, %v3624_v28  ;;  %v3229_v30 = vrot.slane %v3228_v55, 2  ;;  %v3236_v6 = vrot.slane %v3235_v10, 2  ;;  %v2539_v39 = vadd.f32 %v5508_v25, %v7835_v41  ;;  %5549 = vmatpush3.bf16.msra.mxu0 %v6403_v62  ;;  %v7949_v17 = vpop.f32.mrf.mxu1  ;;  %v6409_v62 = vld [vmem:[#allocation11] sm:$0xff]  }
 0x39a   : > { %3679 = vst.msk [vmem:[#allocation4 + $0x31] sm:$0xf] %vm3673_vm10, %v3625_v32  ;;  %v3223_v7 = vmax.f32 %v3221_v16, %v3222_v36  ;;  %v3243_v59 = vrot.slane %v3242_v20, 2  ;;  %v2833_v57 = vcombine.high %v2689_v56, %v2689_v56  ;;  %v2840_v19 = vrot.slane %v2689_v56, %v7840_v18  ;;  %v3742_v42 = vld [vmem:[#allocation4 + $0x28] sm:$0xf]  ;;  %5550 = vmatprep.subr.bf16.mxu0 %v6404_v60  ;;  %v6406_v16 = vld [vmem:[#allocation11 + $0x48] sm:$0xff]  }
 0x39b   : > { %v3711_v24 = vld [vmem:[#allocation4 + $0x29] sm:$0xf]  ;;  %v3230_v43 = vmax.f32 %v3228_v55, %v3229_v30  ;;  %v3237_v31 = vmax.f32 %v3235_v10, %v3236_v6  ;;  %v2636_v47 = vadd.f32 %v2635_v51, %v2539_v39  ;;  %3923 = vrot.lane.b32.xlu0 %v3742_v42, %s6670_s13  ;;  %v2542_v12 = vadd.f32 %v5511_v3, %v7835_v41  ;;  %v6407_v55 = vld [vmem:[#allocation11 + $0x8] sm:$0xff]   ;;  %v2638_v10 = vpop.f32.mrf.mxu0  ;;  %v5513_v6 = vpop.f32.mrf.mxu1 }
 0x39c   : > { %v3224_v49 = vrot.slane %v3223_v7, 1  ;;  %v3244_v53 = vmax.f32 %v3242_v20, %v3243_v59  ;;  %v2847_v27 = vrot.slane %v2833_v57, %v7840_v18  ;;  %v2848_v58 = vcombine.high %v2840_v19, %v2840_v19  ;;  %3861 = vrot.lane.b32.xlu1 %v3711_v24, %s6670_s13  ;;  %v6408_v59 = vld [vmem:[#allocation11 + $0x40] sm:$0xff]  }
 0x39d   : > { %v3231_v33 = vrot.slane %v3230_v43, 1  ;;  %v3238_v4 = vrot.slane %v3237_v31, 1  ;;  %v3247_v9 = vsel %vm3050_vm3, %v2840_v19, -inf  ;;  %v2674_v21 = vmul.f32 0.2, %v2636_v47  ;;  %5551 = vmatpush3.bf16.msra.mxu0 %v6405_v2 }
 0x39e   : > { %v3225_v44 = vmax.f32 %v3223_v7, %v3224_v49  ;;  %v3245_v50 = vrot.slane %v3244_v53, 1  ;;  %v2849_v63 = vcombine.high %v2847_v27, %v2847_v27  ;;  %v3248_v38 = vrot.slane %v3247_v9, 4  ;;  %5552 = vmatprep.subr.bf16.mxu0 %v6406_v16 }
 0x39f   : > { %v3232_v13 = vmax.f32 %v3230_v43, %v3231_v33  ;;  %v3239_v61 = vmax.f32 %v3237_v31, %v3238_v4  ;;  %v3254_v5 = vsel %vm3050_vm3, %v2848_v58, -inf  ;;  %v3261_v1 = vsel %vm3050_vm3, %v2847_v27, -inf  ;;  %v5515_v33 = vpop.f32.mrf.mxu1 }
 0x3a0   : > { %v3246_v14 = vmax.f32 %v3244_v53, %v3245_v50  ;;  %v3249_v11 = vmax.f32 %v3247_v9, %v3248_v38  ;;  %v3255_v26 = vrot.slane %v3254_v5, 4  ;;  %v3262_v35 = vrot.slane %v3261_v1, 4 }
 0x3a1   : > { %v3626_v29 = vsel %vm3605_vm7, %v3232_v13, %v3225_v44  ;;  %v3268_v8 = vsel %vm3050_vm3, %v2849_v63, -inf  ;;  %v2690_v48 = vmax.f32 %v2636_v47, %v2674_v21  ;;  %v3712_v46 = vld [vmem:[#allocation4 + $0x31] sm:$0xf]  ;;  %v2639_v30 = vadd.f32 %v2638_v10, %v2542_v12  ;;  %5553 = vmatpush3.bf16.msra.mxu0 %v6407_v55 }
 0x3a2   : > { %v3743_v15 = vld [vmem:[#allocation4 + $0x30] sm:$0xf]  ;;  %v3627_v45 = vsel %vm3607_vm8, %v3239_v61, %v3626_v29  ;;  %v3250_v22 = vrot.slane %v3249_v11, 2  ;;  %v3256_v23 = vmax.f32 %v3254_v5, %v3255_v26  ;;  %v3263_v52 = vmax.f32 %v3261_v1, %v3262_v35  ;;  %3863 = vrot.lane.b32.xlu0 %v3712_v46, %s6670_s13  ;;  %5554 = vmatprep.subr.bf16.mxu0 %v6408_v59  ;;  %v5516_v29 = vpop.f32.mrf.mxu1 }
 0x3a3   : > { %3925 = vrot.lane.b32.xlu1 %v3743_v15, %s6670_s13  ;;  %v3628_v25 = vsel %vm3609_vm9, %v3246_v14, %v3627_v45  ;;  %v3269_v28 = vrot.slane %v3268_v8, 4  ;;  %v2850_v36 = vcombine.high %v2690_v48, %v2690_v48  ;;  %v2857_v20 = vrot.slane %v2690_v48, %v7840_v18 }
 0x3a4   : > { %3680 = vst.msk [vmem:[#allocation4 + $0x39] sm:$0xf] %vm3673_vm10, %v3628_v25  ;;  %v3251_v56 = vmax.f32 %v3249_v11, %v3250_v22  ;;  %v3257_v37 = vrot.slane %v3256_v23, 2  ;;  %v3264_v32 = vrot.slane %v3263_v52, 2  ;;  %v2675_v5 = vmul.f32 0.2, %v2639_v30 }
 0x3a5   : > { %v3270_v39 = vmax.f32 %v3268_v8, %v3269_v28  ;;  %v2864_v40 = vrot.slane %v2850_v36, %v7840_v18  ;;  %v2865_v51 = vcombine.high %v2857_v20, %v2857_v20  ;;  %v3275_v7 = vsel %vm3050_vm3, %v2857_v20, -inf  ;;  %5555 = vmatpush3.bf16.msra.mxu0 %v6409_v62 }
 0x3a6   : > { %v3252_v57 = vrot.slane %v3251_v56, 1  ;;  %v3258_v19 = vmax.f32 %v3256_v23, %v3257_v37  ;;  %v3265_v42 = vmax.f32 %v3263_v52, %v3264_v32  ;;  %v3276_v24 = vrot.slane %v3275_v7, 4 }
 0x3a7   : > { %v3271_v43 = vrot.slane %v3270_v39, 2  ;;  %v2866_v31 = vcombine.high %v2864_v40, %v2864_v40  ;;  %v3282_v47 = vsel %vm3050_vm3, %v2865_v51, -inf  ;;  %v3289_v3 = vsel %vm3050_vm3, %v2864_v40, -inf }
 0x3a8   : > { %v3253_v49 = vmax.f32 %v3251_v56, %v3252_v57  ;;  %v3259_v53 = vrot.slane %v3258_v19, 1  ;;  %v3266_v27 = vrot.slane %v3265_v42, 1  ;;  %v3277_v58 = vmax.f32 %v3275_v7, %v3276_v24 }
 0x3a9   : > { %v3272_v4 = vmax.f32 %v3270_v39, %v3271_v43  ;;  %v3283_v9 = vrot.slane %v3282_v47, 4  ;;  %v3290_v21 = vrot.slane %v3289_v3, 4  ;;  %v3296_v60 = vsel %vm3050_vm3, %v2866_v31, -inf  ;;  %v5518_v7 = vpop.f32.mrf.mxu1 }
 0x3aa   : > { %v3260_v44 = vmax.f32 %v3258_v19, %v3259_v53  ;;  %v3267_v50 = vmax.f32 %v3265_v42, %v3266_v27  ;;  %v3278_v63 = vrot.slane %v3277_v58, 2  ;;  %v3297_v38 = vrot.slane %v3296_v60, 4 }
 0x3ab   : > { %v3273_v2 = vrot.slane %v3272_v4, 1  ;;  %v3284_v13 = vmax.f32 %v3282_v47, %v3283_v9  ;;  %v3291_v61 = vmax.f32 %v3289_v3, %v3290_v21  ;;  %v3744_v1 = vld [vmem:[#allocation4 + $0x38] sm:$0xf]  ;;  %v5514_v35 = vadd.f32 %v5513_v6, %v7949_v17 }
 0x3ac   : > { %v3629_v14 = vsel %vm3605_vm7, %v3260_v44, %v3253_v49  ;;  %v3279_v11 = vmax.f32 %v3277_v58, %v3278_v63  ;;  %v3298_v26 = vmax.f32 %v3296_v60, %v3297_v38  ;;  %3927 = vrot.lane.b32.xlu0 %v3744_v1, %s6670_s13  ;;  %v3713_v8 = vld [vmem:[#allocation4 + $0x39] sm:$0xf]  ;;  %v2691_v22 = vmax.f32 %v2639_v30, %v2675_v5 }
 0x3ad   : > { %v3274_v48 = vmax.f32 %v3272_v4, %v3273_v2  ;;  %v3630_v12 = vsel %vm3607_vm8, %v3267_v50, %v3629_v14  ;;  %v3285_v46 = vrot.slane %v3284_v13, 2  ;;  %v3292_v15 = vrot.slane %v3291_v61, 2  ;;  %3865 = vrot.lane.b32.xlu1 %v3713_v8, %s6670_s13 }
 0x3ae   : > { %v3280_v16 = vrot.slane %v3279_v11, 1  ;;  %v3299_v45 = vrot.slane %v3298_v26, 2  ;;  %v2547_v23 = vadd.f32 %v5514_v35, %v7835_v41  ;;  %v5517_v10 = vadd.f32 %v5516_v29, %v5515_v33  ;;  %v5519_v33 = vpop.f32.mrf.mxu1 }
 0x3af   : > { %v3631_v52 = vsel %vm3609_vm9, %v3274_v48, %v3630_v12  ;;  %v3286_v55 = vmax.f32 %v3284_v13, %v3285_v46  ;;  %v3293_v17 = vmax.f32 %v3291_v61, %v3292_v15  ;;  %v2867_v36 = vcombine.high %v2691_v22, %v2691_v22 }
 0x3b0   : > { %3681 = vst.msk [vmem:[#allocation4 + $0x41] sm:$0xf] %vm3673_vm10, %v3631_v52  ;;  %v3281_v25 = vmax.f32 %v3279_v11, %v3280_v16  ;;  %v3300_v28 = vmax.f32 %v3298_v26, %v3299_v45  ;;  %v2874_v20 = vrot.slane %v2691_v22, %v7840_v18  ;;  %v2644_v32 = vadd.f32 %v7931_v34, %v2547_v23 }
 0x3b1   : > { %v3287_v56 = vrot.slane %v3286_v55, 1  ;;  %v3294_v37 = vrot.slane %v3293_v17, 1  ;;  %v2550_v30 = vadd.f32 %v5517_v10, %v7835_v41  ;;  %v2881_v39 = vrot.slane %v2867_v36, %v7840_v18  ;;  %v7994_v36 = vpop.f32.mrf.mxu0 }
 0x3b2   : > { %v3301_v6 = vrot.slane %v3300_v28, 1  ;;  %v2882_v40 = vcombine.high %v2874_v20, %v2874_v20  ;;  %v3303_v51 = vsel %vm3050_vm3, %v2874_v20, -inf  ;;  %v2676_v42 = vmul.f32 0.2, %v2644_v32 }
 0x3b3   : > { %v3288_v59 = vmax.f32 %v3286_v55, %v3287_v56  ;;  %v3295_v57 = vmax.f32 %v3293_v17, %v3294_v37  ;;  %v3304_v19 = vrot.slane %v3303_v51, 4  ;;  %v2883_v62 = vcombine.high %v2881_v39, %v2881_v39 }
 0x3b4   : > { %v3302_v24 = vmax.f32 %v3300_v28, %v3301_v6  ;;  %v3310_v43 = vsel %vm3050_vm3, %v2882_v40, -inf  ;;  %v3317_v31 = vsel %vm3050_vm3, %v2881_v39, -inf  ;;  %v2692_v27 = vmax.f32 %v2644_v32, %v2676_v42 }
 0x3b5   : > { %v3632_v34 = vsel %vm3605_vm7, %v3288_v59, %v3281_v25  ;;  %v3305_v41 = vmax.f32 %v3303_v51, %v3304_v19  ;;  %v3311_v47 = vrot.slane %v3310_v43, 4  ;;  %v3318_v3 = vrot.slane %v3317_v31, 4 }
 0x3b6   : > { %v3633_v49 = vsel %vm3607_vm8, %v3295_v57, %v3632_v34  ;;  %v3324_v53 = vsel %vm3050_vm3, %v2883_v62, -inf  ;;  %v2647_v58 = vadd.f32 %v7945_v54, %v2550_v30  ;;  %v2884_v38 = vcombine.high %v2692_v27, %v2692_v27  ;;  %v5521_v30 = vpop.f32.mrf.mxu1 }
 0x3b7   : > { %v3634_v4 = vsel %vm3609_vm9, %v3302_v24, %v3633_v49  ;;  %v3306_v9 = vrot.slane %v3305_v41, 2  ;;  %v3312_v21 = vmax.f32 %v3310_v43, %v3311_v47  ;;  %v3319_v60 = vmax.f32 %v3317_v31, %v3318_v3  ;;  %v3714_v44 = vld [vmem:[#allocation4 + $0x41] sm:$0xf]  ;;  %v7999_v24 = vld [vmem:[#allocation9] ss:$0 sm:$0xff]  ;;  %v2651_v47 = vpop.f32.mrf.mxu0 }
 0x3b8   : > { %v3745_v50 = vld [vmem:[#allocation4 + $0x40] sm:$0xf]  ;;  %3682 = vst.msk [vmem:[#allocation4 + $0x49] sm:$0xf] %vm3673_vm10, %v3634_v4  ;;  %v3325_v63 = vrot.slane %v3324_v53, 4  ;;  %v2891_v2 = vrot.slane %v2692_v27, %v7840_v18  ;;  %3867 = vrot.lane.b32.xlu0 %v3714_v44, %s6670_s13  ;;  %v5520_v1 = vadd.f32 %v5519_v33, %v5518_v7  ;;  %v2898_v11 = vrot.slane %v2884_v38, %v7840_v18 }
 0x3b9   : > { %v2677_v13 = vmul.f32 0.2, %v2647_v58  ;;  %3929 = vrot.lane.b32.xlu1 %v3745_v50, %s6670_s13  ;;  %v3307_v54 = vmax.f32 %v3305_v41, %v3306_v9  ;;  %v3313_v61 = vrot.slane %v3312_v21, 2  ;;  %v3320_v5 = vrot.slane %v3319_v60, 2 }
 0x3ba   : > { %v3326_v14 = vmax.f32 %v3324_v53, %v3325_v63  ;;  %v2899_v26 = vcombine.high %v2891_v2, %v2891_v2  ;;  %v3331_v35 = vsel %vm3050_vm3, %v2891_v2, -inf  ;;  %v2900_v15 = vcombine.high %v2898_v11, %v2898_v11 }
 0x3bb   : > { %v3308_v29 = vrot.slane %v3307_v54, 1  ;;  %v3314_v8 = vmax.f32 %v3312_v21, %v3313_v61  ;;  %v3321_v48 = vmax.f32 %v3319_v60, %v3320_v5  ;;  %v3332_v12 = vrot.slane %v3331_v35, 4 }
 0x3bc   : > { %v3327_v46 = vrot.slane %v3326_v14, 2  ;;  %v3338_v16 = vsel %vm3050_vm3, %v2899_v26, -inf  ;;  %v3345_v45 = vsel %vm3050_vm3, %v2898_v11, -inf  ;;  %v3352_v28 = vsel %vm3050_vm3, %v2900_v15, -inf }
 0x3bd   : > { %v3309_v22 = vmax.f32 %v3307_v54, %v3308_v29  ;;  %v3315_v23 = vrot.slane %v3314_v8, 1  ;;  %v3322_v52 = vrot.slane %v3321_v48, 1  ;;  %v3333_v55 = vmax.f32 %v3331_v35, %v3332_v12 }
 0x3be   : > { %v3328_v17 = vmax.f32 %v3326_v14, %v3327_v46  ;;  %v3339_v10 = vrot.slane %v3338_v16, 4  ;;  %v3346_v25 = vrot.slane %v3345_v45, 4  ;;  %v3353_v32 = vrot.slane %v3352_v28, 4 }
 0x3bf   : > { %v3316_v20 = vmax.f32 %v3314_v8, %v3315_v23  ;;  %v3323_v56 = vmax.f32 %v3321_v48, %v3322_v52  ;;  %v3334_v37 = vrot.slane %v3333_v55, 2  ;;  %v3746_v6 = vld [vmem:[#allocation4 + $0x48] sm:$0xf]  ;;  %v2693_v59 = vmax.f32 %v2647_v58, %v2677_v13  ;;  %v5522_v58 = vpop.f32.mrf.mxu1 }
 0x3c0   : > { %v3715_v39 = vld [vmem:[#allocation4 + $0x49] sm:$0xf]  ;;  %v3329_v40 = vrot.slane %v3328_v17, 1  ;;  %v3340_v51 = vmax.f32 %v3338_v16, %v3339_v10  ;;  %v3347_v7 = vmax.f32 %v3345_v45, %v3346_v25  ;;  %3931 = vrot.lane.b32.xlu0 %v3746_v6, %s6670_s13  ;;  %v3354_v42 = vmax.f32 %v3352_v28, %v3353_v32 }
 0x3c1   : > { %3869 = vrot.lane.b32.xlu1 %v3715_v39, %s6670_s13  ;;  %v3635_v57 = vsel %vm3605_vm7, %v3316_v20, %v3309_v22  ;;  %v3335_v19 = vmax.f32 %v3333_v55, %v3334_v37  ;;  %v2555_v62 = vadd.f32 %v7999_v24, %v5520_v1  ;;  %v2901_v53 = vcombine.high %v2693_v59, %v2693_v59  ;;  %v5524_v11 = vpop.f32.mrf.mxu1 }
 0x3c2   : > { %v3330_v43 = vmax.f32 %v3328_v17, %v3329_v40  ;;  %v3636_v31 = vsel %vm3607_vm8, %v3323_v56, %v3635_v57  ;;  %v3341_v34 = vrot.slane %v3340_v51, 2  ;;  %v3348_v41 = vrot.slane %v3347_v7, 2 }
 0x3c3   : > { %v3336_v3 = vrot.slane %v3335_v19, 1  ;;  %v3355_v49 = vrot.slane %v3354_v42, 2  ;;  %v2908_v27 = vrot.slane %v2693_v59, %v7840_v18  ;;  %v2652_v21 = vadd.f32 %v2651_v47, %v2555_v62  ;;  %v5525_v25 = vpop.f32.mrf.mxu1 }
 0x3c4   : > { %v3637_v33 = vsel %vm3609_vm9, %v3330_v43, %v3636_v31  ;;  %v3342_v4 = vmax.f32 %v3340_v51, %v3341_v34  ;;  %v3349_v9 = vmax.f32 %v3347_v7, %v3348_v41  ;;  %v2915_v50 = vrot.slane %v2901_v53, %v7840_v18 }
 0x3c5   : > { %3683 = vst.msk [vmem:[#allocation4 + $0x51] sm:$0xf] %vm3673_vm10, %v3637_v33  ;;  %v3337_v60 = vmax.f32 %v3335_v19, %v3336_v3  ;;  %v3356_v44 = vmax.f32 %v3354_v42, %v3355_v49  ;;  %v2916_v63 = vcombine.high %v2908_v27, %v2908_v27  ;;  %v3359_v13 = vsel %vm3050_vm3, %v2908_v27, -inf  ;;  %v5527_v53 = vpop.f32.mrf.mxu1 }
 0x3c6   : > { %v3343_v38 = vrot.slane %v3342_v4, 1  ;;  %v3350_v2 = vrot.slane %v3349_v9, 1  ;;  %v2678_v54 = vmul.f32 0.2, %v2652_v21  ;;  %v2917_v5 = vcombine.high %v2915_v50, %v2915_v50 }
 0x3c7   : > { %v3357_v61 = vrot.slane %v3356_v44, 1  ;;  %v3360_v1 = vrot.slane %v3359_v13, 4  ;;  %v3366_v14 = vsel %vm3050_vm3, %v2916_v63, -inf  ;;  %v3373_v8 = vsel %vm3050_vm3, %v2915_v50, -inf }
 0x3c8   : > { %v3344_v26 = vmax.f32 %v3342_v4, %v3343_v38  ;;  %v3351_v35 = vmax.f32 %v3349_v9, %v3350_v2  ;;  %v3367_v29 = vrot.slane %v3366_v14, 4  ;;  %v3374_v46 = vrot.slane %v3373_v8, 4 }
 0x3c9   : > { %v3358_v48 = vmax.f32 %v3356_v44, %v3357_v61  ;;  %v3361_v12 = vmax.f32 %v3359_v13, %v3360_v1  ;;  %v3380_v15 = vsel %vm3050_vm3, %v2917_v5, -inf  ;;  %v2694_v23 = vmax.f32 %v2652_v21, %v2678_v54 }
 0x3ca   : > { %v3638_v16 = vsel %vm3605_vm7, %v3344_v26, %v3337_v60  ;;  %v3368_v45 = vmax.f32 %v3366_v14, %v3367_v29  ;;  %v3381_v22 = vrot.slane %v3380_v15, 4  ;;  %v3375_v17 = vmax.f32 %v3373_v8, %v3374_v46  ;;  %v5528_v14 = vpop.f32.mrf.mxu1 }
 0x3cb   : > { %v3639_v52 = vsel %vm3607_vm8, %v3351_v35, %v3638_v16  ;;  %v3362_v55 = vrot.slane %v3361_v12, 2  ;;  %v5523_v10 = vadd.f32 %v5522_v58, %v5521_v30  ;;  %v2918_v37 = vcombine.high %v2694_v23, %v2694_v23  ;;  %v8019_v30 = vpop.f32.mrf.mxu0 }
 0x3cc   : > { %v3640_v28 = vsel %vm3609_vm9, %v3358_v48, %v3639_v52  ;;  %v3369_v20 = vrot.slane %v3368_v45, 2  ;;  %v3382_v56 = vmax.f32 %v3380_v15, %v3381_v22  ;;  %v3716_v32 = vld [vmem:[#allocation4 + $0x51] sm:$0xf]  ;;  %v3376_v40 = vrot.slane %v3375_v17, 2 }
 0x3cd   : > { %v3747_v6 = vld [vmem:[#allocation4 + $0x50] sm:$0xf]  ;;  %3684 = vst.msk [vmem:[#allocation4 + $0x59] sm:$0xf] %vm3673_vm10, %v3640_v28  ;;  %v3363_v39 = vmax.f32 %v3361_v12, %v3362_v55  ;;  %v2925_v51 = vrot.slane %v2694_v23, %v7840_v18  ;;  %v2558_v7 = vadd.f32 %v7999_v24, %v5523_v10  ;;  %3871 = vrot.lane.b32.xlu0 %v3716_v32, %s6670_s13  ;;  %v2654_v9 = vpop.f32.mrf.mxu0 }
 0x3ce   : > { %3933 = vrot.lane.b32.xlu1 %v3747_v6, %s6670_s13  ;;  %v3370_v59 = vmax.f32 %v3368_v45, %v3369_v20  ;;  %v3383_v57 = vrot.slane %v3382_v56, 2  ;;  %v2932_v19 = vrot.slane %v2918_v37, %v7840_v18  ;;  %v5526_v42 = vadd.f32 %v5525_v25, %v5524_v11  ;;  %v8034_v25 = vld [vmem:[#allocation11 + $0x118] sm:$0xff]  }
 0x3cf   : > { %v3364_v62 = vrot.slane %v3363_v39, 1  ;;  %v3377_v43 = vmax.f32 %v3375_v17, %v3376_v40  ;;  %v2933_v31 = vcombine.high %v2925_v51, %v2925_v51  ;;  %v3387_v34 = vsel %vm3050_vm3, %v2925_v51, -inf  ;;  %5679 = vmatprep.subr.bf16.mxu0 %v8034_v25 }
 0x3d0   : > { %v3371_v41 = vrot.slane %v3370_v59, 1  ;;  %v3384_v47 = vmax.f32 %v3382_v56, %v3383_v57  ;;  %v2934_v3 = vcombine.high %v2932_v19, %v2932_v19  ;;  %v3388_v49 = vrot.slane %v3387_v34, 4 }
 0x3d1   : > { %v3365_v27 = vmax.f32 %v3363_v39, %v3364_v62  ;;  %v3378_v58 = vrot.slane %v3377_v43, 1  ;;  %v3394_v33 = vsel %vm3050_vm3, %v2933_v31, -inf  ;;  %v3401_v4 = vsel %vm3050_vm3, %v2932_v19, -inf }
 0x3d2   : > { %v3372_v21 = vmax.f32 %v3370_v59, %v3371_v41  ;;  %v3385_v60 = vrot.slane %v3384_v47, 1  ;;  %v3389_v44 = vmax.f32 %v3387_v34, %v3388_v49  ;;  %v3395_v50 = vrot.slane %v3394_v33, 4 }
 0x3d3   : > { %v3379_v63 = vmax.f32 %v3377_v43, %v3378_v58  ;;  %v3402_v38 = vrot.slane %v3401_v4, 4  ;;  %v3408_v2 = vsel %vm3050_vm3, %v2934_v3, -inf  ;;  %v2655_v13 = vadd.f32 %v2654_v9, %v2558_v7 }
 0x3d4   : > { %v3386_v54 = vmax.f32 %v3384_v47, %v3385_v60  ;;  %v3641_v61 = vsel %vm3605_vm7, %v3372_v21, %v3365_v27  ;;  %v3390_v5 = vrot.slane %v3389_v44, 2  ;;  %v3396_v1 = vmax.f32 %v3394_v33, %v3395_v50  ;;  %v3748_v11 = vld [vmem:[#allocation4 + $0x58] sm:$0xf] }
 0x3d5   : > { %v3717_v26 = vld [vmem:[#allocation4 + $0x59] sm:$0xf]  ;;  %v3642_v35 = vsel %vm3607_vm8, %v3379_v63, %v3641_v61  ;;  %v3403_v29 = vmax.f32 %v3401_v4, %v3402_v38  ;;  %v3409_v8 = vrot.slane %v3408_v2, 4  ;;  %v2679_v48 = vmul.f32 0.2, %v2655_v13  ;;  %3935 = vrot.lane.b32.xlu0 %v3748_v11, %s6670_s13 }
 0x3d6   : > { %3873 = vrot.lane.b32.xlu1 %v3717_v26, %s6670_s13  ;;  %v3643_v12 = vsel %vm3609_vm9, %v3386_v54, %v3642_v35  ;;  %v3391_v46 = vmax.f32 %v3389_v44, %v3390_v5  ;;  %v3397_v15 = vrot.slane %v3396_v1, 2  ;;  %v2563_v16 = vadd.f32 %v7999_v24, %v5526_v42 }
 0x3d7   : > { %3685 = vst.msk [vmem:[#allocation4 + $0x61] sm:$0xf] %vm3673_vm10, %v3643_v12  ;;  %v3404_v45 = vrot.slane %v3403_v29, 2  ;;  %v3410_v22 = vmax.f32 %v3408_v2, %v3409_v8  ;;  %v2695_v23 = vmax.f32 %v2655_v13, %v2679_v48  ;;  %v5529_v52 = vadd.f32 %v5528_v14, %v5527_v53 }
 0x3d8   : > { %v3392_v55 = vrot.slane %v3391_v46, 1  ;;  %v3398_v17 = vmax.f32 %v3396_v1, %v3397_v15  ;;  %v2660_v10 = vadd.f32 %v7994_v36, %v2563_v16 }
 0x3d9   : > { %v3405_v28 = vmax.f32 %v3403_v29, %v3404_v45  ;;  %v3411_v20 = vrot.slane %v3410_v22, 2  ;;  %v2935_v56 = vcombine.high %v2695_v23, %v2695_v23  ;;  %v2942_v37 = vrot.slane %v2695_v23, %v7840_v18 }
 0x3da   : > { %v3393_v32 = vmax.f32 %v3391_v46, %v3392_v55  ;;  %v3399_v6 = vrot.slane %v3398_v17, 1  ;;  %v2680_v39 = vmul.f32 0.2, %v2660_v10  ;;  %v2566_v40 = vadd.f32 %v7999_v24, %v5529_v52 }
 0x3db   : > { %v3406_v51 = vrot.slane %v3405_v28, 1  ;;  %v3412_v7 = vmax.f32 %v3410_v22, %v3411_v20  ;;  %v2949_v59 = vrot.slane %v2935_v56, %v7840_v18  ;;  %v2950_v57 = vcombine.high %v2942_v37, %v2942_v37 }
 0x3dc   : > { %v3400_v36 = vmax.f32 %v3398_v17, %v3399_v6  ;;  %v3415_v19 = vsel %vm3050_vm3, %v2942_v37, -inf  ;;  %v2696_v42 = vmax.f32 %v2660_v10, %v2680_v39  ;;  %v8042_v62 = vadd.f32 %v8019_v30, %v2566_v40  ;;  %v8059_v6 = vpop.permute.xlu0 %3851 }
 0x3dd   : > { %v3407_v43 = vmax.f32 %v3405_v28, %v3406_v51  ;;  %v3413_v31 = vrot.slane %v3412_v7, 1  ;;  %v2951_v34 = vcombine.high %v2949_v59, %v2949_v59  ;;  %v3416_v41 = vrot.slane %v3415_v19, 4 }
 0x3de   : > { %v3644_v24 = vsel %vm3605_vm7, %v3400_v36, %v3393_v32  ;;  %v3422_v47 = vsel %vm3050_vm3, %v2950_v57, -inf  ;;  %v3429_v3 = vsel %vm3050_vm3, %v2949_v59, -inf  ;;  %v2952_v49 = vcombine.high %v2696_v42, %v2696_v42  ;;  %v3718_v53 = vld [vmem:[#allocation4 + $0x61] sm:$0xf] }
 0x3df   : > { %v3749_v27 = vld [vmem:[#allocation4 + $0x60] sm:$0xf]  ;;  %v3414_v58 = vmax.f32 %v3412_v7, %v3413_v31  ;;  %v3645_v33 = vsel %vm3607_vm8, %v3407_v43, %v3644_v24  ;;  %v3417_v4 = vmax.f32 %v3415_v19, %v3416_v41  ;;  %v3423_v9 = vrot.slane %v3422_v47, 4  ;;  %3875 = vrot.lane.b32.xlu0 %v3718_v53, %s6670_s13 }
 0x3e0   : > { %3937 = vrot.lane.b32.xlu1 %v3749_v27, %s6670_s13  ;;  %v3430_v30 = vrot.slane %v3429_v3, 4  ;;  %v3436_v21 = vsel %vm3050_vm3, %v2951_v34, -inf  ;;  %v2959_v60 = vrot.slane %v2696_v42, %v7840_v18  ;;  %v2966_v44 = vrot.slane %v2952_v49, %v7840_v18  ;;  %v8067_v27 = vpop.permute.xlu1 %3853 }
 0x3e1   : > { %v3646_v50 = vsel %vm3609_vm9, %v3414_v58, %v3645_v33  ;;  %v3418_v63 = vrot.slane %v3417_v4, 2  ;;  %v3424_v38 = vmax.f32 %v3422_v47, %v3423_v9  ;;  %v3437_v2 = vrot.slane %v3436_v21, 4 }
 0x3e2   : > { %3686 = vst.msk [vmem:[#allocation4 + $0x69] sm:$0xf] %vm3673_vm10, %v3646_v50  ;;  %v3431_v13 = vmax.f32 %v3429_v3, %v3430_v30  ;;  %v2967_v54 = vcombine.high %v2959_v60, %v2959_v60  ;;  %v2968_v61 = vcombine.high %v2966_v44, %v2966_v44  ;;  %v3443_v5 = vsel %vm3050_vm3, %v2959_v60, -inf }
 0x3e3   : > { %v3419_v1 = vmax.f32 %v3417_v4, %v3418_v63  ;;  %v3425_v14 = vrot.slane %v3424_v38, 2  ;;  %v3438_v11 = vmax.f32 %v3436_v21, %v3437_v2  ;;  %v3444_v26 = vrot.slane %v3443_v5, 4 }
 0x3e4   : > { %v3432_v35 = vrot.slane %v3431_v13, 2  ;;  %v3450_v29 = vsel %vm3050_vm3, %v2967_v54, -inf  ;;  %v3457_v8 = vsel %vm3050_vm3, %v2966_v44, -inf  ;;  %v3464_v48 = vsel %vm3050_vm3, %v2968_v61, -inf  ;;  %v6412_v61 = vld [vmem:[#allocation11 + $0xf8] sm:$0xff]  }
 0x3e5   : > { %v3420_v12 = vrot.slane %v3419_v1, 1  ;;  %v3426_v46 = vmax.f32 %v3424_v38, %v3425_v14  ;;  %v3439_v15 = vrot.slane %v3438_v11, 2  ;;  %v3445_v16 = vmax.f32 %v3443_v5, %v3444_v26  ;;  %v6413_v5 = vld [vmem:[#allocation11 + $0xb8] sm:$0xff]   ;;  %5580 = vmatprep.subr.bf16.mxu1 %v6412_v61 }
 0x3e6   : > { %v3433_v45 = vmax.f32 %v3431_v13, %v3432_v35  ;;  %v3451_v22 = vrot.slane %v3450_v29, 4  ;;  %v3458_v23 = vrot.slane %v3457_v8, 4  ;;  %v3465_v52 = vrot.slane %v3464_v48, 4  ;;  %5581 = vmatpush3.bf16.msra.mxu1 %v6413_v5 }
 0x3e7   : > { %v3421_v55 = vmax.f32 %v3419_v1, %v3420_v12  ;;  %v3427_v17 = vrot.slane %v3426_v46, 1  ;;  %v3440_v10 = vmax.f32 %v3438_v11, %v3439_v15  ;;  %v3446_v28 = vrot.slane %v3445_v16, 2 }
 0x3e8   : > { %v3434_v20 = vrot.slane %v3433_v45, 1  ;;  %v3452_v56 = vmax.f32 %v3450_v29, %v3451_v22  ;;  %v3459_v37 = vmax.f32 %v3457_v8, %v3458_v23  ;;  %v3466_v32 = vmax.f32 %v3464_v48, %v3465_v52 }
 0x3e9   : > { %v3428_v39 = vmax.f32 %v3426_v46, %v3427_v17  ;;  %v3441_v40 = vrot.slane %v3440_v10, 1  ;;  %v3447_v51 = vmax.f32 %v3445_v16, %v3446_v28  ;;  %v2681_v7 = vmul.f32 0.2, %v8042_v62  ;;  %v3750_v59 = vld [vmem:[#allocation4 + $0x68] sm:$0xf] }
 0x3ea   : > { %v3435_v57 = vmax.f32 %v3433_v45, %v3434_v20  ;;  %v3453_v36 = vrot.slane %v3452_v56, 2  ;;  %v3460_v19 = vrot.slane %v3459_v37, 2  ;;  %v3467_v42 = vrot.slane %v3466_v32, 2  ;;  %3939 = vrot.lane.b32.xlu0 %v3750_v59, %s6670_s13  ;;  %v3719_v43 = vld [vmem:[#allocation4 + $0x69] sm:$0xf] }
 0x3eb   : > { %v3442_v31 = vmax.f32 %v3440_v10, %v3441_v40  ;;  %v3647_v34 = vsel %vm3605_vm7, %v3428_v39, %v3421_v55  ;;  %v3448_v41 = vrot.slane %v3447_v51, 1  ;;  %v2697_v24 = vmax.f32 %v8042_v62, %v2681_v7  ;;  %3877 = vrot.lane.b32.xlu1 %v3719_v43, %s6670_s13  ;;  %v3916_v62 = vpop.permute.xlu0 %3915  ;;  %v3690_v28 = vld [vmem:[#allocation4] sm:$0xf]  ;;  %v3723_v43 = vld [vmem:[#allocation4 + $0xa] sm:$0xf] }
 0x3ec   : > { %v3648_v47 = vsel %vm3607_vm8, %v3435_v57, %v3647_v34  ;;  %v3454_v3 = vmax.f32 %v3452_v56, %v3453_v36  ;;  %v3461_v49 = vmax.f32 %v3459_v37, %v3460_v19  ;;  %v3468_v53 = vmax.f32 %v3466_v32, %v3467_v42  ;;  %v3722_v20 = vld [vmem:[#allocation4 + $0x2] sm:$0xf]  ;;  %v3693_v32 = vld [vmem:[#allocation4 + $0x18] sm:$0xf]  ;;  %v3692_v42 = vld [vmem:[#allocation4 + $0x10] sm:$0xf] }
 0x3ed   : > { %v3649_v58 = vsel %vm3609_vm9, %v3442_v31, %v3648_v47  ;;  %v2969_v33 = vcombine.high %v2697_v24, %v2697_v24  ;;  %v2976_v4 = vrot.slane %v2697_v24, %v7840_v18  ;;  %v3449_v60 = vmax.f32 %v3447_v51, %v3448_v41  ;;  %v3691_v41 = vld [vmem:[#allocation4 + $0x8] sm:$0xf] }
 0x3ee   : > { %3687 = vst.msk [vmem:[#allocation4 + $0x71] sm:$0xf] %vm3673_vm10, %v3649_v58  ;;  %v3455_v9 = vrot.slane %v3454_v3, 1  ;;  %v3462_v30 = vrot.slane %v3461_v49, 1  ;;  %v3469_v21 = vrot.slane %v3468_v53, 1  ;;  %v4091_v36 = vsel %vm2192_vm14, %v3690_v28, %v8059_v6  ;;  %v6433_v28 = vld [vmem:[#allocation11 + $0xc8] sm:$0xff]  }
 0x3ef   : > { %v2983_v44 = vrot.slane %v2969_v33, %v7840_v18  ;;  %v2984_v50 = vcombine.high %v2976_v4, %v2976_v4  ;;  %v3471_v63 = vsel %vm3050_vm3, %v2976_v4, -inf  ;;  %v3918_v18 = vpop.permute.xlu1 %3917  ;;  %v3856_v22 = vpop.permute.xlu0 %3855  ;;  %v4107_v19 = vsel %vm2192_vm14, %v3722_v20, %v3916_v62  ;;  %v3725_v6 = vld [vmem:[#allocation4 + $0x1a] sm:$0xf] }
 0x3f0   : > { %v3456_v38 = vmax.f32 %v3454_v3, %v3455_v9  ;;  %v3463_v2 = vmax.f32 %v3461_v49, %v3462_v30  ;;  %v3470_v13 = vmax.f32 %v3468_v53, %v3469_v21  ;;  %v3472_v54 = vrot.slane %v3471_v63, 4  ;;  %v3724_v3 = vld [vmem:[#allocation4 + $0x12] sm:$0xf]  ;;  %v6434_v20 = vld [vmem:[#allocation11 + $0x88] sm:$0xff]  }
 0x3f1   : > { %v2985_v1 = vcombine.high %v2983_v44, %v2983_v44  ;;  %v3478_v14 = vsel %vm3050_vm3, %v2984_v50, -inf  ;;  %v3485_v11 = vsel %vm3050_vm3, %v2983_v44, -inf  ;;  %v4093_v24 = vsel %vm2192_vm14, %v3692_v42, %v3856_v22  ;;  %v3805_v22 = vld [vmem:[#allocation4 + $0x21] sm:$0xf]  ;;  %v3774_v42 = vld [vmem:[#allocation4 + $0x2a] sm:$0xf] }
 0x3f2   : > { %v3650_v26 = vsel %vm3605_vm7, %v3456_v38, %v3449_v60  ;;  %v3473_v35 = vmax.f32 %v3471_v63, %v3472_v54  ;;  %v3479_v29 = vrot.slane %v3478_v14, 4  ;;  %v3486_v8 = vrot.slane %v3485_v11, 4  ;;  %v6415_v38 = vld [vmem:[#allocation11 + $0xf0] sm:$0xff]  }
 0x3f3   : > { %v3651_v48 = vsel %vm3607_vm8, %v3463_v2, %v3650_v26  ;;  %v3492_v12 = vsel %vm3050_vm3, %v2985_v1, -inf  ;;  %v4108_v47 = vsel %vm2192_vm14, %v3723_v43, %v3918_v18  ;;  %v4092_v53 = vsel %vm2192_vm14, %v3691_v41, %v8067_v27  ;;  %5582 = vmatprep.subr.bf16.mxu1 %v6415_v38  ;;  %v6417_v26 = vld [vmem:[#allocation11 + $0xe8] sm:$0xff]  }
 0x3f4   : > { %v3652_v46 = vsel %vm3609_vm9, %v3470_v13, %v3651_v48  ;;  %v3474_v15 = vrot.slane %v3473_v35, 2  ;;  %v3480_v16 = vmax.f32 %v3478_v14, %v3479_v29  ;;  %v3487_v45 = vmax.f32 %v3485_v11, %v3486_v8  ;;  %v6416_v13 = vld [vmem:[#allocation11 + $0xb0] sm:$0xff]   ;;  %v6418_v29 = vld [vmem:[#allocation11 + $0xa8] sm:$0xff]   ;;  %v4890_v8 = vld [vmem:[#allocation5 + $0x1] sm:$0xff] }
 0x3f5   : > { %3688 = vst.msk [vmem:[#allocation4 + $0x79] sm:$0xf] %vm3673_vm10, %v3652_v46  ;;  %v3493_v23 = vrot.slane %v3492_v12, 4  ;;  %v3751_v52 = vld [vmem:[#allocation4 + $0x70] sm:$0xf]  ;;  %v5328_v50 = vcombine.low %v4107_v19, %v4108_v47  ;;  %v5327_v27 = vcombine.low %v4091_v36, %v4092_v53  ;;  %v6411_v11 = vld [vmem:[#allocation11 + $0x110] sm:$0xff]   ;;  %5583 = vmatpush3.bf16.msra.mxu1 %v6416_v13 }
 0x3f6   : > { %v3475_v55 = vmax.f32 %v3473_v35, %v3474_v15  ;;  %v3481_v17 = vrot.slane %v3480_v16, 2  ;;  %v3488_v10 = vrot.slane %v3487_v45, 2  ;;  %3941 = vrot.lane.b32.xlu1 %v3751_v52, %s6670_s13  ;;  %v3720_v1 = vld [vmem:[#allocation4 + $0x71] sm:$0xf]  ;;  %5584 = vmatprep.subr.bf16.mxu1 %v6417_v26  ;;  %v6414_v18 = vld [vmem:[#allocation11 + $0x108] sm:$0xff]   ;;  %v6426_v52 = vld [vmem:[#allocation11 + $0xd0] sm:$0xff]  }
 0x3f7   : > { %v3494_v37 = vmax.f32 %v3492_v12, %v3493_v23  ;;  %v3920_v7 = vpop.permute.xlu0 %3919  ;;  %v6420_v48 = vld [vmem:[#allocation11 + $0xe0] sm:$0xff]   ;;  %v3727_v53 = vld [vmem:[#allocation4 + $0x2a] sm:$0xf]  ;;  %v3694_v38 = vld [vmem:[#allocation4 + $0x20] sm:$0xf] }
 0x3f8   : > { %v3858_v56 = vpop.permute.xlu1 %3857  ;;  %v3476_v39 = vrot.slane %v3475_v55, 1  ;;  %v3482_v40 = vmax.f32 %v3480_v16, %v3481_v17  ;;  %v3489_v51 = vmax.f32 %v3487_v45, %v3488_v10  ;;  %v4109_v58 = vsel %vm2192_vm14, %v3724_v3, %v3920_v7  ;;  %v6421_v12 = vld [vmem:[#allocation11 + $0xa0] sm:$0xff]   ;;  %v6424_v45 = vld [vmem:[#allocation11 + $0xd8] sm:$0xff]   ;;  %v6430_v17 = vld [vmem:[#allocation11 + $0x90] sm:$0xff]  }
 0x3f9   : > { %v4094_v59 = vsel %vm2192_vm14, %v3693_v32, %v3858_v56  ;;  %v3495_v57 = vrot.slane %v3494_v37, 2  ;;  %5585 = vmatpush3.bf16.msra.mxu1 %v6418_v29  ;;  %v3803_v46 = vld [vmem:[#allocation4 + $0x11] sm:$0xf]  ;;  %v3770_v10 = vld [vmem:[#allocation4 + $0xa] sm:$0xf] }
 0x3fa   : > { %v3483_v31 = vrot.slane %v3482_v40, 1  ;;  %v3490_v34 = vrot.slane %v3489_v51, 1  ;;  %v5331_v33 = vcombine.low %v4093_v24, %v4094_v59  ;;  %v3477_v9 = vmax.f32 %v3475_v55, %v3476_v39  ;;  %5586 = vmatprep.subr.bf16.mxu1 %v6420_v48  ;;  %v6419_v15 = vld [vmem:[#allocation11 + $0x100] sm:$0xff]  }
 0x3fb   : > { %v3496_v49 = vmax.f32 %v3494_v37, %v3495_v57  ;;  %v4891_v55 = vld [vmem:[#allocation5 + $0x2] sm:$0xff]  ;;  %v3772_v56 = vld [vmem:[#allocation4 + $0x1a] sm:$0xf]  ;;  %v3860_v7 = vpop.permute.xlu0 %3859  ;;  %v3809_v57 = vld [vmem:[#allocation4 + $0x41] sm:$0xf] }
 0x3fc   : > { %v3922_v4 = vpop.permute.xlu1 %3921  ;;  %v3484_v30 = vmax.f32 %v3482_v40, %v3483_v31  ;;  %v3491_v21 = vmax.f32 %v3489_v51, %v3490_v34  ;;  %v3752_v62 = vld [vmem:[#allocation4 + $0x78] sm:$0xf]  ;;  %v4347_v14 = vpack.c.bf16 %v5331_v33, %v5327_v27  ;;  %v3807_v32 = vld [vmem:[#allocation4 + $0x31] sm:$0xf]  ;;  %v3806_v51 = vld [vmem:[#allocation4 + $0x29] sm:$0xf] }
 0x3fd   : > { %v4110_v60 = vsel %vm2192_vm14, %v3725_v6, %v3922_v4  ;;  %v3497_v44 = vrot.slane %v3496_v49, 1  ;;  %3943 = vrot.lane.b32.xlu0 %v3752_v62, %s6670_s13  ;;  %5587 = vmatpush3.bf16.msra.mxu1 %v6421_v12  ;;  %v3721_v23 = vld [vmem:[#allocation4 + $0x79] sm:$0xf]  ;;  %v3771_v36 = vld [vmem:[#allocation4 + $0x12] sm:$0xf] }
 0x3fe   : > { %v5332_v63 = vcombine.low %v4109_v58, %v4110_v60  ;;  %v3653_v2 = vsel %vm3605_vm7, %v3484_v30, %v3477_v9  ;;  %5588 = vmatprep.subr.bf16.mxu1 %v6424_v45  ;;  %v3804_v37 = vld [vmem:[#allocation4 + $0x19] sm:$0xf]  ;;  %v3773_v31 = vld [vmem:[#allocation4 + $0x22] sm:$0xf]  ;;  %v3810_v6 = vld [vmem:[#allocation4 + $0x49] sm:$0xf] }
 0x3ff   : > { %v3498_v54 = vmax.f32 %v3496_v49, %v3497_v44  ;;  %v3654_v61 = vsel %vm3607_vm8, %v3491_v21, %v3653_v2  ;;  %v6435_v39 = vld [vmem:[#allocation11 + $0xc0] sm:$0xff]   ;;  %v3695_v4 = vld [vmem:[#allocation4 + $0x28] sm:$0xf]  ;;  %v3696_v9 = vld [vmem:[#allocation4 + $0x30] sm:$0xf] }
 0x400   : > { %v4348_v5 = vpack.c.bf16 %v5332_v63, %v5328_v50  ;;  %v6438_v40 = vld [vmem:[#allocation11 + $0x80] sm:$0xff]   ;;  %v3726_v21 = vld [vmem:[#allocation4 + $0x22] sm:$0xf] }
 0x401   : > { %v3655_v35 = vsel %vm3609_vm9, %v3498_v54, %v3654_v61  ;;  %3879 = vrot.lane.b32.xlu0 %v3720_v1, %s6670_s13  ;;  %v3776_v34 = vld [vmem:[#allocation4 + $0x3a] sm:$0xf]  ;;  %v3811_v49 = vld [vmem:[#allocation4 + $0x51] sm:$0xf]  ;;  %v4095_v61 = vsel %vm2192_vm14, %v3694_v38, %v3860_v7  ;;  %v3813_v1 = vld [vmem:[#allocation4 + $0x61] sm:$0xf] }
 0x402   : > { %4705 = vmatprep.mubr.bf16.mxu0 %v4348_v5  ;;  %3689 = vst.msk [vmem:[#allocation4 + $0x81] sm:$0xf] %vm3673_vm10, %v3655_v35  ;;  %v3808_v47 = vld [vmem:[#allocation4 + $0x39] sm:$0xf]  ;;  %v3728_v44 = vld [vmem:[#allocation4 + $0x32] sm:$0xf] }
 0x403   : > { %4706 = vmatmul.mubr.bf16.vlgmr.msra.gmra.mxu0 %v4347_v14  ;;  %v3697_v3 = vld [vmem:[#allocation4 + $0x38] sm:$0xf]  ;;  %v3779_v45 = vld [vmem:[#allocation4 + $0x52] sm:$0xf] }
 0x404   : > { %5680 = vmatpush3.bf16.msra.mxu0 %v8034_v25  ;;  %v6425_v25 = vld [vmem:[#allocation11 + $0x98] sm:$0xff]   ;;  %v3729_v50 = vld [vmem:[#allocation4 + $0x3a] sm:$0xf] }
 0x405   : > { %5681 = vmatprep.subr.bf16.mxu0 %v6411_v11  ;;  %4893 = vrot.lane.b32.xlu0 %v4890_v8, %s6663_s16  ;;  %v3778_v8 = vld [vmem:[#allocation4 + $0x4a] sm:$0xf]  ;;  %v3780_v48 = vld [vmem:[#allocation4 + $0x5a] sm:$0xf]  ;;  %s8259_s16 = scalar_lea.vmem %s8303_s12, %s5718_s28 }
 0x406   : > { %5589 = vmatpush3.bf16.msra.mxu1 %v6425_v25  ;;  %v3812_v12 = vld [vmem:[#allocation4 + $0x59] sm:$0xf] }
 0x407   : > { %5590 = vmatprep.subr.bf16.mxu1 %v6426_v52 }
 0x408   : > { %5682 = vmatpush3.bf16.msra.mxu0 %v6411_v11  ;;  %v3775_v11 = vld [vmem:[#allocation4 + $0x32] sm:$0xf] }
 0x409   : > { %5683 = vmatprep.subr.bf16.mxu0 %v6414_v18  ;;  %v3753_v16 = vld [vmem:[#allocation4 + $0x80] sm:$0xf]  ;;  %4043 = vrot.lane.b32.xlu0 %v3803_v46, %s6670_s13  ;;  %v3815_v46 = vld [vmem:[#allocation4 + $0x71] sm:$0xf] }
 0x40a   : > { %3945 = vrot.lane.b32.xlu1 %v3753_v16, %s6670_s13  ;;  %5591 = vmatpush3.bf16.msra.mxu1 %v6430_v17  ;;  %v3782_v16 = vld [vmem:[#allocation4 + $0x6a] sm:$0xf]  ;;  %v3817_v25 = vld [vmem:[#allocation4 + $0x81] sm:$0xf]  ;;  %v3816_v17 = vld [vmem:[#allocation4 + $0x79] sm:$0xf] }
 0x40b   : > { %5592 = vmatprep.subr.bf16.mxu1 %v6433_v28  ;;  %v3818_v28 = vld [vmem:[#allocation4 + $0x89] sm:$0xf] }
 0x40c   : > { %5684 = vmatpush3.bf16.msra.mxu0 %v6414_v18  ;;  %v3777_v18 = vld [vmem:[#allocation4 + $0x42] sm:$0xf] }
 0x40d   : > { %5685 = vmatprep.subr.bf16.mxu0 %v6419_v15  ;;  %4047 = vrot.lane.b32.xlu0 %v3805_v22, %s6670_s13  ;;  %v3924_v19 = vpop.permute.xlu0 %3923  ;;  %v3781_v22 = vld [vmem:[#allocation4 + $0x62] sm:$0xf] }
 0x40e   : > { %3881 = vrot.lane.b32.xlu1 %v3721_v23, %s6670_s13  ;;  %5593 = vmatpush3.bf16.msra.mxu1 %v6434_v20  ;;  %v3862_v59 = vpop.permute.xlu1 %3861  ;;  %v4111_v2 = vsel %vm2192_vm14, %v3726_v21, %v3924_v19 }
 0x40f   : > { %5594 = vmatprep.subr.bf16.mxu1 %v6435_v39  ;;  %v4096_v62 = vsel %vm2192_vm14, %v3695_v4, %v3862_v59  ;;  %v3701_v39 = vld [vmem:[#allocation4 + $0x58] sm:$0xf]  ;;  %v3730_v59 = vld [vmem:[#allocation4 + $0x42] sm:$0xf] }
 0x410   : > { %5686 = vmatpush3.bf16.msra.mxu0 %v6419_v15  ;;  %v5335_v26 = vcombine.low %v4095_v61, %v4096_v62  ;;  %v3814_v15 = vld [vmem:[#allocation4 + $0x69] sm:$0xf]  ;;  %v3734_v61 = vld [vmem:[#allocation4 + $0x62] sm:$0xf] }
 0x411   : > { %5695 = vmatprep.subr.bf16.mxu0 %v6661_v0  ;;  %3979 = vrot.lane.b32.xlu0 %v3770_v10, %s6670_s13 }
 0x412   : > { %4897 = vrot.lane.b32.xlu1 %v4891_v55, %s6662_s23  ;;  %5595 = vmatpush3.bf16.msra.mxu1 %v6438_v40  ;;  %v3784_v55 = vld [vmem:[#allocation4 + $0x7a] sm:$0xf]  ;;  %v3731_v40 = vld [vmem:[#allocation4 + $0x4a] sm:$0xf] }
 0x413   : > { %5701 = vmatprep.subr.bf16.mxu1 %v6661_v0 }
 0x414   : > { %v3864_v41 = vpop.permute.xlu0 %3863 }
 0x415   : > { %3983 = vrot.lane.b32.xlu0 %v3772_v56, %s6670_s13  ;;  %v3926_v43 = vpop.permute.xlu1 %3925  ;;  %v4097_v60 = vsel %vm2192_vm14, %v3696_v9, %v3864_v41  ;;  %v3733_v41 = vld [vmem:[#allocation4 + $0x5a] sm:$0xf] }
 0x416   : > { %4045 = vrot.lane.b32.xlu1 %v3804_v37, %s6670_s13  ;;  %v4112_v30 = vsel %vm2192_vm14, %v3727_v53, %v3926_v43  ;;  %v3785_v43 = vld [vmem:[#allocation4 + $0x82] sm:$0xf] }
 0x417   : > { %v5336_v5 = vcombine.low %v4111_v2, %v4112_v30 }
 0x419   : > { %4051 = vrot.lane.b32.xlu0 %v3807_v32, %s6670_s13  ;;  %v3783_v32 = vld [vmem:[#allocation4 + $0x72] sm:$0xf] }
 0x41a   : > { %4049 = vrot.lane.b32.xlu1 %v3806_v51, %s6670_s13 }
 0x41d   : > { %4055 = vrot.lane.b32.xlu0 %v3809_v57, %s6670_s13  ;;  %v3699_v57 = vld [vmem:[#allocation4 + $0x48] sm:$0xf] }
 0x41e   : > { %3981 = vrot.lane.b32.xlu1 %v3771_v36, %s6670_s13  ;;  %v3928_v58 = vpop.permute.xlu0 %3927  ;;  %v3700_v36 = vld [vmem:[#allocation4 + $0x50] sm:$0xf] }
 0x41f   : > { %v3866_v24 = vpop.permute.xlu1 %3865  ;;  %v4113_v27 = vsel %vm2192_vm14, %v3728_v44, %v3928_v58 }
 0x420   : > { %v4098_v33 = vsel %vm2192_vm14, %v3697_v3, %v3866_v24 }
 0x421   : > { %3987 = vrot.lane.b32.xlu0 %v3774_v42, %s6670_s13  ;;  %v5339_v13 = vcombine.low %v4097_v60, %v4098_v33 }
 0x422   : > { %3985 = vrot.lane.b32.xlu1 %v3773_v31, %s6670_s13 }
 0x423   : > { %v4352_v29 = vpack.c.bf16 %v5339_v13, %v5335_v26 }
 0x425   : > { %3991 = vrot.lane.b32.xlu0 %v3776_v34, %s6670_s13  ;;  %v3732_v34 = vld [vmem:[#allocation4 + $0x52] sm:$0xf] }
 0x426   : > { %4053 = vrot.lane.b32.xlu1 %v3808_v47, %s6670_s13  ;;  %v3698_v47 = vld [vmem:[#allocation4 + $0x40] sm:$0xf] }
 0x429   : > { %4059 = vrot.lane.b32.xlu0 %v3811_v49, %s6670_s13 }
 0x42a   : > { %4057 = vrot.lane.b32.xlu1 %v3810_v6, %s6670_s13  ;;  %v3868_v23 = vpop.permute.xlu0 %3867 }
 0x42b   : > { %v3930_v63 = vpop.permute.xlu1 %3929  ;;  %v4099_v33 = vsel %vm2192_vm14, %v3698_v47, %v3868_v23 }
 0x42c   : > { %v4114_v54 = vsel %vm2192_vm14, %v3729_v50, %v3930_v63 }
 0x42d   : > { %v5340_v14 = vcombine.low %v4113_v27, %v4114_v54  ;;  %4063 = vrot.lane.b32.xlu0 %v3813_v1, %s6670_s13  ;;  %v3735_v27 = vld [vmem:[#allocation4 + $0x6a] sm:$0xf]  ;;  %v3737_v1 = vld [vmem:[#allocation4 + $0x7a] sm:$0xf] }
 0x42e   : > { %3989 = vrot.lane.b32.xlu1 %v3775_v11, %s6670_s13 }
 0x42f   : > { %v4353_v35 = vpack.c.bf16 %v5340_v14, %v5336_v5  ;;  %v3736_v5 = vld [vmem:[#allocation4 + $0x72] sm:$0xf] }
 0x431   : > { %4713 = vmatprep.mubr.bf16.mxu0 %v4353_v35  ;;  %3995 = vrot.lane.b32.xlu0 %v3778_v8, %s6670_s13 }
 0x432   : > { %4714 = vmatmul.mubr.bf16.gmra.mxu0 %v4352_v29  ;;  %3993 = vrot.lane.b32.xlu1 %v3777_v18, %s6670_s13  ;;  %v3932_v10 = vpop.permute.xlu0 %3931  ;;  %v3703_v29 = vld [vmem:[#allocation4 + $0x68] sm:$0xf] }
 0x433   : > { %v3870_v52 = vpop.permute.xlu1 %3869  ;;  %v4115_v3 = vsel %vm2192_vm14, %v3730_v59, %v3932_v10  ;;  %v6432_v59 = vld [vmem:[#allocation4 + $0x62] ss:$8 sps:$4 sm:$0xff]  }
 0x434   : > { %v4100_v42 = vsel %vm2192_vm14, %v3699_v57, %v3870_v52  ;;  %v3788_v57 = vld [vmem:[#allocation4 + $0x18] sm:$0xf] }
 0x435   : > { %3999 = vrot.lane.b32.xlu0 %v3780_v48, %s6670_s13  ;;  %v5343_v9 = vcombine.low %v4099_v33, %v4100_v42 }
 0x436   : > { %4061 = vrot.lane.b32.xlu1 %v3812_v12, %s6670_s13 }
 0x439   : > { %4067 = vrot.lane.b32.xlu0 %v3815_v46, %s6670_s13  ;;  %v3702_v46 = vld [vmem:[#allocation4 + $0x60] sm:$0xf] }
 0x43a   : > { %4065 = vrot.lane.b32.xlu1 %v3814_v15, %s6670_s13  ;;  %v3704_v15 = vld [vmem:[#allocation4 + $0x70] sm:$0xf] }
 0x43d   : > { %4003 = vrot.lane.b32.xlu0 %v3782_v16, %s6670_s13  ;;  %v3705_v16 = vld [vmem:[#allocation4 + $0x78] sm:$0xf] }
 0x43e   : > { %3997 = vrot.lane.b32.xlu1 %v3779_v45, %s6670_s13 }
 0x43f   : > { %v3872_v56 = vpop.permute.xlu0 %3871 }
 0x440   : > { %v3934_v20 = vpop.permute.xlu1 %3933  ;;  %v4101_v31 = vsel %vm2192_vm14, %v3700_v36, %v3872_v56  ;;  %v6427_v36 = vld [vmem:[#allocation4 + $0x32] ss:$8 sps:$4 sm:$0xff]  }
 0x441   : > { %4071 = vrot.lane.b32.xlu0 %v3817_v25, %s6670_s13  ;;  %v4116_v19 = vsel %vm2192_vm14, %v3731_v40, %v3934_v20 }
 0x442   : > { %4001 = vrot.lane.b32.xlu1 %v3781_v22, %s6670_s13  ;;  %v5344_v6 = vcombine.low %v4115_v3, %v4116_v19  ;;  %v3787_v19 = vld [vmem:[#allocation4 + $0x10] sm:$0xf] }
 0x445   : > { %4007 = vrot.lane.b32.xlu0 %v3784_v55, %s6670_s13  ;;  %v6423_v55 = vld [vmem:[#allocation4 + $0x22] ss:$8 sps:$4 sm:$0xff]  }
 0x446   : > { %4069 = vrot.lane.b32.xlu1 %v3816_v17, %s6670_s13 }
 0x447   : > { %v3936_v51 = vpop.permute.xlu0 %3935 }
 0x448   : > { %v3874_v37 = vpop.permute.xlu1 %3873  ;;  %v4117_v49 = vsel %vm2192_vm14, %v3732_v34, %v3936_v51  ;;  %v6428_v51 = vld [vmem:[#allocation4 + $0x42] ss:$8 sps:$4 sm:$0xff]  }
 0x449   : > { %v4102_v7 = vsel %vm2192_vm14, %v3701_v39, %v3874_v37  ;;  %v3789_v34 = vld [vmem:[#allocation4 + $0x20] sm:$0xf]  ;;  %v4356_v47 = vpack.c.bf16 %v6428_v51, %v6427_v36  ;;  %v3758_v51 = vld [vmem:[#allocation4 + $0x29] sm:$0xf] }
 0x44a   : > { %4073 = vrot.lane.b32.xlu1 %v3818_v28, %s6670_s13  ;;  %v5347_v53 = vcombine.low %v4101_v31, %v4102_v7  ;;  %v6422_v28 = vld [vmem:[#allocation4 + $0x12] ss:$8 sps:$4 sm:$0xff]  }
 0x44b   : > { %v6429_v7 = vld [vmem:[#allocation14] sm:$0x3f]  }
 0x44c   : > { %v4357_v21 = vpack.c.bf16 %v5347_v53, %v5343_v9  ;;  %v4921_v3 = vsel %vm4919_vm11, %v6429_v7, 0  ;;  %v3760_v7 = vld [vmem:[#allocation4 + $0x39] sm:$0xf] }
 0x44e   : > { %4005 = vrot.lane.b32.xlu1 %v3783_v32, %s6670_s13  ;;  %v4351_v32 = vpack.c.bf16 %v6423_v55, %v6422_v28 }
 0x451   : > { %v3876_v62 = vpop.permute.xlu0 %3875 }
 0x452   : > { %v3938_v24 = vpop.permute.xlu1 %3937  ;;  %4009 = vrot.lane.b32.xlu1 %v3785_v43, %s6670_s13  ;;  %v4103_v22 = vsel %vm2192_vm14, %v3702_v46, %v3876_v62  ;;  %v6431_v43 = vld [vmem:[#allocation4 + $0x52] ss:$8 sps:$4 sm:$0xff]   ;;  %v6437_v62 = vld [vmem:[#allocation4 + $0x82] ss:$8 sps:$4 sm:$0xff]  }
 0x453   : > { %v4118_v58 = vsel %vm2192_vm14, %v3733_v41, %v3938_v24  ;;  %v3790_v41 = vld [vmem:[#allocation4 + $0x28] sm:$0xf]  ;;  %v4361_v33 = vpack.c.bf16 %v6432_v59, %v6431_v43  ;;  %v3792_v46 = vld [vmem:[#allocation4 + $0x38] sm:$0xf]  ;;  %v3761_v59 = vld [vmem:[#allocation4 + $0x41] sm:$0xf] }
 0x454   : > { %v5348_v4 = vcombine.low %v4117_v49, %v4118_v58 }
 0x456   : > { %v4358_v30 = vpack.c.bf16 %v5348_v4, %v5344_v6 }
 0x458   : > { %4721 = vmatprep.mubr.bf16.mxu0 %v4358_v30 }
 0x459   : > { %4722 = vmatmul.mubr.bf16.gmra.mxu0 %v4357_v21 }
 0x45c   : > { %v3940_v60 = vpop.permute.xlu0 %3939 }
 0x45d   : > { %v3878_v50 = vpop.permute.xlu1 %3877  ;;  %v4119_v11 = vsel %vm2192_vm14, %v3734_v61, %v3940_v60  ;;  %v4889_v60 = vld [vmem:[#allocation5] sm:$0xff]  ;;  %v3757_v61 = vld [vmem:[#allocation4 + $0x21] sm:$0xf] }
 0x45e   : > { %v4104_v48 = vsel %vm2192_vm14, %v3703_v29, %v3878_v50  ;;  %v6436_v50 = vld [vmem:[#allocation4 + $0x72] ss:$8 sps:$4 sm:$0xff]  }
 0x45f   : > { %v5351_v17 = vcombine.low %v4103_v22, %v4104_v48  ;;  %v3794_v22 = vld [vmem:[#allocation4 + $0x48] sm:$0xf] }
 0x468   : > { %v3942_v2 = vpop.permute.xlu1 %3941 }
 0x469   : > { %v4120_v13 = vsel %vm2192_vm14, %v3735_v27, %v3942_v2 }
 0x46a   : > { %v5352_v8 = vcombine.low %v4119_v11, %v4120_v13 }
 0x46f   : > { %v3944_v44 = vpop.permute.xlu0 %3943 }
 0x470   : > { %v4121_v26 = vsel %vm2192_vm14, %v3736_v5, %v3944_v44  ;;  %v3755_v44 = vld [vmem:[#allocation4 + $0x11] sm:$0xf] }
 0x473   : > { %v3880_v63 = vpop.permute.xlu0 %3879 }
 0x474   : > { %v4105_v23 = vsel %vm2192_vm14, %v3704_v15, %v3880_v63  ;;  %v3754_v63 = vld [vmem:[#allocation4 + $0x9] sm:$0xf] }
 0x477   : > { %v8153_v38 = vpop.permute.xlu0 %4893 }
 0x478   : > { %v4900_v13 = vsel %vm541_vm0, %v4889_v60, %v8153_v38 }
 0x47b   : > { %v4044_v54 = vpop.permute.xlu0 %4043 }
 0x47c   : > { %v3946_v14 = vpop.permute.xlu1 %3945  ;;  %v4139_v49 = vsel %vm2192_vm14, %v3787_v19, %v4044_v54  ;;  %v3756_v54 = vld [vmem:[#allocation4 + $0x19] sm:$0xf] }
 0x47d   : > { %v4122_v35 = vsel %vm2192_vm14, %v3737_v1, %v3946_v14  ;;  %v4366_v1 = vpack.c.bf16 %v6437_v62, %v6436_v50  ;;  %v3763_v50 = vld [vmem:[#allocation4 + $0x51] sm:$0xf] }
 0x47e   : > { %v5356_v18 = vcombine.low %v4121_v26, %v4122_v35 }
 0x47f   : > { %v4048_v12 = vpop.permute.xlu0 %4047 }
 0x480   : > { %v3882_v45 = vpop.permute.xlu1 %3881  ;;  %v4363_v25 = vpack.c.bf16 %v5356_v18, %v5352_v8  ;;  %v4141_v53 = vsel %vm2192_vm14, %v3789_v34, %v4048_v12 }
 0x481   : > { %v4106_v52 = vsel %vm2192_vm14, %v3705_v16, %v3882_v45  ;;  %v3791_v45 = vld [vmem:[#allocation4 + $0x30] sm:$0xf] }
 0x482   : > { %v5355_v10 = vcombine.low %v4105_v23, %v4106_v52  ;;  %4729 = vmatprep.mubr.bf16.mxu0 %v4363_v25  ;;  %v3793_v25 = vld [vmem:[#allocation4 + $0x40] sm:$0xf] }
 0x483   : > { %v3980_v20 = vpop.permute.xlu0 %3979 }
 0x484   : > { %v4898_v56 = vpop.permute.xlu1 %4897  ;;  %v4362_v37 = vpack.c.bf16 %v5355_v10, %v5351_v17  ;;  %v4123_v14 = vsel %vm2192_vm14, %v3754_v63, %v3980_v20 }
 0x485   : > { %v4901_v8 = vsel %vm1275_vm5, %v4900_v13, %v4898_v56  ;;  %v3764_v13 = vld [vmem:[#allocation4 + $0x59] sm:$0xf] }
 0x486   : > { %4730 = vmatmul.mubr.bf16.gmra.mxu0 %v4362_v37  ;;  %v4902_v12 = vpack.c.bf16 %v4901_v8, %v4901_v8 }
 0x487   : > { %5687 = vmatprep.mubr.msk.bf16.mxu0 %vm2192_vm14, %v4351_v32  ;;  %v3984_v39 = vpop.permute.xlu0 %3983  ;;  %v3759_v32 = vld [vmem:[#allocation4 + $0x31] sm:$0xf] }
 0x488   : > { %v4046_v40 = vpop.permute.xlu1 %4045  ;;  %v4125_v11 = vsel %vm2192_vm14, %v3756_v54, %v3984_v39  ;;  %v3765_v54 = vld [vmem:[#allocation4 + $0x61] sm:$0xf] }
 0x489   : > { %v4140_v42 = vsel %vm2192_vm14, %v3788_v57, %v4046_v40 }
 0x48a   : > { %v5330_v6 = vcombine.low %v4139_v49, %v4140_v42  ;;  %v3795_v49 = vld [vmem:[#allocation4 + $0x50] sm:$0xf] }
 0x48b   : > { %v4052_v31 = vpop.permute.xlu0 %4051 }
 0x48c   : > { %v4050_v24 = vpop.permute.xlu1 %4049  ;;  %v4143_v52 = vsel %vm2192_vm14, %v3791_v45, %v4052_v31 }
 0x48d   : > { %v4142_v58 = vsel %vm2192_vm14, %v3790_v41, %v4050_v24 }
 0x48e   : > { %v5334_v4 = vcombine.low %v4141_v53, %v4142_v58  ;;  %5688 = vmatmul.mubr.msk.bf16.vlgmr.msra.gmra.mxu0 %vm2192_vm14, %v4356_v47  ;;  %v3796_v47 = vld [vmem:[#allocation4 + $0x58] sm:$0xf]  ;;  %v3797_v53 = vld [vmem:[#allocation4 + $0x60] sm:$0xf]  ;;  %v3798_v58 = vld [vmem:[#allocation4 + $0x68] sm:$0xf] }
 0x48f   : > { %5696 = vmatpush3.bf16.msra.mxu0 %v4921_v3  ;;  %5691 = vmatprep.mubr.msk.bf16.mxu0 %vm2192_vm14, %v4361_v33  ;;  %v4056_v9 = vpop.permute.xlu0 %4055 }
 0x490   : > { %v3982_v30 = vpop.permute.xlu1 %3981  ;;  %v4350_v21 = vpack.c.bf16 %v5334_v4, %v5330_v6  ;;  %v4145_v55 = vsel %vm2192_vm14, %v3793_v25, %v4056_v9 }
 0x491   : > { %v4124_v2 = vsel %vm2192_vm14, %v3755_v44, %v3982_v30 }
 0x492   : > { %4770 = vmatprep.mubr.bf16.mxu1 %v4350_v21  ;;  %v5329_v35 = vcombine.low %v4123_v14, %v4124_v2 }
 0x493   : > { %v3988_v27 = vpop.permute.xlu0 %3987 }
 0x494   : > { %v3986_v5 = vpop.permute.xlu1 %3985  ;;  %v4127_v36 = vsel %vm2192_vm14, %v3758_v51, %v3988_v27  ;;  %v3762_v27 = vld [vmem:[#allocation4 + $0x49] sm:$0xf] }
 0x495   : > { %v4126_v26 = vsel %vm2192_vm14, %v3757_v61, %v3986_v5 }
 0x496   : > { %v5333_v29 = vcombine.low %v4125_v11, %v4126_v26  ;;  %5692 = vmatmul.mubr.msk.bf16.gmra.mxu0 %vm2192_vm14, %v4366_v1 }
 0x497   : > { %5697 = vmatprep.mubr.msk.bf16.mxu0 %vm6673_vm12, %v6661_v0  ;;  %v3992_v38 = vpop.permute.xlu0 %3991 }
 0x498   : > { %v4349_v18 = vpack.c.bf16 %v5333_v29, %v5329_v35  ;;  %v4054_v48 = vpop.permute.xlu1 %4053  ;;  %v4129_v19 = vsel %vm2192_vm14, %v3760_v7, %v3992_v38  ;;  %v3800_v38 = vld [vmem:[#allocation4 + $0x78] sm:$0xf] }
 0x499   : > { %v4144_v15 = vsel %vm2192_vm14, %v3792_v46, %v4054_v48  ;;  %v3802_v48 = vld [vmem:[#allocation4 + $0x88] sm:$0xf] }
 0x49a   : > { %4771 = vmatmul.mubr.bf16.vlgmr.msra.gmra.mxu1 %v4349_v18  ;;  %v5338_v10 = vcombine.low %v4143_v52, %v4144_v15  ;;  %v3801_v18 = vld [vmem:[#allocation4 + $0x80] sm:$0xf]  ;;  %v3799_v15 = vld [vmem:[#allocation4 + $0x70] sm:$0xf] }
 0x49b   : > { %v4060_v16 = vpop.permute.xlu0 %4059 }
 0x49c   : > { %v4058_v23 = vpop.permute.xlu1 %4057  ;;  %v4147_v4 = vsel %vm2192_vm14, %v3795_v49, %v4060_v16 }
 0x49d   : > { %v4146_v17 = vsel %vm2192_vm14, %v3794_v22, %v4058_v23 }
 0x49e   : > { %v5342_v28 = vcombine.low %v4145_v55, %v4146_v17  ;;  %5698 = vmatmul.mubr.msk.bf16.vlgmr.msra.gmra.mxu0 %vm1292_vm6, %v4902_v12 }
 0x49f   : > { %v4064_v20 = vpop.permute.xlu0 %4063 }
 0x4a0   : > { %v3990_v56 = vpop.permute.xlu1 %3989  ;;  %v4355_v37 = vpack.c.bf16 %v5342_v28, %v5338_v10  ;;  %v4149_v9 = vsel %vm2192_vm14, %v3797_v53, %v4064_v20  ;;  %v3767_v10 = vld [vmem:[#allocation4 + $0x71] sm:$0xf]  ;;  %v3766_v20 = vld [vmem:[#allocation4 + $0x69] sm:$0xf]  ;;  %v6444_v53 = vld [vmem:[%s8301_s10] sm:$0xff]  }
 0x4a1   : > { %v4128_v39 = vsel %vm2192_vm14, %v3759_v32, %v3990_v56  ;;  %v3768_v56 = vld [vmem:[#allocation4 + $0x79] sm:$0xf] }
 0x4a2   : > { %4778 = vmatprep.mubr.bf16.mxu1 %v4355_v37  ;;  %v5337_v43 = vcombine.low %v4127_v36, %v4128_v39  ;;  %v3769_v37 = vld [vmem:[#allocation4 + $0x81] sm:$0xf] }
 0x4a3   : > { %v3996_v40 = vpop.permute.xlu0 %3995 }
 0x4a4   : > { %v3994_v57 = vpop.permute.xlu1 %3993  ;;  %v4131_v5 = vsel %vm2192_vm14, %v3762_v27, %v3996_v40 }
 0x4a5   : > { %v4130_v42 = vsel %vm2192_vm14, %v3761_v59, %v3994_v57 }
 0x4a6   : > { %v5341_v31 = vcombine.low %v4129_v19, %v4130_v42  ;;  %v6439_v19 = vld [vmem:[%s8301_s10 + $0x28] sm:$0xff]   ;;  %v6440_v42 = vld [vmem:[%s8301_s10 + $0x20] sm:$0xff]  }
 0x4a7   : > { %v4000_v34 = vpop.permute.xlu0 %3999  ;;  %5702 = vmatpush3.bf16.msra.mxu1 %v6439_v19 }
 0x4a8   : > { %v4062_v41 = vpop.permute.xlu1 %4061  ;;  %v4354_v24 = vpack.c.bf16 %v5341_v31, %v5337_v43  ;;  %v4133_v1 = vsel %vm2192_vm14, %v3764_v13, %v4000_v34  ;;  %5703 = vmatprep.subr.bf16.mxu1 %v6661_v0  ;;  %v6441_v31 = vld [vmem:[%s8301_s10 + $0x18] sm:$0xff]  }
 0x4a9   : > { %v4148_v3 = vsel %vm2192_vm14, %v3796_v47, %v4062_v41  ;;  %v6442_v41 = vld [vmem:[%s8301_s10 + $0x10] sm:$0xff]  }
 0x4aa   : > { %4779 = vmatmul.mubr.bf16.gmra.mxu1 %v4354_v24  ;;  %v5346_v21 = vcombine.low %v4147_v4, %v4148_v3  ;;  %v6443_v3 = vld [vmem:[%s8301_s10 + $0x8] sm:$0xff]  }
 0x4ab   : > { %v4068_v6 = vpop.permute.xlu0 %4067  ;;  %5704 = vmatpush3.bf16.msra.mxu1 %v6440_v42 }
 0x4ac   : > { %v4066_v33 = vpop.permute.xlu1 %4065  ;;  %v4151_v45 = vsel %vm2192_vm14, %v3799_v15, %v4068_v6  ;;  %5705 = vmatprep.subr.bf16.mxu1 %v6661_v0 }
 0x4ad   : > { %v4150_v30 = vsel %vm2192_vm14, %v3798_v58, %v4066_v33 }
 0x4ae   : > { %v5350_v62 = vcombine.low %v4149_v9, %v4150_v30 }
 0x4af   : > { %v4004_v63 = vpop.permute.xlu0 %4003  ;;  %5706 = vmatpush3.bf16.msra.mxu1 %v6441_v31 }
 0x4b0   : > { %v3998_v60 = vpop.permute.xlu1 %3997  ;;  %v4360_v44 = vpack.c.bf16 %v5350_v62, %v5346_v21  ;;  %v4135_v39 = vsel %vm2192_vm14, %v3766_v20, %v4004_v63  ;;  %5707 = vmatprep.subr.bf16.mxu1 %v6661_v0 }
 0x4b1   : > { %v4132_v2 = vsel %vm2192_vm14, %v3763_v50, %v3998_v60 }
 0x4b2   : > { %4786 = vmatprep.mubr.bf16.mxu1 %v4360_v44  ;;  %v5345_v11 = vcombine.low %v4131_v5, %v4132_v2 }
 0x4b3   : > { %v4072_v8 = vpop.permute.xlu0 %4071  ;;  %5708 = vmatpush3.bf16.msra.mxu1 %v6442_v41 }
 0x4b4   : > { %v4002_v61 = vpop.permute.xlu1 %4001  ;;  %v4153_v46 = vsel %vm2192_vm14, %v3801_v18, %v4072_v8  ;;  %5709 = vmatprep.subr.bf16.mxu1 %v6661_v0 }
 0x4b5   : > { %v4134_v14 = vsel %vm2192_vm14, %v3765_v54, %v4002_v61 }
 0x4b6   : > { %v5349_v26 = vcombine.low %v4133_v1, %v4134_v14  ;;  %v8246_v1 = vld [vmem:[#allocation12] ss:$0 sm:$0xff] }
 0x4b7   : > { %v4008_v17 = vpop.permute.xlu0 %4007  ;;  %5710 = vmatpush3.bf16.msra.mxu1 %v6443_v3 }
 0x4b8   : > { %v4070_v35 = vpop.permute.xlu1 %4069  ;;  %v4359_v29 = vpack.c.bf16 %v5349_v26, %v5345_v11  ;;  %v4137_v40 = vsel %vm2192_vm14, %v3768_v56, %v4008_v17  ;;  %5711 = vmatprep.subr.bf16.mxu1 %v6661_v0 }
 0x4b9   : > { %v4152_v12 = vsel %vm2192_vm14, %v3800_v38, %v4070_v35 }
 0x4ba   : > { %4787 = vmatmul.mubr.bf16.gmra.mxu1 %v4359_v29  ;;  %v5354_v22 = vcombine.low %v4151_v45, %v4152_v12  ;;  %v5400_v29 = vld [vmem:[#allocation15] ss:$0 sm:$0xff] }
 0x4bb   : > { %5712 = vmatpush3.bf16.msra.mxu1 %v6444_v53 }
 0x4bc   : > { %v4074_v16 = vpop.permute.xlu1 %4073 }
 0x4bd   : > { %v4154_v25 = vsel %vm2192_vm14, %v3802_v48, %v4074_v16 }
 0x4be   : > { %v5358_v23 = vcombine.low %v4153_v46, %v4154_v25 }
 0x4c0   : > { %v4006_v52 = vpop.permute.xlu1 %4005  ;;  %v4365_v55 = vpack.c.bf16 %v5358_v23, %v5354_v22 }
 0x4c1   : > { %v4136_v28 = vsel %vm2192_vm14, %v3767_v10, %v4006_v52 }
 0x4c2   : > { %4794 = vmatprep.mubr.bf16.mxu1 %v4365_v55  ;;  %v5353_v7 = vcombine.low %v4135_v39, %v4136_v28 }
 0x4c3   : > { %v5556_v36 = vpop.f32.mrf.mxu0 }
 0x4c4   : > { %v4010_v32 = vpop.permute.xlu1 %4009 }
 0x4c5   : > { %v4138_v51 = vsel %vm2192_vm14, %v3769_v37, %v4010_v32  ;;  %v5557_v43 = vpop.f32.mrf.mxu0 }
 0x4c6   : > { %v5357_v59 = vcombine.low %v4137_v40, %v4138_v51  ;;  %v5558_v5 = vadd.f32 %v5557_v43, %v5556_v36 }
 0x4c7   : > { %v5559_v34 = vpop.f32.mrf.mxu0 }
 0x4c8   : > { %v4364_v57 = vpack.c.bf16 %v5357_v59, %v5353_v7  ;;  %v4708_v8 = vadd.f32 %v5558_v5, %v8246_v1 }
 0x4c9   : > { %v5560_v24 = vpop.f32.mrf.mxu0 }
 0x4ca   : > { %4795 = vmatmul.mubr.bf16.gmra.mxu1 %v4364_v57  ;;  %v5561_v38 = vadd.f32 %v5560_v24, %v5559_v34 }
 0x4cb   : > { %5713 = vmatprep.mubr.msk.bf16.mxu1 %vm6673_vm12, %v6661_v0 }
 0x4cc   : > { %v4711_v25 = vadd.f32 %v5561_v38, %v8246_v1 }
 0x4f2   : > { %v5562_v47 = vpop.f32.mrf.mxu0 }
 0x4f4   : > { %v5563_v49 = vpop.f32.mrf.mxu0 }
 0x4f5   : > { %v5564_v32 = vadd.f32 %v5563_v49, %v5562_v47 }
 0x4f6   : > { %v5565_v58 = vpop.f32.mrf.mxu0 }
 0x4f7   : > { %v4716_v19 = vadd.f32 %v5564_v32, %v8246_v1 }
 0x4f8   : > { %v5566_v33 = vpop.f32.mrf.mxu0 }
 0x4f9   : > { %v5567_v42 = vadd.f32 %v5566_v33, %v5565_v58 }
 0x4fb   : > { %v4719_v24 = vadd.f32 %v5567_v42, %v8246_v1 }
 0x519   : > { %v8230_v6 = vpop.f32.mrf.mxu0 }
 0x51b   : > { %v8232_v4 = vpop.f32.mrf.mxu0 }
 0x51c   : > { %v5570_v58 = vadd.f32 %v8232_v4, %v8230_v6 }
 0x51d   : > { %v8234_v9 = vpop.f32.mrf.mxu0 }
 0x51e   : > { %v4724_v5 = vadd.f32 %v5570_v58, %v8246_v1 }
 0x51f   : > { %v8236_v30 = vpop.f32.mrf.mxu0 }
 0x546   : > { %v5574_v21 = vpop.f32.mrf.mxu0 }
 0x548   : > { %v5575_v62 = vpop.f32.mrf.mxu0 }
 0x549   : > { %v8238_v60 = vadd.f32 %v5575_v62, %v5574_v21 }
 0x54a   : > { %v5577_v44 = vpop.f32.mrf.mxu0 }
 0x54c   : > { %v5578_v50 = vpop.f32.mrf.mxu0 }
 0x54d   : > { %v8240_v63 = vadd.f32 %v5578_v50, %v5577_v44 }
 0x54e   : > { %v5689_v0 = vpop.f32.mrf.mxu0 }
 0x550   : > { %v4837_v2 = vpop.f32.mrf.mxu0 }
 0x552   : > { %v5690_v27 = vpop.f32.mrf.mxu0 }
 0x554   : > { %v4840_v13 = vpop.f32.mrf.mxu0 }
 0x556   : > { %v8242_v54 = vpop.f32.mrf.mxu0 }
 0x558   : > { %v8244_v61 = vpop.f32.mrf.mxu0 }
 0x55a   : > { %v5596_v14 = vpop.f32.mrf.mxu1  ;;  %v8248_v11 = vpop.f32.mrf.mxu0 }
 0x55c   : > { %v5597_v26 = vpop.f32.mrf.mxu1  ;;  %v8250_v35 = vpop.f32.mrf.mxu0 }
 0x55d   : > { %v5598_v18 = vadd.f32 %v5597_v26, %v5596_v14  ;;  %v5573_v14 = vadd.f32 %v8236_v30, %v8234_v9 }
 0x55e   : > { %v5599_v48 = vpop.f32.mrf.mxu1  ;;  %v4957_v12 = vpop.f32.mrf.mxu0 }
 0x55f   : > { %v4773_v46 = vadd.f32 %v5598_v18, %v4708_v8  ;;  %v4958_v15 = vadd.f32 %v5400_v29, %v4957_v12  ;;  %v4727_v8 = vadd.f32 %v5573_v14, %v8246_v1 }
 0x560   : > { %v5600_v16 = vpop.f32.mrf.mxu1  ;;  %v5699_v45 = vpop.f32.mrf.mxu0 }
 0x561   : > { %v4838_v22 = vadd.f32 %v4837_v2, %v4773_v46  ;;  %v4963_v23 = vmul.f32 0.2, %v4958_v15  ;;  %v5601_v52 = vadd.f32 %v5600_v16, %v5599_v48  ;;  %v4732_v45 = vadd.f32 %v8238_v60, %v8246_v1 }
 0x562   : > { %v4960_v55 = vpop.f32.mrf.mxu0 }
 0x563   : > { %v4964_v17 = vmax.f32 %v4958_v15, %v4963_v23  ;;  %v4776_v10 = vadd.f32 %v5601_v52, %v4711_v25  ;;  %v4868_v20 = vmul.f32 0.2, %v4838_v22  ;;  %v4735_v52 = vadd.f32 %v8240_v63, %v8246_v1 }
 0x564   : > { %v5700_v28 = vpop.f32.mrf.mxu0 }
 0x565   : > { %4968 = vst.msk [vmem:[#allocation6 + $0x1] sm:$0xff] %vm1377_vm4, %v4964_v17  ;;  %v4841_v56 = vadd.f32 %v4840_v13, %v4776_v10  ;;  %v4876_v39 = vmax.f32 %v4838_v22, %v4868_v20 }
 0x567   : > { %v4869_v37 = vmul.f32 0.2, %v4841_v56 }
 0x569   : > { %v4877_v40 = vmax.f32 %v4841_v56, %v4869_v37 }
 0x56a   : > { %v5602_v51 = vpop.f32.mrf.mxu1 }
 0x56b   : > { %v5435_v7 = vpack.c.bf16 %v4877_v40, %v4876_v39 }
 0x56c   : > { %v5603_v59 = vpop.f32.mrf.mxu1  ;;  %v4971_v57 = vld [vmem:[#allocation6 + $0x2] sm:$0xff] }
 0x56d   : > { %v4970_v36 = vld [vmem:[#allocation6 + $0x1] sm:$0xff]  ;;  %5436 = vst [vmem:[%s8259_s16] sm:$0xff] %v5435_v7   ;;  %v5604_v43 = vadd.f32 %v5603_v59, %v5602_v51  ;;  %4977 = vrot.lane.b32.xlu1 %v4971_v57, %s6670_s13 }
 0x56e   : > { %4973 = vrot.lane.b32.xlu0 %v4970_v36, %s6669_s30  ;;  %v5605_v31 = vpop.f32.mrf.mxu1  ;;  %v4969_v40 = vld [vmem:[#allocation6] sm:$0xff] }
 0x56f   : > { %v4781_v34 = vadd.f32 %v5604_v43, %v4716_v19 }
 0x570   : > { %v5606_v41 = vpop.f32.mrf.mxu1 }
 0x571   : > { %v4846_v47 = vadd.f32 %v5689_v0, %v4781_v34  ;;  %v5607_v3 = vadd.f32 %v5606_v41, %v5605_v31 }
 0x573   : > { %v4784_v49 = vadd.f32 %v5607_v3, %v4719_v24  ;;  %v4870_v53 = vmul.f32 0.2, %v4846_v47 }
 0x575   : > { %v4849_v21 = vadd.f32 %v5690_v27, %v4784_v49  ;;  %v4878_v33 = vmax.f32 %v4846_v47, %v4870_v53 }
 0x577   : > { %v4871_v62 = vmul.f32 0.2, %v4849_v21 }
 0x579   : > { %v4879_v44 = vmax.f32 %v4849_v21, %v4871_v62 }
 0x57a   : > { %v5608_v50 = vpop.f32.mrf.mxu1 }
 0x57b   : > { %v5440_v2 = vpack.c.bf16 %v4879_v44, %v4878_v33 }
 0x57c   : > { %v5609_v13 = vpop.f32.mrf.mxu1 }
 0x57d   : > { %5452 = vst [vmem:[%s8259_s16 + $0x8] sm:$0xff] %v5440_v2   ;;  %v5610_v0 = vadd.f32 %v5609_v13, %v5608_v50 }
 0x57e   : > { %v5611_v26 = vpop.f32.mrf.mxu1 }
 0x57f   : > { %v4789_v29 = vadd.f32 %v5610_v0, %v4724_v5 }
 0x580   : > { %v5612_v27 = vpop.f32.mrf.mxu1 }
 0x581   : > { %v4854_v6 = vadd.f32 %v8244_v61, %v4789_v29  ;;  %v5613_v4 = vadd.f32 %v5612_v27, %v5611_v26 }
 0x583   : > { %v4792_v38 = vadd.f32 %v5613_v4, %v4727_v8  ;;  %v4872_v18 = vmul.f32 0.2, %v4854_v6 }
 0x585   : > { %v4857_v48 = vadd.f32 %v8250_v35, %v4792_v38  ;;  %v4880_v46 = vmax.f32 %v4854_v6, %v4872_v18 }
 0x587   : > { %v4873_v12 = vmul.f32 0.2, %v4857_v48 }
 0x589   : > { %v4881_v15 = vmax.f32 %v4857_v48, %v4873_v12 }
 0x58a   : > { %v5614_v16 = vpop.f32.mrf.mxu1 }
 0x58b   : > { %v5445_v9 = vpack.c.bf16 %v4881_v15, %v4880_v46 }
 0x58c   : > { %v5615_v30 = vpop.f32.mrf.mxu1 }
 0x58d   : > { %5453 = vst [vmem:[%s8259_s16 + $0x10] sm:$0xff] %v5445_v9   ;;  %v5616_v25 = vadd.f32 %v5615_v30, %v5614_v16 }
 0x58e   : > { %v5617_v22 = vpop.f32.mrf.mxu1 }
 0x58f   : > { %v4797_v23 = vadd.f32 %v5616_v25, %v4732_v45 }
 0x590   : > { %v5618_v61 = vpop.f32.mrf.mxu1 }
 0x591   : > { %v4862_v35 = vadd.f32 %v8242_v54, %v4797_v23  ;;  %v5619_v55 = vadd.f32 %v5618_v61, %v5617_v22  ;;  %v5403_v54 = vld [vmem:[#allocation17] ss:$0 sm:$0xff] }
 0x593   : > { %v4800_v17 = vadd.f32 %v5619_v55, %v4735_v52  ;;  %v4874_v10 = vmul.f32 0.2, %v4862_v35 }
 0x595   : > { %v4865_v28 = vadd.f32 %v8248_v11, %v4800_v17  ;;  %v4882_v56 = vmax.f32 %v4862_v35, %v4874_v10 }
 0x597   : > { %v4875_v20 = vmul.f32 0.2, %v4865_v28 }
 0x599   : > { %v4883_v37 = vmax.f32 %v4865_v28, %v4875_v20 }
 0x59b   : > { %v5450_v60 = vpack.c.bf16 %v4883_v37, %v4882_v56 }
 0x59d   : > { %5454 = vst [vmem:[%s8259_s16 + $0x18] sm:$0xff] %v5450_v60  }
 0x5df   : > { %v4978_v32 = vpop.permute.xlu1 %4977 }
 0x5e0   : > { %v4974_v39 = vpop.permute.xlu0 %4973 }
 0x5e1   : > { %v4980_v51 = vsel %vm1377_vm4, %v4969_v40, %v4974_v39 }
 0x5e2   : > { %v4981_v63 = vsel %vm2192_vm14, %v4980_v51, %v4978_v32 }
 0x5e3   : > { %v4982_v1 = vpack.c.bf16 %v4981_v63, %v4981_v63 }
 0x5e5   : > { %5714 = vmatmul.mubr.msk.bf16.vlgmr.msra.gmra.mxu1 %vm2209_vm15, %v4982_v1 }
 0x6a5   : > { %v5074_v7 = vpop.f32.mrf.mxu1 }
 0x6a6   : > { %v5075_v59 = vadd.f32 %v5403_v54, %v5074_v7 }
 0x6a7   : > { %v5715_v11 = vpop.f32.mrf.mxu1 }
 0x6a8   : > { %v5080_v57 = vmul.f32 0.2, %v5075_v59 }
 0x6a9   : > { %v5077_v36 = vpop.f32.mrf.mxu1 }
 0x6aa   : > { %v5081_v19 = vmax.f32 %v5075_v59, %v5080_v57 }
 0x6ab   : > { %v5716_v42 = vpop.f32.mrf.mxu1 }
 0x6ac   : > { %v5082_v43 = vsel %vm2192_vm14, %v5081_v19, 0.0 }
 0x6ad   : > { %v5431_v31 = vpack.c.bf16 %v5082_v43, %v5082_v43 }
 0x6af   : > { %5128 = vst [vmem:[%s8259_s16 + $0x20] sm:$0xf] %v5431_v31 }
 0x6b0 PF: > { %s26_s21 = sadd.s32 1, %s6650_s21  }
 0x6b1   : > { %p23_p10 = scmp.ge.s32.totalorder %s26_s21, 4  }
 0x6b3   :  { %25 = sbr.rel (!%p23_p10) target bundleno = 4 (0x4), region = 139 }
 0x6b8   :  { %5150 = vsyncpa [#allocation8], 1 }
 0x6b9   :  { %5152 = vsyncpa [#allocation8 + $0x1], 1 }
 0x6ba   :  { %5153 = vsyncpa [#allocation10], 1 }
 0x6bb   :  { %5154 = vsyncpa [#allocation13], 1 }
 0x6bc   :  { %5155 = vsyncpa [#allocation16], 1 }

// kernel: discriminator_forward.3
= control target key start
LH: loop header
LB: loop body
LE: loop exit
PB: predicated region body
PF: predicated region fallthrough
CT: control target
= control target key end

     0   :  { %v8594_v22 = vmov 1966171168   ;;  %v1204_v24 = vlaneseq  ;;  %vm6619_vm0 = vcmask 517120   ;;  %vm6631_vm1 = vcmask 1024   ;;  %s10523_s1 = inlined_call_operand.vmem [shape: bf16[9216,64], index: 1, kind: input, shape index: {}]   ;;  %s10524_s0 = inlined_call_operand.vmem [shape: bf16[2,9216], index: 0, kind: input, shape index: {}]   ;;  %s10525_s2 = inlined_call_operand.vmem [shape: f32[1,64], index: 2, kind: input, shape index: {}]   ;;  %s10526_s4 = inlined_call_operand.<no memory space> [shape: f32[1,1], index: 4, kind: input, shape index: {}]   ;;  %s10527_s3 = inlined_call_operand.vmem [shape: f32[1,64], index: 3, kind: input, shape index: {}]   ;;  %s10528_s5 = inlined_call_operand.vmem [shape: f32[2,1], index: 5, kind: output, shape index: {}]  }
   0x1   :  { %v8009_v0 = vld [vmem:[%s10523_s1 + $0x78] sm:$0xff]   ;;  %v8013_v4 = vld [vmem:[%s10523_s1 + $0x70] sm:$0xff]   ;;  %v8017_v8 = vld [vmem:[%s10523_s1 + $0x68] sm:$0xff]   ;;  %v1202_v23 = vunpack.c.l.s4 %v8594_v22 }
   0x2   :  { %v8010_v1 = vld [vmem:[%s10523_s1 + $0xf8] sm:$0xff]   ;;  %7216 = vmatprep.subr.bf16.mxu0 %v8009_v0  ;;  %v8014_v5 = vld [vmem:[%s10523_s1 + $0xf0] sm:$0xff]   ;;  %v8018_v9 = vld [vmem:[%s10523_s1 + $0xe8] sm:$0xff]   ;;  %v1205_v30 = vshrl.u32 %v1204_v24, 7 }
   0x3   :  { %v8011_v2 = vld [vmem:[%s10523_s1 + $0x38] sm:$0xff]   ;;  %7238 = vmatprep.subr.bf16.mxu1 %v8010_v1  ;;  %v8015_v6 = vld [vmem:[%s10523_s1 + $0x30] sm:$0xff]   ;;  %v8019_v10 = vld [vmem:[%s10523_s1 + $0x28] sm:$0xff]   ;;  %v1203_v29 = vunpack.c.0.s8 %v1202_v23 }
   0x4   :  { %v8012_v3 = vld [vmem:[%s10523_s1 + $0xb8] sm:$0xff]   ;;  %7217 = vmatpush3.bf16.msra.mxu0 %v8011_v2  ;;  %v8016_v7 = vld [vmem:[%s10523_s1 + $0xb0] sm:$0xff]   ;;  %v8020_v11 = vld [vmem:[%s10523_s1 + $0xa8] sm:$0xff]  }
   0x5   :  { %7239 = vmatpush3.bf16.msra.mxu1 %v8012_v3  ;;  %7218 = vmatprep.subr.bf16.mxu0 %v8013_v4  ;;  %v8021_v12 = vld [vmem:[%s10523_s1 + $0x60] sm:$0xff]   ;;  %v8025_v16 = vld [vmem:[%s10523_s1 + $0x58] sm:$0xff]   ;;  %v8029_v20 = vld [vmem:[%s10523_s1 + $0x50] sm:$0xff]   ;;  %v8715_v35 = vsub.s32 %v1203_v29, %v1205_v30 }
   0x6   :  { %7240 = vmatprep.subr.bf16.mxu1 %v8014_v5  ;;  %v8022_v13 = vld [vmem:[%s10523_s1 + $0xe0] sm:$0xff]   ;;  %v8026_v17 = vld [vmem:[%s10523_s1 + $0xd8] sm:$0xff]   ;;  %v8030_v21 = vld [vmem:[%s10523_s1 + $0xd0] sm:$0xff]  }
   0x7   :  { %v8023_v14 = vld [vmem:[%s10523_s1 + $0x20] sm:$0xff]   ;;  %v8027_v18 = vld [vmem:[%s10523_s1 + $0x18] sm:$0xff]   ;;  %v8031_v25 = vld [vmem:[%s10523_s1 + $0x10] sm:$0xff]  }
   0x8   :  { %7219 = vmatpush3.bf16.msra.mxu0 %v8015_v6  ;;  %v8024_v15 = vld [vmem:[%s10523_s1 + $0xa0] sm:$0xff]   ;;  %v8028_v19 = vld [vmem:[%s10523_s1 + $0x98] sm:$0xff]   ;;  %v8032_v26 = vld [vmem:[%s10523_s1 + $0x90] sm:$0xff]  }
   0x9   :  { %7241 = vmatpush3.bf16.msra.mxu1 %v8016_v7  ;;  %7220 = vmatprep.subr.bf16.mxu0 %v8017_v8  ;;  %v8033_v27 = vld [vmem:[%s10523_s1 + $0x48] sm:$0xff]   ;;  %v8037_v33 = vld [vmem:[%s10523_s1 + $0x40] sm:$0xff]   ;;  %v8042_v41 = vld [vmem:[%s10523_s1 + $0x178] sm:$0xff]  }
   0xa   :  { %7242 = vmatprep.subr.bf16.mxu1 %v8018_v9  ;;  %v8034_v28 = vld [vmem:[%s10523_s1 + $0xc8] sm:$0xff]   ;;  %v8038_v34 = vld [vmem:[%s10523_s1 + $0xc0] sm:$0xff]   ;;  %v8043_v42 = vld [vmem:[%s10523_s1 + $0x1f8] sm:$0xff]  }
   0xb   :  { %v8035_v31 = vld [vmem:[%s10523_s1 + $0x8] sm:$0xff]   ;;  %v8039_v36 = vld [vmem:[%s10523_s1] sm:$0xff]   ;;  %v8044_v46 = vld [vmem:[%s10523_s1 + $0x138] sm:$0xff]  }
   0xc   :  { %7221 = vmatpush3.bf16.msra.mxu0 %v8019_v10  ;;  %v8036_v32 = vld [vmem:[%s10523_s1 + $0x88] sm:$0xff]   ;;  %v8040_v37 = vld [vmem:[%s10523_s1 + $0x80] sm:$0xff]   ;;  %v8045_v48 = vld [vmem:[%s10523_s1 + $0x1b8] sm:$0xff]  }
   0xd   :  { %7243 = vmatpush3.bf16.msra.mxu1 %v8020_v11  ;;  %7222 = vmatprep.subr.bf16.mxu0 %v8021_v12  ;;  %v23_v38 = vld [vmem:[%s10524_s0] sm:$0xff]  ;;  %v8046_v51 = vld [vmem:[%s10523_s1 + $0x170] sm:$0xff]   ;;  %v8050_v58 = vld [vmem:[%s10523_s1 + $0x168] sm:$0xff]  }
   0xe   :  { %7244 = vmatprep.subr.bf16.mxu1 %v8022_v13  ;;  %v1200_v39 = vcombine.high %v23_v38, %v23_v38  ;;  %v1207_v40 = vrot.slane %v23_v38, %v8715_v35  ;;  %v8047_v53 = vld [vmem:[%s10523_s1 + $0x1f0] sm:$0xff]   ;;  %v8051_v59 = vld [vmem:[%s10523_s1 + $0x1e8] sm:$0xff]   ;;  %v8054_v62 = vld [vmem:[%s10523_s1 + $0x160] sm:$0xff]  }
   0xf   :  { %v8048_v55 = vld [vmem:[%s10523_s1 + $0x130] sm:$0xff]   ;;  %v8052_v60 = vld [vmem:[%s10523_s1 + $0x128] sm:$0xff]   ;;  %v8055_v63 = vld [vmem:[%s10523_s1 + $0x1e0] sm:$0xff]  }
  0x10   :  { %7223 = vmatpush3.bf16.msra.mxu0 %v8023_v14  ;;  %v1215_v43 = vcombine.high %v1207_v40, %v1207_v40  ;;  %v1223_v44 = vrot.slane %v1207_v40, %v8715_v35  ;;  %v8735_v45 = vrot.slane %v1200_v39, %v8715_v35  ;;  %v8049_v56 = vld [vmem:[%s10523_s1 + $0x1b0] sm:$0xff]   ;;  %v8053_v61 = vld [vmem:[%s10523_s1 + $0x1a8] sm:$0xff]   ;;  %v8056_v0 = vld [vmem:[%s10523_s1 + $0x120] sm:$0xff]  }
  0x11   :  { %7245 = vmatpush3.bf16.msra.mxu1 %v8024_v15  ;;  %7224 = vmatprep.subr.bf16.mxu0 %v8025_v16  ;;  %v8057_v1 = vld [vmem:[%s10523_s1 + $0x1a0] sm:$0xff]   ;;  %v8058_v2 = vld [vmem:[%s10523_s1 + $0x158] sm:$0xff]   ;;  %v8062_v6 = vld [vmem:[%s10523_s1 + $0x150] sm:$0xff]  }
  0x12   :  { %7246 = vmatprep.subr.bf16.mxu1 %v8026_v17  ;;  %v1237_v47 = vrot.slane %v1215_v43, %v8715_v35  ;;  %v1216_v49 = vcombine.high %v8735_v45, %v8735_v45  ;;  %v1245_v50 = vcombine.high %v1223_v44, %v1223_v44  ;;  %v8059_v3 = vld [vmem:[%s10523_s1 + $0x1d8] sm:$0xff]   ;;  %v8063_v7 = vld [vmem:[%s10523_s1 + $0x1d0] sm:$0xff]   ;;  %v8066_v10 = vld [vmem:[%s10523_s1 + $0x148] sm:$0xff]  }
  0x13   :  { %v8060_v4 = vld [vmem:[%s10523_s1 + $0x118] sm:$0xff]   ;;  %v8064_v8 = vld [vmem:[%s10523_s1 + $0x110] sm:$0xff]   ;;  %v8067_v11 = vld [vmem:[%s10523_s1 + $0x1c8] sm:$0xff]  }
  0x14   :  { %7225 = vmatpush3.bf16.msra.mxu0 %v8027_v18  ;;  %5201 = vmatprep.mubr.bf16.mxu0 %v1237_v47  ;;  %v1247_v52 = vcombine.high %v1237_v47, %v1237_v47  ;;  %v1244_v54 = vrot.slane %v1216_v49, %v8715_v35  ;;  %v8061_v5 = vld [vmem:[%s10523_s1 + $0x198] sm:$0xff]   ;;  %v8065_v9 = vld [vmem:[%s10523_s1 + $0x190] sm:$0xff]   ;;  %v8068_v12 = vld [vmem:[%s10523_s1 + $0x108] sm:$0xff]   ;;  %v1230_v18 = vrot.slane %v8735_v45, %v8715_v35 }
  0x15   :  { %7247 = vmatpush3.bf16.msra.mxu1 %v8028_v19  ;;  %7226 = vmatprep.subr.bf16.mxu0 %v8029_v20  ;;  %v8069_v13 = vld [vmem:[%s10523_s1 + $0x188] sm:$0xff]   ;;  %v8070_v14 = vld [vmem:[%s10523_s1 + $0x140] sm:$0xff]   ;;  %v8074_v19 = vld [vmem:[%s10523_s1 + $0x278] sm:$0xff]  }
  0x16   :  { %7248 = vmatprep.subr.bf16.mxu1 %v8030_v21  ;;  %5241 = vmatprep.mubr.bf16.mxu1 %v1247_v52  ;;  %v1248_v57 = vcombine.high %v1244_v54, %v1244_v54  ;;  %v8071_v15 = vld [vmem:[%s10523_s1 + $0x1c0] sm:$0xff]   ;;  %v8075_v20 = vld [vmem:[%s10523_s1 + $0x2f8] sm:$0xff]   ;;  %v1246_v23 = vcombine.high %v1230_v18, %v1230_v18  ;;  %v8078_v24 = vld [vmem:[%s10523_s1 + $0x270] sm:$0xff]  }
  0x17   :  { %v8072_v16 = vld [vmem:[%s10523_s1 + $0x100] sm:$0xff]   ;;  %v8076_v21 = vld [vmem:[%s10523_s1 + $0x238] sm:$0xff]   ;;  %v8083_v29 = vld [vmem:[%s10523_s1 + $0x2e8] sm:$0xff]  }
  0x18   :  { %7227 = vmatpush3.bf16.msra.mxu0 %v8031_v25  ;;  %v8073_v17 = vld [vmem:[%s10523_s1 + $0x180] sm:$0xff]   ;;  %v8077_v22 = vld [vmem:[%s10523_s1 + $0x2b8] sm:$0xff]   ;;  %v8079_v25 = vld [vmem:[%s10523_s1 + $0x2f0] sm:$0xff]  }
  0x19   :  { %7249 = vmatpush3.bf16.msra.mxu1 %v8032_v26  ;;  %7228 = vmatprep.subr.bf16.mxu0 %v8033_v27  ;;  %v8080_v26 = vld [vmem:[%s10523_s1 + $0x230] sm:$0xff]   ;;  %v8084_v30 = vld [vmem:[%s10523_s1 + $0x228] sm:$0xff]   ;;  %v8091_v38 = vld [vmem:[%s10523_s1 + $0x2d8] sm:$0xff]  }
  0x1a   :  { %7250 = vmatprep.subr.bf16.mxu1 %v8034_v28  ;;  %v8081_v27 = vld [vmem:[%s10523_s1 + $0x2b0] sm:$0xff]   ;;  %v8082_v28 = vld [vmem:[%s10523_s1 + $0x268] sm:$0xff]   ;;  %v8092_v39 = vld [vmem:[%s10523_s1 + $0x218] sm:$0xff]  }
  0x1b   :  { %v8093_v40 = vld [vmem:[%s10523_s1 + $0x298] sm:$0xff]   ;;  %v8096_v43 = vld [vmem:[%s10523_s1 + $0x210] sm:$0xff]   ;;  %v8098_v45 = vld [vmem:[%s10523_s1 + $0x248] sm:$0xff]  }
  0x1c   :  { %7229 = vmatpush3.bf16.msra.mxu0 %v8035_v31  ;;  %v8085_v31 = vld [vmem:[%s10523_s1 + $0x2a8] sm:$0xff]   ;;  %v8102_v49 = vld [vmem:[%s10523_s1 + $0x240] sm:$0xff]  }
  0x1d   :  { %7251 = vmatpush3.bf16.msra.mxu1 %v8036_v32  ;;  %7230 = vmatprep.subr.bf16.mxu0 %v8037_v33  ;;  %v8086_v32 = vld [vmem:[%s10523_s1 + $0x260] sm:$0xff]   ;;  %v8100_v47 = vld [vmem:[%s10523_s1 + $0x208] sm:$0xff]  }
  0x1e   :  { %7252 = vmatprep.subr.bf16.mxu1 %v8038_v34  ;;  %v8087_v33 = vld [vmem:[%s10523_s1 + $0x2e0] sm:$0xff]   ;;  %v24_v52 = vld [vmem:[%s10524_s0 + $0x8] sm:$0xff] }
  0x1f   :  { %v8088_v34 = vld [vmem:[%s10523_s1 + $0x220] sm:$0xff]  }
  0x20   :  { %7231 = vmatpush3.bf16.msra.mxu0 %v8039_v36  ;;  %v8089_v36 = vld [vmem:[%s10523_s1 + $0x2a0] sm:$0xff]  }
  0x21   :  { %7253 = vmatpush3.bf16.msra.mxu1 %v8040_v37  ;;  %7260 = vmatprep.subr.bf16.mxu0 %v8042_v41  ;;  %v8090_v37 = vld [vmem:[%s10523_s1 + $0x258] sm:$0xff]   ;;  %v8094_v41 = vld [vmem:[%s10523_s1 + $0x250] sm:$0xff]  }
  0x22   :  { %7282 = vmatprep.subr.bf16.mxu1 %v8043_v42  ;;  %v8095_v42 = vld [vmem:[%s10523_s1 + $0x2d0] sm:$0xff]  }
  0x23   :  { %5202 = vmatmul.mubr.bf16.vlgmr.msra.gmra.mxu0 %v1223_v44  ;;  %v8097_v44 = vld [vmem:[%s10523_s1 + $0x290] sm:$0xff]  }
  0x24   :  { %7261 = vmatpush3.bf16.msra.mxu0 %v8044_v46  ;;  %5242 = vmatmul.mubr.bf16.vlgmr.msra.gmra.mxu1 %v1245_v50  ;;  %v8099_v46 = vld [vmem:[%s10523_s1 + $0x2c8] sm:$0xff]   ;;  %v8103_v50 = vld [vmem:[%s10523_s1 + $0x2c0] sm:$0xff]  }
  0x25   :  { %7262 = vmatprep.subr.bf16.mxu0 %v8046_v51  ;;  %7283 = vmatpush3.bf16.msra.mxu1 %v8045_v48  ;;  %v8101_v48 = vld [vmem:[%s10523_s1 + $0x288] sm:$0xff]   ;;  %v8104_v51 = vld [vmem:[%s10523_s1 + $0x200] sm:$0xff]  }
  0x26   :  { %5281 = vmatprep.mubr.bf16.mxu0 %v1244_v54  ;;  %7284 = vmatprep.subr.bf16.mxu1 %v8047_v53  ;;  %v8105_v53 = vld [vmem:[%s10523_s1 + $0x280] sm:$0xff]   ;;  %v1256_v54 = vrot.slane %v24_v52, %v8715_v35 }
  0x27   :  { %5321 = vmatprep.mubr.bf16.mxu1 %v1248_v57 }
  0x28   :  { %7263 = vmatpush3.bf16.msra.mxu0 %v8048_v55  ;;  %v1249_v55 = vcombine.high %v24_v52, %v24_v52  ;;  %v1264_v57 = vcombine.high %v1256_v54, %v1256_v54  ;;  %v8155_v52 = vld [vmem:[%s10523_s1 + $0x458] sm:$0xff]  }
  0x29   :  { %7264 = vmatprep.subr.bf16.mxu0 %v8050_v58  ;;  %7285 = vmatpush3.bf16.msra.mxu1 %v8049_v56  ;;  %v8106_v56 = vld [vmem:[%s10523_s1 + $0x378] sm:$0xff]   ;;  %v1272_v58 = vrot.slane %v1256_v54, %v8715_v35 }
  0x2a   :  { %7286 = vmatprep.subr.bf16.mxu1 %v8051_v59  ;;  %v8107_v59 = vld [vmem:[%s10523_s1 + $0x3f8] sm:$0xff]  }
  0x2b   :  { %v8157_v54 = vld [vmem:[%s10523_s1 + $0x418] sm:$0xff]  }
  0x2c   :  { %7265 = vmatpush3.bf16.msra.mxu0 %v8052_v60  ;;  %v8941_v60 = vrot.slane %v1249_v55, %v8715_v35  ;;  %v8158_v55 = vld [vmem:[%s10523_s1 + $0x498] sm:$0xff]  }
  0x2d   :  { %7266 = vmatprep.subr.bf16.mxu0 %v8054_v62  ;;  %7287 = vmatpush3.bf16.msra.mxu1 %v8053_v61  ;;  %v8108_v61 = vld [vmem:[%s10523_s1 + $0x338] sm:$0xff]   ;;  %v1286_v62 = vrot.slane %v1264_v57, %v8715_v35  ;;  %v8160_v57 = vld [vmem:[%s10523_s1 + $0x4d0] sm:$0xff]  }
  0x2e   :  { %7288 = vmatprep.subr.bf16.mxu1 %v8055_v63  ;;  %v8109_v63 = vld [vmem:[%s10523_s1 + $0x3b8] sm:$0xff]  }
  0x30   :  { %7267 = vmatpush3.bf16.msra.mxu0 %v8056_v0  ;;  %v1265_v0 = vcombine.high %v8941_v60, %v8941_v60 }
  0x31   :  { %7268 = vmatprep.subr.bf16.mxu0 %v8058_v2  ;;  %7289 = vmatpush3.bf16.msra.mxu1 %v8057_v1  ;;  %v1294_v1 = vcombine.high %v1272_v58, %v1272_v58  ;;  %v8110_v2 = vld [vmem:[%s10523_s1 + $0x370] sm:$0xff]  }
  0x32   :  { %7290 = vmatprep.subr.bf16.mxu1 %v8059_v3  ;;  %v1296_v3 = vcombine.high %v1286_v62, %v1286_v62 }
  0x34   :  { %7269 = vmatpush3.bf16.msra.mxu0 %v8060_v4  ;;  %v8111_v4 = vld [vmem:[%s10523_s1 + $0x3f0] sm:$0xff]  }
  0x35   :  { %7270 = vmatprep.subr.bf16.mxu0 %v8062_v6  ;;  %7291 = vmatpush3.bf16.msra.mxu1 %v8061_v5  ;;  %v1293_v5 = vrot.slane %v1265_v0, %v8715_v35  ;;  %v8112_v6 = vld [vmem:[%s10523_s1 + $0x330] sm:$0xff]   ;;  %v8167_v0 = vld [vmem:[%s10523_s1 + $0x440] sm:$0xff]  }
  0x36   :  { %7292 = vmatprep.subr.bf16.mxu1 %v8063_v7  ;;  %v8113_v7 = vld [vmem:[%s10523_s1 + $0x3b0] sm:$0xff]  }
  0x38   :  { %7271 = vmatpush3.bf16.msra.mxu0 %v8064_v8  ;;  %v1297_v8 = vcombine.high %v1293_v5, %v1293_v5 }
  0x39   :  { %7272 = vmatprep.subr.bf16.mxu0 %v8066_v10  ;;  %7293 = vmatpush3.bf16.msra.mxu1 %v8065_v9  ;;  %v8114_v9 = vld [vmem:[%s10523_s1 + $0x368] sm:$0xff]  }
  0x3a   :  { %7294 = vmatprep.subr.bf16.mxu1 %v8067_v11  ;;  %v8115_v10 = vld [vmem:[%s10523_s1 + $0x3e8] sm:$0xff]  }
  0x3b   :  { %v8116_v11 = vld [vmem:[%s10523_s1 + $0x328] sm:$0xff]  }
  0x3c   :  { %7273 = vmatpush3.bf16.msra.mxu0 %v8068_v12  ;;  %v8117_v12 = vld [vmem:[%s10523_s1 + $0x3a8] sm:$0xff]  }
  0x3d   :  { %7274 = vmatprep.subr.bf16.mxu0 %v8070_v14  ;;  %7295 = vmatpush3.bf16.msra.mxu1 %v8069_v13  ;;  %v8118_v13 = vld [vmem:[%s10523_s1 + $0x360] sm:$0xff]  }
  0x3e   :  { %7296 = vmatprep.subr.bf16.mxu1 %v8071_v15  ;;  %v8119_v14 = vld [vmem:[%s10523_s1 + $0x3e0] sm:$0xff]  }
  0x3f   :  { %v8120_v15 = vld [vmem:[%s10523_s1 + $0x320] sm:$0xff]  }
  0x40   :  { %7275 = vmatpush3.bf16.msra.mxu0 %v8072_v16  ;;  %v8121_v16 = vld [vmem:[%s10523_s1 + $0x3a0] sm:$0xff]  }
  0x41   :  { %7304 = vmatprep.subr.bf16.mxu0 %v8074_v19  ;;  %7297 = vmatpush3.bf16.msra.mxu1 %v8073_v17  ;;  %v8122_v17 = vld [vmem:[%s10523_s1 + $0x358] sm:$0xff]  }
  0x42   :  { %7326 = vmatprep.subr.bf16.mxu1 %v8075_v20  ;;  %v8124_v19 = vld [vmem:[%s10523_s1 + $0x318] sm:$0xff]  }
  0x43   :  { %5282 = vmatmul.mubr.bf16.vlgmr.msra.gmra.mxu0 %v1230_v18  ;;  %v8123_v18 = vld [vmem:[%s10523_s1 + $0x3d8] sm:$0xff]  }
  0x44   :  { %7305 = vmatpush3.bf16.msra.mxu0 %v8076_v21  ;;  %5322 = vmatmul.mubr.bf16.vlgmr.msra.gmra.mxu1 %v1246_v23  ;;  %v8125_v20 = vld [vmem:[%s10523_s1 + $0x398] sm:$0xff]   ;;  %v8126_v21 = vld [vmem:[%s10523_s1 + $0x350] sm:$0xff]  }
  0x45   :  { %7306 = vmatprep.subr.bf16.mxu0 %v8078_v24  ;;  %7327 = vmatpush3.bf16.msra.mxu1 %v8077_v22  ;;  %v8127_v22 = vld [vmem:[%s10523_s1 + $0x3d0] sm:$0xff]  }
  0x46   :  { %7328 = vmatprep.subr.bf16.mxu1 %v8079_v25  ;;  %5361 = vmatprep.mubr.bf16.mxu0 %v1286_v62  ;;  %v8128_v23 = vld [vmem:[%s10523_s1 + $0x310] sm:$0xff]   ;;  %v8130_v25 = vld [vmem:[%s10523_s1 + $0x348] sm:$0xff]  }
  0x47   :  { %5401 = vmatprep.mubr.bf16.mxu1 %v1296_v3  ;;  %v8129_v24 = vld [vmem:[%s10523_s1 + $0x390] sm:$0xff]   ;;  %v8165_v62 = vld [vmem:[%s10523_s1 + $0x408] sm:$0xff]  }
  0x48   :  { %7307 = vmatpush3.bf16.msra.mxu0 %v8080_v26  ;;  %v8131_v26 = vld [vmem:[%s10523_s1 + $0x3c8] sm:$0xff]   ;;  %v25_v3 = vld [vmem:[%s10524_s0 + $0x10] sm:$0xff] }
  0x49   :  { %7308 = vmatprep.subr.bf16.mxu0 %v8082_v28  ;;  %7329 = vmatpush3.bf16.msra.mxu1 %v8081_v27  ;;  %v8132_v27 = vld [vmem:[%s10523_s1 + $0x308] sm:$0xff]  }
  0x4a   :  { %7330 = vmatprep.subr.bf16.mxu1 %v8083_v29  ;;  %v8133_v28 = vld [vmem:[%s10523_s1 + $0x388] sm:$0xff]   ;;  %v8134_v29 = vld [vmem:[%s10523_s1 + $0x340] sm:$0xff]  }
  0x4c   :  { %7309 = vmatpush3.bf16.msra.mxu0 %v8084_v30  ;;  %v8135_v30 = vld [vmem:[%s10523_s1 + $0x3c0] sm:$0xff]  }
  0x4d   :  { %7310 = vmatprep.subr.bf16.mxu0 %v8086_v32  ;;  %7331 = vmatpush3.bf16.msra.mxu1 %v8085_v31  ;;  %v8136_v31 = vld [vmem:[%s10523_s1 + $0x300] sm:$0xff]  }
  0x4e   :  { %7332 = vmatprep.subr.bf16.mxu1 %v8087_v33  ;;  %v8137_v32 = vld [vmem:[%s10523_s1 + $0x380] sm:$0xff]   ;;  %v1279_v33 = vrot.slane %v8941_v60, %v8715_v35  ;;  %v8163_v60 = vld [vmem:[%s10523_s1 + $0x448] sm:$0xff]  }
  0x50   :  { %7311 = vmatpush3.bf16.msra.mxu0 %v8088_v34  ;;  %v8139_v34 = vld [vmem:[%s10523_s1 + $0x478] sm:$0xff]  }
  0x51   :  { %7312 = vmatprep.subr.bf16.mxu0 %v8090_v37  ;;  %7333 = vmatpush3.bf16.msra.mxu1 %v8089_v36  ;;  %v8140_v36 = vld [vmem:[%s10523_s1 + $0x4f8] sm:$0xff]  }
  0x52   :  { %7334 = vmatprep.subr.bf16.mxu1 %v8091_v38  ;;  %v8141_v37 = vld [vmem:[%s10523_s1 + $0x438] sm:$0xff]  }
  0x53   :  { %v8142_v38 = vld [vmem:[%s10523_s1 + $0x4b8] sm:$0xff]  }
  0x54   :  { %7313 = vmatpush3.bf16.msra.mxu0 %v8092_v39  ;;  %v1295_v39 = vcombine.high %v1279_v33, %v1279_v33 }
  0x55   :  { %7314 = vmatprep.subr.bf16.mxu0 %v8094_v41  ;;  %7335 = vmatpush3.bf16.msra.mxu1 %v8093_v40  ;;  %v8143_v40 = vld [vmem:[%s10523_s1 + $0x470] sm:$0xff]  }
  0x56   :  { %7336 = vmatprep.subr.bf16.mxu1 %v8095_v42  ;;  %v8144_v41 = vld [vmem:[%s10523_s1 + $0x4f0] sm:$0xff]  }
  0x57   :  { %v8145_v42 = vld [vmem:[%s10523_s1 + $0x430] sm:$0xff]  }
  0x58   :  { %7315 = vmatpush3.bf16.msra.mxu0 %v8096_v43  ;;  %v8146_v43 = vld [vmem:[%s10523_s1 + $0x4b0] sm:$0xff]  }
  0x59   :  { %7316 = vmatprep.subr.bf16.mxu0 %v8098_v45  ;;  %7337 = vmatpush3.bf16.msra.mxu1 %v8097_v44  ;;  %v8147_v44 = vld [vmem:[%s10523_s1 + $0x468] sm:$0xff]  }
  0x5a   :  { %7338 = vmatprep.subr.bf16.mxu1 %v8099_v46  ;;  %v8148_v45 = vld [vmem:[%s10523_s1 + $0x4e8] sm:$0xff]  }
  0x5b   :  { %v8149_v46 = vld [vmem:[%s10523_s1 + $0x428] sm:$0xff]  }
  0x5c   :  { %7317 = vmatpush3.bf16.msra.mxu0 %v8100_v47  ;;  %v8150_v47 = vld [vmem:[%s10523_s1 + $0x4a8] sm:$0xff]  }
  0x5d   :  { %7318 = vmatprep.subr.bf16.mxu0 %v8102_v49  ;;  %7339 = vmatpush3.bf16.msra.mxu1 %v8101_v48  ;;  %v8151_v48 = vld [vmem:[%s10523_s1 + $0x460] sm:$0xff]  }
  0x5e   :  { %7340 = vmatprep.subr.bf16.mxu1 %v8103_v50  ;;  %v8152_v49 = vld [vmem:[%s10523_s1 + $0x4e0] sm:$0xff]  }
  0x5f   :  { %v8153_v50 = vld [vmem:[%s10523_s1 + $0x420] sm:$0xff]  }
  0x60   :  { %7319 = vmatpush3.bf16.msra.mxu0 %v8104_v51  ;;  %v8154_v51 = vld [vmem:[%s10523_s1 + $0x4a0] sm:$0xff]  }
  0x61   :  { %7348 = vmatprep.subr.bf16.mxu0 %v8106_v56  ;;  %7341 = vmatpush3.bf16.msra.mxu1 %v8105_v53  ;;  %v8156_v53 = vld [vmem:[%s10523_s1 + $0x4d8] sm:$0xff]   ;;  %v8159_v56 = vld [vmem:[%s10523_s1 + $0x450] sm:$0xff]  }
  0x62   :  { %7370 = vmatprep.subr.bf16.mxu1 %v8107_v59  ;;  %v8162_v59 = vld [vmem:[%s10523_s1 + $0x490] sm:$0xff]  }
  0x63   :  { %5362 = vmatmul.mubr.bf16.vlgmr.msra.gmra.mxu0 %v1272_v58  ;;  %v8161_v58 = vld [vmem:[%s10523_s1 + $0x410] sm:$0xff]  }
  0x64   :  { %7349 = vmatpush3.bf16.msra.mxu0 %v8108_v61  ;;  %5402 = vmatmul.mubr.bf16.vlgmr.msra.gmra.mxu1 %v1294_v1  ;;  %v8164_v61 = vld [vmem:[%s10523_s1 + $0x4c8] sm:$0xff]   ;;  %v8168_v1 = vld [vmem:[%s10523_s1 + $0x4c0] sm:$0xff]  }
  0x65   :  { %7350 = vmatprep.subr.bf16.mxu0 %v8110_v2  ;;  %7371 = vmatpush3.bf16.msra.mxu1 %v8109_v63  ;;  %v8166_v63 = vld [vmem:[%s10523_s1 + $0x488] sm:$0xff]   ;;  %v8169_v2 = vld [vmem:[%s10523_s1 + $0x400] sm:$0xff]  }
  0x66   :  { %5441 = vmatprep.mubr.bf16.mxu0 %v1293_v5  ;;  %7372 = vmatprep.subr.bf16.mxu1 %v8111_v4  ;;  %v8170_v4 = vld [vmem:[%s10523_s1 + $0x480] sm:$0xff]   ;;  %v1305_v5 = vrot.slane %v25_v3, %v8715_v35 }
  0x67   :  { %5481 = vmatprep.mubr.bf16.mxu1 %v1297_v8 }
  0x68   :  { %7351 = vmatpush3.bf16.msra.mxu0 %v8112_v6  ;;  %v1298_v6 = vcombine.high %v25_v3, %v25_v3  ;;  %v1313_v8 = vcombine.high %v1305_v5, %v1305_v5  ;;  %v8220_v3 = vld [vmem:[%s10523_s1 + $0x658] sm:$0xff]  }
  0x69   :  { %7352 = vmatprep.subr.bf16.mxu0 %v8114_v9  ;;  %7373 = vmatpush3.bf16.msra.mxu1 %v8113_v7  ;;  %v8171_v7 = vld [vmem:[%s10523_s1 + $0x578] sm:$0xff]   ;;  %v1321_v9 = vrot.slane %v1305_v5, %v8715_v35 }
  0x6a   :  { %7374 = vmatprep.subr.bf16.mxu1 %v8115_v10  ;;  %v8172_v10 = vld [vmem:[%s10523_s1 + $0x5f8] sm:$0xff]  }
  0x6b   :  { %v8222_v5 = vld [vmem:[%s10523_s1 + $0x618] sm:$0xff]  }
  0x6c   :  { %7353 = vmatpush3.bf16.msra.mxu0 %v8116_v11  ;;  %v9147_v11 = vrot.slane %v1298_v6, %v8715_v35  ;;  %v8223_v6 = vld [vmem:[%s10523_s1 + $0x698] sm:$0xff]  }
  0x6d   :  { %7354 = vmatprep.subr.bf16.mxu0 %v8118_v13  ;;  %7375 = vmatpush3.bf16.msra.mxu1 %v8117_v12  ;;  %v8173_v12 = vld [vmem:[%s10523_s1 + $0x538] sm:$0xff]   ;;  %v1335_v13 = vrot.slane %v1313_v8, %v8715_v35  ;;  %v8225_v8 = vld [vmem:[%s10523_s1 + $0x6d0] sm:$0xff]  }
  0x6e   :  { %7376 = vmatprep.subr.bf16.mxu1 %v8119_v14  ;;  %v8174_v14 = vld [vmem:[%s10523_s1 + $0x5b8] sm:$0xff]  }
  0x70   :  { %7355 = vmatpush3.bf16.msra.mxu0 %v8120_v15  ;;  %v1314_v15 = vcombine.high %v9147_v11, %v9147_v11 }
  0x71   :  { %7356 = vmatprep.subr.bf16.mxu0 %v8122_v17  ;;  %7377 = vmatpush3.bf16.msra.mxu1 %v8121_v16  ;;  %v1343_v16 = vcombine.high %v1321_v9, %v1321_v9  ;;  %v8175_v17 = vld [vmem:[%s10523_s1 + $0x570] sm:$0xff]  }
  0x72   :  { %7378 = vmatprep.subr.bf16.mxu1 %v8123_v18  ;;  %v1345_v18 = vcombine.high %v1335_v13, %v1335_v13 }
  0x74   :  { %7357 = vmatpush3.bf16.msra.mxu0 %v8124_v19  ;;  %v8176_v19 = vld [vmem:[%s10523_s1 + $0x5f0] sm:$0xff]  }
  0x75   :  { %7358 = vmatprep.subr.bf16.mxu0 %v8126_v21  ;;  %7379 = vmatpush3.bf16.msra.mxu1 %v8125_v20  ;;  %v1342_v20 = vrot.slane %v1314_v15, %v8715_v35  ;;  %v8177_v21 = vld [vmem:[%s10523_s1 + $0x530] sm:$0xff]   ;;  %v8232_v15 = vld [vmem:[%s10523_s1 + $0x640] sm:$0xff]  }
  0x76   :  { %7380 = vmatprep.subr.bf16.mxu1 %v8127_v22  ;;  %v8178_v22 = vld [vmem:[%s10523_s1 + $0x5b0] sm:$0xff]  }
  0x78   :  { %7359 = vmatpush3.bf16.msra.mxu0 %v8128_v23  ;;  %v1346_v23 = vcombine.high %v1342_v20, %v1342_v20 }
  0x79   :  { %7360 = vmatprep.subr.bf16.mxu0 %v8130_v25  ;;  %7381 = vmatpush3.bf16.msra.mxu1 %v8129_v24  ;;  %v8179_v24 = vld [vmem:[%s10523_s1 + $0x568] sm:$0xff]  }
  0x7a   :  { %7382 = vmatprep.subr.bf16.mxu1 %v8131_v26  ;;  %v8180_v25 = vld [vmem:[%s10523_s1 + $0x5e8] sm:$0xff]  }
  0x7b   :  { %v8181_v26 = vld [vmem:[%s10523_s1 + $0x528] sm:$0xff]  }
  0x7c   :  { %7361 = vmatpush3.bf16.msra.mxu0 %v8132_v27  ;;  %v8182_v27 = vld [vmem:[%s10523_s1 + $0x5a8] sm:$0xff]  }
  0x7d   :  { %7362 = vmatprep.subr.bf16.mxu0 %v8134_v29  ;;  %7383 = vmatpush3.bf16.msra.mxu1 %v8133_v28  ;;  %v8183_v28 = vld [vmem:[%s10523_s1 + $0x560] sm:$0xff]  }
  0x7e   :  { %7384 = vmatprep.subr.bf16.mxu1 %v8135_v30  ;;  %v8184_v29 = vld [vmem:[%s10523_s1 + $0x5e0] sm:$0xff]  }
  0x7f   :  { %v8185_v30 = vld [vmem:[%s10523_s1 + $0x520] sm:$0xff]  }
  0x80   :  { %7363 = vmatpush3.bf16.msra.mxu0 %v8136_v31  ;;  %v8186_v31 = vld [vmem:[%s10523_s1 + $0x5a0] sm:$0xff]  }
  0x81   :  { %7392 = vmatprep.subr.bf16.mxu0 %v8139_v34  ;;  %7385 = vmatpush3.bf16.msra.mxu1 %v8137_v32  ;;  %v8187_v32 = vld [vmem:[%s10523_s1 + $0x558] sm:$0xff]  }
  0x82   :  { %7414 = vmatprep.subr.bf16.mxu1 %v8140_v36  ;;  %v8189_v34 = vld [vmem:[%s10523_s1 + $0x518] sm:$0xff]  }
  0x83   :  { %5442 = vmatmul.mubr.bf16.vlgmr.msra.gmra.mxu0 %v1279_v33  ;;  %v8188_v33 = vld [vmem:[%s10523_s1 + $0x5d8] sm:$0xff]  }
  0x84   :  { %7393 = vmatpush3.bf16.msra.mxu0 %v8141_v37  ;;  %5482 = vmatmul.mubr.bf16.vlgmr.msra.gmra.mxu1 %v1295_v39  ;;  %v8190_v36 = vld [vmem:[%s10523_s1 + $0x598] sm:$0xff]   ;;  %v8191_v37 = vld [vmem:[%s10523_s1 + $0x550] sm:$0xff]  }
  0x85   :  { %7394 = vmatprep.subr.bf16.mxu0 %v8143_v40  ;;  %7415 = vmatpush3.bf16.msra.mxu1 %v8142_v38  ;;  %v8192_v38 = vld [vmem:[%s10523_s1 + $0x5d0] sm:$0xff]  }
  0x86   :  { %7416 = vmatprep.subr.bf16.mxu1 %v8144_v41  ;;  %5521 = vmatprep.mubr.bf16.mxu0 %v1335_v13  ;;  %v8193_v39 = vld [vmem:[%s10523_s1 + $0x510] sm:$0xff]   ;;  %v8195_v41 = vld [vmem:[%s10523_s1 + $0x548] sm:$0xff]  }
  0x87   :  { %5561 = vmatprep.mubr.bf16.mxu1 %v1345_v18  ;;  %v8194_v40 = vld [vmem:[%s10523_s1 + $0x590] sm:$0xff]   ;;  %v8230_v13 = vld [vmem:[%s10523_s1 + $0x608] sm:$0xff]   ;;  %v26_v18 = vld [vmem:[%s10524_s0 + $0x18] sm:$0xff] }
  0x88   :  { %7395 = vmatpush3.bf16.msra.mxu0 %v8145_v42  ;;  %v8196_v42 = vld [vmem:[%s10523_s1 + $0x5c8] sm:$0xff]  }
  0x89   :  { %7396 = vmatprep.subr.bf16.mxu0 %v8147_v44  ;;  %7417 = vmatpush3.bf16.msra.mxu1 %v8146_v43  ;;  %v8197_v43 = vld [vmem:[%s10523_s1 + $0x508] sm:$0xff]  }
  0x8a   :  { %7418 = vmatprep.subr.bf16.mxu1 %v8148_v45  ;;  %v8198_v44 = vld [vmem:[%s10523_s1 + $0x588] sm:$0xff]   ;;  %v8199_v45 = vld [vmem:[%s10523_s1 + $0x540] sm:$0xff]  }
  0x8c   :  { %7397 = vmatpush3.bf16.msra.mxu0 %v8149_v46  ;;  %v8200_v46 = vld [vmem:[%s10523_s1 + $0x5c0] sm:$0xff]  }
  0x8d   :  { %7398 = vmatprep.subr.bf16.mxu0 %v8151_v48  ;;  %7419 = vmatpush3.bf16.msra.mxu1 %v8150_v47  ;;  %v8201_v47 = vld [vmem:[%s10523_s1 + $0x500] sm:$0xff]  }
  0x8e   :  { %7420 = vmatprep.subr.bf16.mxu1 %v8152_v49  ;;  %v8202_v48 = vld [vmem:[%s10523_s1 + $0x580] sm:$0xff]   ;;  %v1328_v49 = vrot.slane %v9147_v11, %v8715_v35  ;;  %v8228_v11 = vld [vmem:[%s10523_s1 + $0x648] sm:$0xff]  }
  0x90   :  { %7399 = vmatpush3.bf16.msra.mxu0 %v8153_v50  ;;  %v8204_v50 = vld [vmem:[%s10523_s1 + $0x678] sm:$0xff]  }
  0x91   :  { %7400 = vmatprep.subr.bf16.mxu0 %v8155_v52  ;;  %7421 = vmatpush3.bf16.msra.mxu1 %v8154_v51  ;;  %v8205_v51 = vld [vmem:[%s10523_s1 + $0x6f8] sm:$0xff]  }
  0x92   :  { %7422 = vmatprep.subr.bf16.mxu1 %v8156_v53  ;;  %v8206_v52 = vld [vmem:[%s10523_s1 + $0x638] sm:$0xff]  }
  0x93   :  { %v8207_v53 = vld [vmem:[%s10523_s1 + $0x6b8] sm:$0xff]  }
  0x94   :  { %7401 = vmatpush3.bf16.msra.mxu0 %v8157_v54  ;;  %v1344_v54 = vcombine.high %v1328_v49, %v1328_v49 }
  0x95   :  { %7402 = vmatprep.subr.bf16.mxu0 %v8159_v56  ;;  %7423 = vmatpush3.bf16.msra.mxu1 %v8158_v55  ;;  %v8208_v55 = vld [vmem:[%s10523_s1 + $0x670] sm:$0xff]  }
  0x96   :  { %7424 = vmatprep.subr.bf16.mxu1 %v8160_v57  ;;  %v8209_v56 = vld [vmem:[%s10523_s1 + $0x6f0] sm:$0xff]  }
  0x97   :  { %v8210_v57 = vld [vmem:[%s10523_s1 + $0x630] sm:$0xff]  }
  0x98   :  { %7403 = vmatpush3.bf16.msra.mxu0 %v8161_v58  ;;  %v8211_v58 = vld [vmem:[%s10523_s1 + $0x6b0] sm:$0xff]  }
  0x99   :  { %7404 = vmatprep.subr.bf16.mxu0 %v8163_v60  ;;  %7425 = vmatpush3.bf16.msra.mxu1 %v8162_v59  ;;  %v8212_v59 = vld [vmem:[%s10523_s1 + $0x668] sm:$0xff]  }
  0x9a   :  { %7426 = vmatprep.subr.bf16.mxu1 %v8164_v61  ;;  %v8213_v60 = vld [vmem:[%s10523_s1 + $0x6e8] sm:$0xff]  }
  0x9b   :  { %v8214_v61 = vld [vmem:[%s10523_s1 + $0x628] sm:$0xff]  }
  0x9c   :  { %7405 = vmatpush3.bf16.msra.mxu0 %v8165_v62  ;;  %v8215_v62 = vld [vmem:[%s10523_s1 + $0x6a8] sm:$0xff]  }
  0x9d   :  { %7406 = vmatprep.subr.bf16.mxu0 %v8167_v0  ;;  %7427 = vmatpush3.bf16.msra.mxu1 %v8166_v63  ;;  %v8216_v63 = vld [vmem:[%s10523_s1 + $0x660] sm:$0xff]  }
  0x9e   :  { %7428 = vmatprep.subr.bf16.mxu1 %v8168_v1  ;;  %v8217_v0 = vld [vmem:[%s10523_s1 + $0x6e0] sm:$0xff]  }
  0x9f   :  { %v8218_v1 = vld [vmem:[%s10523_s1 + $0x620] sm:$0xff]  }
  0xa0   :  { %7407 = vmatpush3.bf16.msra.mxu0 %v8169_v2  ;;  %v8219_v2 = vld [vmem:[%s10523_s1 + $0x6a0] sm:$0xff]  }
  0xa1   :  { %7436 = vmatprep.subr.bf16.mxu0 %v8171_v7  ;;  %7429 = vmatpush3.bf16.msra.mxu1 %v8170_v4  ;;  %v8221_v4 = vld [vmem:[%s10523_s1 + $0x6d8] sm:$0xff]   ;;  %v8224_v7 = vld [vmem:[%s10523_s1 + $0x650] sm:$0xff]  }
  0xa2   :  { %7458 = vmatprep.subr.bf16.mxu1 %v8172_v10  ;;  %v8227_v10 = vld [vmem:[%s10523_s1 + $0x690] sm:$0xff]  }
  0xa3   :  { %5522 = vmatmul.mubr.bf16.vlgmr.msra.gmra.mxu0 %v1321_v9  ;;  %v8226_v9 = vld [vmem:[%s10523_s1 + $0x610] sm:$0xff]  }
  0xa4   :  { %7437 = vmatpush3.bf16.msra.mxu0 %v8173_v12  ;;  %5562 = vmatmul.mubr.bf16.vlgmr.msra.gmra.mxu1 %v1343_v16  ;;  %v8229_v12 = vld [vmem:[%s10523_s1 + $0x6c8] sm:$0xff]   ;;  %v8233_v16 = vld [vmem:[%s10523_s1 + $0x6c0] sm:$0xff]  }
  0xa5   :  { %7438 = vmatprep.subr.bf16.mxu0 %v8175_v17  ;;  %7459 = vmatpush3.bf16.msra.mxu1 %v8174_v14  ;;  %v8231_v14 = vld [vmem:[%s10523_s1 + $0x688] sm:$0xff]   ;;  %v8234_v17 = vld [vmem:[%s10523_s1 + $0x600] sm:$0xff]  }
  0xa6   :  { %5601 = vmatprep.mubr.bf16.mxu0 %v1342_v20  ;;  %7460 = vmatprep.subr.bf16.mxu1 %v8176_v19  ;;  %v1354_v19 = vrot.slane %v26_v18, %v8715_v35  ;;  %v8236_v20 = vld [vmem:[%s10523_s1 + $0x778] sm:$0xff]  }
  0xa7   :  { %5641 = vmatprep.mubr.bf16.mxu1 %v1346_v23 }
  0xa8   :  { %7439 = vmatpush3.bf16.msra.mxu0 %v8177_v21  ;;  %v1347_v21 = vcombine.high %v26_v18, %v26_v18  ;;  %v1362_v23 = vcombine.high %v1354_v19, %v1354_v19 }
  0xa9   :  { %7440 = vmatprep.subr.bf16.mxu0 %v8179_v24  ;;  %7461 = vmatpush3.bf16.msra.mxu1 %v8178_v22  ;;  %v8235_v22 = vld [vmem:[%s10523_s1 + $0x680] sm:$0xff]   ;;  %v1370_v24 = vrot.slane %v1354_v19, %v8715_v35  ;;  %v8273_v19 = vld [vmem:[%s10523_s1 + $0x870] sm:$0xff]  }
  0xaa   :  { %7462 = vmatprep.subr.bf16.mxu1 %v8180_v25  ;;  %v8237_v25 = vld [vmem:[%s10523_s1 + $0x7f8] sm:$0xff]  }
  0xac   :  { %7441 = vmatpush3.bf16.msra.mxu0 %v8181_v26  ;;  %v9353_v26 = vrot.slane %v1347_v21, %v8715_v35  ;;  %v8274_v21 = vld [vmem:[%s10523_s1 + $0x8f0] sm:$0xff]  }
  0xad   :  { %7442 = vmatprep.subr.bf16.mxu0 %v8183_v28  ;;  %7463 = vmatpush3.bf16.msra.mxu1 %v8182_v27  ;;  %v8238_v27 = vld [vmem:[%s10523_s1 + $0x738] sm:$0xff]   ;;  %v1384_v28 = vrot.slane %v1362_v23, %v8715_v35 }
  0xae   :  { %7464 = vmatprep.subr.bf16.mxu1 %v8184_v29  ;;  %v8239_v29 = vld [vmem:[%s10523_s1 + $0x7b8] sm:$0xff]  }
  0xb0   :  { %7443 = vmatpush3.bf16.msra.mxu0 %v8185_v30  ;;  %v1363_v30 = vcombine.high %v9353_v26, %v9353_v26 }
  0xb1   :  { %7444 = vmatprep.subr.bf16.mxu0 %v8187_v32  ;;  %7465 = vmatpush3.bf16.msra.mxu1 %v8186_v31  ;;  %v1392_v31 = vcombine.high %v1370_v24, %v1370_v24  ;;  %v8240_v32 = vld [vmem:[%s10523_s1 + $0x770] sm:$0xff]  }
  0xb2   :  { %7466 = vmatprep.subr.bf16.mxu1 %v8188_v33  ;;  %v1394_v33 = vcombine.high %v1384_v28, %v1384_v28 }
  0xb4   :  { %7445 = vmatpush3.bf16.msra.mxu0 %v8189_v34 }
  0xb5   :  { %7446 = vmatprep.subr.bf16.mxu0 %v8191_v37  ;;  %7467 = vmatpush3.bf16.msra.mxu1 %v8190_v36  ;;  %v6637_v36 = vld [vmem:[%s10525_s2] ss:$0 sm:$0xff]  ;;  %v8241_v37 = vld [vmem:[%s10523_s1 + $0x7f0] sm:$0xff]  }
  0xb6   :  { %7468 = vmatprep.subr.bf16.mxu1 %v8192_v38  ;;  %v1391_v38 = vrot.slane %v1363_v30, %v8715_v35  ;;  %v8278_v30 = vld [vmem:[%s10523_s1 + $0x8e8] sm:$0xff]  }
  0xb8   :  { %7447 = vmatpush3.bf16.msra.mxu0 %v8193_v39  ;;  %v8242_v39 = vld [vmem:[%s10523_s1 + $0x730] sm:$0xff]  }
  0xb9   :  { %7448 = vmatprep.subr.bf16.mxu0 %v8195_v41  ;;  %7469 = vmatpush3.bf16.msra.mxu1 %v8194_v40 }
  0xba   :  { %7470 = vmatprep.subr.bf16.mxu1 %v8196_v42  ;;  %v8243_v42 = vld [vmem:[%s10523_s1 + $0x7b0] sm:$0xff]  }
  0xbc   :  { %7449 = vmatpush3.bf16.msra.mxu0 %v8197_v43  ;;  %v1395_v43 = vcombine.high %v1391_v38, %v1391_v38 }
  0xbd   :  { %7450 = vmatprep.subr.bf16.mxu0 %v8199_v45  ;;  %7471 = vmatpush3.bf16.msra.mxu1 %v8198_v44  ;;  %v8244_v45 = vld [vmem:[%s10523_s1 + $0x768] sm:$0xff]  }
  0xbe   :  { %7472 = vmatprep.subr.bf16.mxu1 %v8200_v46 }
  0xc0   :  { %7451 = vmatpush3.bf16.msra.mxu0 %v8201_v47 }
  0xc1   :  { %7480 = vmatprep.subr.bf16.mxu0 %v8204_v50  ;;  %7473 = vmatpush3.bf16.msra.mxu1 %v8202_v48  ;;  %v8245_v48 = vld [vmem:[%s10523_s1 + $0x7e8] sm:$0xff]  }
  0xc2   :  { %7502 = vmatprep.subr.bf16.mxu1 %v8205_v51  ;;  %v8246_v51 = vld [vmem:[%s10523_s1 + $0x728] sm:$0xff]  }
  0xc3   :  { %5602 = vmatmul.mubr.bf16.vlgmr.msra.gmra.mxu0 %v1328_v49 }
  0xc4   :  { %7481 = vmatpush3.bf16.msra.mxu0 %v8206_v52  ;;  %5642 = vmatmul.mubr.bf16.vlgmr.msra.gmra.mxu1 %v1344_v54  ;;  %v8247_v54 = vld [vmem:[%s10523_s1 + $0x7a8] sm:$0xff]  }
  0xc5   :  { %7482 = vmatprep.subr.bf16.mxu0 %v8208_v55  ;;  %7503 = vmatpush3.bf16.msra.mxu1 %v8207_v53 }
  0xc6   :  { %7504 = vmatprep.subr.bf16.mxu1 %v8209_v56  ;;  %5681 = vmatprep.mubr.bf16.mxu0 %v1384_v28  ;;  %v8248_v56 = vld [vmem:[%s10523_s1 + $0x760] sm:$0xff]  }
  0xc7   :  { %5721 = vmatprep.mubr.bf16.mxu1 %v1394_v33  ;;  %v8279_v33 = vld [vmem:[%s10523_s1 + $0x828] sm:$0xff]  }
  0xc8   :  { %7483 = vmatpush3.bf16.msra.mxu0 %v8210_v57 }
  0xc9   :  { %7484 = vmatprep.subr.bf16.mxu0 %v8212_v59  ;;  %7505 = vmatpush3.bf16.msra.mxu1 %v8211_v58  ;;  %v8249_v58 = vld [vmem:[%s10523_s1 + $0x7e0] sm:$0xff]  }
  0xca   :  { %7506 = vmatprep.subr.bf16.mxu1 %v8213_v60  ;;  %v8250_v59 = vld [vmem:[%s10523_s1 + $0x720] sm:$0xff]  }
  0xcb   :  { %v8251_v60 = vld [vmem:[%s10523_s1 + $0x7a0] sm:$0xff]  }
  0xcc   :  { %7485 = vmatpush3.bf16.msra.mxu0 %v8214_v61  ;;  %v8252_v61 = vld [vmem:[%s10523_s1 + $0x758] sm:$0xff]  }
  0xcd   :  { %7486 = vmatprep.subr.bf16.mxu0 %v8216_v63  ;;  %7507 = vmatpush3.bf16.msra.mxu1 %v8215_v62  ;;  %v8253_v62 = vld [vmem:[%s10523_s1 + $0x7d8] sm:$0xff]  }
  0xce   :  { %7508 = vmatprep.subr.bf16.mxu1 %v8217_v0  ;;  %v8254_v63 = vld [vmem:[%s10523_s1 + $0x718] sm:$0xff]  }
  0xcf   :  { %v8255_v0 = vld [vmem:[%s10523_s1 + $0x798] sm:$0xff]  }
  0xd0   :  { %7487 = vmatpush3.bf16.msra.mxu0 %v8218_v1  ;;  %v8256_v1 = vld [vmem:[%s10523_s1 + $0x750] sm:$0xff]  }
  0xd1   :  { %7488 = vmatprep.subr.bf16.mxu0 %v8220_v3  ;;  %7509 = vmatpush3.bf16.msra.mxu1 %v8219_v2  ;;  %v8257_v2 = vld [vmem:[%s10523_s1 + $0x7d0] sm:$0xff]  }
  0xd2   :  { %7510 = vmatprep.subr.bf16.mxu1 %v8221_v4  ;;  %v8258_v3 = vld [vmem:[%s10523_s1 + $0x710] sm:$0xff]  }
  0xd3   :  { %v8259_v4 = vld [vmem:[%s10523_s1 + $0x790] sm:$0xff]  }
  0xd4   :  { %7489 = vmatpush3.bf16.msra.mxu0 %v8222_v5  ;;  %v8260_v5 = vld [vmem:[%s10523_s1 + $0x748] sm:$0xff]  }
  0xd5   :  { %7490 = vmatprep.subr.bf16.mxu0 %v8224_v7  ;;  %7511 = vmatpush3.bf16.msra.mxu1 %v8223_v6  ;;  %v8261_v6 = vld [vmem:[%s10523_s1 + $0x7c8] sm:$0xff]  }
  0xd6   :  { %7512 = vmatprep.subr.bf16.mxu1 %v8225_v8  ;;  %v8262_v7 = vld [vmem:[%s10523_s1 + $0x708] sm:$0xff]  }
  0xd7   :  { %v8263_v8 = vld [vmem:[%s10523_s1 + $0x788] sm:$0xff]  }
  0xd8   :  { %7491 = vmatpush3.bf16.msra.mxu0 %v8226_v9  ;;  %v8264_v9 = vld [vmem:[%s10523_s1 + $0x740] sm:$0xff]  }
  0xd9   :  { %7492 = vmatprep.subr.bf16.mxu0 %v8228_v11  ;;  %7513 = vmatpush3.bf16.msra.mxu1 %v8227_v10  ;;  %v8265_v10 = vld [vmem:[%s10523_s1 + $0x7c0] sm:$0xff]  }
  0xda   :  { %7514 = vmatprep.subr.bf16.mxu1 %v8229_v12  ;;  %v8266_v11 = vld [vmem:[%s10523_s1 + $0x700] sm:$0xff]  }
  0xdb   :  { %v8267_v12 = vld [vmem:[%s10523_s1 + $0x780] sm:$0xff]  }
  0xdc   :  { %7493 = vmatpush3.bf16.msra.mxu0 %v8230_v13  ;;  %v1377_v13 = vrot.slane %v9353_v26, %v8715_v35 }
  0xdd   :  { %7494 = vmatprep.subr.bf16.mxu0 %v8232_v15  ;;  %7515 = vmatpush3.bf16.msra.mxu1 %v8231_v14  ;;  %v8269_v14 = vld [vmem:[%s10523_s1 + $0x878] sm:$0xff]  }
  0xde   :  { %7516 = vmatprep.subr.bf16.mxu1 %v8233_v16  ;;  %v8270_v15 = vld [vmem:[%s10523_s1 + $0x8f8] sm:$0xff]   ;;  %v1393_v18 = vcombine.high %v1377_v13, %v1377_v13 }
  0xdf   :  { %v8271_v16 = vld [vmem:[%s10523_s1 + $0x838] sm:$0xff]  }
  0xe0   :  { %7495 = vmatpush3.bf16.msra.mxu0 %v8234_v17  ;;  %v8272_v17 = vld [vmem:[%s10523_s1 + $0x8b8] sm:$0xff]  }
  0xe1   :  { %7524 = vmatprep.subr.bf16.mxu0 %v8236_v20  ;;  %7517 = vmatpush3.bf16.msra.mxu1 %v8235_v22  ;;  %v8275_v22 = vld [vmem:[%s10523_s1 + $0x830] sm:$0xff]  }
  0xe2   :  { %7546 = vmatprep.subr.bf16.mxu1 %v8237_v25  ;;  %v8276_v25 = vld [vmem:[%s10523_s1 + $0x8b0] sm:$0xff]  }
  0xe3   :  { %v7232_v34 = vpop.f32.mrf.mxu0  ;;  %5682 = vmatmul.mubr.bf16.vlgmr.msra.gmra.mxu0 %v1370_v24 }
  0xe4   :  { %v7254_v40 = vpop.f32.mrf.mxu1  ;;  %7525 = vmatpush3.bf16.msra.mxu0 %v8238_v27  ;;  %5722 = vmatmul.mubr.bf16.vlgmr.msra.gmra.mxu1 %v1392_v31  ;;  %v8277_v27 = vld [vmem:[%s10523_s1 + $0x868] sm:$0xff]  }
  0xe5   :  { %v7233_v41 = vpop.f32.mrf.mxu0  ;;  %7526 = vmatprep.subr.bf16.mxu0 %v8240_v32  ;;  %7547 = vmatpush3.bf16.msra.mxu1 %v8239_v29 }
  0xe6   :  { %v7234_v44 = vadd.f32 %v7233_v41, %v7232_v34  ;;  %v7255_v46 = vpop.f32.mrf.mxu1  ;;  %5761 = vmatprep.mubr.bf16.mxu0 %v1391_v38  ;;  %7548 = vmatprep.subr.bf16.mxu1 %v8241_v37  ;;  %v8280_v37 = vld [vmem:[%s10523_s1 + $0x8a8] sm:$0xff]   ;;  %v8282_v41 = vld [vmem:[%s10523_s1 + $0x8e0] sm:$0xff]  }
  0xe7   :  { %v7235_v47 = vpop.f32.mrf.mxu0  ;;  %v7256_v50 = vadd.f32 %v7255_v46, %v7254_v40  ;;  %5801 = vmatprep.mubr.bf16.mxu1 %v1395_v43  ;;  %v8284_v43 = vld [vmem:[%s10523_s1 + $0x8a0] sm:$0xff]   ;;  %v8287_v46 = vld [vmem:[%s10523_s1 + $0x818] sm:$0xff]  }
  0xe8   :  { %v5204_v49 = vadd.f32 %v7234_v44, %v6637_v36  ;;  %v7257_v52 = vpop.f32.mrf.mxu1  ;;  %7527 = vmatpush3.bf16.msra.mxu0 %v8242_v39  ;;  %v8281_v39 = vld [vmem:[%s10523_s1 + $0x860] sm:$0xff]   ;;  %v8285_v44 = vld [vmem:[%s10523_s1 + $0x858] sm:$0xff]  }
  0xe9   :  { %v7236_v53 = vpop.f32.mrf.mxu0  ;;  %7528 = vmatprep.subr.bf16.mxu0 %v8244_v45  ;;  %7549 = vmatpush3.bf16.msra.mxu1 %v8243_v42  ;;  %v8283_v42 = vld [vmem:[%s10523_s1 + $0x820] sm:$0xff]   ;;  %v8286_v45 = vld [vmem:[%s10523_s1 + $0x8d8] sm:$0xff]   ;;  %v8293_v52 = vld [vmem:[%s10523_s1 + $0x848] sm:$0xff]  }
  0xea   :  { %v9392_v55 = vadd.f32 %v7256_v50, %v5204_v49  ;;  %v7258_v57 = vpop.f32.mrf.mxu1  ;;  %7550 = vmatprep.subr.bf16.mxu1 %v8245_v48  ;;  %v8288_v47 = vld [vmem:[%s10523_s1 + $0x898] sm:$0xff]   ;;  %v8289_v48 = vld [vmem:[%s10523_s1 + $0x850] sm:$0xff]   ;;  %v8294_v53 = vld [vmem:[%s10523_s1 + $0x8c8] sm:$0xff]  }
  0xeb   :  { %v8290_v49 = vld [vmem:[%s10523_s1 + $0x8d0] sm:$0xff]   ;;  %v8298_v57 = vld [vmem:[%s10523_s1 + $0x8c0] sm:$0xff]  }
  0xec   :  { %7529 = vmatpush3.bf16.msra.mxu0 %v8246_v51  ;;  %v8291_v50 = vld [vmem:[%s10523_s1 + $0x810] sm:$0xff]  }
  0xed   :  { %7530 = vmatprep.subr.bf16.mxu0 %v8248_v56  ;;  %7551 = vmatpush3.bf16.msra.mxu1 %v8247_v54  ;;  %v8292_v51 = vld [vmem:[%s10523_s1 + $0x890] sm:$0xff]   ;;  %v8295_v54 = vld [vmem:[%s10523_s1 + $0x808] sm:$0xff]   ;;  %v8297_v56 = vld [vmem:[%s10523_s1 + $0x840] sm:$0xff]  }
  0xee   :  { %7552 = vmatprep.subr.bf16.mxu1 %v8249_v58  ;;  %v8299_v58 = vld [vmem:[%s10523_s1 + $0x800] sm:$0xff]  }
  0xf0   :  { %7531 = vmatpush3.bf16.msra.mxu0 %v8250_v59  ;;  %v27_v59 = vld [vmem:[%s10524_s0 + $0x20] sm:$0xff] }
  0xf1   :  { %7532 = vmatprep.subr.bf16.mxu0 %v8252_v61  ;;  %7553 = vmatpush3.bf16.msra.mxu1 %v8251_v60  ;;  %v8300_v60 = vld [vmem:[%s10523_s1 + $0x880] sm:$0xff]   ;;  %v1403_v61 = vrot.slane %v27_v59, %v8715_v35 }
  0xf2   :  { %7554 = vmatprep.subr.bf16.mxu1 %v8253_v62  ;;  %v1396_v62 = vcombine.high %v27_v59, %v27_v59  ;;  %v8338_v59 = vld [vmem:[%s10523_s1 + $0xa70] sm:$0xff]  }
  0xf4   :  { %7533 = vmatpush3.bf16.msra.mxu0 %v8254_v63  ;;  %v8301_v63 = vld [vmem:[%s10523_s1 + $0x978] sm:$0xff]  }
  0xf5   :  { %7534 = vmatprep.subr.bf16.mxu0 %v8256_v1  ;;  %7555 = vmatpush3.bf16.msra.mxu1 %v8255_v0  ;;  %v1411_v0 = vcombine.high %v1403_v61, %v1403_v61  ;;  %v1419_v1 = vrot.slane %v1403_v61, %v8715_v35  ;;  %v8339_v61 = vld [vmem:[%s10523_s1 + $0xaf0] sm:$0xff]  }
  0xf6   :  { %7556 = vmatprep.subr.bf16.mxu1 %v8257_v2  ;;  %v8302_v2 = vld [vmem:[%s10523_s1 + $0x9f8] sm:$0xff]  }
  0xf8   :  { %7535 = vmatpush3.bf16.msra.mxu0 %v8258_v3  ;;  %v9567_v3 = vrot.slane %v1396_v62, %v8715_v35  ;;  %v8340_v62 = vld [vmem:[%s10523_s1 + $0xa30] sm:$0xff]  }
  0xf9   :  { %7536 = vmatprep.subr.bf16.mxu0 %v8260_v5  ;;  %7557 = vmatpush3.bf16.msra.mxu1 %v8259_v4  ;;  %v8303_v4 = vld [vmem:[%s10523_s1 + $0x938] sm:$0xff]   ;;  %v1433_v5 = vrot.slane %v1411_v0, %v8715_v35 }
  0xfa   :  { %7558 = vmatprep.subr.bf16.mxu1 %v8261_v6  ;;  %v8304_v6 = vld [vmem:[%s10523_s1 + $0x9b8] sm:$0xff]  }
  0xfc   :  { %7537 = vmatpush3.bf16.msra.mxu0 %v8262_v7  ;;  %v1412_v7 = vcombine.high %v9567_v3, %v9567_v3 }
  0xfd   :  { %7538 = vmatprep.subr.bf16.mxu0 %v8264_v9  ;;  %7559 = vmatpush3.bf16.msra.mxu1 %v8263_v8  ;;  %v1441_v8 = vcombine.high %v1419_v1, %v1419_v1  ;;  %v8305_v9 = vld [vmem:[%s10523_s1 + $0x970] sm:$0xff]  }
  0xfe   :  { %7560 = vmatprep.subr.bf16.mxu1 %v8265_v10  ;;  %v1443_v10 = vcombine.high %v1433_v5, %v1433_v5 }
 0x100   :  { %7539 = vmatpush3.bf16.msra.mxu0 %v8266_v11 }
 0x101   :  { %7568 = vmatprep.subr.bf16.mxu0 %v8269_v14  ;;  %7561 = vmatpush3.bf16.msra.mxu1 %v8267_v12  ;;  %v8306_v12 = vld [vmem:[%s10523_s1 + $0x9f0] sm:$0xff]  }
 0x102   :  { %7590 = vmatprep.subr.bf16.mxu1 %v8270_v15  ;;  %v8307_v14 = vld [vmem:[%s10523_s1 + $0x930] sm:$0xff]  }
 0x103   :  { %v7276_v20 = vpop.f32.mrf.mxu0  ;;  %5762 = vmatmul.mubr.bf16.vlgmr.msra.gmra.mxu0 %v1377_v13  ;;  %v1440_v13 = vrot.slane %v1412_v7, %v8715_v35 }
 0x104   :  { %v7298_v23 = vpop.f32.mrf.mxu1  ;;  %7569 = vmatpush3.bf16.msra.mxu0 %v8271_v16  ;;  %5802 = vmatmul.mubr.bf16.vlgmr.msra.gmra.mxu1 %v1393_v18 }
 0x105   :  { %v7277_v24 = vpop.f32.mrf.mxu0  ;;  %7570 = vmatprep.subr.bf16.mxu0 %v8273_v19  ;;  %7591 = vmatpush3.bf16.msra.mxu1 %v8272_v17  ;;  %v8308_v17 = vld [vmem:[%s10523_s1 + $0x9b0] sm:$0xff]   ;;  %v1444_v18 = vcombine.high %v1440_v13, %v1440_v13 }
 0x106   :  { %v7278_v26 = vadd.f32 %v7277_v24, %v7276_v20  ;;  %v7299_v28 = vpop.f32.mrf.mxu1  ;;  %7592 = vmatprep.subr.bf16.mxu1 %v8274_v21  ;;  %5841 = vmatprep.mubr.bf16.mxu0 %v1433_v5  ;;  %v8309_v20 = vld [vmem:[%s10523_s1 + $0x968] sm:$0xff]  }
 0x107   :  { %v7279_v29 = vpop.f32.mrf.mxu0  ;;  %v7300_v32 = vadd.f32 %v7299_v28, %v7298_v23  ;;  %5881 = vmatprep.mubr.bf16.mxu1 %v1443_v10  ;;  %v8310_v23 = vld [vmem:[%s10523_s1 + $0x9e8] sm:$0xff]  }
 0x108   :  { %v5284_v31 = vadd.f32 %v7278_v26, %v9392_v55  ;;  %v7301_v34 = vpop.f32.mrf.mxu1  ;;  %7571 = vmatpush3.bf16.msra.mxu0 %v8275_v22  ;;  %v8296_v55 = vld [vmem:[%s10523_s1 + $0x888] sm:$0xff]  }
 0x109   :  { %v7280_v36 = vpop.f32.mrf.mxu0  ;;  %7572 = vmatprep.subr.bf16.mxu0 %v8277_v27  ;;  %7593 = vmatpush3.bf16.msra.mxu1 %v8276_v25  ;;  %v8311_v26 = vld [vmem:[%s10523_s1 + $0x928] sm:$0xff]   ;;  %v8315_v34 = vld [vmem:[%s10523_s1 + $0x920] sm:$0xff]  }
 0x10a   :  { %v9493_v38 = vadd.f32 %v7300_v32, %v5284_v31  ;;  %v7302_v40 = vpop.f32.mrf.mxu1  ;;  %7594 = vmatprep.subr.bf16.mxu1 %v8278_v30  ;;  %v8312_v29 = vld [vmem:[%s10523_s1 + $0x9a8] sm:$0xff]   ;;  %v8313_v31 = vld [vmem:[%s10523_s1 + $0x960] sm:$0xff]  }
 0x10b   :  { %v8316_v36 = vld [vmem:[%s10523_s1 + $0x9a0] sm:$0xff]   ;;  %v8320_v40 = vld [vmem:[%s10523_s1 + $0x998] sm:$0xff]  }
 0x10c   :  { %7573 = vmatpush3.bf16.msra.mxu0 %v8279_v33  ;;  %v8314_v33 = vld [vmem:[%s10523_s1 + $0x9e0] sm:$0xff]  }
 0x10d   :  { %7574 = vmatprep.subr.bf16.mxu0 %v8281_v39  ;;  %7595 = vmatpush3.bf16.msra.mxu1 %v8280_v37  ;;  %v8317_v37 = vld [vmem:[%s10523_s1 + $0x958] sm:$0xff]  }
 0x10e   :  { %7596 = vmatprep.subr.bf16.mxu1 %v8282_v41  ;;  %v8319_v39 = vld [vmem:[%s10523_s1 + $0x918] sm:$0xff]   ;;  %v8321_v41 = vld [vmem:[%s10523_s1 + $0x950] sm:$0xff]  }
 0x110   :  { %7575 = vmatpush3.bf16.msra.mxu0 %v8283_v42  ;;  %v8322_v42 = vld [vmem:[%s10523_s1 + $0x9d0] sm:$0xff]  }
 0x111   :  { %7576 = vmatprep.subr.bf16.mxu0 %v8285_v44  ;;  %7597 = vmatpush3.bf16.msra.mxu1 %v8284_v43  ;;  %v8323_v43 = vld [vmem:[%s10523_s1 + $0x910] sm:$0xff]  }
 0x112   :  { %7598 = vmatprep.subr.bf16.mxu1 %v8286_v45  ;;  %v8324_v44 = vld [vmem:[%s10523_s1 + $0x990] sm:$0xff]   ;;  %v8325_v45 = vld [vmem:[%s10523_s1 + $0x948] sm:$0xff]  }
 0x114   :  { %7577 = vmatpush3.bf16.msra.mxu0 %v8287_v46  ;;  %v8326_v46 = vld [vmem:[%s10523_s1 + $0x9c8] sm:$0xff]  }
 0x115   :  { %7578 = vmatprep.subr.bf16.mxu0 %v8289_v48  ;;  %7599 = vmatpush3.bf16.msra.mxu1 %v8288_v47  ;;  %v8327_v47 = vld [vmem:[%s10523_s1 + $0x908] sm:$0xff]  }
 0x116   :  { %7600 = vmatprep.subr.bf16.mxu1 %v8290_v49  ;;  %v8328_v48 = vld [vmem:[%s10523_s1 + $0x988] sm:$0xff]   ;;  %v8329_v49 = vld [vmem:[%s10523_s1 + $0x940] sm:$0xff]  }
 0x118   :  { %7579 = vmatpush3.bf16.msra.mxu0 %v8291_v50  ;;  %v8330_v50 = vld [vmem:[%s10523_s1 + $0x9c0] sm:$0xff]  }
 0x119   :  { %7580 = vmatprep.subr.bf16.mxu0 %v8293_v52  ;;  %7601 = vmatpush3.bf16.msra.mxu1 %v8292_v51  ;;  %v8331_v51 = vld [vmem:[%s10523_s1 + $0x900] sm:$0xff]  }
 0x11a   :  { %7602 = vmatprep.subr.bf16.mxu1 %v8294_v53  ;;  %v8332_v52 = vld [vmem:[%s10523_s1 + $0x980] sm:$0xff]   ;;  %v1426_v53 = vrot.slane %v9567_v3, %v8715_v35  ;;  %v8342_v3 = vld [vmem:[%s10523_s1 + $0xa68] sm:$0xff]  }
 0x11c   :  { %7581 = vmatpush3.bf16.msra.mxu0 %v8295_v54  ;;  %v8334_v54 = vld [vmem:[%s10523_s1 + $0xa78] sm:$0xff]  }
 0x11d   :  { %7582 = vmatprep.subr.bf16.mxu0 %v8297_v56  ;;  %7603 = vmatpush3.bf16.msra.mxu1 %v8296_v55  ;;  %v8335_v55 = vld [vmem:[%s10523_s1 + $0xaf8] sm:$0xff]  }
 0x11e   :  { %7604 = vmatprep.subr.bf16.mxu1 %v8298_v57  ;;  %v8336_v56 = vld [vmem:[%s10523_s1 + $0xa38] sm:$0xff]  }
 0x11f   :  { %v8337_v57 = vld [vmem:[%s10523_s1 + $0xab8] sm:$0xff]  }
 0x120   :  { %7583 = vmatpush3.bf16.msra.mxu0 %v8299_v58  ;;  %v1442_v58 = vcombine.high %v1426_v53, %v1426_v53 }
 0x121   :  { %7612 = vmatprep.subr.bf16.mxu0 %v8301_v63  ;;  %7605 = vmatpush3.bf16.msra.mxu1 %v8300_v60 }
 0x122   :  { %7634 = vmatprep.subr.bf16.mxu1 %v8302_v2 }
 0x123   :  { %v7320_v11 = vpop.f32.mrf.mxu0  ;;  %5842 = vmatmul.mubr.bf16.vlgmr.msra.gmra.mxu0 %v1419_v1  ;;  %v8341_v1 = vld [vmem:[%s10523_s1 + $0xab0] sm:$0xff]  }
 0x124   :  { %v7342_v15 = vpop.f32.mrf.mxu1  ;;  %7613 = vmatpush3.bf16.msra.mxu0 %v8303_v4  ;;  %5882 = vmatmul.mubr.bf16.vlgmr.msra.gmra.mxu1 %v1441_v8 }
 0x125   :  { %v7321_v16 = vpop.f32.mrf.mxu0  ;;  %7614 = vmatprep.subr.bf16.mxu0 %v8305_v9  ;;  %7635 = vmatpush3.bf16.msra.mxu1 %v8304_v6  ;;  %v8343_v6 = vld [vmem:[%s10523_s1 + $0xae8] sm:$0xff]  }
 0x126   :  { %v7322_v19 = vadd.f32 %v7321_v16, %v7320_v11  ;;  %v7343_v21 = vpop.f32.mrf.mxu1  ;;  %5921 = vmatprep.mubr.bf16.mxu0 %v1440_v13  ;;  %7636 = vmatprep.subr.bf16.mxu1 %v8306_v12  ;;  %v8344_v9 = vld [vmem:[%s10523_s1 + $0xa28] sm:$0xff]   ;;  %v8347_v16 = vld [vmem:[%s10523_s1 + $0xae0] sm:$0xff]  }
 0x127   :  { %v7323_v22 = vpop.f32.mrf.mxu0  ;;  %v7344_v25 = vadd.f32 %v7343_v21, %v7342_v15  ;;  %5961 = vmatprep.mubr.bf16.mxu1 %v1444_v18  ;;  %v8345_v12 = vld [vmem:[%s10523_s1 + $0xaa8] sm:$0xff]   ;;  %v8349_v18 = vld [vmem:[%s10523_s1 + $0xaa0] sm:$0xff]   ;;  %v8352_v21 = vld [vmem:[%s10523_s1 + $0xa18] sm:$0xff]  }
 0x128   :  { %v5364_v24 = vadd.f32 %v7322_v19, %v9493_v38  ;;  %v7345_v27 = vpop.f32.mrf.mxu1  ;;  %7615 = vmatpush3.bf16.msra.mxu0 %v8307_v14  ;;  %v8318_v38 = vld [vmem:[%s10523_s1 + $0x9d8] sm:$0xff]   ;;  %v8346_v14 = vld [vmem:[%s10523_s1 + $0xa60] sm:$0xff]  }
 0x129   :  { %v7324_v28 = vpop.f32.mrf.mxu0  ;;  %7616 = vmatprep.subr.bf16.mxu0 %v8309_v20  ;;  %7637 = vmatpush3.bf16.msra.mxu1 %v8308_v17  ;;  %v8348_v17 = vld [vmem:[%s10523_s1 + $0xa20] sm:$0xff]   ;;  %v8350_v19 = vld [vmem:[%s10523_s1 + $0xa58] sm:$0xff]   ;;  %v8358_v27 = vld [vmem:[%s10523_s1 + $0xa48] sm:$0xff]  }
 0x12a   :  { %v9604_v30 = vadd.f32 %v7344_v25, %v5364_v24  ;;  %v7346_v32 = vpop.f32.mrf.mxu1  ;;  %7638 = vmatprep.subr.bf16.mxu1 %v8310_v23  ;;  %v8351_v20 = vld [vmem:[%s10523_s1 + $0xad8] sm:$0xff]   ;;  %v8354_v23 = vld [vmem:[%s10523_s1 + $0xa50] sm:$0xff]   ;;  %v8359_v28 = vld [vmem:[%s10523_s1 + $0xac8] sm:$0xff]  }
 0x12b   :  { %v8353_v22 = vld [vmem:[%s10523_s1 + $0xa98] sm:$0xff]   ;;  %v8355_v24 = vld [vmem:[%s10523_s1 + $0xad0] sm:$0xff]   ;;  %v8363_v32 = vld [vmem:[%s10523_s1 + $0xac0] sm:$0xff]  }
 0x12c   :  { %7617 = vmatpush3.bf16.msra.mxu0 %v8311_v26  ;;  %v8356_v25 = vld [vmem:[%s10523_s1 + $0xa10] sm:$0xff]  }
 0x12d   :  { %7618 = vmatprep.subr.bf16.mxu0 %v8313_v31  ;;  %7639 = vmatpush3.bf16.msra.mxu1 %v8312_v29  ;;  %v8357_v26 = vld [vmem:[%s10523_s1 + $0xa90] sm:$0xff]   ;;  %v8360_v29 = vld [vmem:[%s10523_s1 + $0xa08] sm:$0xff]   ;;  %v8362_v31 = vld [vmem:[%s10523_s1 + $0xa40] sm:$0xff]  }
 0x12e   :  { %7640 = vmatprep.subr.bf16.mxu1 %v8314_v33  ;;  %v8364_v33 = vld [vmem:[%s10523_s1 + $0xa00] sm:$0xff]  }
 0x130   :  { %7619 = vmatpush3.bf16.msra.mxu0 %v8315_v34  ;;  %v28_v34 = vld [vmem:[%s10524_s0 + $0x28] sm:$0xff] }
 0x131   :  { %7620 = vmatprep.subr.bf16.mxu0 %v8317_v37  ;;  %7641 = vmatpush3.bf16.msra.mxu1 %v8316_v36  ;;  %v1452_v36 = vrot.slane %v28_v34, %v8715_v35  ;;  %v8366_v37 = vld [vmem:[%s10523_s1 + $0xb78] sm:$0xff]  }
 0x132   :  { %7642 = vmatprep.subr.bf16.mxu1 %v8318_v38  ;;  %v1445_v38 = vcombine.high %v28_v34, %v28_v34 }
 0x134   :  { %7621 = vmatpush3.bf16.msra.mxu0 %v8319_v39  ;;  %v8365_v39 = vld [vmem:[%s10523_s1 + $0xa80] sm:$0xff]  }
 0x135   :  { %7622 = vmatprep.subr.bf16.mxu0 %v8321_v41  ;;  %7643 = vmatpush3.bf16.msra.mxu1 %v8320_v40  ;;  %v1460_v40 = vcombine.high %v1452_v36, %v1452_v36  ;;  %v1468_v41 = vrot.slane %v1452_v36, %v8715_v35  ;;  %v8403_v36 = vld [vmem:[%s10523_s1 + $0xc70] sm:$0xff]  }
 0x136   :  { %7644 = vmatprep.subr.bf16.mxu1 %v8322_v42  ;;  %v8367_v42 = vld [vmem:[%s10523_s1 + $0xbf8] sm:$0xff]  }
 0x138   :  { %7623 = vmatpush3.bf16.msra.mxu0 %v8323_v43  ;;  %v9779_v43 = vrot.slane %v1445_v38, %v8715_v35 }
 0x139   :  { %7624 = vmatprep.subr.bf16.mxu0 %v8325_v45  ;;  %7645 = vmatpush3.bf16.msra.mxu1 %v8324_v44  ;;  %v8368_v44 = vld [vmem:[%s10523_s1 + $0xb38] sm:$0xff]   ;;  %v1482_v45 = vrot.slane %v1460_v40, %v8715_v35  ;;  %v8405_v40 = vld [vmem:[%s10523_s1 + $0xc30] sm:$0xff]  }
 0x13a   :  { %7646 = vmatprep.subr.bf16.mxu1 %v8326_v46  ;;  %v8369_v46 = vld [vmem:[%s10523_s1 + $0xbb8] sm:$0xff]  }
 0x13c   :  { %7625 = vmatpush3.bf16.msra.mxu0 %v8327_v47  ;;  %v1461_v47 = vcombine.high %v9779_v43, %v9779_v43 }
 0x13d   :  { %7626 = vmatprep.subr.bf16.mxu0 %v8329_v49  ;;  %7647 = vmatpush3.bf16.msra.mxu1 %v8328_v48  ;;  %v1490_v49 = vcombine.high %v1468_v41, %v1468_v41 }
 0x13e   :  { %7648 = vmatprep.subr.bf16.mxu1 %v8330_v50  ;;  %v8370_v50 = vld [vmem:[%s10523_s1 + $0xb70] sm:$0xff]  }
 0x140   :  { %7627 = vmatpush3.bf16.msra.mxu0 %v8331_v51  ;;  %v1492_v51 = vcombine.high %v1482_v45, %v1482_v45 }
 0x141   :  { %7656 = vmatprep.subr.bf16.mxu0 %v8334_v54  ;;  %7649 = vmatpush3.bf16.msra.mxu1 %v8332_v52  ;;  %v8371_v52 = vld [vmem:[%s10523_s1 + $0xbf0] sm:$0xff]  }
 0x142   :  { %7678 = vmatprep.subr.bf16.mxu1 %v8335_v55 }
 0x143   :  { %v7364_v60 = vpop.f32.mrf.mxu0  ;;  %5922 = vmatmul.mubr.bf16.vlgmr.msra.gmra.mxu0 %v1426_v53  ;;  %v1489_v53 = vrot.slane %v1461_v47, %v8715_v35 }
 0x144   :  { %v7386_v63 = vpop.f32.mrf.mxu1  ;;  %7657 = vmatpush3.bf16.msra.mxu0 %v8336_v56  ;;  %5962 = vmatmul.mubr.bf16.vlgmr.msra.gmra.mxu1 %v1442_v58  ;;  %v8372_v56 = vld [vmem:[%s10523_s1 + $0xb30] sm:$0xff]  }
 0x145   :  { %v7365_v0 = vpop.f32.mrf.mxu0  ;;  %7658 = vmatprep.subr.bf16.mxu0 %v8338_v59  ;;  %7679 = vmatpush3.bf16.msra.mxu1 %v8337_v57  ;;  %v8373_v58 = vld [vmem:[%s10523_s1 + $0xbb0] sm:$0xff]   ;;  %v1493_v59 = vcombine.high %v1489_v53, %v1489_v53 }
 0x146   :  { %v7366_v2 = vadd.f32 %v7365_v0, %v7364_v60  ;;  %v7387_v4 = vpop.f32.mrf.mxu1  ;;  %7680 = vmatprep.subr.bf16.mxu1 %v8339_v61  ;;  %6001 = vmatprep.mubr.bf16.mxu0 %v1482_v45  ;;  %v8407_v45 = vld [vmem:[%s10523_s1 + $0xc68] sm:$0xff]  }
 0x147   :  { %v7367_v5 = vpop.f32.mrf.mxu0  ;;  %v7388_v8 = vadd.f32 %v7387_v4, %v7386_v63  ;;  %6041 = vmatprep.mubr.bf16.mxu1 %v1492_v51  ;;  %v8376_v4 = vld [vmem:[%s10523_s1 + $0xb28] sm:$0xff]  }
 0x148   :  { %v5444_v7 = vadd.f32 %v7366_v2, %v9604_v30  ;;  %v7389_v10 = vpop.f32.mrf.mxu1  ;;  %7659 = vmatpush3.bf16.msra.mxu0 %v8340_v62  ;;  %v8361_v30 = vld [vmem:[%s10523_s1 + $0xa88] sm:$0xff]  }
 0x149   :  { %v7368_v11 = vpop.f32.mrf.mxu0  ;;  %7660 = vmatprep.subr.bf16.mxu0 %v8342_v3  ;;  %7681 = vmatpush3.bf16.msra.mxu1 %v8341_v1  ;;  %v8374_v62 = vld [vmem:[%s10523_s1 + $0xb68] sm:$0xff]   ;;  %v8380_v10 = vld [vmem:[%s10523_s1 + $0xb20] sm:$0xff]  }
 0x14a   :  { %v9705_v13 = vadd.f32 %v7388_v8, %v5444_v7  ;;  %v7390_v15 = vpop.f32.mrf.mxu1  ;;  %7682 = vmatprep.subr.bf16.mxu1 %v8343_v6  ;;  %v8375_v1 = vld [vmem:[%s10523_s1 + $0xbe8] sm:$0xff]   ;;  %v8378_v8 = vld [vmem:[%s10523_s1 + $0xb60] sm:$0xff]  }
 0x14b   :  { %v8377_v6 = vld [vmem:[%s10523_s1 + $0xba8] sm:$0xff]   ;;  %v8381_v11 = vld [vmem:[%s10523_s1 + $0xba0] sm:$0xff]   ;;  %v8385_v15 = vld [vmem:[%s10523_s1 + $0xb98] sm:$0xff]  }
 0x14c   :  { %7661 = vmatpush3.bf16.msra.mxu0 %v8344_v9  ;;  %v8379_v9 = vld [vmem:[%s10523_s1 + $0xbe0] sm:$0xff]   ;;  %v8409_v51 = vld [vmem:[%s10523_s1 + $0xc28] sm:$0xff]  }
 0x14d   :  { %7662 = vmatprep.subr.bf16.mxu0 %v8346_v14  ;;  %7683 = vmatpush3.bf16.msra.mxu1 %v8345_v12  ;;  %v8382_v12 = vld [vmem:[%s10523_s1 + $0xb58] sm:$0xff]  }
 0x14e   :  { %7684 = vmatprep.subr.bf16.mxu1 %v8347_v16  ;;  %v8384_v14 = vld [vmem:[%s10523_s1 + $0xb18] sm:$0xff]   ;;  %v8386_v16 = vld [vmem:[%s10523_s1 + $0xb50] sm:$0xff]  }
 0x150   :  { %7663 = vmatpush3.bf16.msra.mxu0 %v8348_v17  ;;  %v8387_v17 = vld [vmem:[%s10523_s1 + $0xbd0] sm:$0xff]  }
 0x151   :  { %7664 = vmatprep.subr.bf16.mxu0 %v8350_v19  ;;  %7685 = vmatpush3.bf16.msra.mxu1 %v8349_v18  ;;  %v8388_v18 = vld [vmem:[%s10523_s1 + $0xb10] sm:$0xff]  }
 0x152   :  { %7686 = vmatprep.subr.bf16.mxu1 %v8351_v20  ;;  %v8389_v19 = vld [vmem:[%s10523_s1 + $0xb90] sm:$0xff]   ;;  %v8390_v20 = vld [vmem:[%s10523_s1 + $0xb48] sm:$0xff]  }
 0x154   :  { %7665 = vmatpush3.bf16.msra.mxu0 %v8352_v21  ;;  %v8391_v21 = vld [vmem:[%s10523_s1 + $0xbc8] sm:$0xff]  }
 0x155   :  { %7666 = vmatprep.subr.bf16.mxu0 %v8354_v23  ;;  %7687 = vmatpush3.bf16.msra.mxu1 %v8353_v22  ;;  %v8392_v22 = vld [vmem:[%s10523_s1 + $0xb08] sm:$0xff]  }
 0x156   :  { %7688 = vmatprep.subr.bf16.mxu1 %v8355_v24  ;;  %v8393_v23 = vld [vmem:[%s10523_s1 + $0xb88] sm:$0xff]   ;;  %v8394_v24 = vld [vmem:[%s10523_s1 + $0xb40] sm:$0xff]  }
 0x158   :  { %7667 = vmatpush3.bf16.msra.mxu0 %v8356_v25  ;;  %v8395_v25 = vld [vmem:[%s10523_s1 + $0xbc0] sm:$0xff]  }
 0x159   :  { %7668 = vmatprep.subr.bf16.mxu0 %v8358_v27  ;;  %7689 = vmatpush3.bf16.msra.mxu1 %v8357_v26  ;;  %v8396_v26 = vld [vmem:[%s10523_s1 + $0xb00] sm:$0xff]  }
 0x15a   :  { %7690 = vmatprep.subr.bf16.mxu1 %v8359_v28  ;;  %v8397_v27 = vld [vmem:[%s10523_s1 + $0xb80] sm:$0xff]   ;;  %v1475_v28 = vrot.slane %v9779_v43, %v8715_v35 }
 0x15c   :  { %7669 = vmatpush3.bf16.msra.mxu0 %v8360_v29  ;;  %v8399_v29 = vld [vmem:[%s10523_s1 + $0xc78] sm:$0xff]   ;;  %v1491_v34 = vcombine.high %v1475_v28, %v1475_v28 }
 0x15d   :  { %7670 = vmatprep.subr.bf16.mxu0 %v8362_v31  ;;  %7691 = vmatpush3.bf16.msra.mxu1 %v8361_v30  ;;  %v8400_v30 = vld [vmem:[%s10523_s1 + $0xcf8] sm:$0xff]  }
 0x15e   :  { %7692 = vmatprep.subr.bf16.mxu1 %v8363_v32  ;;  %v8401_v31 = vld [vmem:[%s10523_s1 + $0xc38] sm:$0xff]  }
 0x15f   :  { %v8402_v32 = vld [vmem:[%s10523_s1 + $0xcb8] sm:$0xff]  }
 0x160   :  { %7671 = vmatpush3.bf16.msra.mxu0 %v8364_v33 }
 0x161   :  { %7700 = vmatprep.subr.bf16.mxu0 %v8366_v37  ;;  %7693 = vmatpush3.bf16.msra.mxu1 %v8365_v39  ;;  %v8404_v37 = vld [vmem:[%s10523_s1 + $0xcf0] sm:$0xff]  }
 0x162   :  { %7722 = vmatprep.subr.bf16.mxu1 %v8367_v42  ;;  %v8406_v42 = vld [vmem:[%s10523_s1 + $0xcb0] sm:$0xff]  }
 0x163   :  { %v7408_v48 = vpop.f32.mrf.mxu0  ;;  %6002 = vmatmul.mubr.bf16.vlgmr.msra.gmra.mxu0 %v1468_v41 }
 0x164   :  { %v7430_v54 = vpop.f32.mrf.mxu1  ;;  %7701 = vmatpush3.bf16.msra.mxu0 %v8368_v44  ;;  %6042 = vmatmul.mubr.bf16.vlgmr.msra.gmra.mxu1 %v1490_v49 }
 0x165   :  { %v7409_v55 = vpop.f32.mrf.mxu0  ;;  %7702 = vmatprep.subr.bf16.mxu0 %v8370_v50  ;;  %7723 = vmatpush3.bf16.msra.mxu1 %v8369_v46 }
 0x166   :  { %v7410_v57 = vadd.f32 %v7409_v55, %v7408_v48  ;;  %v7431_v60 = vpop.f32.mrf.mxu1  ;;  %6081 = vmatprep.mubr.bf16.mxu0 %v1489_v53  ;;  %7724 = vmatprep.subr.bf16.mxu1 %v8371_v52  ;;  %v8408_v48 = vld [vmem:[%s10523_s1 + $0xce8] sm:$0xff]   ;;  %v8411_v55 = vld [vmem:[%s10523_s1 + $0xc60] sm:$0xff]  }
 0x167   :  { %v7411_v61 = vpop.f32.mrf.mxu0  ;;  %v7432_v0 = vadd.f32 %v7431_v60, %v7430_v54  ;;  %6121 = vmatprep.mubr.bf16.mxu1 %v1493_v59  ;;  %v8410_v53 = vld [vmem:[%s10523_s1 + $0xca8] sm:$0xff]   ;;  %v8415_v59 = vld [vmem:[%s10523_s1 + $0xc58] sm:$0xff]  }
 0x168   :  { %v5524_v63 = vadd.f32 %v7410_v57, %v9705_v13  ;;  %v7433_v2 = vpop.f32.mrf.mxu1  ;;  %7703 = vmatpush3.bf16.msra.mxu0 %v8372_v56  ;;  %v8383_v13 = vld [vmem:[%s10523_s1 + $0xbd8] sm:$0xff]   ;;  %v8412_v56 = vld [vmem:[%s10523_s1 + $0xce0] sm:$0xff]  }
 0x169   :  { %v7412_v3 = vpop.f32.mrf.mxu0  ;;  %7704 = vmatprep.subr.bf16.mxu0 %v8374_v62  ;;  %7725 = vmatpush3.bf16.msra.mxu1 %v8373_v58  ;;  %v8413_v57 = vld [vmem:[%s10523_s1 + $0xc20] sm:$0xff]   ;;  %v8416_v60 = vld [vmem:[%s10523_s1 + $0xcd8] sm:$0xff]   ;;  %v8422_v2 = vld [vmem:[%s10523_s1 + $0xc90] sm:$0xff]  }
 0x16a   :  { %v9813_v5 = vadd.f32 %v7432_v0, %v5524_v63  ;;  %v7434_v7 = vpop.f32.mrf.mxu1  ;;  %7726 = vmatprep.subr.bf16.mxu1 %v8375_v1  ;;  %v8414_v58 = vld [vmem:[%s10523_s1 + $0xca0] sm:$0xff]   ;;  %v8417_v61 = vld [vmem:[%s10523_s1 + $0xc18] sm:$0xff]   ;;  %v8419_v63 = vld [vmem:[%s10523_s1 + $0xc50] sm:$0xff]  }
 0x16b   :  { %v8418_v62 = vld [vmem:[%s10523_s1 + $0xc98] sm:$0xff]   ;;  %v8420_v0 = vld [vmem:[%s10523_s1 + $0xcd0] sm:$0xff]   ;;  %v8423_v3 = vld [vmem:[%s10523_s1 + $0xc48] sm:$0xff]  }
 0x16c   :  { %7705 = vmatpush3.bf16.msra.mxu0 %v8376_v4  ;;  %v8421_v1 = vld [vmem:[%s10523_s1 + $0xc10] sm:$0xff]   ;;  %v8424_v4 = vld [vmem:[%s10523_s1 + $0xcc8] sm:$0xff]   ;;  %v8427_v7 = vld [vmem:[%s10523_s1 + $0xc40] sm:$0xff]  }
 0x16d   :  { %7706 = vmatprep.subr.bf16.mxu0 %v8378_v8  ;;  %7727 = vmatpush3.bf16.msra.mxu1 %v8377_v6  ;;  %v8426_v6 = vld [vmem:[%s10523_s1 + $0xc88] sm:$0xff]   ;;  %v8428_v8 = vld [vmem:[%s10523_s1 + $0xcc0] sm:$0xff]  }
 0x16e   :  { %7728 = vmatprep.subr.bf16.mxu1 %v8379_v9  ;;  %v8429_v9 = vld [vmem:[%s10523_s1 + $0xc00] sm:$0xff]  }
 0x170   :  { %7707 = vmatpush3.bf16.msra.mxu0 %v8380_v10  ;;  %v29_v10 = vld [vmem:[%s10524_s0 + $0x30] sm:$0xff] }
 0x171   :  { %7708 = vmatprep.subr.bf16.mxu0 %v8382_v12  ;;  %7729 = vmatpush3.bf16.msra.mxu1 %v8381_v11  ;;  %v8430_v11 = vld [vmem:[%s10523_s1 + $0xc80] sm:$0xff]   ;;  %v1501_v12 = vrot.slane %v29_v10, %v8715_v35 }
 0x172   :  { %7730 = vmatprep.subr.bf16.mxu1 %v8383_v13  ;;  %v1494_v13 = vcombine.high %v29_v10, %v29_v10  ;;  %v8468_v10 = vld [vmem:[%s10523_s1 + $0xe70] sm:$0xff]  }
 0x174   :  { %7709 = vmatpush3.bf16.msra.mxu0 %v8384_v14  ;;  %v8431_v14 = vld [vmem:[%s10523_s1 + $0xd78] sm:$0xff]  }
 0x175   :  { %7710 = vmatprep.subr.bf16.mxu0 %v8386_v16  ;;  %7731 = vmatpush3.bf16.msra.mxu1 %v8385_v15  ;;  %v1509_v15 = vcombine.high %v1501_v12, %v1501_v12  ;;  %v1517_v16 = vrot.slane %v1501_v12, %v8715_v35  ;;  %v8469_v12 = vld [vmem:[%s10523_s1 + $0xef0] sm:$0xff]  }
 0x176   :  { %7732 = vmatprep.subr.bf16.mxu1 %v8387_v17  ;;  %v8432_v17 = vld [vmem:[%s10523_s1 + $0xdf8] sm:$0xff]  }
 0x178   :  { %7711 = vmatpush3.bf16.msra.mxu0 %v8388_v18  ;;  %v9991_v18 = vrot.slane %v1494_v13, %v8715_v35  ;;  %v8470_v13 = vld [vmem:[%s10523_s1 + $0xe30] sm:$0xff]  }
 0x179   :  { %7712 = vmatprep.subr.bf16.mxu0 %v8390_v20  ;;  %7733 = vmatpush3.bf16.msra.mxu1 %v8389_v19  ;;  %v8433_v19 = vld [vmem:[%s10523_s1 + $0xd38] sm:$0xff]   ;;  %v1531_v20 = vrot.slane %v1509_v15, %v8715_v35 }
 0x17a   :  { %7734 = vmatprep.subr.bf16.mxu1 %v8391_v21  ;;  %v8434_v21 = vld [vmem:[%s10523_s1 + $0xdb8] sm:$0xff]  }
 0x17c   :  { %7713 = vmatpush3.bf16.msra.mxu0 %v8392_v22  ;;  %v1510_v22 = vcombine.high %v9991_v18, %v9991_v18 }
 0x17d   :  { %7714 = vmatprep.subr.bf16.mxu0 %v8394_v24  ;;  %7735 = vmatpush3.bf16.msra.mxu1 %v8393_v23  ;;  %v1539_v23 = vcombine.high %v1517_v16, %v1517_v16  ;;  %v8435_v24 = vld [vmem:[%s10523_s1 + $0xd70] sm:$0xff]  }
 0x17e   :  { %7736 = vmatprep.subr.bf16.mxu1 %v8395_v25  ;;  %v1541_v25 = vcombine.high %v1531_v20, %v1531_v20 }
 0x180   :  { %7715 = vmatpush3.bf16.msra.mxu0 %v8396_v26 }
 0x181   :  { %7744 = vmatprep.subr.bf16.mxu0 %v8399_v29  ;;  %7737 = vmatpush3.bf16.msra.mxu1 %v8397_v27  ;;  %v8436_v27 = vld [vmem:[%s10523_s1 + $0xdf0] sm:$0xff]  }
 0x182   :  { %7766 = vmatprep.subr.bf16.mxu1 %v8400_v30  ;;  %v8437_v29 = vld [vmem:[%s10523_s1 + $0xd30] sm:$0xff]  }
 0x183   :  { %v7452_v33 = vpop.f32.mrf.mxu0  ;;  %6082 = vmatmul.mubr.bf16.vlgmr.msra.gmra.mxu0 %v1475_v28  ;;  %v1538_v28 = vrot.slane %v1510_v22, %v8715_v35 }
 0x184   :  { %v7474_v38 = vpop.f32.mrf.mxu1  ;;  %7745 = vmatpush3.bf16.msra.mxu0 %v8401_v31  ;;  %6122 = vmatmul.mubr.bf16.vlgmr.msra.gmra.mxu1 %v1491_v34 }
 0x185   :  { %v7453_v39 = vpop.f32.mrf.mxu0  ;;  %7746 = vmatprep.subr.bf16.mxu0 %v8403_v36  ;;  %7767 = vmatpush3.bf16.msra.mxu1 %v8402_v32  ;;  %v8438_v32 = vld [vmem:[%s10523_s1 + $0xdb0] sm:$0xff]   ;;  %v8439_v36 = vld [vmem:[%s10523_s1 + $0xd68] sm:$0xff]  }
 0x186   :  { %v7454_v41 = vadd.f32 %v7453_v39, %v7452_v33  ;;  %v7475_v43 = vpop.f32.mrf.mxu1  ;;  %7768 = vmatprep.subr.bf16.mxu1 %v8404_v37  ;;  %6161 = vmatprep.mubr.bf16.mxu0 %v1531_v20  ;;  %v1542_v33 = vcombine.high %v1538_v28, %v1538_v28  ;;  %v8440_v39 = vld [vmem:[%s10523_s1 + $0xde8] sm:$0xff]  }
 0x187   :  { %v7455_v44 = vpop.f32.mrf.mxu0  ;;  %v7476_v47 = vadd.f32 %v7475_v43, %v7474_v38  ;;  %6201 = vmatprep.mubr.bf16.mxu1 %v1541_v25 }
 0x188   :  { %v5604_v46 = vadd.f32 %v7454_v41, %v9813_v5  ;;  %v7477_v49 = vpop.f32.mrf.mxu1  ;;  %7747 = vmatpush3.bf16.msra.mxu0 %v8405_v40  ;;  %v8425_v5 = vld [vmem:[%s10523_s1 + $0xc08] sm:$0xff]  }
 0x189   :  { %v7456_v50 = vpop.f32.mrf.mxu0  ;;  %7748 = vmatprep.subr.bf16.mxu0 %v8407_v45  ;;  %7769 = vmatpush3.bf16.msra.mxu1 %v8406_v42  ;;  %v8441_v42 = vld [vmem:[%s10523_s1 + $0xd28] sm:$0xff]   ;;  %v8444_v49 = vld [vmem:[%s10523_s1 + $0xde0] sm:$0xff]  }
 0x18a   :  { %v9914_v52 = vadd.f32 %v7476_v47, %v5604_v46  ;;  %v7478_v54 = vpop.f32.mrf.mxu1  ;;  %7770 = vmatprep.subr.bf16.mxu1 %v8408_v48  ;;  %v8442_v45 = vld [vmem:[%s10523_s1 + $0xda8] sm:$0xff]   ;;  %v8443_v47 = vld [vmem:[%s10523_s1 + $0xd60] sm:$0xff]  }
 0x18b   :  { %v8445_v50 = vld [vmem:[%s10523_s1 + $0xd20] sm:$0xff]   ;;  %v8449_v54 = vld [vmem:[%s10523_s1 + $0xd18] sm:$0xff]  }
 0x18c   :  { %7749 = vmatpush3.bf16.msra.mxu0 %v8409_v51  ;;  %v8446_v51 = vld [vmem:[%s10523_s1 + $0xda0] sm:$0xff]  }
 0x18d   :  { %7750 = vmatprep.subr.bf16.mxu0 %v8411_v55  ;;  %7771 = vmatpush3.bf16.msra.mxu1 %v8410_v53  ;;  %v8448_v53 = vld [vmem:[%s10523_s1 + $0xdd8] sm:$0xff]  }
 0x18e   :  { %7772 = vmatprep.subr.bf16.mxu1 %v8412_v56  ;;  %v8450_v55 = vld [vmem:[%s10523_s1 + $0xd98] sm:$0xff]   ;;  %v8451_v56 = vld [vmem:[%s10523_s1 + $0xd50] sm:$0xff]  }
 0x190   :  { %7751 = vmatpush3.bf16.msra.mxu0 %v8413_v57  ;;  %v8452_v57 = vld [vmem:[%s10523_s1 + $0xdd0] sm:$0xff]  }
 0x191   :  { %7752 = vmatprep.subr.bf16.mxu0 %v8415_v59  ;;  %7773 = vmatpush3.bf16.msra.mxu1 %v8414_v58  ;;  %v8453_v58 = vld [vmem:[%s10523_s1 + $0xd10] sm:$0xff]  }
 0x192   :  { %7774 = vmatprep.subr.bf16.mxu1 %v8416_v60  ;;  %v8454_v59 = vld [vmem:[%s10523_s1 + $0xd90] sm:$0xff]   ;;  %v8455_v60 = vld [vmem:[%s10523_s1 + $0xd48] sm:$0xff]  }
 0x194   :  { %7753 = vmatpush3.bf16.msra.mxu0 %v8417_v61  ;;  %v8456_v61 = vld [vmem:[%s10523_s1 + $0xdc8] sm:$0xff]  }
 0x195   :  { %7754 = vmatprep.subr.bf16.mxu0 %v8419_v63  ;;  %7775 = vmatpush3.bf16.msra.mxu1 %v8418_v62  ;;  %v8457_v62 = vld [vmem:[%s10523_s1 + $0xd08] sm:$0xff]  }
 0x196   :  { %7776 = vmatprep.subr.bf16.mxu1 %v8420_v0  ;;  %v8458_v63 = vld [vmem:[%s10523_s1 + $0xd88] sm:$0xff]   ;;  %v8459_v0 = vld [vmem:[%s10523_s1 + $0xd40] sm:$0xff]  }
 0x198   :  { %7755 = vmatpush3.bf16.msra.mxu0 %v8421_v1  ;;  %v8460_v1 = vld [vmem:[%s10523_s1 + $0xdc0] sm:$0xff]  }
 0x199   :  { %7756 = vmatprep.subr.bf16.mxu0 %v8423_v3  ;;  %7777 = vmatpush3.bf16.msra.mxu1 %v8422_v2  ;;  %v8461_v2 = vld [vmem:[%s10523_s1 + $0xd00] sm:$0xff]  }
 0x19a   :  { %7778 = vmatprep.subr.bf16.mxu1 %v8424_v4  ;;  %v8462_v3 = vld [vmem:[%s10523_s1 + $0xd80] sm:$0xff]   ;;  %v1524_v4 = vrot.slane %v9991_v18, %v8715_v35  ;;  %v8472_v18 = vld [vmem:[%s10523_s1 + $0xe68] sm:$0xff]  }
 0x19c   :  { %7757 = vmatpush3.bf16.msra.mxu0 %v8425_v5  ;;  %v8464_v5 = vld [vmem:[%s10523_s1 + $0xe78] sm:$0xff]  }
 0x19d   :  { %7758 = vmatprep.subr.bf16.mxu0 %v8427_v7  ;;  %7779 = vmatpush3.bf16.msra.mxu1 %v8426_v6  ;;  %v8465_v6 = vld [vmem:[%s10523_s1 + $0xef8] sm:$0xff]  }
 0x19e   :  { %7780 = vmatprep.subr.bf16.mxu1 %v8428_v8  ;;  %v8466_v7 = vld [vmem:[%s10523_s1 + $0xe38] sm:$0xff]  }
 0x19f   :  { %v8467_v8 = vld [vmem:[%s10523_s1 + $0xeb8] sm:$0xff]  }
 0x1a0   :  { %7759 = vmatpush3.bf16.msra.mxu0 %v8429_v9  ;;  %v1540_v9 = vcombine.high %v1524_v4, %v1524_v4 }
 0x1a1   :  { %7788 = vmatprep.subr.bf16.mxu0 %v8431_v14  ;;  %7781 = vmatpush3.bf16.msra.mxu1 %v8430_v11 }
 0x1a2   :  { %7810 = vmatprep.subr.bf16.mxu1 %v8432_v17 }
 0x1a3   :  { %v7496_v26 = vpop.f32.mrf.mxu0  ;;  %6162 = vmatmul.mubr.bf16.vlgmr.msra.gmra.mxu0 %v1517_v16  ;;  %v8471_v16 = vld [vmem:[%s10523_s1 + $0xeb0] sm:$0xff]  }
 0x1a4   :  { %v7518_v30 = vpop.f32.mrf.mxu1  ;;  %7789 = vmatpush3.bf16.msra.mxu0 %v8433_v19  ;;  %6202 = vmatmul.mubr.bf16.vlgmr.msra.gmra.mxu1 %v1539_v23 }
 0x1a5   :  { %v7497_v31 = vpop.f32.mrf.mxu0  ;;  %7790 = vmatprep.subr.bf16.mxu0 %v8435_v24  ;;  %7811 = vmatpush3.bf16.msra.mxu1 %v8434_v21  ;;  %v8473_v21 = vld [vmem:[%s10523_s1 + $0xee8] sm:$0xff]  }
 0x1a6   :  { %v7498_v34 = vadd.f32 %v7497_v31, %v7496_v26  ;;  %v7519_v37 = vpop.f32.mrf.mxu1  ;;  %6241 = vmatprep.mubr.bf16.mxu0 %v1538_v28  ;;  %7812 = vmatprep.subr.bf16.mxu1 %v8436_v27  ;;  %v8474_v24 = vld [vmem:[%s10523_s1 + $0xe28] sm:$0xff]   ;;  %v8477_v31 = vld [vmem:[%s10523_s1 + $0xee0] sm:$0xff]  }
 0x1a7   :  { %v7499_v38 = vpop.f32.mrf.mxu0  ;;  %v7520_v41 = vadd.f32 %v7519_v37, %v7518_v30  ;;  %6281 = vmatprep.mubr.bf16.mxu1 %v1542_v33  ;;  %v8475_v27 = vld [vmem:[%s10523_s1 + $0xea8] sm:$0xff]   ;;  %v8479_v33 = vld [vmem:[%s10523_s1 + $0xea0] sm:$0xff]   ;;  %v8482_v37 = vld [vmem:[%s10523_s1 + $0xe18] sm:$0xff]  }
 0x1a8   :  { %v5684_v40 = vadd.f32 %v7498_v34, %v9914_v52  ;;  %v7521_v43 = vpop.f32.mrf.mxu1  ;;  %7791 = vmatpush3.bf16.msra.mxu0 %v8437_v29  ;;  %v8447_v52 = vld [vmem:[%s10523_s1 + $0xd58] sm:$0xff]   ;;  %v8476_v29 = vld [vmem:[%s10523_s1 + $0xe60] sm:$0xff]  }
 0x1a9   :  { %v7500_v44 = vpop.f32.mrf.mxu0  ;;  %7792 = vmatprep.subr.bf16.mxu0 %v8439_v36  ;;  %7813 = vmatpush3.bf16.msra.mxu1 %v8438_v32  ;;  %v8478_v32 = vld [vmem:[%s10523_s1 + $0xe20] sm:$0xff]   ;;  %v8480_v34 = vld [vmem:[%s10523_s1 + $0xe58] sm:$0xff]   ;;  %v8488_v43 = vld [vmem:[%s10523_s1 + $0xe48] sm:$0xff]  }
 0x1aa   :  { %v10028_v46 = vadd.f32 %v7520_v41, %v5684_v40  ;;  %v7522_v48 = vpop.f32.mrf.mxu1  ;;  %7814 = vmatprep.subr.bf16.mxu1 %v8440_v39  ;;  %v8481_v36 = vld [vmem:[%s10523_s1 + $0xed8] sm:$0xff]   ;;  %v8484_v39 = vld [vmem:[%s10523_s1 + $0xe50] sm:$0xff]   ;;  %v8489_v44 = vld [vmem:[%s10523_s1 + $0xec8] sm:$0xff]  }
 0x1ab   :  { %v8483_v38 = vld [vmem:[%s10523_s1 + $0xe98] sm:$0xff]   ;;  %v8485_v40 = vld [vmem:[%s10523_s1 + $0xed0] sm:$0xff]   ;;  %v8493_v48 = vld [vmem:[%s10523_s1 + $0xec0] sm:$0xff]  }
 0x1ac   :  { %7793 = vmatpush3.bf16.msra.mxu0 %v8441_v42  ;;  %v8486_v41 = vld [vmem:[%s10523_s1 + $0xe10] sm:$0xff]  }
 0x1ad   :  { %7794 = vmatprep.subr.bf16.mxu0 %v8443_v47  ;;  %7815 = vmatpush3.bf16.msra.mxu1 %v8442_v45  ;;  %v8487_v42 = vld [vmem:[%s10523_s1 + $0xe90] sm:$0xff]   ;;  %v8490_v45 = vld [vmem:[%s10523_s1 + $0xe08] sm:$0xff]   ;;  %v8492_v47 = vld [vmem:[%s10523_s1 + $0xe40] sm:$0xff]  }
 0x1ae   :  { %7816 = vmatprep.subr.bf16.mxu1 %v8444_v49  ;;  %v8494_v49 = vld [vmem:[%s10523_s1 + $0xe00] sm:$0xff]  }
 0x1b0   :  { %7795 = vmatpush3.bf16.msra.mxu0 %v8445_v50  ;;  %v30_v50 = vld [vmem:[%s10524_s0 + $0x38] sm:$0xff] }
 0x1b1   :  { %7796 = vmatprep.subr.bf16.mxu0 %v8447_v52  ;;  %7817 = vmatpush3.bf16.msra.mxu1 %v8446_v51  ;;  %v8495_v51 = vld [vmem:[%s10523_s1 + $0xe80] sm:$0xff]   ;;  %v1550_v52 = vrot.slane %v30_v50, %v8715_v35 }
 0x1b2   :  { %7818 = vmatprep.subr.bf16.mxu1 %v8448_v53  ;;  %v1543_v53 = vcombine.high %v30_v50, %v30_v50  ;;  %v8533_v50 = vld [vmem:[%s10523_s1 + $0x1070] sm:$0xff]  }
 0x1b4   :  { %7797 = vmatpush3.bf16.msra.mxu0 %v8449_v54  ;;  %v8496_v54 = vld [vmem:[%s10523_s1 + $0xf78] sm:$0xff]  }
 0x1b5   :  { %7798 = vmatprep.subr.bf16.mxu0 %v8451_v56  ;;  %7819 = vmatpush3.bf16.msra.mxu1 %v8450_v55  ;;  %v1558_v55 = vcombine.high %v1550_v52, %v1550_v52  ;;  %v1566_v56 = vrot.slane %v1550_v52, %v8715_v35  ;;  %v8534_v52 = vld [vmem:[%s10523_s1 + $0x10f0] sm:$0xff]  }
 0x1b6   :  { %7820 = vmatprep.subr.bf16.mxu1 %v8452_v57  ;;  %v8497_v57 = vld [vmem:[%s10523_s1 + $0xff8] sm:$0xff]  }
 0x1b8   :  { %7799 = vmatpush3.bf16.msra.mxu0 %v8453_v58  ;;  %v10203_v58 = vrot.slane %v1543_v53, %v8715_v35  ;;  %v8535_v53 = vld [vmem:[%s10523_s1 + $0x1030] sm:$0xff]  }
 0x1b9   :  { %7800 = vmatprep.subr.bf16.mxu0 %v8455_v60  ;;  %7821 = vmatpush3.bf16.msra.mxu1 %v8454_v59  ;;  %v8498_v59 = vld [vmem:[%s10523_s1 + $0xf38] sm:$0xff]   ;;  %v1580_v60 = vrot.slane %v1558_v55, %v8715_v35 }
 0x1ba   :  { %7822 = vmatprep.subr.bf16.mxu1 %v8456_v61  ;;  %v8499_v61 = vld [vmem:[%s10523_s1 + $0xfb8] sm:$0xff]  }
 0x1bc   :  { %7801 = vmatpush3.bf16.msra.mxu0 %v8457_v62  ;;  %v1559_v62 = vcombine.high %v10203_v58, %v10203_v58 }
 0x1bd   :  { %7802 = vmatprep.subr.bf16.mxu0 %v8459_v0  ;;  %7823 = vmatpush3.bf16.msra.mxu1 %v8458_v63  ;;  %v1588_v63 = vcombine.high %v1566_v56, %v1566_v56  ;;  %v8500_v0 = vld [vmem:[%s10523_s1 + $0xf70] sm:$0xff]  }
 0x1be   :  { %7824 = vmatprep.subr.bf16.mxu1 %v8460_v1  ;;  %v1590_v1 = vcombine.high %v1580_v60, %v1580_v60 }
 0x1c0   :  { %7803 = vmatpush3.bf16.msra.mxu0 %v8461_v2 }
 0x1c1   :  { %7832 = vmatprep.subr.bf16.mxu0 %v8464_v5  ;;  %7825 = vmatpush3.bf16.msra.mxu1 %v8462_v3  ;;  %v8501_v3 = vld [vmem:[%s10523_s1 + $0xff0] sm:$0xff]  }
 0x1c2   :  { %7854 = vmatprep.subr.bf16.mxu1 %v8465_v6  ;;  %v8502_v5 = vld [vmem:[%s10523_s1 + $0xf30] sm:$0xff]  }
 0x1c3   :  { %v7540_v11 = vpop.f32.mrf.mxu0  ;;  %6242 = vmatmul.mubr.bf16.vlgmr.msra.gmra.mxu0 %v1524_v4  ;;  %v1587_v4 = vrot.slane %v1559_v62, %v8715_v35 }
 0x1c4   :  { %v7562_v14 = vpop.f32.mrf.mxu1  ;;  %7833 = vmatpush3.bf16.msra.mxu0 %v8466_v7  ;;  %6282 = vmatmul.mubr.bf16.vlgmr.msra.gmra.mxu1 %v1540_v9 }
 0x1c5   :  { %v7541_v15 = vpop.f32.mrf.mxu0  ;;  %7834 = vmatprep.subr.bf16.mxu0 %v8468_v10  ;;  %7855 = vmatpush3.bf16.msra.mxu1 %v8467_v8  ;;  %v8503_v8 = vld [vmem:[%s10523_s1 + $0xfb0] sm:$0xff]   ;;  %v1591_v9 = vcombine.high %v1587_v4, %v1587_v4 }
 0x1c6   :  { %v7542_v17 = vadd.f32 %v7541_v15, %v7540_v11  ;;  %v7563_v19 = vpop.f32.mrf.mxu1  ;;  %7856 = vmatprep.subr.bf16.mxu1 %v8469_v12  ;;  %6321 = vmatprep.mubr.bf16.mxu0 %v1580_v60  ;;  %v8504_v11 = vld [vmem:[%s10523_s1 + $0xf68] sm:$0xff]  }
 0x1c7   :  { %v7543_v20 = vpop.f32.mrf.mxu0  ;;  %v7564_v23 = vadd.f32 %v7563_v19, %v7562_v14  ;;  %6361 = vmatprep.mubr.bf16.mxu1 %v1590_v1  ;;  %v8505_v14 = vld [vmem:[%s10523_s1 + $0xfe8] sm:$0xff]  }
 0x1c8   :  { %v5764_v22 = vadd.f32 %v7542_v17, %v10028_v46  ;;  %v7565_v25 = vpop.f32.mrf.mxu1  ;;  %7835 = vmatpush3.bf16.msra.mxu0 %v8470_v13  ;;  %v8491_v46 = vld [vmem:[%s10523_s1 + $0xe88] sm:$0xff]  }
 0x1c9   :  { %v7544_v26 = vpop.f32.mrf.mxu0  ;;  %7836 = vmatprep.subr.bf16.mxu0 %v8472_v18  ;;  %7857 = vmatpush3.bf16.msra.mxu1 %v8471_v16  ;;  %v8506_v17 = vld [vmem:[%s10523_s1 + $0xf28] sm:$0xff]   ;;  %v8510_v25 = vld [vmem:[%s10523_s1 + $0xf20] sm:$0xff]  }
 0x1ca   :  { %v10129_v28 = vadd.f32 %v7564_v23, %v5764_v22  ;;  %v7566_v30 = vpop.f32.mrf.mxu1  ;;  %7858 = vmatprep.subr.bf16.mxu1 %v8473_v21  ;;  %v8507_v20 = vld [vmem:[%s10523_s1 + $0xfa8] sm:$0xff]   ;;  %v8508_v22 = vld [vmem:[%s10523_s1 + $0xf60] sm:$0xff]  }
 0x1cb   :  { %v8511_v26 = vld [vmem:[%s10523_s1 + $0xfa0] sm:$0xff]   ;;  %v8515_v30 = vld [vmem:[%s10523_s1 + $0xf98] sm:$0xff]  }
 0x1cc   :  { %7837 = vmatpush3.bf16.msra.mxu0 %v8474_v24  ;;  %v8509_v24 = vld [vmem:[%s10523_s1 + $0xfe0] sm:$0xff]  }
 0x1cd   :  { %7838 = vmatprep.subr.bf16.mxu0 %v8476_v29  ;;  %7859 = vmatpush3.bf16.msra.mxu1 %v8475_v27  ;;  %v8512_v27 = vld [vmem:[%s10523_s1 + $0xf58] sm:$0xff]  }
 0x1ce   :  { %7860 = vmatprep.subr.bf16.mxu1 %v8477_v31  ;;  %v8514_v29 = vld [vmem:[%s10523_s1 + $0xf18] sm:$0xff]   ;;  %v8516_v31 = vld [vmem:[%s10523_s1 + $0xf50] sm:$0xff]  }
 0x1d0   :  { %7839 = vmatpush3.bf16.msra.mxu0 %v8478_v32  ;;  %v8517_v32 = vld [vmem:[%s10523_s1 + $0xfd0] sm:$0xff]  }
 0x1d1   :  { %7840 = vmatprep.subr.bf16.mxu0 %v8480_v34  ;;  %7861 = vmatpush3.bf16.msra.mxu1 %v8479_v33  ;;  %v8518_v33 = vld [vmem:[%s10523_s1 + $0xf10] sm:$0xff]  }
 0x1d2   :  { %7862 = vmatprep.subr.bf16.mxu1 %v8481_v36  ;;  %v8519_v34 = vld [vmem:[%s10523_s1 + $0xf90] sm:$0xff]   ;;  %v8520_v36 = vld [vmem:[%s10523_s1 + $0xf48] sm:$0xff]  }
 0x1d4   :  { %7841 = vmatpush3.bf16.msra.mxu0 %v8482_v37  ;;  %v8521_v37 = vld [vmem:[%s10523_s1 + $0xfc8] sm:$0xff]  }
 0x1d5   :  { %7842 = vmatprep.subr.bf16.mxu0 %v8484_v39  ;;  %7863 = vmatpush3.bf16.msra.mxu1 %v8483_v38  ;;  %v8522_v38 = vld [vmem:[%s10523_s1 + $0xf08] sm:$0xff]  }
 0x1d6   :  { %7864 = vmatprep.subr.bf16.mxu1 %v8485_v40  ;;  %v8523_v39 = vld [vmem:[%s10523_s1 + $0xf88] sm:$0xff]   ;;  %v8524_v40 = vld [vmem:[%s10523_s1 + $0xf40] sm:$0xff]  }
 0x1d8   :  { %7843 = vmatpush3.bf16.msra.mxu0 %v8486_v41  ;;  %v8525_v41 = vld [vmem:[%s10523_s1 + $0xfc0] sm:$0xff]  }
 0x1d9   :  { %7844 = vmatprep.subr.bf16.mxu0 %v8488_v43  ;;  %7865 = vmatpush3.bf16.msra.mxu1 %v8487_v42  ;;  %v8526_v42 = vld [vmem:[%s10523_s1 + $0xf00] sm:$0xff]  }
 0x1da   :  { %7866 = vmatprep.subr.bf16.mxu1 %v8489_v44  ;;  %v8527_v43 = vld [vmem:[%s10523_s1 + $0xf80] sm:$0xff]   ;;  %v1573_v44 = vrot.slane %v10203_v58, %v8715_v35  ;;  %v8537_v58 = vld [vmem:[%s10523_s1 + $0x1068] sm:$0xff]  }
 0x1dc   :  { %7845 = vmatpush3.bf16.msra.mxu0 %v8490_v45  ;;  %v8529_v45 = vld [vmem:[%s10523_s1 + $0x1078] sm:$0xff]  }
 0x1dd   :  { %7846 = vmatprep.subr.bf16.mxu0 %v8492_v47  ;;  %7867 = vmatpush3.bf16.msra.mxu1 %v8491_v46  ;;  %v8530_v46 = vld [vmem:[%s10523_s1 + $0x10f8] sm:$0xff]  }
 0x1de   :  { %7868 = vmatprep.subr.bf16.mxu1 %v8493_v48  ;;  %v8531_v47 = vld [vmem:[%s10523_s1 + $0x1038] sm:$0xff]  }
 0x1df   :  { %v8532_v48 = vld [vmem:[%s10523_s1 + $0x10b8] sm:$0xff]  }
 0x1e0   :  { %7847 = vmatpush3.bf16.msra.mxu0 %v8494_v49  ;;  %v1589_v49 = vcombine.high %v1573_v44, %v1573_v44 }
 0x1e1   :  { %7876 = vmatprep.subr.bf16.mxu0 %v8496_v54  ;;  %7869 = vmatpush3.bf16.msra.mxu1 %v8495_v51 }
 0x1e2   :  { %7898 = vmatprep.subr.bf16.mxu1 %v8497_v57 }
 0x1e3   :  { %v7584_v2 = vpop.f32.mrf.mxu0  ;;  %6322 = vmatmul.mubr.bf16.vlgmr.msra.gmra.mxu0 %v1566_v56  ;;  %v8536_v56 = vld [vmem:[%s10523_s1 + $0x10b0] sm:$0xff]  }
 0x1e4   :  { %v7606_v6 = vpop.f32.mrf.mxu1  ;;  %7877 = vmatpush3.bf16.msra.mxu0 %v8498_v59  ;;  %6362 = vmatmul.mubr.bf16.vlgmr.msra.gmra.mxu1 %v1588_v63 }
 0x1e5   :  { %v7585_v7 = vpop.f32.mrf.mxu0  ;;  %7878 = vmatprep.subr.bf16.mxu0 %v8500_v0  ;;  %7899 = vmatpush3.bf16.msra.mxu1 %v8499_v61  ;;  %v8538_v61 = vld [vmem:[%s10523_s1 + $0x10e8] sm:$0xff]  }
 0x1e6   :  { %v7586_v10 = vadd.f32 %v7585_v7, %v7584_v2  ;;  %v7607_v12 = vpop.f32.mrf.mxu1  ;;  %6401 = vmatprep.mubr.bf16.mxu0 %v1587_v4  ;;  %7900 = vmatprep.subr.bf16.mxu1 %v8501_v3  ;;  %v8539_v0 = vld [vmem:[%s10523_s1 + $0x1028] sm:$0xff]   ;;  %v8542_v7 = vld [vmem:[%s10523_s1 + $0x10e0] sm:$0xff]  }
 0x1e7   :  { %v7587_v13 = vpop.f32.mrf.mxu0  ;;  %v7608_v16 = vadd.f32 %v7607_v12, %v7606_v6  ;;  %6441 = vmatprep.mubr.bf16.mxu1 %v1591_v9  ;;  %v8540_v3 = vld [vmem:[%s10523_s1 + $0x10a8] sm:$0xff]   ;;  %v8544_v9 = vld [vmem:[%s10523_s1 + $0x10a0] sm:$0xff]   ;;  %v8547_v12 = vld [vmem:[%s10523_s1 + $0x1018] sm:$0xff]  }
 0x1e8   :  { %v5844_v15 = vadd.f32 %v7586_v10, %v10129_v28  ;;  %v7609_v18 = vpop.f32.mrf.mxu1  ;;  %7879 = vmatpush3.bf16.msra.mxu0 %v8502_v5  ;;  %v8513_v28 = vld [vmem:[%s10523_s1 + $0xfd8] sm:$0xff]   ;;  %v8541_v5 = vld [vmem:[%s10523_s1 + $0x1060] sm:$0xff]  }
 0x1e9   :  { %v7588_v19 = vpop.f32.mrf.mxu0  ;;  %7880 = vmatprep.subr.bf16.mxu0 %v8504_v11  ;;  %7901 = vmatpush3.bf16.msra.mxu1 %v8503_v8  ;;  %v8543_v8 = vld [vmem:[%s10523_s1 + $0x1020] sm:$0xff]   ;;  %v8545_v10 = vld [vmem:[%s10523_s1 + $0x1058] sm:$0xff]   ;;  %v8553_v18 = vld [vmem:[%s10523_s1 + $0x1048] sm:$0xff]  }
 0x1ea   :  { %v10240_v21 = vadd.f32 %v7608_v16, %v5844_v15  ;;  %v7610_v23 = vpop.f32.mrf.mxu1  ;;  %7902 = vmatprep.subr.bf16.mxu1 %v8505_v14  ;;  %v8546_v11 = vld [vmem:[%s10523_s1 + $0x10d8] sm:$0xff]   ;;  %v8549_v14 = vld [vmem:[%s10523_s1 + $0x1050] sm:$0xff]   ;;  %v8554_v19 = vld [vmem:[%s10523_s1 + $0x10c8] sm:$0xff]  }
 0x1eb   :  { %v8548_v13 = vld [vmem:[%s10523_s1 + $0x1098] sm:$0xff]   ;;  %v8550_v15 = vld [vmem:[%s10523_s1 + $0x10d0] sm:$0xff]   ;;  %v8558_v23 = vld [vmem:[%s10523_s1 + $0x10c0] sm:$0xff]  }
 0x1ec   :  { %7881 = vmatpush3.bf16.msra.mxu0 %v8506_v17  ;;  %v8551_v16 = vld [vmem:[%s10523_s1 + $0x1010] sm:$0xff]  }
 0x1ed   :  { %7882 = vmatprep.subr.bf16.mxu0 %v8508_v22  ;;  %7903 = vmatpush3.bf16.msra.mxu1 %v8507_v20  ;;  %v8552_v17 = vld [vmem:[%s10523_s1 + $0x1090] sm:$0xff]   ;;  %v8555_v20 = vld [vmem:[%s10523_s1 + $0x1008] sm:$0xff]   ;;  %v8557_v22 = vld [vmem:[%s10523_s1 + $0x1040] sm:$0xff]  }
 0x1ee   :  { %7904 = vmatprep.subr.bf16.mxu1 %v8509_v24  ;;  %v8559_v24 = vld [vmem:[%s10523_s1 + $0x1000] sm:$0xff]  }
 0x1f0   :  { %7883 = vmatpush3.bf16.msra.mxu0 %v8510_v25  ;;  %v31_v25 = vld [vmem:[%s10524_s0 + $0x40] sm:$0xff] }
 0x1f1   :  { %7884 = vmatprep.subr.bf16.mxu0 %v8512_v27  ;;  %7905 = vmatpush3.bf16.msra.mxu1 %v8511_v26  ;;  %v1599_v26 = vrot.slane %v31_v25, %v8715_v35  ;;  %v8561_v27 = vld [vmem:[%s10523_s1 + $0x1178] sm:$0xff]  }
 0x1f2   :  { %7906 = vmatprep.subr.bf16.mxu1 %v8513_v28  ;;  %v1592_v28 = vcombine.high %v31_v25, %v31_v25 }
 0x1f4   :  { %7885 = vmatpush3.bf16.msra.mxu0 %v8514_v29  ;;  %v8560_v29 = vld [vmem:[%s10523_s1 + $0x1080] sm:$0xff]  }
 0x1f5   :  { %7886 = vmatprep.subr.bf16.mxu0 %v8516_v31  ;;  %7907 = vmatpush3.bf16.msra.mxu1 %v8515_v30  ;;  %v1607_v30 = vcombine.high %v1599_v26, %v1599_v26  ;;  %v1615_v31 = vrot.slane %v1599_v26, %v8715_v35 }
 0x1f6   :  { %7908 = vmatprep.subr.bf16.mxu1 %v8517_v32  ;;  %v8562_v32 = vld [vmem:[%s10523_s1 + $0x11f8] sm:$0xff]  }
 0x1f8   :  { %7887 = vmatpush3.bf16.msra.mxu0 %v8518_v33  ;;  %v10415_v33 = vrot.slane %v1592_v28, %v8715_v35 }
 0x1f9   :  { %7888 = vmatprep.subr.bf16.mxu0 %v8520_v36  ;;  %7909 = vmatpush3.bf16.msra.mxu1 %v8519_v34  ;;  %v1629_v34 = vrot.slane %v1607_v30, %v8715_v35  ;;  %v8563_v36 = vld [vmem:[%s10523_s1 + $0x1138] sm:$0xff]  }
 0x1fa   :  { %7910 = vmatprep.subr.bf16.mxu1 %v8521_v37  ;;  %v1608_v37 = vcombine.high %v10415_v33, %v10415_v33 }
 0x1fc   :  { %7889 = vmatpush3.bf16.msra.mxu0 %v8522_v38  ;;  %v1637_v38 = vcombine.high %v1615_v31, %v1615_v31 }
 0x1fd   :  { %7890 = vmatprep.subr.bf16.mxu0 %v8524_v40  ;;  %7911 = vmatpush3.bf16.msra.mxu1 %v8523_v39  ;;  %v8565_v39 = vld [vmem:[%s10523_s1 + $0x1170] sm:$0xff]   ;;  %v1639_v40 = vcombine.high %v1629_v34, %v1629_v34 }
 0x1fe   :  { %7912 = vmatprep.subr.bf16.mxu1 %v8525_v41 }
 0x200   :  { %7891 = vmatpush3.bf16.msra.mxu0 %v8526_v42  ;;  %v8564_v42 = vld [vmem:[%s10523_s1 + $0x11b8] sm:$0xff]  }
 0x201   :  { %7920 = vmatprep.subr.bf16.mxu0 %v8529_v45  ;;  %7913 = vmatpush3.bf16.msra.mxu1 %v8527_v43  ;;  %v1636_v43 = vrot.slane %v1608_v37, %v8715_v35 }
 0x202   :  { %7942 = vmatprep.subr.bf16.mxu1 %v8530_v46 }
 0x203   :  { %v7628_v51 = vpop.f32.mrf.mxu0  ;;  %6402 = vmatmul.mubr.bf16.vlgmr.msra.gmra.mxu0 %v1573_v44  ;;  %v8566_v44 = vld [vmem:[%s10523_s1 + $0x11f0] sm:$0xff]  }
 0x204   :  { %v7650_v54 = vpop.f32.mrf.mxu1  ;;  %7921 = vmatpush3.bf16.msra.mxu0 %v8531_v47  ;;  %6442 = vmatmul.mubr.bf16.vlgmr.msra.gmra.mxu1 %v1589_v49  ;;  %v8567_v47 = vld [vmem:[%s10523_s1 + $0x1130] sm:$0xff]  }
 0x205   :  { %v7629_v55 = vpop.f32.mrf.mxu0  ;;  %7922 = vmatprep.subr.bf16.mxu0 %v8533_v50  ;;  %7943 = vmatpush3.bf16.msra.mxu1 %v8532_v48  ;;  %v1640_v48 = vcombine.high %v1636_v43, %v1636_v43  ;;  %v8569_v50 = vld [vmem:[%s10523_s1 + $0x1168] sm:$0xff]  }
 0x206   :  { %v7630_v57 = vadd.f32 %v7629_v55, %v7628_v51  ;;  %v7651_v59 = vpop.f32.mrf.mxu1  ;;  %7944 = vmatprep.subr.bf16.mxu1 %v8534_v52  ;;  %6481 = vmatprep.mubr.bf16.mxu0 %v1629_v34 }
 0x207   :  { %v7631_v60 = vpop.f32.mrf.mxu0  ;;  %v7652_v63 = vadd.f32 %v7651_v59, %v7650_v54  ;;  %6521 = vmatprep.mubr.bf16.mxu1 %v1639_v40  ;;  %v8571_v59 = vld [vmem:[%s10523_s1 + $0x1128] sm:$0xff]  }
 0x208   :  { %v5924_v62 = vadd.f32 %v7630_v57, %v10240_v21  ;;  %v7653_v1 = vpop.f32.mrf.mxu1  ;;  %7923 = vmatpush3.bf16.msra.mxu0 %v8535_v53  ;;  %v8556_v21 = vld [vmem:[%s10523_s1 + $0x1088] sm:$0xff]   ;;  %v8568_v53 = vld [vmem:[%s10523_s1 + $0x11b0] sm:$0xff]  }
 0x209   :  { %v7632_v2 = vpop.f32.mrf.mxu0  ;;  %7924 = vmatprep.subr.bf16.mxu0 %v8537_v58  ;;  %7945 = vmatpush3.bf16.msra.mxu1 %v8536_v56  ;;  %v8570_v56 = vld [vmem:[%s10523_s1 + $0x11e8] sm:$0xff]   ;;  %v8575_v1 = vld [vmem:[%s10523_s1 + $0x1120] sm:$0xff]  }
 0x20a   :  { %v10341_v4 = vadd.f32 %v7652_v63, %v5924_v62  ;;  %v7654_v6 = vpop.f32.mrf.mxu1  ;;  %7946 = vmatprep.subr.bf16.mxu1 %v8538_v61  ;;  %v8573_v61 = vld [vmem:[%s10523_s1 + $0x1160] sm:$0xff]   ;;  %v8572_v63 = vld [vmem:[%s10523_s1 + $0x11a8] sm:$0xff]   ;;  %v8577_v2 = vld [vmem:[%s10523_s1 + $0x1158] sm:$0xff]  }
 0x20b   :  { %v8581_v6 = vld [vmem:[%s10523_s1 + $0x1150] sm:$0xff]  }
 0x20c   :  { %7925 = vmatpush3.bf16.msra.mxu0 %v8539_v0  ;;  %v8574_v0 = vld [vmem:[%s10523_s1 + $0x11e0] sm:$0xff]  }
 0x20d   :  { %7926 = vmatprep.subr.bf16.mxu0 %v8541_v5  ;;  %7947 = vmatpush3.bf16.msra.mxu1 %v8540_v3  ;;  %v8576_v3 = vld [vmem:[%s10523_s1 + $0x11a0] sm:$0xff]   ;;  %v8579_v5 = vld [vmem:[%s10523_s1 + $0x1118] sm:$0xff]  }
 0x20e   :  { %7948 = vmatprep.subr.bf16.mxu1 %v8542_v7  ;;  %v8580_v7 = vld [vmem:[%s10523_s1 + $0x1198] sm:$0xff]  }
 0x210   :  { %7927 = vmatpush3.bf16.msra.mxu0 %v8543_v8  ;;  %v8582_v8 = vld [vmem:[%s10523_s1 + $0x11d0] sm:$0xff]  }
 0x211   :  { %7928 = vmatprep.subr.bf16.mxu0 %v8545_v10  ;;  %7949 = vmatpush3.bf16.msra.mxu1 %v8544_v9  ;;  %v8583_v9 = vld [vmem:[%s10523_s1 + $0x1110] sm:$0xff]   ;;  %v8585_v10 = vld [vmem:[%s10523_s1 + $0x1148] sm:$0xff]  }
 0x212   :  { %7950 = vmatprep.subr.bf16.mxu1 %v8546_v11  ;;  %v8584_v11 = vld [vmem:[%s10523_s1 + $0x1190] sm:$0xff]  }
 0x214   :  { %7929 = vmatpush3.bf16.msra.mxu0 %v8547_v12  ;;  %v8586_v12 = vld [vmem:[%s10523_s1 + $0x11c8] sm:$0xff]  }
 0x215   :  { %7930 = vmatprep.subr.bf16.mxu0 %v8549_v14  ;;  %7951 = vmatpush3.bf16.msra.mxu1 %v8548_v13  ;;  %v8587_v13 = vld [vmem:[%s10523_s1 + $0x1108] sm:$0xff]   ;;  %v8589_v14 = vld [vmem:[%s10523_s1 + $0x1140] sm:$0xff]  }
 0x216   :  { %7952 = vmatprep.subr.bf16.mxu1 %v8550_v15  ;;  %v8588_v15 = vld [vmem:[%s10523_s1 + $0x1188] sm:$0xff]  }
 0x218   :  { %7931 = vmatpush3.bf16.msra.mxu0 %v8551_v16  ;;  %v8590_v16 = vld [vmem:[%s10523_s1 + $0x11c0] sm:$0xff]  }
 0x219   :  { %7932 = vmatprep.subr.bf16.mxu0 %v8553_v18  ;;  %7953 = vmatpush3.bf16.msra.mxu1 %v8552_v17  ;;  %v8591_v17 = vld [vmem:[%s10523_s1 + $0x1100] sm:$0xff]   ;;  %v1622_v18 = vrot.slane %v10415_v33, %v8715_v35 }
 0x21a   :  { %7954 = vmatprep.subr.bf16.mxu1 %v8554_v19  ;;  %v8592_v19 = vld [vmem:[%s10523_s1 + $0x1180] sm:$0xff]  }
 0x21c   :  { %7933 = vmatpush3.bf16.msra.mxu0 %v8555_v20  ;;  %v1638_v20 = vcombine.high %v1622_v18, %v1622_v18 }
 0x21d   :  { %7934 = vmatprep.subr.bf16.mxu0 %v8557_v22  ;;  %7955 = vmatpush3.bf16.msra.mxu1 %v8556_v21 }
 0x21e   :  { %7956 = vmatprep.subr.bf16.mxu1 %v8558_v23 }
 0x220   :  { %7935 = vmatpush3.bf16.msra.mxu0 %v8559_v24 }
 0x221   :  { %7964 = vmatprep.subr.bf16.mxu0 %v8561_v27  ;;  %7957 = vmatpush3.bf16.msra.mxu1 %v8560_v29 }
 0x222   :  { %7986 = vmatprep.subr.bf16.mxu1 %v8562_v32 }
 0x223   :  { %v7672_v41 = vpop.f32.mrf.mxu0  ;;  %6482 = vmatmul.mubr.bf16.vlgmr.msra.gmra.mxu0 %v1615_v31 }
 0x224   :  { %v7694_v45 = vpop.f32.mrf.mxu1  ;;  %7965 = vmatpush3.bf16.msra.mxu0 %v8563_v36  ;;  %6522 = vmatmul.mubr.bf16.vlgmr.msra.gmra.mxu1 %v1637_v38 }
 0x225   :  { %v7673_v46 = vpop.f32.mrf.mxu0  ;;  %7966 = vmatprep.subr.bf16.mxu0 %v8565_v39  ;;  %7987 = vmatpush3.bf16.msra.mxu1 %v8564_v42 }
 0x226   :  { %v7674_v49 = vadd.f32 %v7673_v46, %v7672_v41  ;;  %v7695_v51 = vpop.f32.mrf.mxu1  ;;  %6561 = vmatprep.mubr.bf16.mxu0 %v1636_v43  ;;  %7988 = vmatprep.subr.bf16.mxu1 %v8566_v44 }
 0x227   :  { %v7675_v52 = vpop.f32.mrf.mxu0  ;;  %v7696_v55 = vadd.f32 %v7695_v51, %v7694_v45  ;;  %6601 = vmatprep.mubr.bf16.mxu1 %v1640_v48 }
 0x228   :  { %v6004_v54 = vadd.f32 %v7674_v49, %v10341_v4  ;;  %v7697_v57 = vpop.f32.mrf.mxu1  ;;  %7967 = vmatpush3.bf16.msra.mxu0 %v8567_v47  ;;  %v8578_v4 = vld [vmem:[%s10523_s1 + $0x11d8] sm:$0xff]  }
 0x229   :  { %v7676_v58 = vpop.f32.mrf.mxu0  ;;  %7968 = vmatprep.subr.bf16.mxu0 %v8569_v50  ;;  %7989 = vmatpush3.bf16.msra.mxu1 %v8568_v53  ;;  %v10_v57 = vstv %s10526_s4 }
 0x22a   :  { %v6044_v60 = vadd.f32 %v7696_v55, %v6004_v54  ;;  %v7698_v62 = vpop.f32.mrf.mxu1  ;;  %7990 = vmatprep.subr.bf16.mxu1 %v8570_v56  ;;  %11 = vst [vmem:[#allocation2] sm:$0x1] %v10_v57 }
 0x22c   :  { %7969 = vmatpush3.bf16.msra.mxu0 %v8571_v59 }
 0x22d   :  { %7970 = vmatprep.subr.bf16.mxu0 %v8573_v61  ;;  %7991 = vmatpush3.bf16.msra.mxu1 %v8572_v63 }
 0x22e   :  { %7992 = vmatprep.subr.bf16.mxu1 %v8574_v0 }
 0x230   :  { %7971 = vmatpush3.bf16.msra.mxu0 %v8575_v1 }
 0x231   :  { %7972 = vmatprep.subr.bf16.mxu0 %v8577_v2  ;;  %7993 = vmatpush3.bf16.msra.mxu1 %v8576_v3 }
 0x232   :  { %7994 = vmatprep.subr.bf16.mxu1 %v8578_v4 }
 0x234   :  { %7973 = vmatpush3.bf16.msra.mxu0 %v8579_v5 }
 0x235   :  { %7974 = vmatprep.subr.bf16.mxu0 %v8581_v6  ;;  %7995 = vmatpush3.bf16.msra.mxu1 %v8580_v7 }
 0x236   :  { %7996 = vmatprep.subr.bf16.mxu1 %v8582_v8 }
 0x238   :  { %7975 = vmatpush3.bf16.msra.mxu0 %v8583_v9 }
 0x239   :  { %7976 = vmatprep.subr.bf16.mxu0 %v8585_v10  ;;  %7997 = vmatpush3.bf16.msra.mxu1 %v8584_v11 }
 0x23a   :  { %7998 = vmatprep.subr.bf16.mxu1 %v8586_v12 }
 0x23c   :  { %7977 = vmatpush3.bf16.msra.mxu0 %v8587_v13 }
 0x23d   :  { %7978 = vmatprep.subr.bf16.mxu0 %v8589_v14  ;;  %7999 = vmatpush3.bf16.msra.mxu1 %v8588_v15 }
 0x23e   :  { %8000 = vmatprep.subr.bf16.mxu1 %v8590_v16 }
 0x240   :  { %7979 = vmatpush3.bf16.msra.mxu0 %v8591_v17 }
 0x241   :  { %8001 = vmatpush3.bf16.msra.mxu1 %v8592_v19 }
 0x243   :  { %v7716_v21 = vpop.f32.mrf.mxu0  ;;  %6562 = vmatmul.mubr.bf16.vlgmr.msra.gmra.mxu0 %v1622_v18 }
 0x244   :  { %v7738_v22 = vpop.f32.mrf.mxu1  ;;  %6602 = vmatmul.mubr.bf16.vlgmr.msra.gmra.mxu1 %v1638_v20 }
 0x245   :  { %v7717_v23 = vpop.f32.mrf.mxu0 }
 0x246   :  { %v7718_v24 = vadd.f32 %v7717_v23, %v7716_v21  ;;  %v7739_v25 = vpop.f32.mrf.mxu1 }
 0x247   :  { %v7719_v26 = vpop.f32.mrf.mxu0  ;;  %v7740_v28 = vadd.f32 %v7739_v25, %v7738_v22 }
 0x248   :  { %v6084_v27 = vadd.f32 %v7718_v24, %v6044_v60  ;;  %v7741_v35 = vpop.f32.mrf.mxu1 }
 0x249   :  { %v7720_v29 = vpop.f32.mrf.mxu0 }
 0x24a   :  { %v6124_v30 = vadd.f32 %v7740_v28, %v6084_v27  ;;  %v7742_v31 = vpop.f32.mrf.mxu1 }
 0x263   :  { %v7760_v32 = vpop.f32.mrf.mxu0 }
 0x264   :  { %v7782_v33 = vpop.f32.mrf.mxu1 }
 0x265   :  { %v7761_v34 = vpop.f32.mrf.mxu0 }
 0x266   :  { %v7762_v36 = vadd.f32 %v7761_v34, %v7760_v32  ;;  %v7783_v37 = vpop.f32.mrf.mxu1 }
 0x267   :  { %v7763_v38 = vpop.f32.mrf.mxu0  ;;  %v7784_v40 = vadd.f32 %v7783_v37, %v7782_v33 }
 0x268   :  { %v6164_v39 = vadd.f32 %v7762_v36, %v6124_v30  ;;  %v7785_v41 = vpop.f32.mrf.mxu1 }
 0x269   :  { %v7764_v42 = vpop.f32.mrf.mxu0 }
 0x26a   :  { %v6204_v43 = vadd.f32 %v7784_v40, %v6164_v39  ;;  %v7786_v44 = vpop.f32.mrf.mxu1 }
 0x283   :  { %v7804_v45 = vpop.f32.mrf.mxu0 }
 0x284   :  { %v7826_v46 = vpop.f32.mrf.mxu1 }
 0x285   :  { %v7805_v47 = vpop.f32.mrf.mxu0 }
 0x286   :  { %v7806_v48 = vadd.f32 %v7805_v47, %v7804_v45  ;;  %v7827_v49 = vpop.f32.mrf.mxu1  ;;  %v7215_v47 = vld [vmem:[#allocation2] ss:$0 sm:$0xff] }
 0x287   :  { %v7807_v50 = vpop.f32.mrf.mxu0  ;;  %v7828_v52 = vadd.f32 %v7827_v49, %v7826_v46 }
 0x288   :  { %v6244_v51 = vadd.f32 %v7806_v48, %v6204_v43  ;;  %v7829_v53 = vpop.f32.mrf.mxu1  ;;  %v7214_v43 = vld [vmem:[%s10527_s3] ss:$0 sm:$0xff] }
 0x289   :  { %v7808_v54 = vpop.f32.mrf.mxu0 }
 0x28a   :  { %v6284_v55 = vadd.f32 %v7828_v52, %v6244_v51  ;;  %v7830_v56 = vpop.f32.mrf.mxu1 }
 0x2a3   :  { %v7848_v58 = vpop.f32.mrf.mxu0 }
 0x2a4   :  { %v7870_v59 = vpop.f32.mrf.mxu1 }
 0x2a5   :  { %v7849_v60 = vpop.f32.mrf.mxu0 }
 0x2a6   :  { %v7850_v61 = vadd.f32 %v7849_v60, %v7848_v58  ;;  %v7871_v62 = vpop.f32.mrf.mxu1 }
 0x2a7   :  { %v7851_v63 = vpop.f32.mrf.mxu0  ;;  %v7872_v1 = vadd.f32 %v7871_v62, %v7870_v59 }
 0x2a8   :  { %v6324_v0 = vadd.f32 %v7850_v61, %v6284_v55  ;;  %v7873_v2 = vpop.f32.mrf.mxu1 }
 0x2a9   :  { %v7852_v3 = vpop.f32.mrf.mxu0 }
 0x2aa   :  { %v6364_v4 = vadd.f32 %v7872_v1, %v6324_v0  ;;  %v7874_v5 = vpop.f32.mrf.mxu1 }
 0x2c3   :  { %v7892_v6 = vpop.f32.mrf.mxu0 }
 0x2c4   :  { %v7914_v7 = vpop.f32.mrf.mxu1 }
 0x2c5   :  { %v7893_v8 = vpop.f32.mrf.mxu0 }
 0x2c6   :  { %v7915_v9 = vpop.f32.mrf.mxu1  ;;  %v7894_v22 = vadd.f32 %v7893_v8, %v7892_v6 }
 0x2c7   :  { %v7895_v10 = vpop.f32.mrf.mxu0  ;;  %v7916_v24 = vadd.f32 %v7915_v9, %v7914_v7 }
 0x2c8   :  { %v7917_v11 = vpop.f32.mrf.mxu1  ;;  %v6404_v23 = vadd.f32 %v7894_v22, %v6364_v4 }
 0x2c9   :  { %v7896_v12 = vpop.f32.mrf.mxu0 }
 0x2ca   :  { %v7918_v13 = vpop.f32.mrf.mxu1  ;;  %v6444_v26 = vadd.f32 %v7916_v24, %v6404_v23 }
 0x2e3   :  { %v7936_v14 = vpop.f32.mrf.mxu0 }
 0x2e4   :  { %v7958_v15 = vpop.f32.mrf.mxu1 }
 0x2e5   :  { %v7937_v16 = vpop.f32.mrf.mxu0 }
 0x2e6   :  { %v7959_v17 = vpop.f32.mrf.mxu1  ;;  %v7938_v25 = vadd.f32 %v7937_v16, %v7936_v14 }
 0x2e7   :  { %v7939_v18 = vpop.f32.mrf.mxu0  ;;  %v7960_v28 = vadd.f32 %v7959_v17, %v7958_v15 }
 0x2e8   :  { %v7961_v19 = vpop.f32.mrf.mxu1  ;;  %v6484_v27 = vadd.f32 %v7938_v25, %v6444_v26 }
 0x2e9   :  { %v7940_v20 = vpop.f32.mrf.mxu0 }
 0x2ea   :  { %v7962_v21 = vpop.f32.mrf.mxu1  ;;  %v6524_v31 = vadd.f32 %v7960_v28, %v6484_v27 }
 0x303   :  { %v7980_v35 = vpop.f32.mrf.mxu0 }
 0x304   :  { %v8002_v29 = vpop.f32.mrf.mxu1 }
 0x305   :  { %v7981_v30 = vpop.f32.mrf.mxu0 }
 0x306   :  { %v7982_v32 = vadd.f32 %v7981_v30, %v7980_v35  ;;  %v8003_v33 = vpop.f32.mrf.mxu1 }
 0x307   :  { %v7983_v34 = vpop.f32.mrf.mxu0  ;;  %v8004_v37 = vadd.f32 %v8003_v33, %v8002_v29 }
 0x308   :  { %v6564_v36 = vadd.f32 %v7982_v32, %v6524_v31  ;;  %v8005_v38 = vpop.f32.mrf.mxu1 }
 0x309   :  { %v7984_v39 = vpop.f32.mrf.mxu0 }
 0x30a   :  { %v6604_v40 = vadd.f32 %v8004_v37, %v6564_v36  ;;  %v8006_v41 = vpop.f32.mrf.mxu1 }
 0x30c   :  { %v6609_v42 = vmul.f32 0.2, %v6604_v40 }
 0x30e   :  { %v6610_v44 = vmax.f32 %v6604_v40, %v6609_v42 }
 0x310   :  { %v6618_v45 = vmul.f32 %v7214_v43, %v6610_v44 }
 0x312   :  { %v6620_v46 = vsel %vm6619_vm0, %v6618_v45, 0.0 }
 0x313   :  { %6621 = vadd.xlane.f32.xlu0 %v6620_v46 }
 0x39c   :  { %v6622_v48 = vpop.xlane.xlu0 %6621 }
 0x39d   :  { %v6630_v49 = vadd.f32 %v7215_v47, %v6622_v48 }
 0x39f   :  { %6632 = vst.msk [vmem:[%s10528_s5] sm:$0x3] %vm6631_vm1, %v6630_v49 }

</bundles_post_ra>
